<compile_context>
chip_gen: v7x
topology: tpu7x:2x2x1
jax: 0.10.0
libtpu: 0.0.40
codegen_flags: <defaults>
</compile_context>

<pallas_src>
import math
from functools import partial

import jax
import jax.numpy as jnp
from jax.experimental import pallas as pl
from jax.experimental.pallas import tpu as pltpu


# ----------------------------------------------------------------------------
# Fused forward kernel: TB sets per grid step, all layers inside.
# ----------------------------------------------------------------------------
def _set_transformer_kernel(x_ref, seedq_ref, wqkv_ref, bqkv_ref, wo_ref, bo_ref,
                            lin_w_ref, lin_b_ref, out_ref,
                            *, num_heads, n_enc, n_dec, n_per_set):
    H = num_heads
    N = n_per_set
    Dh = wo_ref.shape[-1]
    hd = Dh // H
    S = seedq_ref.shape[0]
    TB = x_ref.shape[0] // N
    scale = 1.0 / math.sqrt(Dh)                 # classic impl scales by sqrt(dim_V)

    def attend(q_h, k_h, v_h):
        # q_h: (TB, Nq, hd), k_h/v_h: (TB, Nk, hd) -- single leading batch dim.
        logits = jnp.einsum("bqd,bkd->bqk", q_h, k_h,
                            preferred_element_type=jnp.float32) * scale
        m = jnp.max(logits, axis=-1, keepdims=True)
        p = jnp.exp(logits - m)                                        # f32 softmax
        a = p * pl.reciprocal(jnp.sum(p, axis=-1, keepdims=True), approx=True)
        return q_h + jnp.einsum("bqk,bkd->bqd", a, v_h,
                                preferred_element_type=jnp.float32)    # per-head residual

    def out_proj(o2, li):                        # O + relu(fc_o(O))
        return o2 + jax.nn.relu(
            jnp.dot(o2, wo_ref[li], preferred_element_type=jnp.float32) + bo_ref[li])

    def sab(h2, nq, li):
        # fused QKV: one (TB*nq, Dh) @ (Dh, 3*Dh) MXU push
        qkv = jnp.dot(h2, wqkv_ref[li],
                      preferred_element_type=jnp.float32) + bqkv_ref[li]
        qkv3 = qkv.reshape(TB, nq, 3 * Dh)       # leading-dim split only (layout-free)
        heads = []
        for h in range(H):
            q_h = qkv3[:, :, h * hd:(h + 1) * hd]
            k_h = qkv3[:, :, Dh + h * hd:Dh + (h + 1) * hd]
            v_h = qkv3[:, :, 2 * Dh + h * hd:2 * Dh + (h + 1) * hd]
            heads.append(attend(q_h, k_h, v_h))
        o = jnp.concatenate(heads, axis=-1).reshape(TB * nq, Dh)
        return out_proj(o, li)

    def pma(h2, li):
        # Q = fc_q(seed) was precomputed host-side (batch independent); only K/V here.
        wkv = wqkv_ref[li][:, Dh:]
        bkv = bqkv_ref[li][:, Dh:]
        kv = jnp.dot(h2, wkv, preferred_element_type=jnp.float32) + bkv
        kv3 = kv.reshape(TB, N, 2 * Dh)
        sq = jnp.broadcast_to(seedq_ref[...].reshape(1, S, Dh), (TB, S, Dh))
        heads = []
        for h in range(H):
            q_h = sq[:, :, h * hd:(h + 1) * hd]
            k_h = kv3[:, :, h * hd:(h + 1) * hd]
            v_h = kv3[:, :, Dh + h * hd:Dh + (h + 1) * hd]
            heads.append(attend(q_h, k_h, v_h))
        o = jnp.concatenate(heads, axis=-1).reshape(TB * S, Dh)
        return out_proj(o, li)

    h2 = x_ref[...]                              # (TB*N, Dh): lane-padded input rows
    li = 0
    for _ in range(n_enc):                       # encoder SABs: MAB(h, h)
        h2 = sab(h2, N, li); li += 1
    h2 = pma(h2, li); li += 1                    # PMA: MAB(seed, h)
    for _ in range(n_dec):                       # decoder SABs
        h2 = sab(h2, S, li); li += 1

    y = jnp.dot(h2, lin_w_ref[...],
                preferred_element_type=jnp.float32) + lin_b_ref[...]   # (TB*S, Do)
    Do = y.shape[-1]
    y3 = y.reshape(TB, S, Do)                    # leading-dim split only
    # lane-dense store: merge (S, Do) into one (S*Do)-lane row per set.
    out_ref[...] = jnp.concatenate([y3[:, s, :] for s in range(S)],
                                   axis=-1).astype(out_ref.dtype)


# ----------------------------------------------------------------------------
# Wrapper: single pallas_call for the whole model
# ----------------------------------------------------------------------------
def _pick_batch_tile(B):
    # Largest divisor of B that keeps >= 2 grid steps (v7x megacore), capped.
    best = 1
    for d in range(1, min(B, 32) + 1):
        if B % d == 0 and (B // d) >= 2:
            best = d
    return best if B >= 2 else B


def set_transformer_forward(params, X, num_heads, *, batch_tile=None):
    B, N, dim_input = X.shape
    seed = params["pma_seed"]                    # (1, S, Dh)
    S, Dh = seed.shape[1], seed.shape[2]
    Do = params["lin_w"].shape[1]                # weights stored (Din, Dout)
    assert dim_input <= Dh, "TODO(synk): dim_input > dim_hidden not supported"

    TB = _pick_batch_tile(B) if batch_tile is None else batch_tile
    assert B % TB == 0
    n_blocks = B // TB

    mabs = list(params["enc"]) + [params["pma_mab"]] + list(params["dec"])
    n_enc = len(params["enc"])
    n_dec = len(params["dec"])

    # ---- pack the per-MAB params into 4 stacked slabs -----------------------
    wqkv, bqkv, wo, bo = [], [], [], []
    for p in mabs:
        w = jnp.concatenate([p["wq"], p["wk"], p["wv"]], axis=1)       # (Din, 3*Dh)
        if w.shape[0] < Dh:                                            # first SAB: pad Din -> Dh
            w = jnp.pad(w, ((0, Dh - w.shape[0]), (0, 0)))
        wqkv.append(w)
        bqkv.append(jnp.concatenate([p["bq"], p["bk"], p["bv"]], axis=1))
        wo.append(p["wo"]); bo.append(p["bo"])
    wqkv = jnp.stack(wqkv)        # (n_mab, Dh, 3*Dh)
    bqkv = jnp.stack(bqkv)        # (n_mab, 1, 3*Dh)
    wo = jnp.stack(wo)            # (n_mab, Dh, Dh)
    bo = jnp.stack(bo)            # (n_mab, 1, Dh)

    # PMA query is batch independent: precompute fc_q(seed) on the host.
    pma = params["pma_mab"]
    seed_q = seed[0] @ pma["wq"] + pma["bq"]     # (S, Dh)

    # ---- lane-padded, row-flattened input -----------------------------------
    Xp = jnp.pad(X, ((0, 0), (0, 0), (0, Dh - dim_input))) if dim_input < Dh else X
    X2 = Xp.reshape(B * N, Dh)

    def resident(a):                             # whole array, same block every step
        zeros = (0,) * a.ndim
        return pl.BlockSpec(a.shape, lambda b: zeros)

    kernel = partial(_set_transformer_kernel, num_heads=num_heads,
                     n_enc=n_enc, n_dec=n_dec, n_per_set=N)

    out2 = pl.pallas_call(
        kernel,
        out_shape=jax.ShapeDtypeStruct((B, S * Do), X.dtype),
        grid=(n_blocks,),
        in_specs=[pl.BlockSpec((TB * N, Dh), lambda b: (b, 0)),
                  resident(seed_q), resident(wqkv), resident(bqkv),
                  resident(wo), resident(bo),
                  resident(params["lin_w"]), resident(params["lin_b"])],
        out_specs=pl.BlockSpec((TB, S * Do), lambda b: (b, 0)),
        compiler_params=pltpu.CompilerParams(dimension_semantics=("parallel",)),
    )(X2, seed_q, wqkv, bqkv, wo, bo, params["lin_w"], params["lin_b"])

    return out2.reshape(B, S, Do)


# ----------------------------------------------------------------------------
# Parameter construction (deterministic, PyTorch-Linear-like init,
# weights stored pre-transposed as (Din, Dout))
# ----------------------------------------------------------------------------
def _init_linear(key, d_in, d_out):
    k1, k2 = jax.random.split(key)
    bound = 1.0 / math.sqrt(d_in)
    w = jax.random.uniform(k1, (d_in, d_out), jnp.float32, -bound, bound)
    b = jax.random.uniform(k2, (1, d_out), jnp.float32, -bound, bound)
    return w, b


def _init_mab(key, dim_q, dim_k, dim_v):
    kq, kk, kv, ko = jax.random.split(key, 4)
    wq, bq = _init_linear(kq, dim_q, dim_v)
    wk, bk = _init_linear(kk, dim_k, dim_v)
    wv, bv = _init_linear(kv, dim_k, dim_v)
    wo, bo = _init_linear(ko, dim_v, dim_v)
    return dict(wq=wq, bq=bq, wk=wk, bk=bk, wv=wv, bv=bv, wo=wo, bo=bo)


def init_set_transformer(key, dim_input, num_outputs, dim_output,
                         num_enc_SABs, num_dec_SABs, dim_hidden):
    keys = jax.random.split(key, 4 + num_enc_SABs + num_dec_SABs)
    params = {}
    # encoder: SAB(dim_input, dim_hidden) then num_enc_SABs x SAB(hidden, hidden)
    params["enc"] = [_init_mab(keys[0], dim_input, dim_input, dim_hidden)]
    for i in range(num_enc_SABs):
        params["enc"].append(_init_mab(keys[1 + i], dim_hidden, dim_hidden, dim_hidden))
    # decoder: PMA(hidden, heads, num_outputs), num_dec_SABs x SAB, Linear
    k_seed = keys[1 + num_enc_SABs]
    bound = math.sqrt(6.0 / (num_outputs + dim_hidden))   # xavier_uniform on (1, S, D)
    params["pma_seed"] = jax.random.uniform(
        k_seed, (1, num_outputs, dim_hidden), jnp.float32, -bound, bound)
    params["pma_mab"] = _init_mab(keys[2 + num_enc_SABs], dim_hidden, dim_hidden, dim_hidden)
    params["dec"] = []
    for i in range(num_dec_SABs):
        params["dec"].append(_init_mab(keys[3 + num_enc_SABs + i],
                                       dim_hidden, dim_hidden, dim_hidden))
    params["lin_w"], params["lin_b"] = _init_linear(keys[-1], dim_hidden, dim_output)
    return params


# ----------------------------------------------------------------------------
# Pure-JAX reference (mirrors the PyTorch MAB exactly) for validation
# ----------------------------------------------------------------------------
def _mab_ref(q, k, p, num_heads):
    Q = q @ p["wq"] + p["bq"]
    K = k @ p["wk"] + p["bk"]
    V = k @ p["wv"] + p["bv"]
    B, Nq, Dv = Q.shape
    Nk = K.shape[1]
    hd = Dv // num_heads
    Qh = Q.reshape(B, Nq, num_heads, hd)
    Kh = K.reshape(B, Nk, num_heads, hd)
    Vh = V.reshape(B, Nk, num_heads, hd)
    logits = jnp.einsum("bqhd,bkhd->bhqk", Qh, Kh) / math.sqrt(Dv)
    a = jax.nn.softmax(logits, axis=-1)
    Oh = Qh + jnp.einsum("bhqk,bkhd->bqhd", a, Vh)
    O = Oh.reshape(B, Nq, Dv)
    return O + jax.nn.relu(O @ p["wo"] + p["bo"])


def _ref_forward(params, X, num_heads):
    h = X
    for p in params["enc"]:
        h = _mab_ref(h, h, p, num_heads)
    B = X.shape[0]
    S = jnp.broadcast_to(params["pma_seed"], (B,) + params["pma_seed"].shape[1:])
    h = _mab_ref(S, h, params["pma_mab"], num_heads)
    for p in params["dec"]:
        h = _mab_ref(h, h, p, num_heads)
    return h @ params["lin_w"] + params["lin_b"]


# ----------------------------------------------------------------------------
if __name__ == "__main__":
    # Module config (ln=False, the default)
    dim_input, num_outputs, dim_output = 16, 4, 8
    num_enc_SABs, num_dec_SABs = 1, 1
    dim_hidden, num_heads = 32, 4

    B, N = 16, 8                      # 16 sets of 8 elements -> 2 grid steps of TB=8
    key = jax.random.PRNGKey(0)
    k_x, k_p = jax.random.split(key)
    X = jax.random.normal(k_x, (B, N, dim_input), jnp.float32)

    params = init_set_transformer(k_p, dim_input, num_outputs, dim_output,
                                  num_enc_SABs, num_dec_SABs, dim_hidden)

    out = set_transformer_forward(params, X, num_heads)
    out = jax.block_until_ready(out)
    assert out.shape == (B, num_outputs, dim_output), out.shape

    ref = jax.block_until_ready(_ref_forward(params, X, num_heads))
    err = float(jnp.max(jnp.abs(out - ref)))
    assert jnp.allclose(out, ref, rtol=1e-2, atol=1e-2), err

    print("KERNEL_OK")
</pallas_src>

<mosaic_0001>
module attributes {stable_mosaic.version = 11 : i64} {
  func.func @_set_transformer_kernel(%arg0: i32, %arg1: memref<64x32xf32, #tpu.memory_space<vmem>>, %arg2: memref<4x32xf32, #tpu.memory_space<vmem>>, %arg3: memref<4x32x96xf32, #tpu.memory_space<vmem>>, %arg4: memref<4x1x96xf32, #tpu.memory_space<vmem>>, %arg5: memref<4x32x32xf32, #tpu.memory_space<vmem>>, %arg6: memref<4x1x32xf32, #tpu.memory_space<vmem>>, %arg7: memref<32x8xf32, #tpu.memory_space<vmem>>, %arg8: memref<1x8xf32, #tpu.memory_space<vmem>>, %arg9: memref<8x32xf32, #tpu.memory_space<vmem>>) attributes {dimension_semantics = [#tpu.dimension_semantics<parallel>], iteration_bounds = array<i64: 2>, scalar_prefetch = 0 : i64, scratch_operands = 0 : i64, tpu.core_type = #tpu.core_type<tc>, window_params = [{transform_indices = @transform_0, window_bounds = array<i64: 64, 32>}, {pipeline_mode = #tpu.pipeline_mode<synchronous>, transform_indices = @transform_1, window_bounds = array<i64: 4, 32>}, {pipeline_mode = #tpu.pipeline_mode<synchronous>, transform_indices = @transform_2, window_bounds = array<i64: 4, 32, 96>}, {pipeline_mode = #tpu.pipeline_mode<synchronous>, transform_indices = @transform_3, window_bounds = array<i64: 4, 1, 96>}, {pipeline_mode = #tpu.pipeline_mode<synchronous>, transform_indices = @transform_4, window_bounds = array<i64: 4, 32, 32>}, {pipeline_mode = #tpu.pipeline_mode<synchronous>, transform_indices = @transform_5, window_bounds = array<i64: 4, 1, 32>}, {pipeline_mode = #tpu.pipeline_mode<synchronous>, transform_indices = @transform_6, window_bounds = array<i64: 32, 8>}, {pipeline_mode = #tpu.pipeline_mode<synchronous>, transform_indices = @transform_7, window_bounds = array<i64: 1, 8>}, {transform_indices = @transform_8, window_bounds = array<i64: 8, 32>}]} {
    %c0 = arith.constant 0 : index
    %c0_0 = arith.constant 0 : index
    %0 = vector.load %arg1[%c0, %c0_0] : memref<64x32xf32, #tpu.memory_space<vmem>>, vector<64x32xf32>
    %c0_1 = arith.constant 0 : index
    %c0_2 = arith.constant 0 : index
    %c0_3 = arith.constant 0 : index
    %1 = vector.load %arg3[%c0_1, %c0_2, %c0_3] : memref<4x32x96xf32, #tpu.memory_space<vmem>>, vector<1x32x96xf32>
    %2 = vector.shape_cast %1 : vector<1x32x96xf32> to vector<32x96xf32>
    %cst = arith.constant dense<0.000000e+00> : vector<64x96xf32>
    %3 = tpu.matmul %0, %2, %cst {dimension_numbers = #tpu.dot_dimension_numbers<[1], [0], [0], [1], [0, 0, 1, 1], [], []>} : vector<64x32xf32>, vector<32x96xf32>, vector<64x96xf32> -> vector<64x96xf32>
    %c0_4 = arith.constant 0 : index
    %c0_5 = arith.constant 0 : index
    %c0_6 = arith.constant 0 : index
    %4 = vector.load %arg4[%c0_4, %c0_5, %c0_6] : memref<4x1x96xf32, #tpu.memory_space<vmem>>, vector<1x1x96xf32>
    %5 = vector.shape_cast %4 : vector<1x1x96xf32> to vector<1x96xf32>
    %6 = vector.broadcast %5 : vector<1x96xf32> to vector<64x96xf32>
    %7 = arith.addf %3, %6 : vector<64x96xf32>
    %8 = vector.shape_cast %7 : vector<64x96xf32> to vector<8x8x96xf32>
    %9 = vector.extract_strided_slice %8 {offsets = [0, 0, 0], sizes = [8, 8, 8], strides = [1, 1, 1]} : vector<8x8x96xf32> to vector<8x8x8xf32>
    %10 = vector.extract_strided_slice %8 {offsets = [0, 0, 32], sizes = [8, 8, 8], strides = [1, 1, 1]} : vector<8x8x96xf32> to vector<8x8x8xf32>
    %11 = vector.extract_strided_slice %8 {offsets = [0, 0, 64], sizes = [8, 8, 8], strides = [1, 1, 1]} : vector<8x8x96xf32> to vector<8x8x8xf32>
    "tpu.trace_start"() <{level = 10 : i32, message = "bqd,bkd->bqk"}> : () -> ()
    %cst_7 = arith.constant dense<0.000000e+00> : vector<8x8x8xf32>
    %12 = tpu.matmul %9, %10, %cst_7 {dimension_numbers = #tpu.dot_dimension_numbers<[2], [2], [1], [1], [0, 0, 0, 1, 1, 1], [0], [0]>} : vector<8x8x8xf32>, vector<8x8x8xf32>, vector<8x8x8xf32> -> vector<8x8x8xf32>
    "tpu.trace_stop"() : () -> ()
    %cst_8 = arith.constant 0.176776692 : f32
    %13 = vector.broadcast %cst_8 : f32 to vector<8x8x8xf32>
    %14 = arith.mulf %12, %13 : vector<8x8x8xf32>
    %cst_9 = arith.constant dense<0xFF800000> : vector<8x8xf32>
    %15 = vector.multi_reduction <maximumf>, %14, %cst_9 [2] : vector<8x8x8xf32> to vector<8x8xf32>
    %16 = vector.shape_cast %15 : vector<8x8xf32> to vector<8x8x1xf32>
    %17 = vector.broadcast %16 : vector<8x8x1xf32> to vector<8x8x8xf32>
    %18 = arith.subf %14, %17 : vector<8x8x8xf32>
    %19 = math.exp %18 : vector<8x8x8xf32>
    %cst_10 = arith.constant dense<0.000000e+00> : vector<8x8xf32>
    %20 = vector.multi_reduction <add>, %19, %cst_10 [2] : vector<8x8x8xf32> to vector<8x8xf32>
    %21 = vector.shape_cast %20 : vector<8x8xf32> to vector<8x8x1xf32>
    %22 = tpu.reciprocal %21 {approx = true} : vector<8x8x1xf32> -> vector<8x8x1xf32>
    %23 = vector.broadcast %22 : vector<8x8x1xf32> to vector<8x8x8xf32>
    %24 = arith.mulf %19, %23 : vector<8x8x8xf32>
    "tpu.trace_start"() <{level = 10 : i32, message = "bqk,bkd->bqd"}> : () -> ()
    %cst_11 = arith.constant dense<0.000000e+00> : vector<8x8x8xf32>
    %25 = tpu.matmul %24, %11, %cst_11 {dimension_numbers = #tpu.dot_dimension_numbers<[2], [1], [1], [2], [0, 0, 0, 1, 1, 2], [0], [0]>} : vector<8x8x8xf32>, vector<8x8x8xf32>, vector<8x8x8xf32> -> vector<8x8x8xf32>
    "tpu.trace_stop"() : () -> ()
    %26 = arith.addf %9, %25 : vector<8x8x8xf32>
    %27 = vector.extract_strided_slice %8 {offsets = [0, 0, 8], sizes = [8, 8, 8], strides = [1, 1, 1]} : vector<8x8x96xf32> to vector<8x8x8xf32>
    %28 = vector.extract_strided_slice %8 {offsets = [0, 0, 40], sizes = [8, 8, 8], strides = [1, 1, 1]} : vector<8x8x96xf32> to vector<8x8x8xf32>
    %29 = vector.extract_strided_slice %8 {offsets = [0, 0, 72], sizes = [8, 8, 8], strides = [1, 1, 1]} : vector<8x8x96xf32> to vector<8x8x8xf32>
    "tpu.trace_start"() <{level = 10 : i32, message = "bqd,bkd->bqk"}> : () -> ()
    %cst_12 = arith.constant dense<0.000000e+00> : vector<8x8x8xf32>
    %30 = tpu.matmul %27, %28, %cst_12 {dimension_numbers = #tpu.dot_dimension_numbers<[2], [2], [1], [1], [0, 0, 0, 1, 1, 1], [0], [0]>} : vector<8x8x8xf32>, vector<8x8x8xf32>, vector<8x8x8xf32> -> vector<8x8x8xf32>
    "tpu.trace_stop"() : () -> ()
    %cst_13 = arith.constant 0.176776692 : f32
    %31 = vector.broadcast %cst_13 : f32 to vector<8x8x8xf32>
    %32 = arith.mulf %30, %31 : vector<8x8x8xf32>
    %cst_14 = arith.constant dense<0xFF800000> : vector<8x8xf32>
    %33 = vector.multi_reduction <maximumf>, %32, %cst_14 [2] : vector<8x8x8xf32> to vector<8x8xf32>
    %34 = vector.shape_cast %33 : vector<8x8xf32> to vector<8x8x1xf32>
    %35 = vector.broadcast %34 : vector<8x8x1xf32> to vector<8x8x8xf32>
    %36 = arith.subf %32, %35 : vector<8x8x8xf32>
    %37 = math.exp %36 : vector<8x8x8xf32>
    %cst_15 = arith.constant dense<0.000000e+00> : vector<8x8xf32>
    %38 = vector.multi_reduction <add>, %37, %cst_15 [2] : vector<8x8x8xf32> to vector<8x8xf32>
    %39 = vector.shape_cast %38 : vector<8x8xf32> to vector<8x8x1xf32>
    %40 = tpu.reciprocal %39 {approx = true} : vector<8x8x1xf32> -> vector<8x8x1xf32>
    %41 = vector.broadcast %40 : vector<8x8x1xf32> to vector<8x8x8xf32>
    %42 = arith.mulf %37, %41 : vector<8x8x8xf32>
    "tpu.trace_start"() <{level = 10 : i32, message = "bqk,bkd->bqd"}> : () -> ()
    %cst_16 = arith.constant dense<0.000000e+00> : vector<8x8x8xf32>
    %43 = tpu.matmul %42, %29, %cst_16 {dimension_numbers = #tpu.dot_dimension_numbers<[2], [1], [1], [2], [0, 0, 0, 1, 1, 2], [0], [0]>} : vector<8x8x8xf32>, vector<8x8x8xf32>, vector<8x8x8xf32> -> vector<8x8x8xf32>
    "tpu.trace_stop"() : () -> ()
    %44 = arith.addf %27, %43 : vector<8x8x8xf32>
    %45 = vector.extract_strided_slice %8 {offsets = [0, 0, 16], sizes = [8, 8, 8], strides = [1, 1, 1]} : vector<8x8x96xf32> to vector<8x8x8xf32>
    %46 = vector.extract_strided_slice %8 {offsets = [0, 0, 48], sizes = [8, 8, 8], strides = [1, 1, 1]} : vector<8x8x96xf32> to vector<8x8x8xf32>
    %47 = vector.extract_strided_slice %8 {offsets = [0, 0, 80], sizes = [8, 8, 8], strides = [1, 1, 1]} : vector<8x8x96xf32> to vector<8x8x8xf32>
    "tpu.trace_start"() <{level = 10 : i32, message = "bqd,bkd->bqk"}> : () -> ()
    %cst_17 = arith.constant dense<0.000000e+00> : vector<8x8x8xf32>
    %48 = tpu.matmul %45, %46, %cst_17 {dimension_numbers = #tpu.dot_dimension_numbers<[2], [2], [1], [1], [0, 0, 0, 1, 1, 1], [0], [0]>} : vector<8x8x8xf32>, vector<8x8x8xf32>, vector<8x8x8xf32> -> vector<8x8x8xf32>
    "tpu.trace_stop"() : () -> ()
    %cst_18 = arith.constant 0.176776692 : f32
    %49 = vector.broadcast %cst_18 : f32 to vector<8x8x8xf32>
    %50 = arith.mulf %48, %49 : vector<8x8x8xf32>
    %cst_19 = arith.constant dense<0xFF800000> : vector<8x8xf32>
    %51 = vector.multi_reduction <maximumf>, %50, %cst_19 [2] : vector<8x8x8xf32> to vector<8x8xf32>
    %52 = vector.shape_cast %51 : vector<8x8xf32> to vector<8x8x1xf32>
    %53 = vector.broadcast %52 : vector<8x8x1xf32> to vector<8x8x8xf32>
    %54 = arith.subf %50, %53 : vector<8x8x8xf32>
    %55 = math.exp %54 : vector<8x8x8xf32>
    %cst_20 = arith.constant dense<0.000000e+00> : vector<8x8xf32>
    %56 = vector.multi_reduction <add>, %55, %cst_20 [2] : vector<8x8x8xf32> to vector<8x8xf32>
    %57 = vector.shape_cast %56 : vector<8x8xf32> to vector<8x8x1xf32>
    %58 = tpu.reciprocal %57 {approx = true} : vector<8x8x1xf32> -> vector<8x8x1xf32>
    %59 = vector.broadcast %58 : vector<8x8x1xf32> to vector<8x8x8xf32>
    %60 = arith.mulf %55, %59 : vector<8x8x8xf32>
    "tpu.trace_start"() <{level = 10 : i32, message = "bqk,bkd->bqd"}> : () -> ()
    %cst_21 = arith.constant dense<0.000000e+00> : vector<8x8x8xf32>
    %61 = tpu.matmul %60, %47, %cst_21 {dimension_numbers = #tpu.dot_dimension_numbers<[2], [1], [1], [2], [0, 0, 0, 1, 1, 2], [0], [0]>} : vector<8x8x8xf32>, vector<8x8x8xf32>, vector<8x8x8xf32> -> vector<8x8x8xf32>
    "tpu.trace_stop"() : () -> ()
    %62 = arith.addf %45, %61 : vector<8x8x8xf32>
    %63 = vector.extract_strided_slice %8 {offsets = [0, 0, 24], sizes = [8, 8, 8], strides = [1, 1, 1]} : vector<8x8x96xf32> to vector<8x8x8xf32>
    %64 = vector.extract_strided_slice %8 {offsets = [0, 0, 56], sizes = [8, 8, 8], strides = [1, 1, 1]} : vector<8x8x96xf32> to vector<8x8x8xf32>
    %65 = vector.extract_strided_slice %8 {offsets = [0, 0, 88], sizes = [8, 8, 8], strides = [1, 1, 1]} : vector<8x8x96xf32> to vector<8x8x8xf32>
    "tpu.trace_start"() <{level = 10 : i32, message = "bqd,bkd->bqk"}> : () -> ()
    %cst_22 = arith.constant dense<0.000000e+00> : vector<8x8x8xf32>
    %66 = tpu.matmul %63, %64, %cst_22 {dimension_numbers = #tpu.dot_dimension_numbers<[2], [2], [1], [1], [0, 0, 0, 1, 1, 1], [0], [0]>} : vector<8x8x8xf32>, vector<8x8x8xf32>, vector<8x8x8xf32> -> vector<8x8x8xf32>
    "tpu.trace_stop"() : () -> ()
    %cst_23 = arith.constant 0.176776692 : f32
    %67 = vector.broadcast %cst_23 : f32 to vector<8x8x8xf32>
    %68 = arith.mulf %66, %67 : vector<8x8x8xf32>
    %cst_24 = arith.constant dense<0xFF800000> : vector<8x8xf32>
    %69 = vector.multi_reduction <maximumf>, %68, %cst_24 [2] : vector<8x8x8xf32> to vector<8x8xf32>
    %70 = vector.shape_cast %69 : vector<8x8xf32> to vector<8x8x1xf32>
    %71 = vector.broadcast %70 : vector<8x8x1xf32> to vector<8x8x8xf32>
    %72 = arith.subf %68, %71 : vector<8x8x8xf32>
    %73 = math.exp %72 : vector<8x8x8xf32>
    %cst_25 = arith.constant dense<0.000000e+00> : vector<8x8xf32>
    %74 = vector.multi_reduction <add>, %73, %cst_25 [2] : vector<8x8x8xf32> to vector<8x8xf32>
    %75 = vector.shape_cast %74 : vector<8x8xf32> to vector<8x8x1xf32>
    %76 = tpu.reciprocal %75 {approx = true} : vector<8x8x1xf32> -> vector<8x8x1xf32>
    %77 = vector.broadcast %76 : vector<8x8x1xf32> to vector<8x8x8xf32>
    %78 = arith.mulf %73, %77 : vector<8x8x8xf32>
    "tpu.trace_start"() <{level = 10 : i32, message = "bqk,bkd->bqd"}> : () -> ()
    %cst_26 = arith.constant dense<0.000000e+00> : vector<8x8x8xf32>
    %79 = tpu.matmul %78, %65, %cst_26 {dimension_numbers = #tpu.dot_dimension_numbers<[2], [1], [1], [2], [0, 0, 0, 1, 1, 2], [0], [0]>} : vector<8x8x8xf32>, vector<8x8x8xf32>, vector<8x8x8xf32> -> vector<8x8x8xf32>
    "tpu.trace_stop"() : () -> ()
    %80 = arith.addf %63, %79 : vector<8x8x8xf32>
    %81 = tpu.concatenate %26, %44, %62, %80 in 2 : vector<8x8x8xf32>, vector<8x8x8xf32>, vector<8x8x8xf32>, vector<8x8x8xf32> -> vector<8x8x32xf32>
    %82 = vector.shape_cast %81 : vector<8x8x32xf32> to vector<64x32xf32>
    %c0_27 = arith.constant 0 : index
    %c0_28 = arith.constant 0 : index
    %c0_29 = arith.constant 0 : index
    %83 = vector.load %arg5[%c0_27, %c0_28, %c0_29] : memref<4x32x32xf32, #tpu.memory_space<vmem>>, vector<1x32x32xf32>
    %84 = vector.shape_cast %83 : vector<1x32x32xf32> to vector<32x32xf32>
    %cst_30 = arith.constant dense<0.000000e+00> : vector<64x32xf32>
    %85 = tpu.matmul %82, %84, %cst_30 {dimension_numbers = #tpu.dot_dimension_numbers<[1], [0], [0], [1], [0, 0, 1, 1], [], []>} : vector<64x32xf32>, vector<32x32xf32>, vector<64x32xf32> -> vector<64x32xf32>
    %c0_31 = arith.constant 0 : index
    %c0_32 = arith.constant 0 : index
    %c0_33 = arith.constant 0 : index
    %86 = vector.load %arg6[%c0_31, %c0_32, %c0_33] : memref<4x1x32xf32, #tpu.memory_space<vmem>>, vector<1x1x32xf32>
    %87 = vector.shape_cast %86 : vector<1x1x32xf32> to vector<1x32xf32>
    %88 = vector.broadcast %87 : vector<1x32xf32> to vector<64x32xf32>
    %89 = arith.addf %85, %88 : vector<64x32xf32>
    %cst_34 = arith.constant 0.000000e+00 : f32
    %90 = vector.broadcast %cst_34 : f32 to vector<64x32xf32>
    %91 = arith.maximumf %89, %90 : vector<64x32xf32>
    %92 = arith.addf %82, %91 : vector<64x32xf32>
    %c1 = arith.constant 1 : index
    %c0_35 = arith.constant 0 : index
    %c0_36 = arith.constant 0 : index
    %93 = vector.load %arg3[%c1, %c0_35, %c0_36] : memref<4x32x96xf32, #tpu.memory_space<vmem>>, vector<1x32x96xf32>
    %94 = vector.shape_cast %93 : vector<1x32x96xf32> to vector<32x96xf32>
    %cst_37 = arith.constant dense<0.000000e+00> : vector<64x96xf32>
    %95 = tpu.matmul %92, %94, %cst_37 {dimension_numbers = #tpu.dot_dimension_numbers<[1], [0], [0], [1], [0, 0, 1, 1], [], []>} : vector<64x32xf32>, vector<32x96xf32>, vector<64x96xf32> -> vector<64x96xf32>
    %c1_38 = arith.constant 1 : index
    %c0_39 = arith.constant 0 : index
    %c0_40 = arith.constant 0 : index
    %96 = vector.load %arg4[%c1_38, %c0_39, %c0_40] : memref<4x1x96xf32, #tpu.memory_space<vmem>>, vector<1x1x96xf32>
    %97 = vector.shape_cast %96 : vector<1x1x96xf32> to vector<1x96xf32>
    %98 = vector.broadcast %97 : vector<1x96xf32> to vector<64x96xf32>
    %99 = arith.addf %95, %98 : vector<64x96xf32>
    %100 = vector.shape_cast %99 : vector<64x96xf32> to vector<8x8x96xf32>
    %101 = vector.extract_strided_slice %100 {offsets = [0, 0, 0], sizes = [8, 8, 8], strides = [1, 1, 1]} : vector<8x8x96xf32> to vector<8x8x8xf32>
    %102 = vector.extract_strided_slice %100 {offsets = [0, 0, 32], sizes = [8, 8, 8], strides = [1, 1, 1]} : vector<8x8x96xf32> to vector<8x8x8xf32>
    %103 = vector.extract_strided_slice %100 {offsets = [0, 0, 64], sizes = [8, 8, 8], strides = [1, 1, 1]} : vector<8x8x96xf32> to vector<8x8x8xf32>
    "tpu.trace_start"() <{level = 10 : i32, message = "bqd,bkd->bqk"}> : () -> ()
    %cst_41 = arith.constant dense<0.000000e+00> : vector<8x8x8xf32>
    %104 = tpu.matmul %101, %102, %cst_41 {dimension_numbers = #tpu.dot_dimension_numbers<[2], [2], [1], [1], [0, 0, 0, 1, 1, 1], [0], [0]>} : vector<8x8x8xf32>, vector<8x8x8xf32>, vector<8x8x8xf32> -> vector<8x8x8xf32>
    "tpu.trace_stop"() : () -> ()
    %cst_42 = arith.constant 0.176776692 : f32
    %105 = vector.broadcast %cst_42 : f32 to vector<8x8x8xf32>
    %106 = arith.mulf %104, %105 : vector<8x8x8xf32>
    %cst_43 = arith.constant dense<0xFF800000> : vector<8x8xf32>
    %107 = vector.multi_reduction <maximumf>, %106, %cst_43 [2] : vector<8x8x8xf32> to vector<8x8xf32>
    %108 = vector.shape_cast %107 : vector<8x8xf32> to vector<8x8x1xf32>
    %109 = vector.broadcast %108 : vector<8x8x1xf32> to vector<8x8x8xf32>
    %110 = arith.subf %106, %109 : vector<8x8x8xf32>
    %111 = math.exp %110 : vector<8x8x8xf32>
    %cst_44 = arith.constant dense<0.000000e+00> : vector<8x8xf32>
    %112 = vector.multi_reduction <add>, %111, %cst_44 [2] : vector<8x8x8xf32> to vector<8x8xf32>
    %113 = vector.shape_cast %112 : vector<8x8xf32> to vector<8x8x1xf32>
    %114 = tpu.reciprocal %113 {approx = true} : vector<8x8x1xf32> -> vector<8x8x1xf32>
    %115 = vector.broadcast %114 : vector<8x8x1xf32> to vector<8x8x8xf32>
    %116 = arith.mulf %111, %115 : vector<8x8x8xf32>
    "tpu.trace_start"() <{level = 10 : i32, message = "bqk,bkd->bqd"}> : () -> ()
    %cst_45 = arith.constant dense<0.000000e+00> : vector<8x8x8xf32>
    %117 = tpu.matmul %116, %103, %cst_45 {dimension_numbers = #tpu.dot_dimension_numbers<[2], [1], [1], [2], [0, 0, 0, 1, 1, 2], [0], [0]>} : vector<8x8x8xf32>, vector<8x8x8xf32>, vector<8x8x8xf32> -> vector<8x8x8xf32>
    "tpu.trace_stop"() : () -> ()
    %118 = arith.addf %101, %117 : vector<8x8x8xf32>
    %119 = vector.extract_strided_slice %100 {offsets = [0, 0, 8], sizes = [8, 8, 8], strides = [1, 1, 1]} : vector<8x8x96xf32> to vector<8x8x8xf32>
    %120 = vector.extract_strided_slice %100 {offsets = [0, 0, 40], sizes = [8, 8, 8], strides = [1, 1, 1]} : vector<8x8x96xf32> to vector<8x8x8xf32>
    %121 = vector.extract_strided_slice %100 {offsets = [0, 0, 72], sizes = [8, 8, 8], strides = [1, 1, 1]} : vector<8x8x96xf32> to vector<8x8x8xf32>
    "tpu.trace_start"() <{level = 10 : i32, message = "bqd,bkd->bqk"}> : () -> ()
    %cst_46 = arith.constant dense<0.000000e+00> : vector<8x8x8xf32>
    %122 = tpu.matmul %119, %120, %cst_46 {dimension_numbers = #tpu.dot_dimension_numbers<[2], [2], [1], [1], [0, 0, 0, 1, 1, 1], [0], [0]>} : vector<8x8x8xf32>, vector<8x8x8xf32>, vector<8x8x8xf32> -> vector<8x8x8xf32>
    "tpu.trace_stop"() : () -> ()
    %cst_47 = arith.constant 0.176776692 : f32
    %123 = vector.broadcast %cst_47 : f32 to vector<8x8x8xf32>
    %124 = arith.mulf %122, %123 : vector<8x8x8xf32>
    %cst_48 = arith.constant dense<0xFF800000> : vector<8x8xf32>
    %125 = vector.multi_reduction <maximumf>, %124, %cst_48 [2] : vector<8x8x8xf32> to vector<8x8xf32>
    %126 = vector.shape_cast %125 : vector<8x8xf32> to vector<8x8x1xf32>
    %127 = vector.broadcast %126 : vector<8x8x1xf32> to vector<8x8x8xf32>
    %128 = arith.subf %124, %127 : vector<8x8x8xf32>
    %129 = math.exp %128 : vector<8x8x8xf32>
    %cst_49 = arith.constant dense<0.000000e+00> : vector<8x8xf32>
    %130 = vector.multi_reduction <add>, %129, %cst_49 [2] : vector<8x8x8xf32> to vector<8x8xf32>
    %131 = vector.shape_cast %130 : vector<8x8xf32> to vector<8x8x1xf32>
    %132 = tpu.reciprocal %131 {approx = true} : vector<8x8x1xf32> -> vector<8x8x1xf32>
    %133 = vector.broadcast %132 : vector<8x8x1xf32> to vector<8x8x8xf32>
    %134 = arith.mulf %129, %133 : vector<8x8x8xf32>
    "tpu.trace_start"() <{level = 10 : i32, message = "bqk,bkd->bqd"}> : () -> ()
    %cst_50 = arith.constant dense<0.000000e+00> : vector<8x8x8xf32>
    %135 = tpu.matmul %134, %121, %cst_50 {dimension_numbers = #tpu.dot_dimension_numbers<[2], [1], [1], [2], [0, 0, 0, 1, 1, 2], [0], [0]>} : vector<8x8x8xf32>, vector<8x8x8xf32>, vector<8x8x8xf32> -> vector<8x8x8xf32>
    "tpu.trace_stop"() : () -> ()
    %136 = arith.addf %119, %135 : vector<8x8x8xf32>
    %137 = vector.extract_strided_slice %100 {offsets = [0, 0, 16], sizes = [8, 8, 8], strides = [1, 1, 1]} : vector<8x8x96xf32> to vector<8x8x8xf32>
    %138 = vector.extract_strided_slice %100 {offsets = [0, 0, 48], sizes = [8, 8, 8], strides = [1, 1, 1]} : vector<8x8x96xf32> to vector<8x8x8xf32>
    %139 = vector.extract_strided_slice %100 {offsets = [0, 0, 80], sizes = [8, 8, 8], strides = [1, 1, 1]} : vector<8x8x96xf32> to vector<8x8x8xf32>
    "tpu.trace_start"() <{level = 10 : i32, message = "bqd,bkd->bqk"}> : () -> ()
    %cst_51 = arith.constant dense<0.000000e+00> : vector<8x8x8xf32>
    %140 = tpu.matmul %137, %138, %cst_51 {dimension_numbers = #tpu.dot_dimension_numbers<[2], [2], [1], [1], [0, 0, 0, 1, 1, 1], [0], [0]>} : vector<8x8x8xf32>, vector<8x8x8xf32>, vector<8x8x8xf32> -> vector<8x8x8xf32>
    "tpu.trace_stop"() : () -> ()
    %cst_52 = arith.constant 0.176776692 : f32
    %141 = vector.broadcast %cst_52 : f32 to vector<8x8x8xf32>
    %142 = arith.mulf %140, %141 : vector<8x8x8xf32>
    %cst_53 = arith.constant dense<0xFF800000> : vector<8x8xf32>
    %143 = vector.multi_reduction <maximumf>, %142, %cst_53 [2] : vector<8x8x8xf32> to vector<8x8xf32>
    %144 = vector.shape_cast %143 : vector<8x8xf32> to vector<8x8x1xf32>
    %145 = vector.broadcast %144 : vector<8x8x1xf32> to vector<8x8x8xf32>
    %146 = arith.subf %142, %145 : vector<8x8x8xf32>
    %147 = math.exp %146 : vector<8x8x8xf32>
    %cst_54 = arith.constant dense<0.000000e+00> : vector<8x8xf32>
    %148 = vector.multi_reduction <add>, %147, %cst_54 [2] : vector<8x8x8xf32> to vector<8x8xf32>
    %149 = vector.shape_cast %148 : vector<8x8xf32> to vector<8x8x1xf32>
    %150 = tpu.reciprocal %149 {approx = true} : vector<8x8x1xf32> -> vector<8x8x1xf32>
    %151 = vector.broadcast %150 : vector<8x8x1xf32> to vector<8x8x8xf32>
    %152 = arith.mulf %147, %151 : vector<8x8x8xf32>
    "tpu.trace_start"() <{level = 10 : i32, message = "bqk,bkd->bqd"}> : () -> ()
    %cst_55 = arith.constant dense<0.000000e+00> : vector<8x8x8xf32>
    %153 = tpu.matmul %152, %139, %cst_55 {dimension_numbers = #tpu.dot_dimension_numbers<[2], [1], [1], [2], [0, 0, 0, 1, 1, 2], [0], [0]>} : vector<8x8x8xf32>, vector<8x8x8xf32>, vector<8x8x8xf32> -> vector<8x8x8xf32>
    "tpu.trace_stop"() : () -> ()
    %154 = arith.addf %137, %153 : vector<8x8x8xf32>
    %155 = vector.extract_strided_slice %100 {offsets = [0, 0, 24], sizes = [8, 8, 8], strides = [1, 1, 1]} : vector<8x8x96xf32> to vector<8x8x8xf32>
    %156 = vector.extract_strided_slice %100 {offsets = [0, 0, 56], sizes = [8, 8, 8], strides = [1, 1, 1]} : vector<8x8x96xf32> to vector<8x8x8xf32>
    %157 = vector.extract_strided_slice %100 {offsets = [0, 0, 88], sizes = [8, 8, 8], strides = [1, 1, 1]} : vector<8x8x96xf32> to vector<8x8x8xf32>
    "tpu.trace_start"() <{level = 10 : i32, message = "bqd,bkd->bqk"}> : () -> ()
    %cst_56 = arith.constant dense<0.000000e+00> : vector<8x8x8xf32>
    %158 = tpu.matmul %155, %156, %cst_56 {dimension_numbers = #tpu.dot_dimension_numbers<[2], [2], [1], [1], [0, 0, 0, 1, 1, 1], [0], [0]>} : vector<8x8x8xf32>, vector<8x8x8xf32>, vector<8x8x8xf32> -> vector<8x8x8xf32>
    "tpu.trace_stop"() : () -> ()
    %cst_57 = arith.constant 0.176776692 : f32
    %159 = vector.broadcast %cst_57 : f32 to vector<8x8x8xf32>
    %160 = arith.mulf %158, %159 : vector<8x8x8xf32>
    %cst_58 = arith.constant dense<0xFF800000> : vector<8x8xf32>
    %161 = vector.multi_reduction <maximumf>, %160, %cst_58 [2] : vector<8x8x8xf32> to vector<8x8xf32>
    %162 = vector.shape_cast %161 : vector<8x8xf32> to vector<8x8x1xf32>
    %163 = vector.broadcast %162 : vector<8x8x1xf32> to vector<8x8x8xf32>
    %164 = arith.subf %160, %163 : vector<8x8x8xf32>
    %165 = math.exp %164 : vector<8x8x8xf32>
    %cst_59 = arith.constant dense<0.000000e+00> : vector<8x8xf32>
    %166 = vector.multi_reduction <add>, %165, %cst_59 [2] : vector<8x8x8xf32> to vector<8x8xf32>
    %167 = vector.shape_cast %166 : vector<8x8xf32> to vector<8x8x1xf32>
    %168 = tpu.reciprocal %167 {approx = true} : vector<8x8x1xf32> -> vector<8x8x1xf32>
    %169 = vector.broadcast %168 : vector<8x8x1xf32> to vector<8x8x8xf32>
    %170 = arith.mulf %165, %169 : vector<8x8x8xf32>
    "tpu.trace_start"() <{level = 10 : i32, message = "bqk,bkd->bqd"}> : () -> ()
    %cst_60 = arith.constant dense<0.000000e+00> : vector<8x8x8xf32>
    %171 = tpu.matmul %170, %157, %cst_60 {dimension_numbers = #tpu.dot_dimension_numbers<[2], [1], [1], [2], [0, 0, 0, 1, 1, 2], [0], [0]>} : vector<8x8x8xf32>, vector<8x8x8xf32>, vector<8x8x8xf32> -> vector<8x8x8xf32>
    "tpu.trace_stop"() : () -> ()
    %172 = arith.addf %155, %171 : vector<8x8x8xf32>
    %173 = tpu.concatenate %118, %136, %154, %172 in 2 : vector<8x8x8xf32>, vector<8x8x8xf32>, vector<8x8x8xf32>, vector<8x8x8xf32> -> vector<8x8x32xf32>
    %174 = vector.shape_cast %173 : vector<8x8x32xf32> to vector<64x32xf32>
    %c1_61 = arith.constant 1 : index
    %c0_62 = arith.constant 0 : index
    %c0_63 = arith.constant 0 : index
    %175 = vector.load %arg5[%c1_61, %c0_62, %c0_63] : memref<4x32x32xf32, #tpu.memory_space<vmem>>, vector<1x32x32xf32>
    %176 = vector.shape_cast %175 : vector<1x32x32xf32> to vector<32x32xf32>
    %cst_64 = arith.constant dense<0.000000e+00> : vector<64x32xf32>
    %177 = tpu.matmul %174, %176, %cst_64 {dimension_numbers = #tpu.dot_dimension_numbers<[1], [0], [0], [1], [0, 0, 1, 1], [], []>} : vector<64x32xf32>, vector<32x32xf32>, vector<64x32xf32> -> vector<64x32xf32>
    %c1_65 = arith.constant 1 : index
    %c0_66 = arith.constant 0 : index
    %c0_67 = arith.constant 0 : index
    %178 = vector.load %arg6[%c1_65, %c0_66, %c0_67] : memref<4x1x32xf32, #tpu.memory_space<vmem>>, vector<1x1x32xf32>
    %179 = vector.shape_cast %178 : vector<1x1x32xf32> to vector<1x32xf32>
    %180 = vector.broadcast %179 : vector<1x32xf32> to vector<64x32xf32>
    %181 = arith.addf %177, %180 : vector<64x32xf32>
    %cst_68 = arith.constant 0.000000e+00 : f32
    %182 = vector.broadcast %cst_68 : f32 to vector<64x32xf32>
    %183 = arith.maximumf %181, %182 : vector<64x32xf32>
    %184 = arith.addf %174, %183 : vector<64x32xf32>
    %c2 = arith.constant 2 : index
    %c0_69 = arith.constant 0 : index
    %c0_70 = arith.constant 0 : index
    %185 = vector.load %arg3[%c2, %c0_69, %c0_70] : memref<4x32x96xf32, #tpu.memory_space<vmem>>, vector<1x32x96xf32>
    %186 = vector.shape_cast %185 : vector<1x32x96xf32> to vector<32x96xf32>
    %187 = vector.extract_strided_slice %186 {offsets = [0, 32], sizes = [32, 64], strides = [1, 1]} : vector<32x96xf32> to vector<32x64xf32>
    %c2_71 = arith.constant 2 : index
    %c0_72 = arith.constant 0 : index
    %c0_73 = arith.constant 0 : index
    %188 = vector.load %arg4[%c2_71, %c0_72, %c0_73] : memref<4x1x96xf32, #tpu.memory_space<vmem>>, vector<1x1x96xf32>
    %189 = vector.shape_cast %188 : vector<1x1x96xf32> to vector<1x96xf32>
    %190 = vector.extract_strided_slice %189 {offsets = [0, 32], sizes = [1, 64], strides = [1, 1]} : vector<1x96xf32> to vector<1x64xf32>
    %cst_74 = arith.constant dense<0.000000e+00> : vector<64x64xf32>
    %191 = tpu.matmul %184, %187, %cst_74 {dimension_numbers = #tpu.dot_dimension_numbers<[1], [0], [0], [1], [0, 0, 1, 1], [], []>} : vector<64x32xf32>, vector<32x64xf32>, vector<64x64xf32> -> vector<64x64xf32>
    %192 = vector.broadcast %190 : vector<1x64xf32> to vector<64x64xf32>
    %193 = arith.addf %191, %192 : vector<64x64xf32>
    %194 = vector.shape_cast %193 : vector<64x64xf32> to vector<8x8x64xf32>
    %c0_75 = arith.constant 0 : index
    %c0_76 = arith.constant 0 : index
    %195 = vector.load %arg2[%c0_75, %c0_76] : memref<4x32xf32, #tpu.memory_space<vmem>>, vector<4x32xf32>
    %196 = vector.shape_cast %195 : vector<4x32xf32> to vector<1x4x32xf32>
    %197 = vector.shape_cast %196 : vector<1x4x32xf32> to vector<1x4x32xf32>
    %198 = vector.broadcast %197 : vector<1x4x32xf32> to vector<8x4x32xf32>
    %199 = vector.extract_strided_slice %198 {offsets = [0, 0, 0], sizes = [8, 4, 8], strides = [1, 1, 1]} : vector<8x4x32xf32> to vector<8x4x8xf32>
    %200 = vector.extract_strided_slice %194 {offsets = [0, 0, 0], sizes = [8, 8, 8], strides = [1, 1, 1]} : vector<8x8x64xf32> to vector<8x8x8xf32>
    %201 = vector.extract_strided_slice %194 {offsets = [0, 0, 32], sizes = [8, 8, 8], strides = [1, 1, 1]} : vector<8x8x64xf32> to vector<8x8x8xf32>
    "tpu.trace_start"() <{level = 10 : i32, message = "bqd,bkd->bqk"}> : () -> ()
    %cst_77 = arith.constant dense<0.000000e+00> : vector<8x4x8xf32>
    %202 = tpu.matmul %199, %200, %cst_77 {dimension_numbers = #tpu.dot_dimension_numbers<[2], [2], [1], [1], [0, 0, 0, 1, 1, 1], [0], [0]>} : vector<8x4x8xf32>, vector<8x8x8xf32>, vector<8x4x8xf32> -> vector<8x4x8xf32>
    "tpu.trace_stop"() : () -> ()
    %cst_78 = arith.constant 0.176776692 : f32
    %203 = vector.broadcast %cst_78 : f32 to vector<8x4x8xf32>
    %204 = arith.mulf %202, %203 : vector<8x4x8xf32>
    %cst_79 = arith.constant dense<0xFF800000> : vector<8x4xf32>
    %205 = vector.multi_reduction <maximumf>, %204, %cst_79 [2] : vector<8x4x8xf32> to vector<8x4xf32>
    %206 = vector.shape_cast %205 : vector<8x4xf32> to vector<8x4x1xf32>
    %207 = vector.broadcast %206 : vector<8x4x1xf32> to vector<8x4x8xf32>
    %208 = arith.subf %204, %207 : vector<8x4x8xf32>
    %209 = math.exp %208 : vector<8x4x8xf32>
    %cst_80 = arith.constant dense<0.000000e+00> : vector<8x4xf32>
    %210 = vector.multi_reduction <add>, %209, %cst_80 [2] : vector<8x4x8xf32> to vector<8x4xf32>
    %211 = vector.shape_cast %210 : vector<8x4xf32> to vector<8x4x1xf32>
    %212 = tpu.reciprocal %211 {approx = true} : vector<8x4x1xf32> -> vector<8x4x1xf32>
    %213 = vector.broadcast %212 : vector<8x4x1xf32> to vector<8x4x8xf32>
    %214 = arith.mulf %209, %213 : vector<8x4x8xf32>
    "tpu.trace_start"() <{level = 10 : i32, message = "bqk,bkd->bqd"}> : () -> ()
    %cst_81 = arith.constant dense<0.000000e+00> : vector<8x4x8xf32>
    %215 = tpu.matmul %214, %201, %cst_81 {dimension_numbers = #tpu.dot_dimension_numbers<[2], [1], [1], [2], [0, 0, 0, 1, 1, 2], [0], [0]>} : vector<8x4x8xf32>, vector<8x8x8xf32>, vector<8x4x8xf32> -> vector<8x4x8xf32>
    "tpu.trace_stop"() : () -> ()
    %216 = arith.addf %199, %215 : vector<8x4x8xf32>
    %217 = vector.extract_strided_slice %198 {offsets = [0, 0, 8], sizes = [8, 4, 8], strides = [1, 1, 1]} : vector<8x4x32xf32> to vector<8x4x8xf32>
    %218 = vector.extract_strided_slice %194 {offsets = [0, 0, 8], sizes = [8, 8, 8], strides = [1, 1, 1]} : vector<8x8x64xf32> to vector<8x8x8xf32>
    %219 = vector.extract_strided_slice %194 {offsets = [0, 0, 40], sizes = [8, 8, 8], strides = [1, 1, 1]} : vector<8x8x64xf32> to vector<8x8x8xf32>
    "tpu.trace_start"() <{level = 10 : i32, message = "bqd,bkd->bqk"}> : () -> ()
    %cst_82 = arith.constant dense<0.000000e+00> : vector<8x4x8xf32>
    %220 = tpu.matmul %217, %218, %cst_82 {dimension_numbers = #tpu.dot_dimension_numbers<[2], [2], [1], [1], [0, 0, 0, 1, 1, 1], [0], [0]>} : vector<8x4x8xf32>, vector<8x8x8xf32>, vector<8x4x8xf32> -> vector<8x4x8xf32>
    "tpu.trace_stop"() : () -> ()
    %cst_83 = arith.constant 0.176776692 : f32
    %221 = vector.broadcast %cst_83 : f32 to vector<8x4x8xf32>
    %222 = arith.mulf %220, %221 : vector<8x4x8xf32>
    %cst_84 = arith.constant dense<0xFF800000> : vector<8x4xf32>
    %223 = vector.multi_reduction <maximumf>, %222, %cst_84 [2] : vector<8x4x8xf32> to vector<8x4xf32>
    %224 = vector.shape_cast %223 : vector<8x4xf32> to vector<8x4x1xf32>
    %225 = vector.broadcast %224 : vector<8x4x1xf32> to vector<8x4x8xf32>
    %226 = arith.subf %222, %225 : vector<8x4x8xf32>
    %227 = math.exp %226 : vector<8x4x8xf32>
    %cst_85 = arith.constant dense<0.000000e+00> : vector<8x4xf32>
    %228 = vector.multi_reduction <add>, %227, %cst_85 [2] : vector<8x4x8xf32> to vector<8x4xf32>
    %229 = vector.shape_cast %228 : vector<8x4xf32> to vector<8x4x1xf32>
    %230 = tpu.reciprocal %229 {approx = true} : vector<8x4x1xf32> -> vector<8x4x1xf32>
    %231 = vector.broadcast %230 : vector<8x4x1xf32> to vector<8x4x8xf32>
    %232 = arith.mulf %227, %231 : vector<8x4x8xf32>
    "tpu.trace_start"() <{level = 10 : i32, message = "bqk,bkd->bqd"}> : () -> ()
    %cst_86 = arith.constant dense<0.000000e+00> : vector<8x4x8xf32>
    %233 = tpu.matmul %232, %219, %cst_86 {dimension_numbers = #tpu.dot_dimension_numbers<[2], [1], [1], [2], [0, 0, 0, 1, 1, 2], [0], [0]>} : vector<8x4x8xf32>, vector<8x8x8xf32>, vector<8x4x8xf32> -> vector<8x4x8xf32>
    "tpu.trace_stop"() : () -> ()
    %234 = arith.addf %217, %233 : vector<8x4x8xf32>
    %235 = vector.extract_strided_slice %198 {offsets = [0, 0, 16], sizes = [8, 4, 8], strides = [1, 1, 1]} : vector<8x4x32xf32> to vector<8x4x8xf32>
    %236 = vector.extract_strided_slice %194 {offsets = [0, 0, 16], sizes = [8, 8, 8], strides = [1, 1, 1]} : vector<8x8x64xf32> to vector<8x8x8xf32>
    %237 = vector.extract_strided_slice %194 {offsets = [0, 0, 48], sizes = [8, 8, 8], strides = [1, 1, 1]} : vector<8x8x64xf32> to vector<8x8x8xf32>
    "tpu.trace_start"() <{level = 10 : i32, message = "bqd,bkd->bqk"}> : () -> ()
    %cst_87 = arith.constant dense<0.000000e+00> : vector<8x4x8xf32>
    %238 = tpu.matmul %235, %236, %cst_87 {dimension_numbers = #tpu.dot_dimension_numbers<[2], [2], [1], [1], [0, 0, 0, 1, 1, 1], [0], [0]>} : vector<8x4x8xf32>, vector<8x8x8xf32>, vector<8x4x8xf32> -> vector<8x4x8xf32>
    "tpu.trace_stop"() : () -> ()
    %cst_88 = arith.constant 0.176776692 : f32
    %239 = vector.broadcast %cst_88 : f32 to vector<8x4x8xf32>
    %240 = arith.mulf %238, %239 : vector<8x4x8xf32>
    %cst_89 = arith.constant dense<0xFF800000> : vector<8x4xf32>
    %241 = vector.multi_reduction <maximumf>, %240, %cst_89 [2] : vector<8x4x8xf32> to vector<8x4xf32>
    %242 = vector.shape_cast %241 : vector<8x4xf32> to vector<8x4x1xf32>
    %243 = vector.broadcast %242 : vector<8x4x1xf32> to vector<8x4x8xf32>
    %244 = arith.subf %240, %243 : vector<8x4x8xf32>
    %245 = math.exp %244 : vector<8x4x8xf32>
    %cst_90 = arith.constant dense<0.000000e+00> : vector<8x4xf32>
    %246 = vector.multi_reduction <add>, %245, %cst_90 [2] : vector<8x4x8xf32> to vector<8x4xf32>
    %247 = vector.shape_cast %246 : vector<8x4xf32> to vector<8x4x1xf32>
    %248 = tpu.reciprocal %247 {approx = true} : vector<8x4x1xf32> -> vector<8x4x1xf32>
    %249 = vector.broadcast %248 : vector<8x4x1xf32> to vector<8x4x8xf32>
    %250 = arith.mulf %245, %249 : vector<8x4x8xf32>
    "tpu.trace_start"() <{level = 10 : i32, message = "bqk,bkd->bqd"}> : () -> ()
    %cst_91 = arith.constant dense<0.000000e+00> : vector<8x4x8xf32>
    %251 = tpu.matmul %250, %237, %cst_91 {dimension_numbers = #tpu.dot_dimension_numbers<[2], [1], [1], [2], [0, 0, 0, 1, 1, 2], [0], [0]>} : vector<8x4x8xf32>, vector<8x8x8xf32>, vector<8x4x8xf32> -> vector<8x4x8xf32>
    "tpu.trace_stop"() : () -> ()
    %252 = arith.addf %235, %251 : vector<8x4x8xf32>
    %253 = vector.extract_strided_slice %198 {offsets = [0, 0, 24], sizes = [8, 4, 8], strides = [1, 1, 1]} : vector<8x4x32xf32> to vector<8x4x8xf32>
    %254 = vector.extract_strided_slice %194 {offsets = [0, 0, 24], sizes = [8, 8, 8], strides = [1, 1, 1]} : vector<8x8x64xf32> to vector<8x8x8xf32>
    %255 = vector.extract_strided_slice %194 {offsets = [0, 0, 56], sizes = [8, 8, 8], strides = [1, 1, 1]} : vector<8x8x64xf32> to vector<8x8x8xf32>
    "tpu.trace_start"() <{level = 10 : i32, message = "bqd,bkd->bqk"}> : () -> ()
    %cst_92 = arith.constant dense<0.000000e+00> : vector<8x4x8xf32>
    %256 = tpu.matmul %253, %254, %cst_92 {dimension_numbers = #tpu.dot_dimension_numbers<[2], [2], [1], [1], [0, 0, 0, 1, 1, 1], [0], [0]>} : vector<8x4x8xf32>, vector<8x8x8xf32>, vector<8x4x8xf32> -> vector<8x4x8xf32>
    "tpu.trace_stop"() : () -> ()
    %cst_93 = arith.constant 0.176776692 : f32
    %257 = vector.broadcast %cst_93 : f32 to vector<8x4x8xf32>
    %258 = arith.mulf %256, %257 : vector<8x4x8xf32>
    %cst_94 = arith.constant dense<0xFF800000> : vector<8x4xf32>
    %259 = vector.multi_reduction <maximumf>, %258, %cst_94 [2] : vector<8x4x8xf32> to vector<8x4xf32>
    %260 = vector.shape_cast %259 : vector<8x4xf32> to vector<8x4x1xf32>
    %261 = vector.broadcast %260 : vector<8x4x1xf32> to vector<8x4x8xf32>
    %262 = arith.subf %258, %261 : vector<8x4x8xf32>
    %263 = math.exp %262 : vector<8x4x8xf32>
    %cst_95 = arith.constant dense<0.000000e+00> : vector<8x4xf32>
    %264 = vector.multi_reduction <add>, %263, %cst_95 [2] : vector<8x4x8xf32> to vector<8x4xf32>
    %265 = vector.shape_cast %264 : vector<8x4xf32> to vector<8x4x1xf32>
    %266 = tpu.reciprocal %265 {approx = true} : vector<8x4x1xf32> -> vector<8x4x1xf32>
    %267 = vector.broadcast %266 : vector<8x4x1xf32> to vector<8x4x8xf32>
    %268 = arith.mulf %263, %267 : vector<8x4x8xf32>
    "tpu.trace_start"() <{level = 10 : i32, message = "bqk,bkd->bqd"}> : () -> ()
    %cst_96 = arith.constant dense<0.000000e+00> : vector<8x4x8xf32>
    %269 = tpu.matmul %268, %255, %cst_96 {dimension_numbers = #tpu.dot_dimension_numbers<[2], [1], [1], [2], [0, 0, 0, 1, 1, 2], [0], [0]>} : vector<8x4x8xf32>, vector<8x8x8xf32>, vector<8x4x8xf32> -> vector<8x4x8xf32>
    "tpu.trace_stop"() : () -> ()
    %270 = arith.addf %253, %269 : vector<8x4x8xf32>
    %271 = tpu.concatenate %216, %234, %252, %270 in 2 : vector<8x4x8xf32>, vector<8x4x8xf32>, vector<8x4x8xf32>, vector<8x4x8xf32> -> vector<8x4x32xf32>
    %272 = vector.shape_cast %271 : vector<8x4x32xf32> to vector<32x32xf32>
    %c2_97 = arith.constant 2 : index
    %c0_98 = arith.constant 0 : index
    %c0_99 = arith.constant 0 : index
    %273 = vector.load %arg5[%c2_97, %c0_98, %c0_99] : memref<4x32x32xf32, #tpu.memory_space<vmem>>, vector<1x32x32xf32>
    %274 = vector.shape_cast %273 : vector<1x32x32xf32> to vector<32x32xf32>
    %cst_100 = arith.constant dense<0.000000e+00> : vector<32x32xf32>
    %275 = tpu.matmul %272, %274, %cst_100 {dimension_numbers = #tpu.dot_dimension_numbers<[1], [0], [0], [1], [0, 0, 1, 1], [], []>} : vector<32x32xf32>, vector<32x32xf32>, vector<32x32xf32> -> vector<32x32xf32>
    %c2_101 = arith.constant 2 : index
    %c0_102 = arith.constant 0 : index
    %c0_103 = arith.constant 0 : index
    %276 = vector.load %arg6[%c2_101, %c0_102, %c0_103] : memref<4x1x32xf32, #tpu.memory_space<vmem>>, vector<1x1x32xf32>
    %277 = vector.shape_cast %276 : vector<1x1x32xf32> to vector<1x32xf32>
    %278 = vector.broadcast %277 : vector<1x32xf32> to vector<32x32xf32>
    %279 = arith.addf %275, %278 : vector<32x32xf32>
    %cst_104 = arith.constant 0.000000e+00 : f32
    %280 = vector.broadcast %cst_104 : f32 to vector<32x32xf32>
    %281 = arith.maximumf %279, %280 : vector<32x32xf32>
    %282 = arith.addf %272, %281 : vector<32x32xf32>
    %c3 = arith.constant 3 : index
    %c0_105 = arith.constant 0 : index
    %c0_106 = arith.constant 0 : index
    %283 = vector.load %arg3[%c3, %c0_105, %c0_106] : memref<4x32x96xf32, #tpu.memory_space<vmem>>, vector<1x32x96xf32>
    %284 = vector.shape_cast %283 : vector<1x32x96xf32> to vector<32x96xf32>
    %cst_107 = arith.constant dense<0.000000e+00> : vector<32x96xf32>
    %285 = tpu.matmul %282, %284, %cst_107 {dimension_numbers = #tpu.dot_dimension_numbers<[1], [0], [0], [1], [0, 0, 1, 1], [], []>} : vector<32x32xf32>, vector<32x96xf32>, vector<32x96xf32> -> vector<32x96xf32>
    %c3_108 = arith.constant 3 : index
    %c0_109 = arith.constant 0 : index
    %c0_110 = arith.constant 0 : index
    %286 = vector.load %arg4[%c3_108, %c0_109, %c0_110] : memref<4x1x96xf32, #tpu.memory_space<vmem>>, vector<1x1x96xf32>
    %287 = vector.shape_cast %286 : vector<1x1x96xf32> to vector<1x96xf32>
    %288 = vector.broadcast %287 : vector<1x96xf32> to vector<32x96xf32>
    %289 = arith.addf %285, %288 : vector<32x96xf32>
    %290 = vector.shape_cast %289 : vector<32x96xf32> to vector<8x4x96xf32>
    %291 = vector.extract_strided_slice %290 {offsets = [0, 0, 0], sizes = [8, 4, 8], strides = [1, 1, 1]} : vector<8x4x96xf32> to vector<8x4x8xf32>
    %292 = vector.extract_strided_slice %290 {offsets = [0, 0, 32], sizes = [8, 4, 8], strides = [1, 1, 1]} : vector<8x4x96xf32> to vector<8x4x8xf32>
    %293 = vector.extract_strided_slice %290 {offsets = [0, 0, 64], sizes = [8, 4, 8], strides = [1, 1, 1]} : vector<8x4x96xf32> to vector<8x4x8xf32>
    "tpu.trace_start"() <{level = 10 : i32, message = "bqd,bkd->bqk"}> : () -> ()
    %cst_111 = arith.constant dense<0.000000e+00> : vector<8x4x4xf32>
    %294 = tpu.matmul %291, %292, %cst_111 {dimension_numbers = #tpu.dot_dimension_numbers<[2], [2], [1], [1], [0, 0, 0, 1, 1, 1], [0], [0]>} : vector<8x4x8xf32>, vector<8x4x8xf32>, vector<8x4x4xf32> -> vector<8x4x4xf32>
    "tpu.trace_stop"() : () -> ()
    %cst_112 = arith.constant 0.176776692 : f32
    %295 = vector.broadcast %cst_112 : f32 to vector<8x4x4xf32>
    %296 = arith.mulf %294, %295 : vector<8x4x4xf32>
    %cst_113 = arith.constant dense<0xFF800000> : vector<8x4xf32>
    %297 = vector.multi_reduction <maximumf>, %296, %cst_113 [2] : vector<8x4x4xf32> to vector<8x4xf32>
    %298 = vector.shape_cast %297 : vector<8x4xf32> to vector<8x4x1xf32>
    %299 = vector.broadcast %298 : vector<8x4x1xf32> to vector<8x4x4xf32>
    %300 = arith.subf %296, %299 : vector<8x4x4xf32>
    %301 = math.exp %300 : vector<8x4x4xf32>
    %cst_114 = arith.constant dense<0.000000e+00> : vector<8x4xf32>
    %302 = vector.multi_reduction <add>, %301, %cst_114 [2] : vector<8x4x4xf32> to vector<8x4xf32>
    %303 = vector.shape_cast %302 : vector<8x4xf32> to vector<8x4x1xf32>
    %304 = tpu.reciprocal %303 {approx = true} : vector<8x4x1xf32> -> vector<8x4x1xf32>
    %305 = vector.broadcast %304 : vector<8x4x1xf32> to vector<8x4x4xf32>
    %306 = arith.mulf %301, %305 : vector<8x4x4xf32>
    "tpu.trace_start"() <{level = 10 : i32, message = "bqk,bkd->bqd"}> : () -> ()
    %cst_115 = arith.constant dense<0.000000e+00> : vector<8x4x8xf32>
    %307 = tpu.matmul %306, %293, %cst_115 {dimension_numbers = #tpu.dot_dimension_numbers<[2], [1], [1], [2], [0, 0, 0, 1, 1, 2], [0], [0]>} : vector<8x4x4xf32>, vector<8x4x8xf32>, vector<8x4x8xf32> -> vector<8x4x8xf32>
    "tpu.trace_stop"() : () -> ()
    %308 = arith.addf %291, %307 : vector<8x4x8xf32>
    %309 = vector.extract_strided_slice %290 {offsets = [0, 0, 8], sizes = [8, 4, 8], strides = [1, 1, 1]} : vector<8x4x96xf32> to vector<8x4x8xf32>
    %310 = vector.extract_strided_slice %290 {offsets = [0, 0, 40], sizes = [8, 4, 8], strides = [1, 1, 1]} : vector<8x4x96xf32> to vector<8x4x8xf32>
    %311 = vector.extract_strided_slice %290 {offsets = [0, 0, 72], sizes = [8, 4, 8], strides = [1, 1, 1]} : vector<8x4x96xf32> to vector<8x4x8xf32>
    "tpu.trace_start"() <{level = 10 : i32, message = "bqd,bkd->bqk"}> : () -> ()
    %cst_116 = arith.constant dense<0.000000e+00> : vector<8x4x4xf32>
    %312 = tpu.matmul %309, %310, %cst_116 {dimension_numbers = #tpu.dot_dimension_numbers<[2], [2], [1], [1], [0, 0, 0, 1, 1, 1], [0], [0]>} : vector<8x4x8xf32>, vector<8x4x8xf32>, vector<8x4x4xf32> -> vector<8x4x4xf32>
    "tpu.trace_stop"() : () -> ()
    %cst_117 = arith.constant 0.176776692 : f32
    %313 = vector.broadcast %cst_117 : f32 to vector<8x4x4xf32>
    %314 = arith.mulf %312, %313 : vector<8x4x4xf32>
    %cst_118 = arith.constant dense<0xFF800000> : vector<8x4xf32>
    %315 = vector.multi_reduction <maximumf>, %314, %cst_118 [2] : vector<8x4x4xf32> to vector<8x4xf32>
    %316 = vector.shape_cast %315 : vector<8x4xf32> to vector<8x4x1xf32>
    %317 = vector.broadcast %316 : vector<8x4x1xf32> to vector<8x4x4xf32>
    %318 = arith.subf %314, %317 : vector<8x4x4xf32>
    %319 = math.exp %318 : vector<8x4x4xf32>
    %cst_119 = arith.constant dense<0.000000e+00> : vector<8x4xf32>
    %320 = vector.multi_reduction <add>, %319, %cst_119 [2] : vector<8x4x4xf32> to vector<8x4xf32>
    %321 = vector.shape_cast %320 : vector<8x4xf32> to vector<8x4x1xf32>
    %322 = tpu.reciprocal %321 {approx = true} : vector<8x4x1xf32> -> vector<8x4x1xf32>
    %323 = vector.broadcast %322 : vector<8x4x1xf32> to vector<8x4x4xf32>
    %324 = arith.mulf %319, %323 : vector<8x4x4xf32>
    "tpu.trace_start"() <{level = 10 : i32, message = "bqk,bkd->bqd"}> : () -> ()
    %cst_120 = arith.constant dense<0.000000e+00> : vector<8x4x8xf32>
    %325 = tpu.matmul %324, %311, %cst_120 {dimension_numbers = #tpu.dot_dimension_numbers<[2], [1], [1], [2], [0, 0, 0, 1, 1, 2], [0], [0]>} : vector<8x4x4xf32>, vector<8x4x8xf32>, vector<8x4x8xf32> -> vector<8x4x8xf32>
    "tpu.trace_stop"() : () -> ()
    %326 = arith.addf %309, %325 : vector<8x4x8xf32>
    %327 = vector.extract_strided_slice %290 {offsets = [0, 0, 16], sizes = [8, 4, 8], strides = [1, 1, 1]} : vector<8x4x96xf32> to vector<8x4x8xf32>
    %328 = vector.extract_strided_slice %290 {offsets = [0, 0, 48], sizes = [8, 4, 8], strides = [1, 1, 1]} : vector<8x4x96xf32> to vector<8x4x8xf32>
    %329 = vector.extract_strided_slice %290 {offsets = [0, 0, 80], sizes = [8, 4, 8], strides = [1, 1, 1]} : vector<8x4x96xf32> to vector<8x4x8xf32>
    "tpu.trace_start"() <{level = 10 : i32, message = "bqd,bkd->bqk"}> : () -> ()
    %cst_121 = arith.constant dense<0.000000e+00> : vector<8x4x4xf32>
    %330 = tpu.matmul %327, %328, %cst_121 {dimension_numbers = #tpu.dot_dimension_numbers<[2], [2], [1], [1], [0, 0, 0, 1, 1, 1], [0], [0]>} : vector<8x4x8xf32>, vector<8x4x8xf32>, vector<8x4x4xf32> -> vector<8x4x4xf32>
    "tpu.trace_stop"() : () -> ()
    %cst_122 = arith.constant 0.176776692 : f32
    %331 = vector.broadcast %cst_122 : f32 to vector<8x4x4xf32>
    %332 = arith.mulf %330, %331 : vector<8x4x4xf32>
    %cst_123 = arith.constant dense<0xFF800000> : vector<8x4xf32>
    %333 = vector.multi_reduction <maximumf>, %332, %cst_123 [2] : vector<8x4x4xf32> to vector<8x4xf32>
    %334 = vector.shape_cast %333 : vector<8x4xf32> to vector<8x4x1xf32>
    %335 = vector.broadcast %334 : vector<8x4x1xf32> to vector<8x4x4xf32>
    %336 = arith.subf %332, %335 : vector<8x4x4xf32>
    %337 = math.exp %336 : vector<8x4x4xf32>
    %cst_124 = arith.constant dense<0.000000e+00> : vector<8x4xf32>
    %338 = vector.multi_reduction <add>, %337, %cst_124 [2] : vector<8x4x4xf32> to vector<8x4xf32>
    %339 = vector.shape_cast %338 : vector<8x4xf32> to vector<8x4x1xf32>
    %340 = tpu.reciprocal %339 {approx = true} : vector<8x4x1xf32> -> vector<8x4x1xf32>
    %341 = vector.broadcast %340 : vector<8x4x1xf32> to vector<8x4x4xf32>
    %342 = arith.mulf %337, %341 : vector<8x4x4xf32>
    "tpu.trace_start"() <{level = 10 : i32, message = "bqk,bkd->bqd"}> : () -> ()
    %cst_125 = arith.constant dense<0.000000e+00> : vector<8x4x8xf32>
    %343 = tpu.matmul %342, %329, %cst_125 {dimension_numbers = #tpu.dot_dimension_numbers<[2], [1], [1], [2], [0, 0, 0, 1, 1, 2], [0], [0]>} : vector<8x4x4xf32>, vector<8x4x8xf32>, vector<8x4x8xf32> -> vector<8x4x8xf32>
    "tpu.trace_stop"() : () -> ()
    %344 = arith.addf %327, %343 : vector<8x4x8xf32>
    %345 = vector.extract_strided_slice %290 {offsets = [0, 0, 24], sizes = [8, 4, 8], strides = [1, 1, 1]} : vector<8x4x96xf32> to vector<8x4x8xf32>
    %346 = vector.extract_strided_slice %290 {offsets = [0, 0, 56], sizes = [8, 4, 8], strides = [1, 1, 1]} : vector<8x4x96xf32> to vector<8x4x8xf32>
    %347 = vector.extract_strided_slice %290 {offsets = [0, 0, 88], sizes = [8, 4, 8], strides = [1, 1, 1]} : vector<8x4x96xf32> to vector<8x4x8xf32>
    "tpu.trace_start"() <{level = 10 : i32, message = "bqd,bkd->bqk"}> : () -> ()
    %cst_126 = arith.constant dense<0.000000e+00> : vector<8x4x4xf32>
    %348 = tpu.matmul %345, %346, %cst_126 {dimension_numbers = #tpu.dot_dimension_numbers<[2], [2], [1], [1], [0, 0, 0, 1, 1, 1], [0], [0]>} : vector<8x4x8xf32>, vector<8x4x8xf32>, vector<8x4x4xf32> -> vector<8x4x4xf32>
    "tpu.trace_stop"() : () -> ()
    %cst_127 = arith.constant 0.176776692 : f32
    %349 = vector.broadcast %cst_127 : f32 to vector<8x4x4xf32>
    %350 = arith.mulf %348, %349 : vector<8x4x4xf32>
    %cst_128 = arith.constant dense<0xFF800000> : vector<8x4xf32>
    %351 = vector.multi_reduction <maximumf>, %350, %cst_128 [2] : vector<8x4x4xf32> to vector<8x4xf32>
    %352 = vector.shape_cast %351 : vector<8x4xf32> to vector<8x4x1xf32>
    %353 = vector.broadcast %352 : vector<8x4x1xf32> to vector<8x4x4xf32>
    %354 = arith.subf %350, %353 : vector<8x4x4xf32>
    %355 = math.exp %354 : vector<8x4x4xf32>
    %cst_129 = arith.constant dense<0.000000e+00> : vector<8x4xf32>
    %356 = vector.multi_reduction <add>, %355, %cst_129 [2] : vector<8x4x4xf32> to vector<8x4xf32>
    %357 = vector.shape_cast %356 : vector<8x4xf32> to vector<8x4x1xf32>
    %358 = tpu.reciprocal %357 {approx = true} : vector<8x4x1xf32> -> vector<8x4x1xf32>
    %359 = vector.broadcast %358 : vector<8x4x1xf32> to vector<8x4x4xf32>
    %360 = arith.mulf %355, %359 : vector<8x4x4xf32>
    "tpu.trace_start"() <{level = 10 : i32, message = "bqk,bkd->bqd"}> : () -> ()
    %cst_130 = arith.constant dense<0.000000e+00> : vector<8x4x8xf32>
    %361 = tpu.matmul %360, %347, %cst_130 {dimension_numbers = #tpu.dot_dimension_numbers<[2], [1], [1], [2], [0, 0, 0, 1, 1, 2], [0], [0]>} : vector<8x4x4xf32>, vector<8x4x8xf32>, vector<8x4x8xf32> -> vector<8x4x8xf32>
    "tpu.trace_stop"() : () -> ()
    %362 = arith.addf %345, %361 : vector<8x4x8xf32>
    %363 = tpu.concatenate %308, %326, %344, %362 in 2 : vector<8x4x8xf32>, vector<8x4x8xf32>, vector<8x4x8xf32>, vector<8x4x8xf32> -> vector<8x4x32xf32>
    %364 = vector.shape_cast %363 : vector<8x4x32xf32> to vector<32x32xf32>
    %c3_131 = arith.constant 3 : index
    %c0_132 = arith.constant 0 : index
    %c0_133 = arith.constant 0 : index
    %365 = vector.load %arg5[%c3_131, %c0_132, %c0_133] : memref<4x32x32xf32, #tpu.memory_space<vmem>>, vector<1x32x32xf32>
    %366 = vector.shape_cast %365 : vector<1x32x32xf32> to vector<32x32xf32>
    %cst_134 = arith.constant dense<0.000000e+00> : vector<32x32xf32>
    %367 = tpu.matmul %364, %366, %cst_134 {dimension_numbers = #tpu.dot_dimension_numbers<[1], [0], [0], [1], [0, 0, 1, 1], [], []>} : vector<32x32xf32>, vector<32x32xf32>, vector<32x32xf32> -> vector<32x32xf32>
    %c3_135 = arith.constant 3 : index
    %c0_136 = arith.constant 0 : index
    %c0_137 = arith.constant 0 : index
    %368 = vector.load %arg6[%c3_135, %c0_136, %c0_137] : memref<4x1x32xf32, #tpu.memory_space<vmem>>, vector<1x1x32xf32>
    %369 = vector.shape_cast %368 : vector<1x1x32xf32> to vector<1x32xf32>
    %370 = vector.broadcast %369 : vector<1x32xf32> to vector<32x32xf32>
    %371 = arith.addf %367, %370 : vector<32x32xf32>
    %cst_138 = arith.constant 0.000000e+00 : f32
    %372 = vector.broadcast %cst_138 : f32 to vector<32x32xf32>
    %373 = arith.maximumf %371, %372 : vector<32x32xf32>
    %374 = arith.addf %364, %373 : vector<32x32xf32>
    %c0_139 = arith.constant 0 : index
    %c0_140 = arith.constant 0 : index
    %375 = vector.load %arg7[%c0_139, %c0_140] : memref<32x8xf32, #tpu.memory_space<vmem>>, vector<32x8xf32>
    %cst_141 = arith.constant dense<0.000000e+00> : vector<32x8xf32>
    %376 = tpu.matmul %374, %375, %cst_141 {dimension_numbers = #tpu.dot_dimension_numbers<[1], [0], [0], [1], [0, 0, 1, 1], [], []>} : vector<32x32xf32>, vector<32x8xf32>, vector<32x8xf32> -> vector<32x8xf32>
    %c0_142 = arith.constant 0 : index
    %c0_143 = arith.constant 0 : index
    %377 = vector.load %arg8[%c0_142, %c0_143] : memref<1x8xf32, #tpu.memory_space<vmem>>, vector<1x8xf32>
    %378 = vector.broadcast %377 : vector<1x8xf32> to vector<32x8xf32>
    %379 = arith.addf %376, %378 : vector<32x8xf32>
    %380 = vector.shape_cast %379 : vector<32x8xf32> to vector<8x4x8xf32>
    %381 = vector.extract_strided_slice %380 {offsets = [0, 0, 0], sizes = [8, 1, 8], strides = [1, 1, 1]} : vector<8x4x8xf32> to vector<8x1x8xf32>
    %382 = vector.shape_cast %381 : vector<8x1x8xf32> to vector<8x8xf32>
    %383 = vector.extract_strided_slice %380 {offsets = [0, 1, 0], sizes = [8, 1, 8], strides = [1, 1, 1]} : vector<8x4x8xf32> to vector<8x1x8xf32>
    %384 = vector.shape_cast %383 : vector<8x1x8xf32> to vector<8x8xf32>
    %385 = vector.extract_strided_slice %380 {offsets = [0, 2, 0], sizes = [8, 1, 8], strides = [1, 1, 1]} : vector<8x4x8xf32> to vector<8x1x8xf32>
    %386 = vector.shape_cast %385 : vector<8x1x8xf32> to vector<8x8xf32>
    %387 = vector.extract_strided_slice %380 {offsets = [0, 3, 0], sizes = [8, 1, 8], strides = [1, 1, 1]} : vector<8x4x8xf32> to vector<8x1x8xf32>
    %388 = vector.shape_cast %387 : vector<8x1x8xf32> to vector<8x8xf32>
    %389 = tpu.concatenate %382, %384, %386, %388 in 1 : vector<8x8xf32>, vector<8x8xf32>, vector<8x8xf32>, vector<8x8xf32> -> vector<8x32xf32>
    %c0_144 = arith.constant 0 : index
    %c0_145 = arith.constant 0 : index
    %390 = vector.load %arg9[%c0_144, %c0_145] : memref<8x32xf32, #tpu.memory_space<vmem>>, vector<8x32xf32>
    tpu.vector_store %arg9[%c0_144, %c0_145], %389 {strides = array<i32>} : memref<8x32xf32, #tpu.memory_space<vmem>>, vector<8x32xf32>,
    return
  }
  func.func @transform_0(%arg0: i32) -> (i32, i32) {
    %c0_i32 = arith.constant 0 : i32
    %c0_i32_0 = arith.constant 0 : i32
    return %arg0, %c0_i32 : i32, i32
  }
  func.func @transform_1(%arg0: i32) -> (i32, i32) {
    %c0_i32 = arith.constant 0 : i32
    %c0_i32_0 = arith.constant 0 : i32
    %c0_i32_1 = arith.constant 0 : i32
    return %c0_i32, %c0_i32_0 : i32, i32
  }
  func.func @transform_2(%arg0: i32) -> (i32, i32, i32) {
    %c0_i32 = arith.constant 0 : i32
    %c0_i32_0 = arith.constant 0 : i32
    %c0_i32_1 = arith.constant 0 : i32
    %c0_i32_2 = arith.constant 0 : i32
    return %c0_i32, %c0_i32_0, %c0_i32_1 : i32, i32, i32
  }
  func.func @transform_3(%arg0: i32) -> (i32, i32, i32) {
    %c0_i32 = arith.constant 0 : i32
    %c0_i32_0 = arith.constant 0 : i32
    %c0_i32_1 = arith.constant 0 : i32
    %c0_i32_2 = arith.constant 0 : i32
    return %c0_i32, %c0_i32_0, %c0_i32_1 : i32, i32, i32
  }
  func.func @transform_4(%arg0: i32) -> (i32, i32, i32) {
    %c0_i32 = arith.constant 0 : i32
    %c0_i32_0 = arith.constant 0 : i32
    %c0_i32_1 = arith.constant 0 : i32
    %c0_i32_2 = arith.constant 0 : i32
    return %c0_i32, %c0_i32_0, %c0_i32_1 : i32, i32, i32
  }
  func.func @transform_5(%arg0: i32) -> (i32, i32, i32) {
    %c0_i32 = arith.constant 0 : i32
    %c0_i32_0 = arith.constant 0 : i32
    %c0_i32_1 = arith.constant 0 : i32
    %c0_i32_2 = arith.constant 0 : i32
    return %c0_i32, %c0_i32_0, %c0_i32_1 : i32, i32, i32
  }
  func.func @transform_6(%arg0: i32) -> (i32, i32) {
    %c0_i32 = arith.constant 0 : i32
    %c0_i32_0 = arith.constant 0 : i32
    %c0_i32_1 = arith.constant 0 : i32
    return %c0_i32, %c0_i32_0 : i32, i32
  }
  func.func @transform_7(%arg0: i32) -> (i32, i32) {
    %c0_i32 = arith.constant 0 : i32
    %c0_i32_0 = arith.constant 0 : i32
    %c0_i32_1 = arith.constant 0 : i32
    return %c0_i32, %c0_i32_0 : i32, i32
  }
  func.func @transform_8(%arg0: i32) -> (i32, i32) {
    %c0_i32 = arith.constant 0 : i32
    %c0_i32_0 = arith.constant 0 : i32
    return %arg0, %c0_i32 : i32, i32
  }
}

</mosaic_0001>

<bundles_post_ra>
// kernel: tpu_custom_call.1
= control target key start
LH: loop header
LB: loop body
LE: loop exit
PB: predicated region body
PF: predicated region fallthrough
CT: control target
= control target key end

     0   :  { %s30982_s0 = inlined_call_operand.vmem [shape: f32[128,32], index: 0, kind: input, shape index: {}]   ;;  %s30983_s1 = inlined_call_operand.vmem [shape: f32[4,32], index: 1, kind: input, shape index: {}]   ;;  %s30984_s2 = inlined_call_operand.vmem [shape: f32[4,32,96], index: 2, kind: input, shape index: {}]   ;;  %s30985_s3 = inlined_call_operand.vmem [shape: f32[4,1,96], index: 3, kind: input, shape index: {}]   ;;  %s30986_s4 = inlined_call_operand.hbm [shape: f32[4,32,32], index: 4, kind: input, shape index: {}]   ;;  %s30987_s5 = inlined_call_operand.vmem [shape: f32[4,1,32], index: 5, kind: input, shape index: {}]   ;;  %s30988_s6 = inlined_call_operand.vmem [shape: f32[32,8], index: 6, kind: input, shape index: {}]   ;;  %s30989_s7 = inlined_call_operand.vmem [shape: f32[1,8], index: 7, kind: input, shape index: {}]   ;;  %s30990_s8 = inlined_call_operand.hbm [shape: f32[16,32], index: 8, kind: output, shape index: {}]  }
   0x1   :  { %31026 = sst [smem:[#allocation12_spill]] %s30982_s0 }
   0x2   :  { %31027 = sst [smem:[#allocation13_spill]] %s30983_s1 }
   0x3   :  { %31028 = sst [smem:[#allocation14_spill]] %s30986_s4 }
   0x4   :  { %13 = vsyncpa [#allocation3], 0 }
   0x5   :  { %14 = vsyncpa [#allocation4], 0 }
   0x6   :  { %16 = vsyncpa [#allocation4 + $0x1], 0  ;;  %s27005_s27 = smov 0   ;;  %s27007_s28 = smov 0  }
   0x7   :  { %s27009_s29 = smov 0   ;;  %s27011_s30 = smov 0  }
   0x8 LB: > { %31029 = sst [smem:[#allocation8_spill]] %s26934_s29  ;;  %s27026_s9 = sadd.s32 4294967295, %s26938_s30   ;;  %s26938_s30 = sphi %s27011_s30, %s31060_s30   ;;  %s26934_s29 = sphi %s27009_s29, %s31062_s29   ;;  %s26930_s28 = sphi %s27007_s28, %s31064_s28   ;;  %s26926_s27 = sphi %s27005_s27, %s31063_s27  }
   0x9   : > { %s23629_s10 = sadd.s32 4294967294, %s26938_s30   ;;  %s27030_s11 = sadd.s32 1, %s26938_s30  }
   0xa   : > { %31030 = sst [smem:[#allocation9_spill]] %s27030_s11  ;;  %s202_s12 = sadd.s32 1, %s26934_s29 }
   0xb   : > { %s199_s13 = ssub.s32 %s26938_s30, %s27030_s11  ;;  %p212_p0 = scmp.ne.s32.totalorder %s26934_s29, %s26930_s28 }
   0xc   : > { %p200_p1 = scmp.eq.s32.totalorder %s199_s13, 0  ;;  %p213_p2 = scmp.eq.s32.totalorder %s27026_s9, 1 }
   0xd   : > { %p218_p3 = scmp.ne.s32.totalorder %s26930_s28, %s26926_s27  ;;  %p219_p4 = scmp.eq.s32.totalorder %s23629_s10, 1 }
   0xe   : > { %s27041_s14 = scalar_select %p200_p1, %s26934_s29, %s202_s12  }
   0xf   : > { %p27043_p5 = por %p213_p2, %p212_p0  ;;  %p27047_p6 = por %p219_p4, %p218_p3 }
  0x10   : > { %31031 = sst [smem:[#allocation10_spill]] %s27041_s14  ;;  %p23630_p7 = scmp.ge.s32.totalorder %s26938_s30, 1 }
  0x11   : > { %s31032_s15 = scalar_select %p27043_p5, 1, 0 }
  0x12   : > { %s31033_s16 = scalar_select %p27047_p6, 1, 0 }
  0x13   : > { %p226_p8 = scmp.lt.s32.totalorder %s26938_s30, 3  ;;  %p30991_p9 = scmp.eq.s32.totalorder %s27026_s9, 0 }
  0x14   : > { %31034 = sst [smem:[#allocation11_spill]] %s31033_s16  ;;  %s26940_s18 = smov [#allocation2]  }
  0x15   : > { %p27054_p10 = pnand %p23630_p7, %p226_p8  ;;  %s247_s19 = sshll.u32 %s26940_s18, 4  ;;  %s248_s19 = int_to_ptr.vmem [resolvable:$true] %s247_s19 }
  0x16   : > { %s31037_s4 = sld [smem:[#allocation14_spill]] }
  0x17   : > { %s31035_s17 = scalar_select %p27054_p10, 1, 0 }
  0x18   : > { %p26259_p11 = pneg %p27054_p10 }
  0x1a   : > { %p27062_p12 = pnand %p30991_p9, %p26259_p11 }
  0x1c   : > { %s26844_s23 = scalar_lea.hbm %s31037_s4, 2048  ;;  %p26846_p0 = pneg %p27062_p12 }
  0x1d   : > { %p26845_p13 = scmp.ne.s32.totalorder %s31037_s4, %s26844_s23  ;;  %p26851_p3 = scmp.lt.u32.totalorder %s26844_s23, %s31037_s4 }
  0x1f   : > { %p26847_p1 = pnand %p26846_p0, %p26845_p13 }
  0x21   : > { %p26848_p2 = pneg %p26847_p1 }
  0x23   : > { %p26853_p4 = pnand %p26851_p3, %p26848_p2 }
  0x25   : > { %26856 = shalt.err (!%p26853_p4)
}
  0x26   : > { %s26857_s12 = scalar_lea.vmem %s248_s19, 2048  ;;  %p26865_p9 = scmp.lt.s32.totalorder %s248_s19, %s248_s19 }
  0x27   : > { %p26858_p7 = scmp.ne.s32.totalorder %s248_s19, %s26857_s12  ;;  %p26866_p6 = scmp.lt.s32.totalorder %s26857_s12, %s26857_s12 }
  0x29   : > { %p26860_p8 = pnand %p26858_p7, %p26846_p0  ;;  %p26867_p5 = por %p26866_p6, %p26865_p9 }
  0x2b   : > { %p26861_p11 = pneg %p26860_p8 }
  0x2d   : > { %p26868_p10 = pnand %p26867_p5, %p26861_p11 }
  0x2f   : > { %26871 = shalt.err (!%p26868_p10)
}
  0x30   : > { %s26941_s13 = smov 128   ;;  %s26942_s18 = smov 8  }
  0x31   : > { %26262 = dma.hbm_to_vmem [thread:$0]  (!%p27062_p12), %s31037_s4, 2048, %s248_s19, [#allocation3], %s26941_s13, %s26941_s13, %s26942_s18  }
  0x32   : > { %p31038_p13 = scmp.ne.s32.totalorder %s31035_s17, 0 }
  0x33   : > { %p31039_p1 = scmp.eq.s32.totalorder (!%p31038_p13), %s27026_s9, 0 }
  0x34   : > { %281 = sbr.rel (%p31038_p13) target bundleno = 13074 (0x3312), region = 52 }
  0x3b   : > { %26917 = dma.done.wait (%p31039_p1), [#allocation3], 2048   ;;  %p31040_p0 = pmov %p31039_p1 }
  0x3c   : > { %s23636_s23 = sshll.u32 %s27026_s9, 3  ;;  %s31041_s0 = sld [smem:[#allocation12_spill]]  ;;  %vm340_vm0 = vcmask 261120   ;;  %v329_v0 = vld [vmem:[%s30984_s2] sm:$0xff]  ;;  %v330_v1 = vld [vmem:[%s30984_s2 + $0x8] sm:$0xff]  ;;  %v331_v2 = vld [vmem:[%s30984_s2 + $0x10] sm:$0xff] }
  0x3d   : > { %26919 = vsyncadd (%p31040_p0), [#allocation3], 4294965248  ;;  %p316_p5 = scmp.lt.s32.totalorder %s23636_s23, 15  ;;  %v26181_v3 = vpack.c.bf16 %v330_v1, %v329_v0  ;;  %v332_v4 = vld [vmem:[%s30984_s2 + $0x18] sm:$0xff]  ;;  %v26943_v14 = vmov 0.0   ;;  %vm26944_vm1 = vmmov 0  }
  0x3e   : > { %v26185_v6 = vpack.c.bf16 %v332_v4, %v331_v2  ;;  %24765 = vmatprep.subr.mxu1 %v26943_v14  ;;  %24767 = vmatprep.mubr.msk.f32.mxu1 %vm26944_vm1, %v26943_v14  ;;  %v23638_v15 = vld [vmem:[%s30985_s3] ss:$0 sm:$0xff]  ;;  %s31020_s25 = smov 96   ;;  %vm473_vm2 = vcmask 64512   ;;  %s31014_s20 = smov 64   ;;  %vm5911_vm3 = vcmask 130048  }
  0x3f   : > { %s31066_s23 = smov (!%p316_p5, %s23636_s23), 15  ;;  %26182 = vmatprep.subr.bf16.mxu0 %v26181_v3  ;;  %s31018_s19 = smov 120   ;;  %vm5920_vm4 = vcmask 195584   ;;  %vm12597_vm5 = vcmask 60416   ;;  %vm18234_vm6 = vcmask 27648   ;;  %vm18329_vm7 = vcmask 1043456  }
  0x40   : > { %s23637_s24 = sshll.u32 %s31066_s23, 3  ;;  %26184 = vmatpush3.bf16.msra.mxu0 %v26181_v3  ;;  %s31012_s10 = smov 56   ;;  %vm18325_vm8 = vcmask 31744   ;;  %vm23399_vm9 = vcmask 1041409   ;;  %vm23401_vm10 = vcmask 1042434   ;;  %vm23403_vm11 = vcmask 1043459  }
  0x41   : > { %26186 = vmatprep.subr.bf16.mxu0 %v26185_v6  ;;  %s31010_s17 = smov 80   ;;  %s31008_s12 = smov 112   ;;  %vm23405_vm12 = vcmask 1044484   ;;  %vm23407_vm13 = vcmask 1045509   ;;  %vm23409_vm14 = vcmask 1046534   ;;  %vm23411_vm15 = vcmask 1047559  }
  0x42   : > { %s319_s26 = scalar_lea.vmem %s31041_s0, %s23637_s24  ;;  %s31006_s13 = smov 48  }
  0x43   : > { %v321_v5 = vld [vmem:[%s319_s26] sm:$0xff]  ;;  %v322_v7 = vld [vmem:[%s319_s26 + $0x8] sm:$0xff]  ;;  %v323_v8 = vld [vmem:[%s319_s26 + $0x10] sm:$0xff]  ;;  %s31004_s18 = smov 72   ;;  %s31002_s21 = smov 104  }
  0x44   : > { %24753 = vmatprep.mubr.msk.f32.mxu0 %vm340_vm0, %v321_v5  ;;  %26188 = vmatpush3.bf16.msra.mxu0 %v26185_v6  ;;  %v324_v9 = vld [vmem:[%s319_s26 + $0x18] sm:$0xff]  ;;  %v325_v10 = vld [vmem:[%s319_s26 + $0x20] sm:$0xff]  ;;  %v326_v11 = vld [vmem:[%s319_s26 + $0x28] sm:$0xff]  ;;  %s31000_s22 = smov 40   ;;  %s30994_s23 = smov 8  }
  0x45   : > { %v327_v12 = vld [vmem:[%s319_s26 + $0x30] sm:$0xff]  ;;  %v328_v13 = vld [vmem:[%s319_s26 + $0x38] sm:$0xff]  ;;  %24790 = vmatprep.subr.mxu0 %v26943_v14  ;;  %s31016_s26 = smov 88   ;;  %s30998_s24 = smov 16  }
  0x46   : > { %s31052_s1 = sld [smem:[#allocation13_spill]]  ;;  %s31054_s0 = smov 88  }
  0x47   : > { %24754 = vmatmul.mubr.msk.f32.vlgmr.msra.gmra.mrb[0].mxu0 %vm340_vm0, %v322_v7  ;;  %s31055_s16 = smov 64   ;;  %p31057_p9 = scmp.ne.s32.totalorder %s31032_s15, 0 }
  0x48   : > { %24756 = vmatprep.mubr.msk.f32.mxu0 %vm340_vm0, %v323_v8 }
  0x4b   : > { %24757 = vmatmul.mubr.msk.f32.gmra.mrb[2].mxu0 %vm340_vm0, %v324_v9 }
  0x4c   : > { %24759 = vmatprep.mubr.msk.f32.mxu0 %vm340_vm0, %v325_v10 }
  0x4f   : > { %24760 = vmatmul.mubr.msk.f32.gmra.mrb[4].mxu0 %vm340_vm0, %v326_v11 }
  0x50   : > { %24762 = vmatprep.mubr.msk.f32.mxu0 %vm340_vm0, %v327_v12 }
  0x53   : > { %24763 = vmatmul.mubr.msk.f32.gmra.mrb[6].mxu0 %vm340_vm0, %v328_v13 }
  0x54   : > { %24792 = vmatprep.mubr.msk.f32.mxu0 %vm26944_vm1, %v26943_v14 }
 0x11a   : > { %v24755_v16 = vpop.f32.mrb[0].mxu0 }
 0x11b   : > { %v431_v17 = vpop.f32.mrb[1].mxu0  ;;  %v27125_v21 = vadd.f32 %v24755_v16, %v23638_v15 }
 0x11c   : > { %v27121_v18 = vadd.f32 %v23638_v15, %v431_v17 }
 0x11e   : > { %v24758_v19 = vpop.f32.mrb[2].mxu0  ;;  %471 = vrot.lane.b32.xlu0 %v27121_v18, %s31020_s25 }
 0x11f   : > { %v441_v20 = vpop.f32.mrb[3].mxu0  ;;  %v27129_v23 = vadd.f32 %v24758_v19, %v23638_v15 }
 0x120   : > { %v27127_v22 = vadd.f32 %v23638_v15, %v441_v20 }
 0x122   : > { %626 = vrot.lane.b32.xlu1 %v27127_v22, %s31020_s25  ;;  %549 = vrot.lane.b32.xlu0 %v27125_v21, %s31020_s25  ;;  %v24761_v24 = vpop.f32.mrb[4].mxu0 }
 0x123   : > { %v451_v25 = vpop.f32.mrb[5].mxu0  ;;  %v27139_v27 = vadd.f32 %v24761_v24, %v23638_v15 }
 0x124   : > { %v27135_v26 = vadd.f32 %v23638_v15, %v451_v25 }
 0x126   : > { %703 = vrot.lane.b32.xlu1 %v27129_v23, %s31020_s25  ;;  %v24764_v28 = vpop.f32.mrb[6].mxu0  ;;  %780 = vrot.lane.b32.xlu0 %v27135_v26, %s31020_s25 }
 0x127   : > { %v461_v29 = vpop.f32.mrb[7].mxu0  ;;  %v27147_v31 = vadd.f32 %v24764_v28, %v23638_v15 }
 0x128   : > { %v27143_v30 = vadd.f32 %v23638_v15, %v461_v29 }
 0x12a   : > { %857 = vrot.lane.b32.xlu1 %v27139_v27, %s31020_s25  ;;  %934 = vrot.lane.b32.xlu0 %v27143_v30, %s31020_s25 }
 0x12e   : > { %1011 = vrot.lane.b32.xlu1 %v27147_v31, %s31020_s25 }
 0x190   : > { %v472_v32 = vpop.permute.xlu0 %471 }
 0x191   : > { %24766 = vmatpush3.xpose.msk.msra.mxu1 %vm473_vm2, %v472_v32 }
 0x192   : > { %24770 = vmatprep.subr.mxu1 %v26943_v14 }
 0x194   : > { %v627_v33 = vpop.permute.xlu1 %626  ;;  %24768 = vmatmul.mubr.msk.f32.vlgmr.msra.gmra.mrb[0].mxu1 %vm473_vm2, %v27121_v18  ;;  %v550_v34 = vpop.permute.xlu0 %549 }
 0x195   : > { %24771 = vmatpush3.xpose.msk.msra.mxu1 %vm473_vm2, %v550_v34  ;;  %24772 = vmatprep.mubr.msk.f32.mxu1 %vm26944_vm1, %v26943_v14 }
 0x196   : > { %24775 = vmatprep.subr.mxu1 %v26943_v14 }
 0x198   : > { %v704_v35 = vpop.permute.xlu1 %703  ;;  %24773 = vmatmul.mubr.msk.f32.vlgmr.msra.gmra.mrb[2].mxu1 %vm473_vm2, %v27125_v21  ;;  %v781_v37 = vpop.permute.xlu0 %780 }
 0x199   : > { %24776 = vmatpush3.xpose.msk.msra.mxu1 %vm473_vm2, %v627_v33  ;;  %24777 = vmatprep.mubr.msk.f32.mxu1 %vm26944_vm1, %v26943_v14 }
 0x19a   : > { %24780 = vmatprep.subr.mxu1 %v26943_v14 }
 0x19c   : > { %v858_v36 = vpop.permute.xlu1 %857  ;;  %24778 = vmatmul.mubr.msk.f32.vlgmr.msra.gmra.mrb[4].mxu1 %vm473_vm2, %v27127_v22  ;;  %v935_v39 = vpop.permute.xlu0 %934 }
 0x19d   : > { %24781 = vmatpush3.xpose.msk.msra.mxu1 %vm473_vm2, %v704_v35  ;;  %24791 = vmatpush3.xpose.msk.msra.mxu0 %vm473_vm2, %v858_v36 }
 0x19e   : > { %24782 = vmatprep.mubr.msk.f32.mxu1 %vm26944_vm1, %v26943_v14  ;;  %24800 = vmatprep.subr.mxu0 %v26943_v14 }
 0x19f   : > { %24785 = vmatprep.subr.mxu1 %v26943_v14 }
 0x1a0   : > { %24793 = vmatmul.mubr.msk.f32.vlgmr.msra.gmra.mrb[8].mxu0 %vm473_vm2, %v27139_v27  ;;  %v1012_v38 = vpop.permute.xlu1 %1011  ;;  %24783 = vmatmul.mubr.msk.f32.vlgmr.msra.gmra.mrb[6].mxu1 %vm473_vm2, %v27129_v23 }
 0x1a1   : > { %24786 = vmatpush3.xpose.msk.msra.mxu1 %vm473_vm2, %v781_v37  ;;  %24801 = vmatpush3.xpose.msk.msra.mxu0 %vm473_vm2, %v1012_v38 }
 0x1a2   : > { %24787 = vmatprep.mubr.msk.f32.mxu1 %vm26944_vm1, %v26943_v14  ;;  %24802 = vmatprep.mubr.msk.f32.mxu0 %vm26944_vm1, %v26943_v14 }
 0x1a3   : > { %24795 = vmatprep.subr.mxu1 %v26943_v14  ;;  %24810 = vmatprep.subr.mxu0 %v26943_v14 }
 0x1a4   : > { %24788 = vmatmul.mubr.msk.f32.vlgmr.msra.gmra.mrb[8].mxu1 %vm473_vm2, %v27135_v26  ;;  %24803 = vmatmul.mubr.msk.f32.vlgmr.msra.gmra.mrb[10].mxu0 %vm473_vm2, %v27147_v31 }
 0x1a5   : > { %24796 = vmatpush3.xpose.msk.msra.mxu1 %vm473_vm2, %v935_v39  ;;  %24797 = vmatprep.mubr.msk.f32.mxu1 %vm26944_vm1, %v26943_v14 }
 0x1a6   : > { %24805 = vmatprep.subr.mxu1 %v26943_v14  ;;  %24812 = vmatprep.mubr.msk.f32.mxu0 %vm26944_vm1, %v26943_v14 }
 0x1a8   : > { %24798 = vmatmul.mubr.msk.f32.vlgmr.msra.gmra.mrb[10].mxu1 %vm473_vm2, %v27143_v30 }
 0x1a9   : > { %24807 = vmatprep.mubr.msk.f32.mxu1 %vm26944_vm1, %v26943_v14 }
 0x267   : > { %v544_v40 = vpop.f32.mrb[0].mxu1 }
 0x268   : > { %v24769_v41 = vpop.f32.mrb[1].mxu1  ;;  %v1087_v42 = vmul.f32 0.17677669, %v544_v40 }
 0x26a   : > { %v1095_v43 = vsel %vm473_vm2, %v1087_v42, -inf }
 0x26b   : > { %1096 = vmax.xlane.f32.xlu0 %v1095_v43  ;;  %v621_v44 = vpop.f32.mrb[2].mxu1 }
 0x26c   : > { %v24774_v45 = vpop.f32.mrb[3].mxu1  ;;  %v1088_v46 = vmul.f32 0.17677669, %v621_v44 }
 0x26e   : > { %v1098_v47 = vsel %vm473_vm2, %v1088_v46, -inf }
 0x26f   : > { %1099 = vmax.xlane.f32.xlu1 %v1098_v47  ;;  %v698_v48 = vpop.f32.mrb[4].mxu1 }
 0x270   : > { %v24779_v49 = vpop.f32.mrb[5].mxu1  ;;  %v1089_v50 = vmul.f32 0.17677669, %v698_v48 }
 0x272   : > { %v1101_v51 = vsel %vm473_vm2, %v1089_v50, -inf }
 0x273   : > { %v929_v52 = vpop.f32.mrb[8].mxu0  ;;  %1102 = vmax.xlane.f32.xlu0 %v1101_v51  ;;  %v775_v53 = vpop.f32.mrb[6].mxu1 }
 0x274   : > { %v24784_v54 = vpop.f32.mrb[7].mxu1  ;;  %v24794_v55 = vpop.f32.mrb[9].mxu0  ;;  %v27204_v56 = vmul.f32 0.17677669, %v775_v53  ;;  %v1092_v58 = vmul.f32 0.17677669, %v929_v52 }
 0x276   : > { %v1104_v57 = vsel %vm473_vm2, %v27204_v56, -inf  ;;  %v1110_v63 = vsel %vm473_vm2, %v1092_v58, -inf }
 0x277   : > { %v1083_v59 = vpop.f32.mrb[10].mxu0  ;;  %1105 = vmax.xlane.f32.xlu0 %v1104_v57  ;;  %v852_v60 = vpop.f32.mrb[8].mxu1 }
 0x278   : > { %v24789_v61 = vpop.f32.mrb[9].mxu1  ;;  %v24804_v62 = vpop.f32.mrb[11].mxu0  ;;  %v1094_v0 = vmul.f32 0.17677669, %v1083_v59  ;;  %v27228_v4 = vmul.f32 0.17677669, %v852_v60 }
 0x27a   : > { %v1116_v3 = vsel %vm473_vm2, %v1094_v0, -inf  ;;  %v1107_v5 = vsel %vm473_vm2, %v27228_v4, -inf }
 0x27b   : > { %1111 = vmax.xlane.f32.xlu0 %v1110_v63  ;;  %v1006_v1 = vpop.f32.mrb[10].mxu1 }
 0x27c   : > { %v24799_v2 = vpop.f32.mrb[11].mxu1  ;;  %v27232_v6 = vmul.f32 0.17677669, %v1006_v1 }
 0x27e   : > { %v1113_v7 = vsel %vm473_vm2, %v27232_v6, -inf }
 0x27f   : > { %1117 = vmax.xlane.f32.xlu0 %v1116_v3 }
 0x280   : > { %1183 = vrot.lane.b32.xlu1 %v27121_v18, %s31014_s20 }
 0x284   : > { %1335 = vrot.lane.b32.xlu1 %v27127_v22, %s31014_s20 }
 0x288   : > { %1411 = vrot.lane.b32.xlu1 %v27129_v23, %s31014_s20 }
 0x28c   : > { %1563 = vrot.lane.b32.xlu1 %v27139_v27, %s31014_s20 }
 0x290   : > { %1715 = vrot.lane.b32.xlu1 %v27147_v31, %s31014_s20 }
 0x295   : > { %1259 = vrot.lane.b32.xlu0 %v27125_v21, %s31014_s20 }
 0x299   : > { %1487 = vrot.lane.b32.xlu0 %v27135_v26, %s31014_s20 }
 0x29d   : > { %1639 = vrot.lane.b32.xlu0 %v27143_v30, %s31014_s20 }
 0x2a1   : > { %1801 = vrot.lane.b32.xlu0 %v27121_v18, %s31016_s26 }
 0x2b4   : > { %1108 = vmax.xlane.f32.xlu1 %v1107_v5 }
 0x2b8   : > { %1114 = vmax.xlane.f32.xlu1 %v1113_v7 }
 0x2c9   : > { %1879 = vrot.lane.b32.xlu1 %v27125_v21, %s31016_s26 }
 0x2f8   : > { %v1097_v8 = vpop.xlane.xlu0 %1096 }
 0x2f9   : > { %v1119_v9 = vsub.f32 %v1087_v42, %v1097_v8 }
 0x2fb   : > { %v1127_v10 = vmul.f32 1.442695, %v1119_v9 }
 0x2fc   : > { %v1100_v11 = vpop.xlane.xlu1 %1099 }
 0x2fd   : > { %26331 = vpow2.f32 %v1127_v10  ;;  %v1120_v12 = vsub.f32 %v1088_v46, %v1100_v11 }
 0x2ff   : > { %v1129_v13 = vmul.f32 1.442695, %v1120_v12 }
 0x300   : > { %v1184_v15 = vpop.permute.xlu1 %1183  ;;  %v1103_v16 = vpop.xlane.xlu0 %1102 }
 0x301   : > { %26333 = vpow2.f32 %v1129_v13  ;;  %v1121_v17 = vsub.f32 %v1089_v50, %v1103_v16  ;;  %24806 = vmatpush3.msra.mxu1 %v1184_v15 }
 0x302   : > { %24815 = vmatprep.subr.mxu1 %v26943_v14 }
 0x303   : > { %v1131_v19 = vmul.f32 1.442695, %v1121_v17 }
 0x304   : > { %v1106_v20 = vpop.xlane.xlu0 %1105  ;;  %v1336_v49 = vpop.permute.xlu1 %1335 }
 0x305   : > { %26335 = vpow2.f32 %v1131_v19  ;;  %v1122_v33 = vsub.f32 %v27204_v56, %v1106_v20 }
 0x307   : > { %v27239_v24 = vpop.eup %26331  ;;  %v1133_v39 = vmul.f32 1.442695, %v1122_v33 }
 0x308   : > { %v1112_v25 = vpop.xlane.xlu0 %1111  ;;  %v1143_v28 = vsel %vm473_vm2, %v27239_v24, 0.0  ;;  %v1412_v50 = vpop.permute.xlu1 %1411 }
 0x309   : > { %v1124_v29 = vsub.f32 %v1092_v58, %v1112_v25  ;;  %1144 = vadd.xlane.f32.xlu1 %v1143_v28 }
 0x30b   : > { %v27243_v32 = vpop.eup %26333  ;;  %v1137_v34 = vmul.f32 1.442695, %v1124_v29 }
 0x30c   : > { %v1118_v35 = vpop.xlane.xlu0 %1117  ;;  %v1146_v36 = vsel %vm473_vm2, %v27243_v32, 0.0  ;;  %v27271_v51 = vpop.permute.xlu1 %1563 }
 0x30d   : > { %26337 = vpow2.f32 %v1137_v34  ;;  %v1126_v37 = vsub.f32 %v1094_v0, %v1118_v35  ;;  %1147 = vadd.xlane.f32.xlu0 %v1146_v36 }
 0x30f   : > { %v27248_v38 = vpop.eup %26335  ;;  %v1141_v40 = vmul.f32 1.442695, %v1126_v37 }
 0x310   : > { %v1260_v41 = vpop.permute.xlu0 %1259  ;;  %v1149_v42 = vsel %vm473_vm2, %v27248_v38, 0.0  ;;  %v27277_v52 = vpop.permute.xlu1 %1715 }
 0x311   : > { %26339 = vpow2.f32 %v1141_v40  ;;  %1150 = vadd.xlane.f32.xlu1 %v1149_v42  ;;  %24811 = vmatpush3.msra.mxu0 %v1260_v41 }
 0x312   : > { %24820 = vmatprep.subr.mxu0 %v26943_v14  ;;  %26341 = vpow2.f32 %v1133_v39 }
 0x314   : > { %v1488_v63 = vpop.permute.xlu0 %1487 }
 0x317   : > { %v27253_v43 = vpop.eup %26337 }
 0x318   : > { %v1158_v44 = vsel %vm473_vm2, %v27253_v43, 0.0  ;;  %v27307_v0 = vpop.permute.xlu0 %1639 }
 0x319   : > { %1159 = vadd.xlane.f32.xlu0 %v1158_v44 }
 0x31b   : > { %v27257_v45 = vpop.eup %26339 }
 0x31c   : > { %v1164_v46 = vsel %vm473_vm2, %v27257_v45, 0.0  ;;  %v27261_v47 = vpop.eup %26341  ;;  %v27309_v2 = vpop.permute.xlu0 %1801 }
 0x31d   : > { %1165 = vadd.xlane.f32.xlu0 %v1164_v46  ;;  %v1152_v48 = vsel %vm473_vm2, %v27261_v47, 0.0 }
 0x321   : > { %1153 = vadd.xlane.f32.xlu0 %v1152_v48 }
 0x322   : > { %1877 = vrot.lane.b32.xlu1 %v27125_v21, %s31018_s19 }
 0x326   : > { %2035 = vrot.lane.b32.xlu1 %v27129_v23, %s31016_s26 }
 0x32a   : > { %2033 = vrot.lane.b32.xlu1 %v27129_v23, %s31018_s19 }
 0x337   : > { %1799 = vrot.lane.b32.xlu0 %v27121_v18, %s31018_s19 }
 0x33b   : > { %1957 = vrot.lane.b32.xlu0 %v27127_v22, %s31016_s26 }
 0x33f   : > { %1955 = vrot.lane.b32.xlu0 %v27127_v22, %s31018_s19 }
 0x341   : > { %v1109_v53 = vpop.xlane.xlu1 %1108 }
 0x342   : > { %v1123_v54 = vsub.f32 %v27228_v4, %v1109_v53 }
 0x343   : > { %2113 = vrot.lane.b32.xlu0 %v27135_v26, %s31016_s26 }
 0x344   : > { %v1135_v55 = vmul.f32 1.442695, %v1123_v54 }
 0x345   : > { %v1115_v56 = vpop.xlane.xlu1 %1114 }
 0x346   : > { %26343 = vpow2.f32 %v1135_v55  ;;  %v1125_v57 = vsub.f32 %v27232_v6, %v1115_v56 }
 0x347   : > { %2111 = vrot.lane.b32.xlu0 %v27135_v26, %s31018_s19 }
 0x348   : > { %v1139_v58 = vmul.f32 1.442695, %v1125_v57 }
 0x349   : > { %v1880_v1 = vpop.permute.xlu1 %1879 }
 0x34a   : > { %26345 = vpow2.f32 %v1139_v58 }
 0x34b   : > { %2269 = vrot.lane.b32.xlu0 %v27143_v30, %s31016_s26 }
 0x34f   : > { %2267 = vrot.lane.b32.xlu0 %v27143_v30, %s31018_s19 }
 0x350   : > { %v27291_v59 = vpop.eup %26343 }
 0x351   : > { %v1155_v60 = vsel %vm473_vm2, %v27291_v59, 0.0 }
 0x352   : > { %1156 = vadd.xlane.f32.xlu1 %v1155_v60 }
 0x354   : > { %v27295_v61 = vpop.eup %26345 }
 0x355   : > { %v1161_v62 = vsel %vm473_vm2, %v27295_v61, 0.0 }
 0x356   : > { %1162 = vadd.xlane.f32.xlu1 %v1161_v62 }
 0x367   : > { %2191 = vrot.lane.b32.xlu1 %v27139_v27, %s31016_s26 }
 0x36b   : > { %2189 = vrot.lane.b32.xlu1 %v27139_v27, %s31018_s19 }
 0x36f   : > { %2347 = vrot.lane.b32.xlu1 %v27147_v31, %s31016_s26 }
 0x373   : > { %2345 = vrot.lane.b32.xlu1 %v27147_v31, %s31018_s19 }
 0x396   : > { %v1145_v3 = vpop.xlane.xlu1 %1144 }
 0x397   : > { %26347 = vrcp.f32 %v1145_v3 }
 0x39a   : > { %v1148_v4 = vpop.xlane.xlu0 %1147 }
 0x39b   : > { %26349 = vrcp.f32 %v1148_v4 }
 0x39e   : > { %v1151_v5 = vpop.xlane.xlu1 %1150 }
 0x39f   : > { %26351 = vrcp.f32 %v1151_v5 }
 0x3a1   : > { %v26348_v6 = vpop.eup %26347 }
 0x3a2   : > { %v1175_v7 = vmul.f32 %v26348_v6, %v27239_v24  ;;  %v1878_v25 = vpop.permute.xlu1 %1877 }
 0x3a4   : > { %24808 = vmatmul.mubr.msk.f32.vlgmr.msra.gmra.mrb[12].mxu1 %vm473_vm2, %v1175_v7 }
 0x3a5   : > { %v26350_v8 = vpop.eup %26349  ;;  %24816 = vmatpush3.msra.mxu1 %v1336_v49  ;;  %24817 = vmatprep.mubr.msk.f32.mxu1 %vm26944_vm1, %v26943_v14 }
 0x3a6   : > { %v1160_v9 = vpop.xlane.xlu0 %1159  ;;  %v1176_v10 = vmul.f32 %v26350_v8, %v27243_v32  ;;  %24825 = vmatprep.subr.mxu1 %v26943_v14  ;;  %v2036_v29 = vpop.permute.xlu1 %2035 }
 0x3a8   : > { %24813 = vmatmul.mubr.msk.f32.vlgmr.msra.gmra.mrb[12].mxu0 %vm473_vm2, %v1176_v10 }
 0x3a9   : > { %v26352_v11 = vpop.eup %26351  ;;  %24821 = vmatpush3.msra.mxu0 %v1412_v50  ;;  %24822 = vmatprep.mubr.msk.f32.mxu0 %vm26944_vm1, %v26943_v14 }
 0x3aa   : > { %v1166_v12 = vpop.xlane.xlu0 %1165  ;;  %v1177_v13 = vmul.f32 %v26352_v11, %v27248_v38  ;;  %24830 = vmatprep.subr.mxu0 %v26943_v14  ;;  %v2034_v32 = vpop.permute.xlu1 %2033 }
 0x3ac   : > { %24818 = vmatmul.mubr.msk.f32.vlgmr.msra.gmra.mrb[14].mxu1 %vm473_vm2, %v1177_v13 }
 0x3ad   : > { %24826 = vmatpush3.msra.mxu1 %v1488_v63  ;;  %24827 = vmatprep.mubr.msk.f32.mxu1 %vm26944_vm1, %v26943_v14 }
 0x3ae   : > { %v1154_v15 = vpop.xlane.xlu0 %1153  ;;  %24835 = vmatprep.subr.mxu1 %v26943_v14 }
 0x3af   : > { %26353 = vrcp.f32 %v1154_v15 }
 0x3b0   : > { %26355 = vrcp.f32 %v1160_v9 }
 0x3b1   : > { %26357 = vrcp.f32 %v1166_v12 }
 0x3b2   : > { %v1800_v33 = vpop.permute.xlu0 %1799 }
 0x3b6   : > { %v1958_v36 = vpop.permute.xlu0 %1957 }
 0x3b9   : > { %v26354_v16 = vpop.eup %26353 }
 0x3ba   : > { %v1178_v17 = vmul.f32 %v26354_v16, %v27261_v47  ;;  %v26356_v19 = vpop.eup %26355  ;;  %v1956_v39 = vpop.permute.xlu0 %1955 }
 0x3bb   : > { %v1180_v20 = vmul.f32 %v26356_v19, %v27253_v43  ;;  %v26358_v24 = vpop.eup %26357 }
 0x3bc   : > { %24823 = vmatmul.mubr.msk.f32.vlgmr.msra.gmra.mrb[14].mxu0 %vm473_vm2, %v1178_v17  ;;  %v1182_v28 = vmul.f32 %v26358_v24, %v27257_v45 }
 0x3bd   : > { %24831 = vmatpush3.msra.mxu0 %v27271_v51  ;;  %24832 = vmatprep.mubr.msk.f32.mxu0 %vm26944_vm1, %v26943_v14 }
 0x3be   : > { %24840 = vmatprep.subr.mxu0 %v26943_v14  ;;  %v2114_v45 = vpop.permute.xlu0 %2113 }
 0x3c0   : > { %24833 = vmatmul.mubr.msk.f32.vlgmr.msra.gmra.mrb[16].mxu0 %vm473_vm2, %v1180_v20 }
 0x3c1   : > { %24841 = vmatpush3.msra.mxu0 %v27277_v52  ;;  %24842 = vmatprep.mubr.msk.f32.mxu0 %vm26944_vm1, %v26943_v14 }
 0x3c2   : > { %24850 = vmatprep.subr.mxu0 %v26943_v14  ;;  %v2112_v47 = vpop.permute.xlu0 %2111 }
 0x3c4   : > { %24843 = vmatmul.mubr.msk.f32.vlgmr.msra.gmra.mrb[18].mxu0 %vm473_vm2, %v1182_v28 }
 0x3c5   : > { %24852 = vmatprep.mubr.msk.f32.mxu0 %vm26944_vm1, %v26943_v14 }
 0x3c6   : > { %v2270_v48 = vpop.permute.xlu0 %2269 }
 0x3c8   : > { %24851 = vmatpush3.xpose.msk.msra.mxu0 %vm473_vm2, %v1880_v1 }
 0x3c9   : > { %24860 = vmatprep.subr.mxu0 %v26943_v14 }
 0x3ca   : > { %v2268_v49 = vpop.permute.xlu0 %2267 }
 0x3cb   : > { %24853 = vmatmul.mubr.msk.f32.vlgmr.msra.gmra.mrb[20].mxu0 %vm473_vm2, %v1878_v25 }
 0x3cc   : > { %24861 = vmatpush3.xpose.msk.msra.mxu0 %vm473_vm2, %v2036_v29  ;;  %24862 = vmatprep.mubr.msk.f32.mxu0 %vm26944_vm1, %v26943_v14 }
 0x3cd   : > { %24870 = vmatprep.subr.mxu0 %v26943_v14 }
 0x3cf   : > { %24863 = vmatmul.mubr.msk.f32.vlgmr.msra.gmra.mrb[22].mxu0 %vm473_vm2, %v2034_v32 }
 0x3d0   : > { %24872 = vmatprep.mubr.msk.f32.mxu0 %vm26944_vm1, %v26943_v14 }
 0x3df   : > { %v1157_v34 = vpop.xlane.xlu1 %1156 }
 0x3e0   : > { %26359 = vrcp.f32 %v1157_v34 }
 0x3e3   : > { %v1163_v35 = vpop.xlane.xlu1 %1162 }
 0x3e4   : > { %26361 = vrcp.f32 %v1163_v35 }
 0x3e7   : > { %v2192_v37 = vpop.permute.xlu1 %2191 }
 0x3e8   : > { %24871 = vmatpush3.xpose.msk.msra.mxu0 %vm473_vm2, %v2192_v37 }
 0x3e9   : > { %24880 = vmatprep.subr.mxu0 %v26943_v14 }
 0x3ea   : > { %v26360_v38 = vpop.eup %26359 }
 0x3eb   : > { %v2190_v40 = vpop.permute.xlu1 %2189  ;;  %v1179_v41 = vmul.f32 %v26360_v38, %v27291_v59 }
 0x3ec   : > { %24873 = vmatmul.mubr.msk.f32.vlgmr.msra.gmra.mrb[24].mxu0 %vm473_vm2, %v2190_v40 }
 0x3ed   : > { %24828 = vmatmul.mubr.msk.f32.vlgmr.msra.gmra.mrb[16].mxu1 %vm473_vm2, %v1179_v41  ;;  %24882 = vmatprep.mubr.msk.f32.mxu0 %vm26944_vm1, %v26943_v14 }
 0x3ee   : > { %v26362_v42 = vpop.eup %26361  ;;  %24836 = vmatpush3.msra.mxu1 %v27307_v0  ;;  %24837 = vmatprep.mubr.msk.f32.mxu1 %vm26944_vm1, %v26943_v14 }
 0x3ef   : > { %v2348_v43 = vpop.permute.xlu1 %2347  ;;  %v1181_v44 = vmul.f32 %v26362_v42, %v27295_v61  ;;  %24845 = vmatprep.subr.mxu1 %v26943_v14 }
 0x3f0   : > { %24881 = vmatpush3.xpose.msk.msra.mxu0 %vm473_vm2, %v2348_v43 }
 0x3f1   : > { %24838 = vmatmul.mubr.msk.f32.vlgmr.msra.gmra.mrb[18].mxu1 %vm473_vm2, %v1181_v44  ;;  %24890 = vmatprep.subr.mxu0 %v26943_v14 }
 0x3f2   : > { %24847 = vmatprep.mubr.msk.f32.mxu1 %vm26944_vm1, %v26943_v14 }
 0x3f3   : > { %v2346_v46 = vpop.permute.xlu1 %2345 }
 0x3f4   : > { %24883 = vmatmul.mubr.msk.f32.vlgmr.msra.gmra.mrb[26].mxu0 %vm473_vm2, %v2346_v46 }
 0x3f5   : > { %24846 = vmatpush3.xpose.msk.msra.mxu1 %vm473_vm2, %v27309_v2  ;;  %24892 = vmatprep.mubr.msk.f32.mxu0 %vm26944_vm1, %v26943_v14 }
 0x3f6   : > { %24855 = vmatprep.subr.mxu1 %v26943_v14 }
 0x3f8   : > { %24848 = vmatmul.mubr.msk.f32.vlgmr.msra.gmra.mrb[20].mxu1 %vm473_vm2, %v1800_v33 }
 0x3f9   : > { %24856 = vmatpush3.xpose.msk.msra.mxu1 %vm473_vm2, %v1958_v36  ;;  %24857 = vmatprep.mubr.msk.f32.mxu1 %vm26944_vm1, %v26943_v14 }
 0x3fa   : > { %24865 = vmatprep.subr.mxu1 %v26943_v14 }
 0x3fc   : > { %24858 = vmatmul.mubr.msk.f32.vlgmr.msra.gmra.mrb[22].mxu1 %vm473_vm2, %v1956_v39 }
 0x3fd   : > { %24866 = vmatpush3.xpose.msk.msra.mxu1 %vm473_vm2, %v2114_v45  ;;  %24867 = vmatprep.mubr.msk.f32.mxu1 %vm26944_vm1, %v26943_v14 }
 0x3fe   : > { %24875 = vmatprep.subr.mxu1 %v26943_v14 }
 0x400   : > { %24868 = vmatmul.mubr.msk.f32.vlgmr.msra.gmra.mrb[24].mxu1 %vm473_vm2, %v2112_v47 }
 0x401   : > { %24876 = vmatpush3.xpose.msk.msra.mxu1 %vm473_vm2, %v2270_v48  ;;  %24877 = vmatprep.mubr.msk.f32.mxu1 %vm26944_vm1, %v26943_v14 }
 0x402   : > { %24885 = vmatprep.subr.mxu1 %v26943_v14 }
 0x404   : > { %24878 = vmatmul.mubr.msk.f32.vlgmr.msra.gmra.mrb[26].mxu1 %vm473_vm2, %v2268_v49 }
 0x405   : > { %24887 = vmatprep.mubr.msk.f32.mxu1 %vm26944_vm1, %v26943_v14 }
 0x477   : > { %v27393_v50 = vpop.f32.mrb[12].mxu1 }
 0x478   : > { %v24809_v51 = vpop.f32.mrb[13].mxu1 }
 0x47b   : > { %v27395_v52 = vpop.f32.mrb[12].mxu0 }
 0x47c   : > { %v24814_v53 = vpop.f32.mrb[13].mxu0 }
 0x47f   : > { %v27397_v54 = vpop.f32.mrb[14].mxu1 }
 0x480   : > { %v24819_v55 = vpop.f32.mrb[15].mxu1 }
 0x48f   : > { %v27399_v56 = vpop.f32.mrb[14].mxu0 }
 0x490   : > { %v24824_v57 = vpop.f32.mrb[15].mxu0 }
 0x493   : > { %v27401_v58 = vpop.f32.mrb[16].mxu0 }
 0x494   : > { %v24834_v59 = vpop.f32.mrb[17].mxu0 }
 0x497   : > { %v27403_v60 = vpop.f32.mrb[18].mxu0 }
 0x498   : > { %v24844_v61 = vpop.f32.mrb[19].mxu0 }
 0x49e   : > { %v1951_v62 = vpop.f32.mrb[20].mxu0 }
 0x49f   : > { %v24854_v63 = vpop.f32.mrb[21].mxu0  ;;  %v2424_v0 = vmul.f32 0.17677669, %v1951_v62 }
 0x4a1   : > { %v2434_v1 = vsel %vm473_vm2, %v2424_v0, -inf }
 0x4a2   : > { %2435 = vmax.xlane.f32.xlu1 %v2434_v1  ;;  %v2107_v2 = vpop.f32.mrb[22].mxu0 }
 0x4a3   : > { %v24864_v3 = vpop.f32.mrb[23].mxu0  ;;  %v2426_v25 = vmul.f32 0.17677669, %v2107_v2 }
 0x4a5   : > { %v2440_v33 = vsel %vm473_vm2, %v2426_v25, -inf }
 0x4bf   : > { %v2263_v4 = vpop.f32.mrb[24].mxu0 }
 0x4c0   : > { %v27406_v5 = vpop.f32.mrb[16].mxu1  ;;  %v24874_v6 = vpop.f32.mrb[25].mxu0  ;;  %v2428_v35 = vmul.f32 0.17677669, %v2263_v4 }
 0x4c1   : > { %v24829_v7 = vpop.f32.mrb[17].mxu1 }
 0x4c2   : > { %v2446_v38 = vsel %vm473_vm2, %v2428_v35, -inf }
 0x4c4   : > { %v27408_v8 = vpop.f32.mrb[18].mxu1 }
 0x4c5   : > { %v24839_v9 = vpop.f32.mrb[19].mxu1 }
 0x4c7   : > { %v2419_v10 = vpop.f32.mrb[26].mxu0 }
 0x4c8   : > { %v24884_v11 = vpop.f32.mrb[27].mxu0  ;;  %v2430_v39 = vmul.f32 0.17677669, %v2419_v10 }
 0x4ca   : > { %v2452_v40 = vsel %vm473_vm2, %v2430_v39, -inf }
 0x4cb   : > { %v1873_v12 = vpop.f32.mrb[20].mxu1 }
 0x4cc   : > { %v24849_v13 = vpop.f32.mrb[21].mxu1  ;;  %v2423_v15 = vmul.f32 0.17677669, %v1873_v12 }
 0x4ce   : > { %v2431_v16 = vsel %vm473_vm2, %v2423_v15, -inf }
 0x4cf   : > { %2432 = vmax.xlane.f32.xlu0 %v2431_v16  ;;  %v2029_v17 = vpop.f32.mrb[22].mxu1 }
 0x4d0   : > { %v24859_v19 = vpop.f32.mrb[23].mxu1  ;;  %v2425_v20 = vmul.f32 0.17677669, %v2029_v17 }
 0x4d2   : > { %v2437_v24 = vsel %vm473_vm2, %v2425_v20, -inf }
 0x4d3   : > { %2438 = vmax.xlane.f32.xlu0 %v2437_v24  ;;  %v2185_v28 = vpop.f32.mrb[24].mxu1 }
 0x4d4   : > { %v24869_v29 = vpop.f32.mrb[25].mxu1  ;;  %v2427_v32 = vmul.f32 0.17677669, %v2185_v28 }
 0x4d6   : > { %v2443_v34 = vsel %vm473_vm2, %v2427_v32, -inf }
 0x4d7   : > { %2441 = vmax.xlane.f32.xlu0 %v2440_v33  ;;  %2444 = vmax.xlane.f32.xlu1 %v2443_v34  ;;  %v2341_v36 = vpop.f32.mrb[26].mxu1 }
 0x4d8   : > { %v24879_v37 = vpop.f32.mrb[27].mxu1  ;;  %v27428_v41 = vmul.f32 0.17677669, %v2341_v36 }
 0x4da   : > { %v2449_v42 = vsel %vm473_vm2, %v27428_v41, -inf }
 0x4db   : > { %2447 = vmax.xlane.f32.xlu0 %v2446_v38 }
 0x4df   : > { %2453 = vmax.xlane.f32.xlu0 %v2452_v40 }
 0x4e8   : > { %2519 = vrot.lane.b32.xlu1 %v27121_v18, %s31012_s10 }
 0x4f5   : > { %2595 = vrot.lane.b32.xlu0 %v27125_v21, %s31012_s10 }
 0x4f9   : > { %2823 = vrot.lane.b32.xlu0 %v27135_v26, %s31012_s10 }
 0x4fd   : > { %2975 = vrot.lane.b32.xlu0 %v27143_v30, %s31012_s10 }
 0x501   : > { %3169 = vrot.lane.b32.xlu0 %v27121_v18, %s31010_s17 }
 0x505   : > { %3167 = vrot.lane.b32.xlu0 %v27121_v18, %s31008_s12 }
 0x509   : > { %3325 = vrot.lane.b32.xlu0 %v27127_v22, %s31010_s17 }
 0x50c   : > { %2450 = vmax.xlane.f32.xlu1 %v2449_v42 }
 0x51d   : > { %2671 = vrot.lane.b32.xlu1 %v27127_v22, %s31012_s10 }
 0x521   : > { %2747 = vrot.lane.b32.xlu1 %v27129_v23, %s31012_s10 }
 0x525   : > { %2899 = vrot.lane.b32.xlu1 %v27139_v27, %s31012_s10 }
 0x529   : > { %3051 = vrot.lane.b32.xlu1 %v27147_v31, %s31012_s10 }
 0x52d   : > { %3247 = vrot.lane.b32.xlu1 %v27125_v21, %s31010_s17 }
 0x52f   : > { %v2436_v43 = vpop.xlane.xlu1 %2435 }
 0x530   : > { %v2456_v44 = vsub.f32 %v2424_v0, %v2436_v43 }
 0x531   : > { %3245 = vrot.lane.b32.xlu1 %v27125_v21, %s31008_s12 }
 0x532   : > { %v2465_v45 = vmul.f32 1.442695, %v2456_v44 }
 0x534   : > { %26363 = vpow2.f32 %v2465_v45 }
 0x535   : > { %3403 = vrot.lane.b32.xlu1 %v27129_v23, %s31010_s17 }
 0x53e   : > { %v27448_v46 = vpop.eup %26363 }
 0x53f   : > { %v2482_v47 = vsel %vm473_vm2, %v27448_v46, 0.0 }
 0x540   : > { %2483 = vadd.xlane.f32.xlu0 %v2482_v47 }
 0x55c   : > { %v2433_v48 = vpop.xlane.xlu0 %2432 }
 0x55d   : > { %v2455_v49 = vsub.f32 %v2423_v15, %v2433_v48 }
 0x55f   : > { %v2463_v51 = vmul.f32 1.442695, %v2455_v49 }
 0x560   : > { %v2439_v53 = vpop.xlane.xlu0 %2438 }
 0x561   : > { %26365 = vpow2.f32 %v2463_v51  ;;  %v2457_v55 = vsub.f32 %v2425_v20, %v2439_v53 }
 0x563   : > { %v2467_v57 = vmul.f32 1.442695, %v2457_v55 }
 0x564   : > { %v2445_v59 = vpop.xlane.xlu1 %2444  ;;  %v2442_v61 = vpop.xlane.xlu0 %2441 }
 0x565   : > { %26367 = vpow2.f32 %v2467_v57  ;;  %v2459_v62 = vsub.f32 %v2427_v32, %v2445_v59  ;;  %v2458_v63 = vsub.f32 %v2426_v25, %v2442_v61 }
 0x567   : > { %v2471_v0 = vmul.f32 1.442695, %v2459_v62  ;;  %v2469_v1 = vmul.f32 1.442695, %v2458_v63 }
 0x568   : > { %v2520_v2 = vpop.permute.xlu1 %2519  ;;  %v2448_v3 = vpop.xlane.xlu0 %2447 }
 0x569   : > { %26369 = vpow2.f32 %v2471_v0  ;;  %v2460_v4 = vsub.f32 %v2428_v35, %v2448_v3  ;;  %24886 = vmatpush3.msra.mxu1 %v2520_v2 }
 0x56a   : > { %26371 = vpow2.f32 %v2469_v1  ;;  %24895 = vmatprep.subr.mxu1 %v26943_v14 }
 0x56b   : > { %v27453_v6 = vpop.eup %26365  ;;  %v2473_v7 = vmul.f32 1.442695, %v2460_v4 }
 0x56c   : > { %v2454_v9 = vpop.xlane.xlu0 %2453  ;;  %v2479_v10 = vsel %vm473_vm2, %v27453_v6, 0.0 }
 0x56d   : > { %26373 = vpow2.f32 %v2473_v7  ;;  %v2462_v11 = vsub.f32 %v2430_v39, %v2454_v9  ;;  %2480 = vadd.xlane.f32.xlu1 %v2479_v10 }
 0x56f   : > { %v27457_v12 = vpop.eup %26367  ;;  %v2477_v13 = vmul.f32 1.442695, %v2462_v11 }
 0x570   : > { %v2596_v15 = vpop.permute.xlu0 %2595  ;;  %v2485_v16 = vsel %vm473_vm2, %v27457_v12, 0.0 }
 0x571   : > { %26375 = vpow2.f32 %v2477_v13  ;;  %2486 = vadd.xlane.f32.xlu1 %v2485_v16  ;;  %24891 = vmatpush3.msra.mxu0 %v2596_v15 }
 0x572   : > { %24900 = vmatprep.subr.mxu0 %v26943_v14 }
 0x573   : > { %v27462_v17 = vpop.eup %26369 }
 0x574   : > { %v27464_v19 = vpop.eup %26371  ;;  %v2491_v20 = vsel %vm473_vm2, %v27462_v17, 0.0  ;;  %v2824_v38 = vpop.permute.xlu0 %2823 }
 0x575   : > { %2492 = vadd.xlane.f32.xlu1 %v2491_v20  ;;  %v2488_v24 = vsel %vm473_vm2, %v27464_v19, 0.0 }
 0x576   : > { %2489 = vadd.xlane.f32.xlu0 %v2488_v24 }
 0x577   : > { %v27470_v25 = vpop.eup %26373 }
 0x578   : > { %v2494_v28 = vsel %vm473_vm2, %v27470_v25, 0.0  ;;  %v2976_v39 = vpop.permute.xlu0 %2975 }
 0x57a   : > { %2495 = vadd.xlane.f32.xlu0 %v2494_v28 }
 0x57b   : > { %v27474_v29 = vpop.eup %26375 }
 0x57c   : > { %v2500_v32 = vsel %vm473_vm2, %v27474_v29, 0.0  ;;  %v27495_v40 = vpop.permute.xlu0 %3169 }
 0x57e   : > { %2501 = vadd.xlane.f32.xlu0 %v2500_v32 }
 0x594   : > { %3323 = vrot.lane.b32.xlu0 %v27127_v22, %s31008_s12 }
 0x598   : > { %3481 = vrot.lane.b32.xlu0 %v27135_v26, %s31010_s17 }
 0x599   : > { %v2451_v33 = vpop.xlane.xlu1 %2450 }
 0x59a   : > { %v2461_v34 = vsub.f32 %v27428_v41, %v2451_v33  ;;  %v27499_v41 = vpop.permute.xlu0 %3167 }
 0x59c   : > { %v2475_v35 = vmul.f32 1.442695, %v2461_v34  ;;  %3479 = vrot.lane.b32.xlu0 %v27135_v26, %s31008_s12 }
 0x59d   : > { %v2672_v44 = vpop.permute.xlu1 %2671 }
 0x59e   : > { %26377 = vpow2.f32 %v2475_v35  ;;  %v27505_v42 = vpop.permute.xlu0 %3325 }
 0x5a0   : > { %3637 = vrot.lane.b32.xlu0 %v27143_v30, %s31010_s17 }
 0x5a1   : > { %v2748_v47 = vpop.permute.xlu1 %2747 }
 0x5a4   : > { %3635 = vrot.lane.b32.xlu0 %v27143_v30, %s31008_s12 }
 0x5a5   : > { %v2900_v49 = vpop.permute.xlu1 %2899 }
 0x5a8   : > { %v27489_v36 = vpop.eup %26377 }
 0x5a9   : > { %v2497_v37 = vsel %vm473_vm2, %v27489_v36, 0.0  ;;  %v3052_v51 = vpop.permute.xlu1 %3051 }
 0x5aa   : > { %2498 = vadd.xlane.f32.xlu1 %v2497_v37 }
 0x5ad   : > { %v3248_v53 = vpop.permute.xlu1 %3247 }
 0x5b1   : > { %v3246_v55 = vpop.permute.xlu1 %3245 }
 0x5b5   : > { %v3404_v57 = vpop.permute.xlu1 %3403 }
 0x5bb   : > { %3401 = vrot.lane.b32.xlu1 %v27129_v23, %s31008_s12 }
 0x5bf   : > { %3559 = vrot.lane.b32.xlu1 %v27139_v27, %s31010_s17 }
 0x5c3   : > { %3557 = vrot.lane.b32.xlu1 %v27139_v27, %s31008_s12 }
 0x5c7   : > { %3715 = vrot.lane.b32.xlu1 %v27147_v31, %s31010_s17  ;;  %s31048_s17 = smov 8  }
 0x5cb   : > { %3713 = vrot.lane.b32.xlu1 %v27147_v31, %s31008_s12  ;;  %s31049_s12 = smov 16  }
 0x5cd   : > { %v2484_v43 = vpop.xlane.xlu0 %2483 }
 0x5ce   : > { %26379 = vrcp.f32 %v2484_v43 }
 0x5d8   : > { %v26380_v45 = vpop.eup %26379 }
 0x5d9   : > { %v2512_v48 = vmul.f32 %v26380_v45, %v27448_v46 }
 0x5db   : > { %24893 = vmatmul.mubr.msk.f32.vlgmr.msra.gmra.mrb[28].mxu0 %vm473_vm2, %v2512_v48 }
 0x5dc   : > { %24901 = vmatpush3.msra.mxu0 %v2748_v47  ;;  %24902 = vmatprep.mubr.msk.f32.mxu0 %vm26944_vm1, %v26943_v14 }
 0x5dd   : > { %24910 = vmatprep.subr.mxu0 %v26943_v14 }
 0x5fa   : > { %v2481_v59 = vpop.xlane.xlu1 %2480 }
 0x5fb   : > { %26381 = vrcp.f32 %v2481_v59 }
 0x5fe   : > { %v2487_v61 = vpop.xlane.xlu1 %2486 }
 0x5ff   : > { %26383 = vrcp.f32 %v2487_v61 }
 0x602   : > { %v2493_v62 = vpop.xlane.xlu1 %2492 }
 0x603   : > { %26385 = vrcp.f32 %v2493_v62  ;;  %v2490_v46 = vpop.xlane.xlu0 %2489 }
 0x604   : > { %26387 = vrcp.f32 %v2490_v46 }
 0x605   : > { %v26382_v63 = vpop.eup %26381 }
 0x606   : > { %v2511_v0 = vmul.f32 %v26382_v63, %v27453_v6 }
 0x607   : > { %v2496_v1 = vpop.xlane.xlu0 %2495 }
 0x608   : > { %26389 = vrcp.f32 %v2496_v1  ;;  %24888 = vmatmul.mubr.msk.f32.vlgmr.msra.gmra.mrb[28].mxu1 %vm473_vm2, %v2511_v0 }
 0x609   : > { %v26384_v2 = vpop.eup %26383  ;;  %24896 = vmatpush3.msra.mxu1 %v2672_v44  ;;  %24897 = vmatprep.mubr.msk.f32.mxu1 %vm26944_vm1, %v26943_v14 }
 0x60a   : > { %24905 = vmatprep.subr.mxu1 %v26943_v14  ;;  %v2513_v3 = vmul.f32 %v26384_v2, %v27457_v12 }
 0x60b   : > { %v2502_v4 = vpop.xlane.xlu0 %2501 }
 0x60c   : > { %26391 = vrcp.f32 %v2502_v4  ;;  %24898 = vmatmul.mubr.msk.f32.vlgmr.msra.gmra.mrb[30].mxu1 %vm473_vm2, %v2513_v3 }
 0x60d   : > { %v26386_v7 = vpop.eup %26385  ;;  %24906 = vmatpush3.msra.mxu1 %v2824_v38  ;;  %24907 = vmatprep.mubr.msk.f32.mxu1 %vm26944_vm1, %v26943_v14 }
 0x60e   : > { %v26388_v6 = vpop.eup %26387  ;;  %24915 = vmatprep.subr.mxu1 %v26943_v14  ;;  %v2515_v9 = vmul.f32 %v26386_v7, %v27462_v17 }
 0x60f   : > { %v2514_v10 = vmul.f32 %v26388_v6, %v27464_v19  ;;  %v3324_v19 = vpop.permute.xlu0 %3323 }
 0x610   : > { %24908 = vmatmul.mubr.msk.f32.vlgmr.msra.gmra.mrb[32].mxu1 %vm473_vm2, %v2515_v9 }
 0x611   : > { %24903 = vmatmul.mubr.msk.f32.vlgmr.msra.gmra.mrb[30].mxu0 %vm473_vm2, %v2514_v10  ;;  %24916 = vmatpush3.msra.mxu1 %v2976_v39 }
 0x612   : > { %v26390_v11 = vpop.eup %26389  ;;  %24911 = vmatpush3.msra.mxu0 %v2900_v49  ;;  %24912 = vmatprep.mubr.msk.f32.mxu0 %vm26944_vm1, %v26943_v14 }
 0x613   : > { %24920 = vmatprep.subr.mxu0 %v26943_v14  ;;  %v2516_v12 = vmul.f32 %v26390_v11, %v27470_v25  ;;  %24917 = vmatprep.mubr.msk.f32.mxu1 %vm26944_vm1, %v26943_v14  ;;  %v3482_v25 = vpop.permute.xlu0 %3481 }
 0x614   : > { %24925 = vmatprep.subr.mxu1 %v26943_v14 }
 0x615   : > { %24913 = vmatmul.mubr.msk.f32.vlgmr.msra.gmra.mrb[32].mxu0 %vm473_vm2, %v2516_v12 }
 0x616   : > { %v26392_v13 = vpop.eup %26391  ;;  %24921 = vmatpush3.msra.mxu0 %v3052_v51  ;;  %24922 = vmatprep.mubr.msk.f32.mxu0 %vm26944_vm1, %v26943_v14 }
 0x617   : > { %v2518_v15 = vmul.f32 %v26392_v13, %v27474_v29  ;;  %24930 = vmatprep.subr.mxu0 %v26943_v14  ;;  %v3480_v33 = vpop.permute.xlu0 %3479 }
 0x619   : > { %24923 = vmatmul.mubr.msk.f32.vlgmr.msra.gmra.mrb[34].mxu0 %vm473_vm2, %v2518_v15 }
 0x61a   : > { %24932 = vmatprep.mubr.msk.f32.mxu0 %vm26944_vm1, %v26943_v14 }
 0x61b   : > { %v3638_v35 = vpop.permute.xlu0 %3637 }
 0x61d   : > { %24931 = vmatpush3.xpose.msk.msra.mxu0 %vm473_vm2, %v3248_v53 }
 0x61e   : > { %24940 = vmatprep.subr.mxu0 %v26943_v14 }
 0x620   : > { %24933 = vmatmul.mubr.msk.f32.vlgmr.msra.gmra.mrb[36].mxu0 %vm473_vm2, %v3246_v55 }
 0x621   : > { %24941 = vmatpush3.xpose.msk.msra.mxu0 %vm473_vm2, %v3404_v57  ;;  %24942 = vmatprep.mubr.msk.f32.mxu0 %vm26944_vm1, %v26943_v14 }
 0x622   : > { %24950 = vmatprep.subr.mxu0 %v26943_v14 }
 0x637   : > { %v2499_v16 = vpop.xlane.xlu1 %2498 }
 0x638   : > { %26393 = vrcp.f32 %v2499_v16 }
 0x63b   : > { %v3402_v17 = vpop.permute.xlu1 %3401 }
 0x63c   : > { %24943 = vmatmul.mubr.msk.f32.vlgmr.msra.gmra.mrb[38].mxu0 %vm473_vm2, %v3402_v17 }
 0x63d   : > { %24952 = vmatprep.mubr.msk.f32.mxu0 %vm26944_vm1, %v26943_v14 }
 0x63f   : > { %v3560_v20 = vpop.permute.xlu1 %3559 }
 0x640   : > { %24951 = vmatpush3.xpose.msk.msra.mxu0 %vm473_vm2, %v3560_v20 }
 0x641   : > { %24960 = vmatprep.subr.mxu0 %v26943_v14 }
 0x642   : > { %v26394_v24 = vpop.eup %26393 }
 0x643   : > { %v3558_v28 = vpop.permute.xlu1 %3557  ;;  %v2517_v29 = vmul.f32 %v26394_v24, %v27489_v36  ;;  %v3636_v36 = vpop.permute.xlu0 %3635 }
 0x644   : > { %24953 = vmatmul.mubr.msk.f32.vlgmr.msra.gmra.mrb[40].mxu0 %vm473_vm2, %v3558_v28 }
 0x645   : > { %24918 = vmatmul.mubr.msk.f32.vlgmr.msra.gmra.mrb[34].mxu1 %vm473_vm2, %v2517_v29  ;;  %24962 = vmatprep.mubr.msk.f32.mxu0 %vm26944_vm1, %v26943_v14 }
 0x646   : > { %24926 = vmatpush3.xpose.msk.msra.mxu1 %vm473_vm2, %v27495_v40  ;;  %24927 = vmatprep.mubr.msk.f32.mxu1 %vm26944_vm1, %v26943_v14 }
 0x647   : > { %v3716_v32 = vpop.permute.xlu1 %3715  ;;  %24935 = vmatprep.subr.mxu1 %v26943_v14 }
 0x648   : > { %24961 = vmatpush3.xpose.msk.msra.mxu0 %vm473_vm2, %v3716_v32 }
 0x649   : > { %24928 = vmatmul.mubr.msk.f32.vlgmr.msra.gmra.mrb[36].mxu1 %vm473_vm2, %v27499_v41  ;;  %24970 = vmatprep.subr.mxu0 %v26943_v14 }
 0x64a   : > { %24936 = vmatpush3.xpose.msk.msra.mxu1 %vm473_vm2, %v27505_v42  ;;  %24937 = vmatprep.mubr.msk.f32.mxu1 %vm26944_vm1, %v26943_v14 }
 0x64b   : > { %v3714_v34 = vpop.permute.xlu1 %3713  ;;  %24945 = vmatprep.subr.mxu1 %v26943_v14 }
 0x64c   : > { %24963 = vmatmul.mubr.msk.f32.vlgmr.msra.gmra.mrb[42].mxu0 %vm473_vm2, %v3714_v34 }
 0x64d   : > { %24938 = vmatmul.mubr.msk.f32.vlgmr.msra.gmra.mrb[38].mxu1 %vm473_vm2, %v3324_v19  ;;  %24972 = vmatprep.mubr.msk.f32.mxu0 %vm26944_vm1, %v26943_v14 }
 0x64e   : > { %24946 = vmatpush3.xpose.msk.msra.mxu1 %vm473_vm2, %v3482_v25  ;;  %24947 = vmatprep.mubr.msk.f32.mxu1 %vm26944_vm1, %v26943_v14 }
 0x64f   : > { %24955 = vmatprep.subr.mxu1 %v26943_v14 }
 0x651   : > { %24948 = vmatmul.mubr.msk.f32.vlgmr.msra.gmra.mrb[40].mxu1 %vm473_vm2, %v3480_v33 }
 0x652   : > { %24956 = vmatpush3.xpose.msk.msra.mxu1 %vm473_vm2, %v3638_v35  ;;  %24957 = vmatprep.mubr.msk.f32.mxu1 %vm26944_vm1, %v26943_v14 }
 0x653   : > { %24965 = vmatprep.subr.mxu1 %v26943_v14 }
 0x655   : > { %24958 = vmatmul.mubr.msk.f32.vlgmr.msra.gmra.mrb[42].mxu1 %vm473_vm2, %v3636_v36 }
 0x656   : > { %24967 = vmatprep.mubr.msk.f32.mxu1 %vm26944_vm1, %v26943_v14 }
 0x6ae   : > { %v27590_v37 = vpop.f32.mrb[28].mxu0 }
 0x6af   : > { %v24894_v38 = vpop.f32.mrb[29].mxu0 }
 0x6db   : > { %v27592_v39 = vpop.f32.mrb[28].mxu1 }
 0x6dc   : > { %v24889_v40 = vpop.f32.mrb[29].mxu1 }
 0x6df   : > { %v27594_v41 = vpop.f32.mrb[30].mxu1 }
 0x6e0   : > { %v24899_v42 = vpop.f32.mrb[31].mxu1 }
 0x6e3   : > { %v27596_v43 = vpop.f32.mrb[32].mxu1 }
 0x6e4   : > { %v27598_v44 = vpop.f32.mrb[30].mxu0  ;;  %v24909_v45 = vpop.f32.mrb[33].mxu1 }
 0x6e5   : > { %v24904_v47 = vpop.f32.mrb[31].mxu0 }
 0x6e8   : > { %v27600_v48 = vpop.f32.mrb[32].mxu0 }
 0x6e9   : > { %v24914_v49 = vpop.f32.mrb[33].mxu0 }
 0x6ec   : > { %v27602_v51 = vpop.f32.mrb[34].mxu0 }
 0x6ed   : > { %v24924_v53 = vpop.f32.mrb[35].mxu0 }
 0x6f3   : > { %v3319_v55 = vpop.f32.mrb[36].mxu0 }
 0x6f4   : > { %v3792_v57 = vmul.f32 0.17677669, %v3319_v55  ;;  %v24934_v59 = vpop.f32.mrb[37].mxu0 }
 0x6f6   : > { %v3802_v61 = vsel %vm473_vm2, %v3792_v57, -inf }
 0x6f7   : > { %3803 = vmax.xlane.f32.xlu1 %v3802_v61 }
 0x70f   : > { %v3475_v62 = vpop.f32.mrb[38].mxu0 }
 0x710   : > { %v24944_v46 = vpop.f32.mrb[39].mxu0  ;;  %v3794_v15 = vmul.f32 0.17677669, %v3475_v62 }
 0x712   : > { %v3808_v25 = vsel %vm473_vm2, %v3794_v15, -inf }
 0x717   : > { %v3631_v63 = vpop.f32.mrb[40].mxu0 }
 0x718   : > { %v27605_v0 = vpop.f32.mrb[34].mxu1  ;;  %v24954_v1 = vpop.f32.mrb[41].mxu0  ;;  %v3796_v24 = vmul.f32 0.17677669, %v3631_v63 }
 0x719   : > { %v24919_v2 = vpop.f32.mrb[35].mxu1 }
 0x71a   : > { %v3814_v34 = vsel %vm473_vm2, %v3796_v24, -inf }
 0x71c   : > { %v3241_v3 = vpop.f32.mrb[36].mxu1 }
 0x71d   : > { %v3791_v4 = vmul.f32 0.17677669, %v3241_v3  ;;  %v24929_v7 = vpop.f32.mrb[37].mxu1 }
 0x71f   : > { %v3787_v6 = vpop.f32.mrb[42].mxu0  ;;  %v3799_v9 = vsel %vm473_vm2, %v3791_v4, -inf }
 0x720   : > { %3800 = vmax.xlane.f32.xlu0 %v3799_v9  ;;  %v3397_v10 = vpop.f32.mrb[38].mxu1  ;;  %v24964_v11 = vpop.f32.mrb[43].mxu0  ;;  %v3798_v33 = vmul.f32 0.17677669, %v3787_v6 }
 0x721   : > { %v3793_v12 = vmul.f32 0.17677669, %v3397_v10  ;;  %v24939_v13 = vpop.f32.mrb[39].mxu1 }
 0x722   : > { %v3820_v35 = vsel %vm473_vm2, %v3798_v33, -inf }
 0x723   : > { %v3805_v16 = vsel %vm473_vm2, %v3793_v12, -inf }
 0x724   : > { %3806 = vmax.xlane.f32.xlu0 %v3805_v16  ;;  %v3553_v17 = vpop.f32.mrb[40].mxu1 }
 0x725   : > { %v3795_v19 = vmul.f32 0.17677669, %v3553_v17  ;;  %v24949_v20 = vpop.f32.mrb[41].mxu1 }
 0x727   : > { %v3811_v28 = vsel %vm473_vm2, %v3795_v19, -inf }
 0x728   : > { %3809 = vmax.xlane.f32.xlu0 %v3808_v25  ;;  %3812 = vmax.xlane.f32.xlu1 %v3811_v28  ;;  %v3709_v29 = vpop.f32.mrb[42].mxu1 }
 0x729   : > { %v24959_v32 = vpop.f32.mrb[43].mxu1  ;;  %v27625_v36 = vmul.f32 0.17677669, %v3709_v29 }
 0x72b   : > { %v3817_v38 = vsel %vm473_vm2, %v27625_v36, -inf }
 0x72c   : > { %3815 = vmax.xlane.f32.xlu0 %v3814_v34 }
 0x730   : > { %3821 = vmax.xlane.f32.xlu0 %v3820_v35 }
 0x739   : > { %3887 = vrot.lane.b32.xlu1 %v27121_v18, %s31006_s13 }
 0x746   : > { %3963 = vrot.lane.b32.xlu0 %v27125_v21, %s31006_s13 }
 0x74a   : > { %4191 = vrot.lane.b32.xlu0 %v27135_v26, %s31006_s13 }
 0x74e   : > { %4343 = vrot.lane.b32.xlu0 %v27143_v30, %s31006_s13 }
 0x752   : > { %4537 = vrot.lane.b32.xlu0 %v27121_v18, %s31004_s18 }
 0x756   : > { %4535 = vrot.lane.b32.xlu0 %v27121_v18, %s31002_s21 }
 0x75a   : > { %4693 = vrot.lane.b32.xlu0 %v27127_v22, %s31004_s18 }
 0x75d   : > { %3818 = vmax.xlane.f32.xlu1 %v3817_v38 }
 0x76e   : > { %4039 = vrot.lane.b32.xlu1 %v27127_v22, %s31006_s13 }
 0x772   : > { %4115 = vrot.lane.b32.xlu1 %v27129_v23, %s31006_s13 }
 0x776   : > { %4267 = vrot.lane.b32.xlu1 %v27139_v27, %s31006_s13 }
 0x77a   : > { %4419 = vrot.lane.b32.xlu1 %v27147_v31, %s31006_s13  ;;  %s31042_s13 = smov 80  }
 0x77e   : > { %4615 = vrot.lane.b32.xlu1 %v27125_v21, %s31004_s18 }
 0x782   : > { %4613 = vrot.lane.b32.xlu1 %v27125_v21, %s31002_s21 }
 0x784   : > { %v3804_v40 = vpop.xlane.xlu1 %3803 }
 0x785   : > { %v3824_v42 = vsub.f32 %v3792_v57, %v3804_v40 }
 0x786   : > { %4771 = vrot.lane.b32.xlu1 %v27129_v23, %s31004_s18 }
 0x787   : > { %v3833_v45 = vmul.f32 1.442695, %v3824_v42 }
 0x789   : > { %26395 = vpow2.f32 %v3833_v45 }
 0x793   : > { %v27645_v47 = vpop.eup %26395 }
 0x794   : > { %v3850_v49 = vsel %vm473_vm2, %v27645_v47, 0.0 }
 0x795   : > { %3851 = vadd.xlane.f32.xlu0 %v3850_v49 }
 0x7ad   : > { %v3801_v53 = vpop.xlane.xlu0 %3800 }
 0x7ae   : > { %v3823_v55 = vsub.f32 %v3791_v4, %v3801_v53 }
 0x7b0   : > { %v3831_v59 = vmul.f32 1.442695, %v3823_v55 }
 0x7b1   : > { %v3807_v61 = vpop.xlane.xlu0 %3806 }
 0x7b2   : > { %26397 = vpow2.f32 %v3831_v59  ;;  %v3825_v62 = vsub.f32 %v3793_v12, %v3807_v61 }
 0x7b4   : > { %v3835_v46 = vmul.f32 1.442695, %v3825_v62 }
 0x7b5   : > { %v3813_v63 = vpop.xlane.xlu1 %3812  ;;  %v3810_v57 = vpop.xlane.xlu0 %3809 }
 0x7b6   : > { %26399 = vpow2.f32 %v3835_v46  ;;  %v3827_v1 = vsub.f32 %v3795_v19, %v3813_v63  ;;  %v3826_v2 = vsub.f32 %v3794_v15, %v3810_v57 }
 0x7b8   : > { %v3839_v3 = vmul.f32 1.442695, %v3827_v1  ;;  %v3837_v7 = vmul.f32 1.442695, %v3826_v2 }
 0x7b9   : > { %v3888_v6 = vpop.permute.xlu1 %3887  ;;  %v3816_v9 = vpop.xlane.xlu0 %3815 }
 0x7ba   : > { %26401 = vpow2.f32 %v3839_v3  ;;  %v3828_v10 = vsub.f32 %v3796_v24, %v3816_v9  ;;  %24966 = vmatpush3.msra.mxu1 %v3888_v6 }
 0x7bb   : > { %26403 = vpow2.f32 %v3837_v7  ;;  %24975 = vmatprep.subr.mxu1 %v26943_v14 }
 0x7bc   : > { %v27650_v4 = vpop.eup %26397  ;;  %v3841_v11 = vmul.f32 1.442695, %v3828_v10 }
 0x7bd   : > { %v3822_v12 = vpop.xlane.xlu0 %3821  ;;  %v3847_v13 = vsel %vm473_vm2, %v27650_v4, 0.0 }
 0x7be   : > { %26405 = vpow2.f32 %v3841_v11  ;;  %v3830_v16 = vsub.f32 %v3798_v33, %v3822_v12  ;;  %3848 = vadd.xlane.f32.xlu1 %v3847_v13 }
 0x7c0   : > { %v27654_v15 = vpop.eup %26399  ;;  %v3845_v17 = vmul.f32 1.442695, %v3830_v16 }
 0x7c1   : > { %v3964_v19 = vpop.permute.xlu0 %3963  ;;  %v3853_v20 = vsel %vm473_vm2, %v27654_v15, 0.0 }
 0x7c2   : > { %26407 = vpow2.f32 %v3845_v17  ;;  %3854 = vadd.xlane.f32.xlu1 %v3853_v20  ;;  %24971 = vmatpush3.msra.mxu0 %v3964_v19 }
 0x7c3   : > { %24980 = vmatprep.subr.mxu0 %v26943_v14 }
 0x7c4   : > { %v27659_v24 = vpop.eup %26401 }
 0x7c5   : > { %v27661_v25 = vpop.eup %26403  ;;  %v3859_v28 = vsel %vm473_vm2, %v27659_v24, 0.0  ;;  %v4192_v53 = vpop.permute.xlu0 %4191 }
 0x7c6   : > { %3860 = vadd.xlane.f32.xlu1 %v3859_v28  ;;  %v3856_v29 = vsel %vm473_vm2, %v27661_v25, 0.0 }
 0x7c7   : > { %3857 = vadd.xlane.f32.xlu0 %v3856_v29 }
 0x7c8   : > { %v27667_v32 = vpop.eup %26405 }
 0x7c9   : > { %v3862_v33 = vsel %vm473_vm2, %v27667_v32, 0.0  ;;  %v4344_v55 = vpop.permute.xlu0 %4343 }
 0x7cb   : > { %3863 = vadd.xlane.f32.xlu0 %v3862_v33 }
 0x7cc   : > { %v27671_v34 = vpop.eup %26407 }
 0x7cd   : > { %v3868_v35 = vsel %vm473_vm2, %v27671_v34, 0.0 }
 0x7cf   : > { %3869 = vadd.xlane.f32.xlu0 %v3868_v35 }
 0x7e5   : > { %4691 = vrot.lane.b32.xlu0 %v27127_v22, %s31002_s21 }
 0x7e9   : > { %4849 = vrot.lane.b32.xlu0 %v27135_v26, %s31004_s18 }
 0x7ea   : > { %v3819_v38 = vpop.xlane.xlu1 %3818 }
 0x7eb   : > { %v3829_v40 = vsub.f32 %v27625_v36, %v3819_v38  ;;  %v27694_v36 = vpop.permute.xlu0 %4537 }
 0x7ed   : > { %v3843_v42 = vmul.f32 1.442695, %v3829_v40  ;;  %4847 = vrot.lane.b32.xlu0 %v27135_v26, %s31002_s21 }
 0x7ee   : > { %v4040_v46 = vpop.permute.xlu1 %4039 }
 0x7ef   : > { %26409 = vpow2.f32 %v3843_v42  ;;  %v27698_v59 = vpop.permute.xlu0 %4535 }
 0x7f1   : > { %5005 = vrot.lane.b32.xlu0 %v27143_v30, %s31004_s18 }
 0x7f2   : > { %v4116_v63 = vpop.permute.xlu1 %4115 }
 0x7f3   : > { %v27704_v61 = vpop.permute.xlu0 %4693 }
 0x7f5   : > { %5003 = vrot.lane.b32.xlu0 %v27143_v30, %s31002_s21 }
 0x7f6   : > { %v4268_v2 = vpop.permute.xlu1 %4267 }
 0x7f9   : > { %v27686_v45 = vpop.eup %26409 }
 0x7fa   : > { %v3865_v49 = vsel %vm473_vm2, %v27686_v45, 0.0  ;;  %v4420_v3 = vpop.permute.xlu1 %4419 }
 0x7fb   : > { %3866 = vadd.xlane.f32.xlu1 %v3865_v49 }
 0x7fe   : > { %v4616_v7 = vpop.permute.xlu1 %4615 }
 0x802   : > { %v4614_v6 = vpop.permute.xlu1 %4613 }
 0x806   : > { %v4772_v9 = vpop.permute.xlu1 %4771 }
 0x80c   : > { %4769 = vrot.lane.b32.xlu1 %v27129_v23, %s31002_s21 }
 0x810   : > { %4927 = vrot.lane.b32.xlu1 %v27139_v27, %s31004_s18 }
 0x814   : > { %4925 = vrot.lane.b32.xlu1 %v27139_v27, %s31002_s21 }
 0x818   : > { %5083 = vrot.lane.b32.xlu1 %v27147_v31, %s31004_s18  ;;  %s31043_s18 = smov 112  }
 0x81c   : > { %5081 = vrot.lane.b32.xlu1 %v27147_v31, %s31002_s21  ;;  %s31044_s21 = smov 48  }
 0x822   : > { %v3852_v62 = vpop.xlane.xlu0 %3851 }
 0x823   : > { %26411 = vrcp.f32 %v3852_v62 }
 0x82d   : > { %v26412_v57 = vpop.eup %26411 }
 0x82e   : > { %v3880_v1 = vmul.f32 %v26412_v57, %v27645_v47 }
 0x830   : > { %24973 = vmatmul.mubr.msk.f32.vlgmr.msra.gmra.mrb[44].mxu0 %vm473_vm2, %v3880_v1 }
 0x831   : > { %24981 = vmatpush3.msra.mxu0 %v4116_v63  ;;  %24982 = vmatprep.mubr.msk.f32.mxu0 %vm26944_vm1, %v26943_v14 }
 0x832   : > { %24990 = vmatprep.subr.mxu0 %v26943_v14 }
 0x84b   : > { %v3849_v10 = vpop.xlane.xlu1 %3848 }
 0x84c   : > { %26413 = vrcp.f32 %v3849_v10 }
 0x84f   : > { %v3855_v11 = vpop.xlane.xlu1 %3854 }
 0x850   : > { %26415 = vrcp.f32 %v3855_v11 }
 0x853   : > { %v3861_v12 = vpop.xlane.xlu1 %3860 }
 0x854   : > { %26417 = vrcp.f32 %v3861_v12  ;;  %v3858_v47 = vpop.xlane.xlu0 %3857 }
 0x855   : > { %26419 = vrcp.f32 %v3858_v47 }
 0x856   : > { %v26414_v13 = vpop.eup %26413 }
 0x857   : > { %v3879_v16 = vmul.f32 %v26414_v13, %v27650_v4 }
 0x858   : > { %v3864_v17 = vpop.xlane.xlu0 %3863 }
 0x859   : > { %26421 = vrcp.f32 %v3864_v17  ;;  %24968 = vmatmul.mubr.msk.f32.vlgmr.msra.gmra.mrb[44].mxu1 %vm473_vm2, %v3879_v16 }
 0x85a   : > { %v26416_v19 = vpop.eup %26415  ;;  %24976 = vmatpush3.msra.mxu1 %v4040_v46  ;;  %24977 = vmatprep.mubr.msk.f32.mxu1 %vm26944_vm1, %v26943_v14 }
 0x85b   : > { %24985 = vmatprep.subr.mxu1 %v26943_v14  ;;  %v3881_v20 = vmul.f32 %v26416_v19, %v27654_v15 }
 0x85c   : > { %v3870_v28 = vpop.xlane.xlu0 %3869 }
 0x85d   : > { %26423 = vrcp.f32 %v3870_v28  ;;  %24978 = vmatmul.mubr.msk.f32.vlgmr.msra.gmra.mrb[46].mxu1 %vm473_vm2, %v3881_v20 }
 0x85e   : > { %v26418_v29 = vpop.eup %26417  ;;  %24986 = vmatpush3.msra.mxu1 %v4192_v53  ;;  %24987 = vmatprep.mubr.msk.f32.mxu1 %vm26944_vm1, %v26943_v14 }
 0x85f   : > { %v26420_v4 = vpop.eup %26419  ;;  %24995 = vmatprep.subr.mxu1 %v26943_v14  ;;  %v3883_v33 = vmul.f32 %v26418_v29, %v27659_v24 }
 0x860   : > { %v3882_v35 = vmul.f32 %v26420_v4, %v27661_v25  ;;  %v4692_v40 = vpop.permute.xlu0 %4691 }
 0x861   : > { %24988 = vmatmul.mubr.msk.f32.vlgmr.msra.gmra.mrb[48].mxu1 %vm473_vm2, %v3883_v33 }
 0x862   : > { %24983 = vmatmul.mubr.msk.f32.vlgmr.msra.gmra.mrb[46].mxu0 %vm473_vm2, %v3882_v35  ;;  %24996 = vmatpush3.msra.mxu1 %v4344_v55 }
 0x863   : > { %v26422_v15 = vpop.eup %26421  ;;  %24991 = vmatpush3.msra.mxu0 %v4268_v2  ;;  %24992 = vmatprep.mubr.msk.f32.mxu0 %vm26944_vm1, %v26943_v14 }
 0x864   : > { %25000 = vmatprep.subr.mxu0 %v26943_v14  ;;  %v3884_v38 = vmul.f32 %v26422_v15, %v27667_v32  ;;  %24997 = vmatprep.mubr.msk.f32.mxu1 %vm26944_vm1, %v26943_v14  ;;  %v4850_v53 = vpop.permute.xlu0 %4849 }
 0x865   : > { %25005 = vmatprep.subr.mxu1 %v26943_v14 }
 0x866   : > { %24993 = vmatmul.mubr.msk.f32.vlgmr.msra.gmra.mrb[48].mxu0 %vm473_vm2, %v3884_v38 }
 0x867   : > { %v26424_v24 = vpop.eup %26423  ;;  %25001 = vmatpush3.msra.mxu0 %v4420_v3  ;;  %25002 = vmatprep.mubr.msk.f32.mxu0 %vm26944_vm1, %v26943_v14 }
 0x868   : > { %v3886_v25 = vmul.f32 %v26424_v24, %v27671_v34  ;;  %25010 = vmatprep.subr.mxu0 %v26943_v14  ;;  %v4848_v63 = vpop.permute.xlu0 %4847 }
 0x86a   : > { %25003 = vmatmul.mubr.msk.f32.vlgmr.msra.gmra.mrb[50].mxu0 %vm473_vm2, %v3886_v25 }
 0x86b   : > { %25012 = vmatprep.mubr.msk.f32.mxu0 %vm26944_vm1, %v26943_v14 }
 0x86e   : > { %25011 = vmatpush3.xpose.msk.msra.mxu0 %vm473_vm2, %v4616_v7 }
 0x86f   : > { %25020 = vmatprep.subr.mxu0 %v26943_v14 }
 0x871   : > { %25013 = vmatmul.mubr.msk.f32.vlgmr.msra.gmra.mrb[52].mxu0 %vm473_vm2, %v4614_v6 }
 0x872   : > { %25021 = vmatpush3.xpose.msk.msra.mxu0 %vm473_vm2, %v4772_v9  ;;  %25022 = vmatprep.mubr.msk.f32.mxu0 %vm26944_vm1, %v26943_v14 }
 0x873   : > { %25030 = vmatprep.subr.mxu0 %v26943_v14 }
 0x888   : > { %v3867_v32 = vpop.xlane.xlu1 %3866 }
 0x889   : > { %26425 = vrcp.f32 %v3867_v32 }
 0x88c   : > { %v4770_v34 = vpop.permute.xlu1 %4769 }
 0x88d   : > { %25023 = vmatmul.mubr.msk.f32.vlgmr.msra.gmra.mrb[54].mxu0 %vm473_vm2, %v4770_v34 }
 0x88e   : > { %25032 = vmatprep.mubr.msk.f32.mxu0 %vm26944_vm1, %v26943_v14 }
 0x890   : > { %v4928_v42 = vpop.permute.xlu1 %4927 }
 0x891   : > { %25031 = vmatpush3.xpose.msk.msra.mxu0 %vm473_vm2, %v4928_v42 }
 0x892   : > { %25040 = vmatprep.subr.mxu0 %v26943_v14 }
 0x893   : > { %v26426_v49 = vpop.eup %26425 }
 0x894   : > { %v4926_v55 = vpop.permute.xlu1 %4925  ;;  %v3885_v62 = vmul.f32 %v26426_v49, %v27686_v45 }
 0x895   : > { %25033 = vmatmul.mubr.msk.f32.vlgmr.msra.gmra.mrb[56].mxu0 %vm473_vm2, %v4926_v55 }
 0x896   : > { %24998 = vmatmul.mubr.msk.f32.vlgmr.msra.gmra.mrb[50].mxu1 %vm473_vm2, %v3885_v62  ;;  %25042 = vmatprep.mubr.msk.f32.mxu0 %vm26944_vm1, %v26943_v14 }
 0x897   : > { %25006 = vmatpush3.xpose.msk.msra.mxu1 %vm473_vm2, %v27694_v36  ;;  %25007 = vmatprep.mubr.msk.f32.mxu1 %vm26944_vm1, %v26943_v14  ;;  %v5006_v36 = vpop.permute.xlu0 %5005 }
 0x898   : > { %v5084_v46 = vpop.permute.xlu1 %5083  ;;  %25015 = vmatprep.subr.mxu1 %v26943_v14 }
 0x899   : > { %25041 = vmatpush3.xpose.msk.msra.mxu0 %vm473_vm2, %v5084_v46 }
 0x89a   : > { %25008 = vmatmul.mubr.msk.f32.vlgmr.msra.gmra.mrb[52].mxu1 %vm473_vm2, %v27698_v59  ;;  %25050 = vmatprep.subr.mxu0 %v26943_v14 }
 0x89b   : > { %25016 = vmatpush3.xpose.msk.msra.mxu1 %vm473_vm2, %v27704_v61  ;;  %25017 = vmatprep.mubr.msk.f32.mxu1 %vm26944_vm1, %v26943_v14  ;;  %v5004_v59 = vpop.permute.xlu0 %5003 }
 0x89c   : > { %v5082_v45 = vpop.permute.xlu1 %5081  ;;  %25025 = vmatprep.subr.mxu1 %v26943_v14 }
 0x89d   : > { %25043 = vmatmul.mubr.msk.f32.vlgmr.msra.gmra.mrb[58].mxu0 %vm473_vm2, %v5082_v45 }
 0x89e   : > { %25018 = vmatmul.mubr.msk.f32.vlgmr.msra.gmra.mrb[54].mxu1 %vm473_vm2, %v4692_v40  ;;  %25052 = vmatprep.mubr.msk.f32.mxu0 %vm26944_vm1, %v26943_v14 }
 0x89f   : > { %25026 = vmatpush3.xpose.msk.msra.mxu1 %vm473_vm2, %v4850_v53  ;;  %25027 = vmatprep.mubr.msk.f32.mxu1 %vm26944_vm1, %v26943_v14 }
 0x8a0   : > { %25035 = vmatprep.subr.mxu1 %v26943_v14 }
 0x8a2   : > { %25028 = vmatmul.mubr.msk.f32.vlgmr.msra.gmra.mrb[56].mxu1 %vm473_vm2, %v4848_v63 }
 0x8a3   : > { %25036 = vmatpush3.xpose.msk.msra.mxu1 %vm473_vm2, %v5006_v36  ;;  %25037 = vmatprep.mubr.msk.f32.mxu1 %vm26944_vm1, %v26943_v14 }
 0x8a4   : > { %25045 = vmatprep.subr.mxu1 %v26943_v14 }
 0x8a6   : > { %25038 = vmatmul.mubr.msk.f32.vlgmr.msra.gmra.mrb[58].mxu1 %vm473_vm2, %v5004_v59 }
 0x8a7   : > { %25047 = vmatprep.mubr.msk.f32.mxu1 %vm26944_vm1, %v26943_v14 }
 0x903   : > { %v27787_v61 = vpop.f32.mrb[44].mxu0 }
 0x904   : > { %v24974_v57 = vpop.f32.mrb[45].mxu0 }
 0x92c   : > { %v27789_v1 = vpop.f32.mrb[44].mxu1 }
 0x92d   : > { %v24969_v2 = vpop.f32.mrb[45].mxu1 }
 0x930   : > { %v27791_v3 = vpop.f32.mrb[46].mxu1 }
 0x931   : > { %v24979_v7 = vpop.f32.mrb[47].mxu1 }
 0x934   : > { %v27793_v6 = vpop.f32.mrb[48].mxu1 }
 0x935   : > { %v27795_v9 = vpop.f32.mrb[46].mxu0  ;;  %v24989_v10 = vpop.f32.mrb[49].mxu1 }
 0x936   : > { %v24984_v11 = vpop.f32.mrb[47].mxu0 }
 0x939   : > { %v27797_v12 = vpop.f32.mrb[48].mxu0 }
 0x93a   : > { %v24994_v47 = vpop.f32.mrb[49].mxu0 }
 0x93d   : > { %v27799_v13 = vpop.f32.mrb[50].mxu0 }
 0x93e   : > { %v25004_v16 = vpop.f32.mrb[51].mxu0 }
 0x944   : > { %v4687_v17 = vpop.f32.mrb[52].mxu0 }
 0x945   : > { %v5160_v19 = vmul.f32 0.17677669, %v4687_v17  ;;  %v25014_v20 = vpop.f32.mrb[53].mxu0 }
 0x947   : > { %v5170_v28 = vsel %vm473_vm2, %v5160_v19, -inf }
 0x948   : > { %5171 = vmax.xlane.f32.xlu1 %v5170_v28 }
 0x960   : > { %v4843_v29 = vpop.f32.mrb[54].mxu0 }
 0x961   : > { %v25024_v4 = vpop.f32.mrb[55].mxu0  ;;  %v5162_v62 = vmul.f32 0.17677669, %v4843_v29 }
 0x963   : > { %v5176_v57 = vsel %vm473_vm2, %v5162_v62, -inf }
 0x968   : > { %v4999_v33 = vpop.f32.mrb[56].mxu0 }
 0x969   : > { %v27802_v35 = vpop.f32.mrb[50].mxu1  ;;  %v25034_v15 = vpop.f32.mrb[57].mxu0  ;;  %v5164_v59 = vmul.f32 0.17677669, %v4999_v33 }
 0x96a   : > { %v24999_v38 = vpop.f32.mrb[51].mxu1 }
 0x96b   : > { %v5182_v16 = vsel %vm473_vm2, %v5164_v59, -inf }
 0x96d   : > { %v4609_v24 = vpop.f32.mrb[52].mxu1 }
 0x96e   : > { %v5159_v25 = vmul.f32 0.17677669, %v4609_v24  ;;  %v25009_v32 = vpop.f32.mrb[53].mxu1 }
 0x970   : > { %v5155_v34 = vpop.f32.mrb[58].mxu0  ;;  %v5167_v40 = vsel %vm473_vm2, %v5159_v25, -inf }
 0x971   : > { %5168 = vmax.xlane.f32.xlu0 %v5167_v40  ;;  %v4765_v42 = vpop.f32.mrb[54].mxu1  ;;  %v25044_v49 = vpop.f32.mrb[59].mxu0  ;;  %v5166_v47 = vmul.f32 0.17677669, %v5155_v34 }
 0x972   : > { %v5161_v53 = vmul.f32 0.17677669, %v4765_v42  ;;  %v25019_v55 = vpop.f32.mrb[55].mxu1 }
 0x973   : > { %v5188_v20 = vsel %vm473_vm2, %v5166_v47, -inf }
 0x974   : > { %v5173_v46 = vsel %vm473_vm2, %v5161_v53, -inf }
 0x975   : > { %5174 = vmax.xlane.f32.xlu0 %v5173_v46  ;;  %v4921_v63 = vpop.f32.mrb[56].mxu1 }
 0x976   : > { %v5163_v45 = vmul.f32 0.17677669, %v4921_v63  ;;  %v25029_v36 = vpop.f32.mrb[57].mxu1 }
 0x978   : > { %v5179_v2 = vsel %vm473_vm2, %v5163_v45, -inf }
 0x979   : > { %5177 = vmax.xlane.f32.xlu0 %v5176_v57  ;;  %5180 = vmax.xlane.f32.xlu1 %v5179_v2  ;;  %v5077_v7 = vpop.f32.mrb[58].mxu1 }
 0x97a   : > { %v5165_v10 = vmul.f32 0.17677669, %v5077_v7  ;;  %v25039_v11 = vpop.f32.mrb[59].mxu1 }
 0x97c   : > { %v5185_v17 = vsel %vm473_vm2, %v5165_v10, -inf }
 0x97d   : > { %5183 = vmax.xlane.f32.xlu0 %v5182_v16  ;;  %5186 = vmax.xlane.f32.xlu1 %v5185_v17 }
 0x981   : > { %5189 = vmax.xlane.f32.xlu0 %v5188_v20 }
 0x98e   : > { %5255 = vrot.lane.b32.xlu1 %v27121_v18, %s31000_s22 }
 0x992   : > { %5407 = vrot.lane.b32.xlu1 %v27127_v22, %s31000_s22 }
 0x996   : > { %5483 = vrot.lane.b32.xlu1 %v27129_v23, %s31000_s22 }
 0x997   : > { %5331 = vrot.lane.b32.xlu0 %v27125_v21, %s31000_s22 }
 0x99a   : > { %5635 = vrot.lane.b32.xlu1 %v27139_v27, %s31000_s22 }
 0x99b   : > { %5559 = vrot.lane.b32.xlu0 %v27135_v26, %s31000_s22 }
 0x9d5   : > { %v5172_v28 = vpop.xlane.xlu1 %5171 }
 0x9d6   : > { %v5192_v29 = vsub.f32 %v5160_v19, %v5172_v28 }
 0x9d8   : > { %v5201_v4 = vmul.f32 1.442695, %v5192_v29 }
 0x9da   : > { %26427 = vpow2.f32 %v5201_v4 }
 0x9e4   : > { %v27823_v33 = vpop.eup %26427 }
 0x9e5   : > { %v5218_v15 = vsel %vm473_vm2, %v27823_v33, 0.0 }
 0x9e6   : > { %5219 = vadd.xlane.f32.xlu0 %v5218_v15 }
 0x9fe   : > { %v5169_v38 = vpop.xlane.xlu0 %5168 }
 0x9ff   : > { %v5191_v24 = vsub.f32 %v5159_v25, %v5169_v38 }
 0xa01   : > { %v5199_v32 = vmul.f32 1.442695, %v5191_v24 }
 0xa02   : > { %v5175_v34 = vpop.xlane.xlu0 %5174 }
 0xa03   : > { %26429 = vpow2.f32 %v5199_v32  ;;  %v5193_v40 = vsub.f32 %v5161_v53, %v5175_v34 }
 0xa05   : > { %v5203_v42 = vmul.f32 1.442695, %v5193_v40 }
 0xa06   : > { %v5181_v49 = vpop.xlane.xlu1 %5180  ;;  %v5178_v55 = vpop.xlane.xlu0 %5177 }
 0xa07   : > { %26431 = vpow2.f32 %v5203_v42  ;;  %v5195_v46 = vsub.f32 %v5163_v45, %v5181_v49  ;;  %v5194_v19 = vsub.f32 %v5162_v62, %v5178_v55 }
 0xa09   : > { %v5207_v63 = vmul.f32 1.442695, %v5195_v46  ;;  %v5205_v36 = vmul.f32 1.442695, %v5194_v19 }
 0xa0a   : > { %v5187_v57 = vpop.xlane.xlu1 %5186  ;;  %v5184_v2 = vpop.xlane.xlu0 %5183 }
 0xa0b   : > { %26433 = vpow2.f32 %v5207_v63  ;;  %v5197_v7 = vsub.f32 %v5165_v10, %v5187_v57  ;;  %v5196_v11 = vsub.f32 %v5164_v59, %v5184_v2 }
 0xa0c   : > { %26435 = vpow2.f32 %v5205_v36 }
 0xa0d   : > { %v27827_v16 = vpop.eup %26429  ;;  %v5211_v25 = vmul.f32 1.442695, %v5197_v7  ;;  %v5209_v17 = vmul.f32 1.442695, %v5196_v11 }
 0xa0e   : > { %v5256_v20 = vpop.permute.xlu1 %5255  ;;  %v5190_v53 = vpop.xlane.xlu0 %5189  ;;  %v5215_v28 = vsel %vm473_vm2, %v27827_v16, 0.0 }
 0xa0f   : > { %26437 = vpow2.f32 %v5211_v25  ;;  %v5198_v45 = vsub.f32 %v5166_v47, %v5190_v53  ;;  %25046 = vmatpush3.msra.mxu1 %v5256_v20  ;;  %5216 = vadd.xlane.f32.xlu1 %v5215_v28 }
 0xa10   : > { %26439 = vpow2.f32 %v5209_v17  ;;  %25055 = vmatprep.subr.mxu1 %v26943_v14 }
 0xa11   : > { %v27832_v62 = vpop.eup %26431  ;;  %v5213_v59 = vmul.f32 1.442695, %v5198_v45  ;;  %v5929_v45 = vld [vmem:[#allocation2] sm:$0xff] }
 0xa12   : > { %v5332_v10 = vpop.permute.xlu0 %5331  ;;  %v5221_v29 = vsel %vm473_vm2, %v27832_v62, 0.0 }
 0xa13   : > { %26441 = vpow2.f32 %v5213_v59  ;;  %5222 = vadd.xlane.f32.xlu1 %v5221_v29  ;;  %25051 = vmatpush3.msra.mxu0 %v5332_v10 }
 0xa14   : > { %25060 = vmatprep.subr.mxu0 %v26943_v14 }
 0xa15   : > { %v27837_v4 = vpop.eup %26433 }
 0xa16   : > { %v27839_v47 = vpop.eup %26435  ;;  %v5227_v15 = vsel %vm473_vm2, %v27837_v4, 0.0 }
 0xa17   : > { %5228 = vadd.xlane.f32.xlu1 %v5227_v15  ;;  %v5224_v38 = vsel %vm473_vm2, %v27839_v47, 0.0 }
 0xa18   : > { %5225 = vadd.xlane.f32.xlu0 %v5224_v38 }
 0xa19   : > { %v27845_v24 = vpop.eup %26437 }
 0xa1a   : > { %v27847_v32 = vpop.eup %26439  ;;  %v5233_v34 = vsel %vm473_vm2, %v27845_v24, 0.0 }
 0xa1b   : > { %5234 = vadd.xlane.f32.xlu1 %v5233_v34  ;;  %v5230_v40 = vsel %vm473_vm2, %v27847_v32, 0.0 }
 0xa1c   : > { %5231 = vadd.xlane.f32.xlu0 %v5230_v40 }
 0xa1d   : > { %v27853_v42 = vpop.eup %26441 }
 0xa1e   : > { %v5236_v49 = vsel %vm473_vm2, %v27853_v42, 0.0 }
 0xa20   : > { %5237 = vadd.xlane.f32.xlu0 %v5236_v49 }
 0xa2c   : > { %5787 = vrot.lane.b32.xlu1 %v27147_v31, %s31000_s22 }
 0xa30   : > { %3137 = vrot.lane.b32.xlu1 %v27590_v37, %s30994_s23  ;;  %v5560_v37 = vpop.permute.xlu0 %5559 }
 0xa34   : > { %4505 = vrot.lane.b32.xlu1 %v27787_v61, %s30998_s24 }
 0xa36   : > { %5711 = vrot.lane.b32.xlu0 %v27143_v30, %s31000_s22  ;;  %s31045_s22 = smov 72  }
 0xa38   : > { %3141 = vrot.lane.b32.xlu1 %v27598_v44, %s30994_s23 }
 0xa3a   : > { %3135 = vrot.lane.b32.xlu0 %v27592_v39, %s30994_s23 }
 0xa3c   : > { %4509 = vrot.lane.b32.xlu1 %v27795_v9, %s30998_s24 }
 0xa3e   : > { %4503 = vrot.lane.b32.xlu0 %v27789_v1, %s30998_s24 }
 0xa40   : > { %3145 = vrot.lane.b32.xlu1 %v27600_v48, %s30994_s23 }
 0xa42   : > { %3139 = vrot.lane.b32.xlu0 %v27594_v41, %s30994_s23  ;;  %v5408_v41 = vpop.permute.xlu1 %5407 }
 0xa44   : > { %4513 = vrot.lane.b32.xlu1 %v27797_v12, %s30998_s24 }
 0xa46   : > { %4507 = vrot.lane.b32.xlu0 %v27791_v3, %s30998_s24  ;;  %v5484_v61 = vpop.permute.xlu1 %5483 }
 0xa48   : > { %3149 = vrot.lane.b32.xlu1 %v27602_v51, %s30994_s23 }
 0xa4a   : > { %3143 = vrot.lane.b32.xlu0 %v27596_v43, %s30994_s23  ;;  %v5636_v43 = vpop.permute.xlu1 %5635 }
 0xa4e   : > { %4511 = vrot.lane.b32.xlu0 %v27793_v6, %s30998_s24 }
 0xa52   : > { %3147 = vrot.lane.b32.xlu0 %v27605_v0, %s30994_s23  ;;  %s30996_s23 = smov 24  }
 0xa73   : > { %v5220_v39 = vpop.xlane.xlu0 %5219 }
 0xa74   : > { %26443 = vrcp.f32 %v5220_v39 }
 0xa7e   : > { %v26444_v44 = vpop.eup %26443 }
 0xa7f   : > { %v5248_v48 = vmul.f32 %v26444_v44, %v27823_v33 }
 0xa81   : > { %25053 = vmatmul.mubr.msk.f32.vlgmr.msra.gmra.mrb[60].mxu0 %vm473_vm2, %v5248_v48 }
 0xa82   : > { %25061 = vmatpush3.msra.mxu0 %v5484_v61  ;;  %25062 = vmatprep.mubr.msk.f32.mxu0 %vm26944_vm1, %v26943_v14 }
 0xa83   : > { %25070 = vmatprep.subr.mxu0 %v26943_v14 }
 0xa9c   : > { %v5217_v51 = vpop.xlane.xlu1 %5216 }
 0xa9d   : > { %26445 = vrcp.f32 %v5217_v51 }
 0xaa0   : > { %v5223_v0 = vpop.xlane.xlu1 %5222 }
 0xaa1   : > { %26447 = vrcp.f32 %v5223_v0 }
 0xaa4   : > { %v5229_v1 = vpop.xlane.xlu1 %5228 }
 0xaa5   : > { %26449 = vrcp.f32 %v5229_v1  ;;  %v5226_v3 = vpop.xlane.xlu0 %5225 }
 0xaa6   : > { %26451 = vrcp.f32 %v5226_v3 }
 0xaa7   : > { %v26446_v6 = vpop.eup %26445 }
 0xaa8   : > { %v5235_v9 = vpop.xlane.xlu1 %5234  ;;  %v5247_v12 = vmul.f32 %v26446_v6, %v27827_v16 }
 0xaa9   : > { %26453 = vrcp.f32 %v5235_v9  ;;  %v5232_v33 = vpop.xlane.xlu0 %5231 }
 0xaaa   : > { %26455 = vrcp.f32 %v5232_v33  ;;  %25048 = vmatmul.mubr.msk.f32.vlgmr.msra.gmra.mrb[60].mxu1 %vm473_vm2, %v5247_v12 }
 0xaab   : > { %v26448_v55 = vpop.eup %26447  ;;  %25056 = vmatpush3.msra.mxu1 %v5408_v41  ;;  %25057 = vmatprep.mubr.msk.f32.mxu1 %vm26944_vm1, %v26943_v14 }
 0xaac   : > { %25065 = vmatprep.subr.mxu1 %v26943_v14  ;;  %v5249_v46 = vmul.f32 %v26448_v55, %v27832_v62  ;;  %v5788_v20 = vpop.permute.xlu1 %5787  ;;  %v5930_v62 = vld [vmem:[#allocation2 + $0x8] sm:$0xff] }
 0xaad   : > { %v5238_v19 = vpop.xlane.xlu0 %5237  ;;  %v26189_v59 = vpack.c.bf16 %v5930_v62, %v5929_v45 }
 0xaae   : > { %26457 = vrcp.f32 %v5238_v19  ;;  %25058 = vmatmul.mubr.msk.f32.vlgmr.msra.gmra.mrb[62].mxu1 %vm473_vm2, %v5249_v46 }
 0xaaf   : > { %v26450_v63 = vpop.eup %26449  ;;  %25066 = vmatpush3.msra.mxu1 %v5560_v37  ;;  %25067 = vmatprep.mubr.msk.f32.mxu1 %vm26944_vm1, %v26943_v14 }
 0xab0   : > { %v26452_v36 = vpop.eup %26451  ;;  %25075 = vmatprep.subr.mxu1 %v26943_v14  ;;  %v5251_v57 = vmul.f32 %v26450_v63, %v27837_v4  ;;  %v5931_v4 = vld [vmem:[#allocation2 + $0x10] sm:$0xff]  ;;  %v3138_v51 = vpop.permute.xlu1 %3137 }
 0xab1   : > { %v5712_v2 = vpop.permute.xlu0 %5711  ;;  %v5250_v7 = vmul.f32 %v26452_v36, %v27839_v47  ;;  %v5932_v47 = vld [vmem:[#allocation2 + $0x18] sm:$0xff] }
 0xab2   : > { %25068 = vmatmul.mubr.msk.f32.vlgmr.msra.gmra.mrb[64].mxu1 %vm473_vm2, %v5251_v57  ;;  %v26193_v15 = vpack.c.bf16 %v5932_v47, %v5931_v4 }
 0xab3   : > { %v26454_v11 = vpop.eup %26453  ;;  %25063 = vmatmul.mubr.msk.f32.vlgmr.msra.gmra.mrb[62].mxu0 %vm473_vm2, %v5250_v7  ;;  %25076 = vmatpush3.msra.mxu1 %v5712_v2  ;;  %v3160_v2 = vadd.f32 %v3138_v51, %v27125_v21  ;;  %v1796_v51 = vadd.f32 %v27401_v58, %v27139_v27  ;;  %v1797_v58 = vadd.f32 %v27408_v8, %v27143_v30 }
 0xab4   : > { %v26456_v16 = vpop.eup %26455  ;;  %25071 = vmatpush3.msra.mxu0 %v5636_v43  ;;  %25072 = vmatprep.mubr.msk.f32.mxu0 %vm26944_vm1, %v26943_v14  ;;  %v5253_v25 = vmul.f32 %v26454_v11, %v27845_v24  ;;  %v4506_v1 = vpop.permute.xlu1 %4505  ;;  %v1791_v11 = vadd.f32 %v27393_v50, %v27121_v18 }
 0xab5   : > { %25077 = vmatprep.mubr.msk.f32.mxu1 %vm26944_vm1, %v26943_v14  ;;  %25080 = vmatprep.subr.mxu0 %v26943_v14  ;;  %v5252_v17 = vmul.f32 %v26456_v16, %v27847_v32  ;;  %v3136_v0 = vpop.permute.xlu0 %3135  ;;  %v4528_v16 = vadd.f32 %v4506_v1, %v27125_v21 }
 0xab6   : > { %25078 = vmatmul.mubr.msk.f32.vlgmr.msra.gmra.mrb[66].mxu1 %vm473_vm2, %v5253_v25  ;;  %26190 = vmatprep.subr.bf16.mxu1 %v26189_v59  ;;  %v1792_v25 = vadd.f32 %v27395_v52, %v27125_v21  ;;  %v1793_v52 = vadd.f32 %v27397_v54, %v27127_v22 }
 0xab7   : > { %25073 = vmatmul.mubr.msk.f32.vlgmr.msra.gmra.mrb[64].mxu0 %vm473_vm2, %v5252_v17  ;;  %26192 = vmatpush3.bf16.msra.mxu1 %v26189_v59 }
 0xab8   : > { %v26458_v53 = vpop.eup %26457  ;;  %25081 = vmatpush3.msra.mxu0 %v5788_v20  ;;  %25082 = vmatprep.mubr.msk.f32.mxu0 %vm26944_vm1, %v26943_v14  ;;  %v3142_v6 = vpop.permute.xlu1 %3141  ;;  %v5904_v62 = vsel %vm473_vm2, %v1792_v25, %v3160_v2 }
 0xab9   : > { %v5254_v28 = vmul.f32 %v26458_v53, %v27853_v42  ;;  %26194 = vmatprep.subr.bf16.mxu1 %v26193_v15  ;;  %v4504_v3 = vpop.permute.xlu0 %4503  ;;  %v3162_v54 = vadd.f32 %v3142_v6, %v27129_v23 }
 0xaba   : > { %v4527_v7 = vadd.f32 %v4504_v3, %v27121_v18 }
 0xabb   : > { %25083 = vmatmul.mubr.msk.f32.vlgmr.msra.gmra.mrb[66].mxu0 %vm473_vm2, %v5254_v28  ;;  %26196 = vmatpush3.bf16.msra.mxu1 %v26193_v15 }
 0xabc   : > { %25125 = vmatprep.subr.mxu1 %v26943_v14 }
 0xabd   : > { %v3140_v9 = vpop.permute.xlu0 %3139 }
 0xabe   : > { %v3161_v28 = vadd.f32 %v3140_v9, %v27127_v22 }
 0xac0   : > { %v5905_v4 = vsel %vm473_vm2, %v1793_v52, %v3161_v28 }
 0xac1   : > { %v4508_v12 = vpop.permute.xlu0 %4507 }
 0xac2   : > { %v4529_v50 = vadd.f32 %v4508_v12, %v27127_v22 }
 0xac5   : > { %v3144_v55 = vpop.permute.xlu0 %3143 }
 0xac6   : > { %v3163_v47 = vadd.f32 %v3144_v55, %v27135_v26 }
 0xac9   : > { %v4512_v19 = vpop.permute.xlu0 %4511 }
 0xacd   : > { %v3148_v36 = vpop.permute.xlu0 %3147 }
 0xace   : > { %v3165_v1 = vadd.f32 %v3148_v36, %v27143_v30 }
 0xad0   : > { %v5909_v55 = vsel %vm473_vm2, %v1797_v58, %v3165_v1 }
 0xb54   : > { %v5403_v10 = vpop.f32.mrb[60].mxu0 }
 0xb55   : > { %5873 = vrot.lane.b32.xlu1 %v5403_v10, %s30996_s23  ;;  %v25054_v29 = vpop.f32.mrb[61].mxu0  ;;  %v5913_v10 = vsel %vm5911_vm3, %v5904_v62, %v4528_v16  ;;  %v23753_v16 = vld [vmem:[%s30984_s2 + $0x28] sm:$0xff] }
 0xb7d   : > { %v5327_v38 = vpop.f32.mrb[60].mxu1 }
 0xb7e   : > { %v25049_v24 = vpop.f32.mrb[61].mxu1  ;;  %5871 = vrot.lane.b32.xlu0 %v5327_v38, %s30996_s23  ;;  %v4531_v38 = vadd.f32 %v4512_v19, %v27135_v26 }
 0xb7f   : > { %v5914_v24 = vsel %vm5911_vm3, %v5905_v4, %v4529_v50 }
 0xb81   : > { %v5479_v32 = vpop.f32.mrb[62].mxu1 }
 0xb82   : > { %v25059_v34 = vpop.f32.mrb[63].mxu1  ;;  %5875 = vrot.lane.b32.xlu0 %v5479_v32, %s30996_s23  ;;  %v1795_v32 = vadd.f32 %v27406_v5, %v27135_v26 }
 0xb85   : > { %v5631_v40 = vpop.f32.mrb[64].mxu1 }
 0xb86   : > { %v5555_v42 = vpop.f32.mrb[62].mxu0  ;;  %5879 = vrot.lane.b32.xlu0 %v5631_v40, %s30996_s23  ;;  %v25069_v49 = vpop.f32.mrb[65].mxu1 }
 0xb87   : > { %5877 = vrot.lane.b32.xlu1 %v5555_v42, %s30996_s23  ;;  %v25064_v37 = vpop.f32.mrb[63].mxu0  ;;  %v5907_v49 = vsel %vm473_vm2, %v1795_v32, %v3163_v47 }
 0xb89   : > { %v5783_v39 = vpop.f32.mrb[66].mxu1 }
 0xb8a   : > { %v5707_v41 = vpop.f32.mrb[64].mxu0  ;;  %4515 = vrot.lane.b32.xlu0 %v27802_v35, %s30998_s24  ;;  %v25079_v44 = vpop.f32.mrb[67].mxu1 }
 0xb8b   : > { %5881 = vrot.lane.b32.xlu1 %v5707_v41, %s30996_s23  ;;  %v25074_v48 = vpop.f32.mrb[65].mxu0  ;;  %v4510_v35 = vpop.permute.xlu1 %4509 }
 0xb8c   : > { %v4530_v34 = vadd.f32 %v4510_v35, %v27129_v23  ;;  %v5916_v48 = vsel %vm5911_vm3, %v5907_v49, %v4531_v38 }
 0xb8e   : > { %v5859_v61 = vpop.f32.mrb[66].mxu0  ;;  %5883 = vrot.lane.b32.xlu0 %v5783_v39, %s30996_s23 }
 0xb8f   : > { %4517 = vrot.lane.b32.xlu1 %v27799_v13, %s30998_s24  ;;  %v25084_v43 = vpop.f32.mrb[67].mxu0  ;;  %v3146_v33 = vpop.permute.xlu1 %3145  ;;  %v3159_v13 = vadd.f32 %v3136_v0, %v27121_v18  ;;  %s31047_s24 = smov 40  }
 0xb90   : > { %v3164_v5 = vadd.f32 %v3146_v33, %v27139_v27 }
 0xb91   : > { %v5903_v53 = vsel %vm473_vm2, %v1791_v11, %v3159_v13 }
 0xb92   : > { %v5912_v59 = vsel %vm5911_vm3, %v5903_v53, %v4527_v7  ;;  %v23743_v53 = vld [vmem:[%s30987_s5] ss:$0 sm:$0xff] }
 0xb93   : > { %5885 = vrot.lane.b32.xlu1 %v5859_v61, %s30996_s23  ;;  %v4514_v46 = vpop.permute.xlu1 %4513  ;;  %s31046_s23 = smov 104  }
 0xb94   : > { %v4532_v61 = vadd.f32 %v4514_v46, %v27139_v27 }
 0xb97   : > { %v27934_v63 = vpop.permute.xlu1 %3149 }
 0xb98   : > { %v3166_v19 = vadd.f32 %v27934_v63, %v27147_v31 }
 0xbc7   : > { %v5874_v57 = vpop.permute.xlu1 %5873 }
 0xbc8   : > { %v5896_v17 = vadd.f32 %v5874_v57, %v27125_v21  ;;  %v1798_v57 = vadd.f32 %v27403_v60, %v27147_v31  ;;  %v23752_v60 = vld [vmem:[%s30984_s2 + $0x20] sm:$0xff] }
 0xbc9   : > { %v26197_v25 = vpack.c.bf16 %v23753_v16, %v23752_v60 }
 0xbca   : > { %v5910_v7 = vsel %vm473_vm2, %v1798_v57, %v3166_v19 }
 0xbcb   : > { %26198 = vmatprep.subr.bf16.mxu0 %v26197_v25 }
 0xbcc   : > { %26200 = vmatpush3.bf16.msra.mxu0 %v26197_v25 }
 0xbf0   : > { %v5872_v20 = vpop.permute.xlu0 %5871 }
 0xbf1   : > { %v5895_v45 = vadd.f32 %v5872_v20, %v27121_v18  ;;  %v27960_v18 = vsel %vm5920_vm4, %v5913_v10, %v5896_v17  ;;  %v23755_v17 = vld [vmem:[%s30984_s2 + $0x38] sm:$0xff] }
 0xbf3   : > { %v27955_v21 = vsel %vm5920_vm4, %v5912_v59, %v5895_v45 }
 0xbf4   : > { %25093 = vmatprep.mubr.msk.f32.mxu1 %vm340_vm0, %v27955_v21  ;;  %v5876_v29 = vpop.permute.xlu0 %5875 }
 0xbf5   : > { %v5897_v15 = vadd.f32 %v5876_v29, %v27127_v22  ;;  %25094 = vmatmul.mubr.msk.f32.vlgmr.msra.gmra.mrb[68].mxu1 %vm340_vm0, %v27960_v18  ;;  %v1794_v22 = vadd.f32 %v27399_v56, %v27129_v23 }
 0xbf7   : > { %v27974_v40 = vsel %vm5920_vm4, %v5914_v24, %v5897_v15  ;;  %v5906_v41 = vsel %vm473_vm2, %v1794_v22, %v3162_v54 }
 0xbf8   : > { %25096 = vmatprep.mubr.msk.f32.mxu1 %vm340_vm0, %v27974_v40  ;;  %v5880_v42 = vpop.permute.xlu0 %5879  ;;  %v5915_v56 = vsel %vm5911_vm3, %v5906_v41, %v4530_v34 }
 0xbf9   : > { %v5878_v37 = vpop.permute.xlu1 %5877  ;;  %v5899_v39 = vadd.f32 %v5880_v42, %v27135_v26 }
 0xbfa   : > { %v5898_v44 = vadd.f32 %v5878_v37, %v27129_v23  ;;  %v5908_v23 = vsel %vm473_vm2, %v1796_v51, %v3164_v5 }
 0xbfb   : > { %v27989_v43 = vsel %vm5920_vm4, %v5916_v48, %v5899_v39  ;;  %v5917_v35 = vsel %vm5911_vm3, %v5908_v23, %v4532_v61 }
 0xbfc   : > { %v27994_v26 = vsel %vm5920_vm4, %v5915_v56, %v5898_v44  ;;  %v4516_v0 = vpop.permute.xlu0 %4515 }
 0xbfd   : > { %v5882_v3 = vpop.permute.xlu1 %5881  ;;  %25097 = vmatmul.mubr.msk.f32.gmra.mrb[70].mxu1 %vm340_vm0, %v27994_v26  ;;  %v4533_v9 = vadd.f32 %v4516_v0, %v27143_v30 }
 0xbfe   : > { %v5900_v6 = vadd.f32 %v5882_v3, %v27139_v27  ;;  %25099 = vmatprep.mubr.msk.f32.mxu1 %vm340_vm0, %v27989_v43 }
 0xbff   : > { %v5918_v36 = vsel %vm5911_vm3, %v5909_v55, %v4533_v9 }
 0xc00   : > { %v5926_v12 = vsel %vm5920_vm4, %v5917_v35, %v5900_v6  ;;  %v5884_v33 = vpop.permute.xlu0 %5883 }
 0xc01   : > { %v4518_v46 = vpop.permute.xlu1 %4517  ;;  %25100 = vmatmul.mubr.msk.f32.gmra.mrb[72].mxu1 %vm340_vm0, %v5926_v12  ;;  %v5901_v27 = vadd.f32 %v5884_v33, %v27143_v30 }
 0xc02   : > { %v4534_v13 = vadd.f32 %v4518_v46, %v27147_v31 }
 0xc03   : > { %v5927_v8 = vsel %vm5920_vm4, %v5918_v36, %v5901_v27 }
 0xc04   : > { %25102 = vmatprep.mubr.msk.f32.mxu1 %vm340_vm0, %v5927_v8  ;;  %v5919_v30 = vsel %vm5911_vm3, %v5910_v7, %v4534_v13 }
 0xc05   : > { %v5886_v2 = vpop.permute.xlu1 %5885 }
 0xc06   : > { %v5902_v11 = vadd.f32 %v5886_v2, %v27147_v31  ;;  %v23754_v31 = vld [vmem:[%s30984_s2 + $0x30] sm:$0xff] }
 0xc07   : > { %v26201_v20 = vpack.c.bf16 %v23755_v17, %v23754_v31 }
 0xc08   : > { %v5928_v63 = vsel %vm5920_vm4, %v5919_v30, %v5902_v11 }
 0xc09   : > { %25103 = vmatmul.mubr.msk.f32.gmra.mrb[74].mxu1 %vm340_vm0, %v5928_v63  ;;  %26202 = vmatprep.subr.bf16.mxu0 %v26201_v20 }
 0xc0a   : > { %25127 = vmatprep.mubr.msk.f32.mxu1 %vm26944_vm1, %v26943_v14  ;;  %26204 = vmatpush3.bf16.msra.mxu0 %v26201_v20 }
 0xc0b   : > { %25130 = vmatprep.subr.mxu0 %v26943_v14 }
 0xcc8   : > { %v25095_v28 = vpop.f32.mrb[68].mxu1 }
 0xcc9   : > { %v6036_v45 = vadd.f32 %v25095_v28, %v23743_v53  ;;  %v6030_v62 = vpop.f32.mrb[69].mxu1 }
 0xcca   : > { %v6031_v50 = vadd.f32 %v23743_v53, %v6030_v62 }
 0xccb   : > { %v6070_v59 = vmax.f32 %v6036_v45, 0.0 }
 0xccc   : > { %v6069_v52 = vmax.f32 %v6031_v50, 0.0 }
 0xccd   : > { %v6078_v29 = vadd.f32 %v6070_v59, %v27960_v18 }
 0xcce   : > { %v6077_v10 = vadd.f32 %v6069_v52, %v27955_v21 }
 0xcd0   : > { %v25098_v4 = vpop.f32.mrb[70].mxu1  ;;  %25113 = vmatprep.mubr.msk.f32.mxu0 %vm340_vm0, %v6077_v10 }
 0xcd1   : > { %v6046_v47 = vadd.f32 %v25098_v4, %v23743_v53  ;;  %v6040_v15 = vpop.f32.mrb[71].mxu1  ;;  %25114 = vmatmul.mubr.msk.f32.vlgmr.msra.gmra.mrb[68].mxu0 %vm340_vm0, %v6078_v29 }
 0xcd2   : > { %v6041_v54 = vadd.f32 %v23743_v53, %v6040_v15 }
 0xcd3   : > { %v6072_v38 = vmax.f32 %v6046_v47, 0.0 }
 0xcd4   : > { %v6071_v24 = vmax.f32 %v6041_v54, 0.0  ;;  %v25101_v32 = vpop.f32.mrb[72].mxu1 }
 0xcd5   : > { %v6056_v34 = vadd.f32 %v25101_v32, %v23743_v53  ;;  %v6050_v22 = vpop.f32.mrb[73].mxu1  ;;  %v6080_v21 = vadd.f32 %v6072_v38, %v27994_v26 }
 0xcd6   : > { %v6079_v42 = vadd.f32 %v6071_v24, %v27974_v40  ;;  %v6051_v49 = vadd.f32 %v23743_v53, %v6050_v22 }
 0xcd7   : > { %v6074_v37 = vmax.f32 %v6056_v34, 0.0 }
 0xcd8   : > { %v6073_v18 = vmax.f32 %v6051_v49, 0.0  ;;  %25116 = vmatprep.mubr.msk.f32.mxu0 %vm340_vm0, %v6079_v42 }
 0xcd9   : > { %25117 = vmatmul.mubr.msk.f32.gmra.mrb[70].mxu0 %vm340_vm0, %v6080_v21  ;;  %v6082_v41 = vadd.f32 %v6074_v37, %v5926_v12 }
 0xcda   : > { %v6081_v39 = vadd.f32 %v6073_v18, %v27989_v43  ;;  %v23757_v43 = vld [vmem:[%s30985_s3 + $0x1] ss:$0 sm:$0xff] }
 0xcdc   : > { %v25104_v5 = vpop.f32.mrb[74].mxu1  ;;  %25119 = vmatprep.mubr.msk.f32.mxu0 %vm340_vm0, %v6081_v39 }
 0xcdd   : > { %v6066_v44 = vadd.f32 %v25104_v5, %v23743_v53  ;;  %v6060_v48 = vpop.f32.mrb[75].mxu1  ;;  %25120 = vmatmul.mubr.msk.f32.gmra.mrb[72].mxu0 %vm340_vm0, %v6082_v41 }
 0xcde   : > { %v6061_v40 = vadd.f32 %v23743_v53, %v6060_v48 }
 0xcdf   : > { %v6076_v61 = vmax.f32 %v6066_v44, 0.0 }
 0xce0   : > { %v6075_v56 = vmax.f32 %v6061_v40, 0.0 }
 0xce1   : > { %v6084_v26 = vadd.f32 %v6076_v61, %v5928_v63 }
 0xce2   : > { %v6083_v51 = vadd.f32 %v6075_v56, %v5927_v8 }
 0xce4   : > { %25122 = vmatprep.mubr.msk.f32.mxu0 %vm340_vm0, %v6083_v51 }
 0xce5   : > { %25123 = vmatmul.mubr.msk.f32.gmra.mrb[74].mxu0 %vm340_vm0, %v6084_v26 }
 0xce6   : > { %25132 = vmatprep.mubr.msk.f32.mxu0 %vm26944_vm1, %v26943_v14 }
 0xda4   : > { %v25115_v0 = vpop.f32.mrb[68].mxu0 }
 0xda5   : > { %v28060_v1 = vadd.f32 %v25115_v0, %v23757_v43  ;;  %v6188_v3 = vpop.f32.mrb[69].mxu0 }
 0xda6   : > { %v28062_v23 = vadd.f32 %v23757_v43, %v6188_v3 }
 0xda7   : > { %6305 = vrot.lane.b32.xlu1 %v28060_v1, %s31020_s25 }
 0xda8   : > { %6228 = vrot.lane.b32.xlu0 %v28062_v23, %s31020_s25 }
 0xdac   : > { %v25118_v6 = vpop.f32.mrb[70].mxu0 }
 0xdad   : > { %v28068_v9 = vadd.f32 %v25118_v6, %v23757_v43  ;;  %v6198_v58 = vpop.f32.mrb[71].mxu0 }
 0xdae   : > { %v28070_v35 = vadd.f32 %v23757_v43, %v6198_v58 }
 0xdaf   : > { %6459 = vrot.lane.b32.xlu1 %v28068_v9, %s31020_s25 }
 0xdb0   : > { %6382 = vrot.lane.b32.xlu0 %v28070_v35, %s31020_s25  ;;  %v25121_v12 = vpop.f32.mrb[72].mxu0 }
 0xdb1   : > { %v28076_v33 = vadd.f32 %v25121_v12, %v23757_v43  ;;  %v6208_v55 = vpop.f32.mrb[73].mxu0 }
 0xdb2   : > { %v28078_v46 = vadd.f32 %v23757_v43, %v6208_v55 }
 0xdb3   : > { %6613 = vrot.lane.b32.xlu1 %v28076_v33, %s31020_s25 }
 0xdb4   : > { %6536 = vrot.lane.b32.xlu0 %v28078_v46, %s31020_s25 }
 0xdb8   : > { %v25124_v27 = vpop.f32.mrb[74].mxu0 }
 0xdb9   : > { %v28084_v19 = vadd.f32 %v25124_v27, %v23757_v43  ;;  %v6218_v36 = vpop.f32.mrb[75].mxu0 }
 0xdba   : > { %v28086_v13 = vadd.f32 %v23757_v43, %v6218_v36 }
 0xdbb   : > { %6767 = vrot.lane.b32.xlu1 %v28084_v19, %s31020_s25 }
 0xdbc   : > { %6690 = vrot.lane.b32.xlu0 %v28086_v13, %s31020_s25  ;;  %s312_s25 = sand.u32 1, %s26930_s28  }
 0xe19   : > { %v6306_v8 = vpop.permute.xlu1 %6305 }
 0xe1a   : > { %25131 = vmatpush3.xpose.msk.msra.mxu0 %vm473_vm2, %v6306_v8  ;;  %v6229_v57 = vpop.permute.xlu0 %6228 }
 0xe1b   : > { %25126 = vmatpush3.xpose.msk.msra.mxu1 %vm473_vm2, %v6229_v57  ;;  %25140 = vmatprep.subr.mxu0 %v26943_v14 }
 0xe1c   : > { %25135 = vmatprep.subr.mxu1 %v26943_v14 }
 0xe1d   : > { %25133 = vmatmul.mubr.msk.f32.vlgmr.msra.gmra.mrb[76].mxu0 %vm473_vm2, %v28060_v1 }
 0xe1e   : > { %25128 = vmatmul.mubr.msk.f32.vlgmr.msra.gmra.mrb[76].mxu1 %vm473_vm2, %v28062_v23  ;;  %25142 = vmatprep.mubr.msk.f32.mxu0 %vm26944_vm1, %v26943_v14 }
 0xe1f   : > { %25137 = vmatprep.mubr.msk.f32.mxu1 %vm26944_vm1, %v26943_v14 }
 0xe21   : > { %v6460_v2 = vpop.permute.xlu1 %6459 }
 0xe22   : > { %25141 = vmatpush3.xpose.msk.msra.mxu0 %vm473_vm2, %v6460_v2  ;;  %v6383_v7 = vpop.permute.xlu0 %6382 }
 0xe23   : > { %25136 = vmatpush3.xpose.msk.msra.mxu1 %vm473_vm2, %v6383_v7  ;;  %25150 = vmatprep.subr.mxu0 %v26943_v14 }
 0xe24   : > { %25145 = vmatprep.subr.mxu1 %v26943_v14 }
 0xe25   : > { %v6614_v11 = vpop.permute.xlu1 %6613  ;;  %25143 = vmatmul.mubr.msk.f32.vlgmr.msra.gmra.mrb[78].mxu0 %vm473_vm2, %v28068_v9 }
 0xe26   : > { %25138 = vmatmul.mubr.msk.f32.vlgmr.msra.gmra.mrb[78].mxu1 %vm473_vm2, %v28070_v35  ;;  %25151 = vmatpush3.xpose.msk.msra.mxu0 %vm473_vm2, %v6614_v11  ;;  %v6537_v30 = vpop.permute.xlu0 %6536 }
 0xe27   : > { %25146 = vmatpush3.xpose.msk.msra.mxu1 %vm473_vm2, %v6537_v30  ;;  %25152 = vmatprep.mubr.msk.f32.mxu0 %vm26944_vm1, %v26943_v14 }
 0xe28   : > { %25147 = vmatprep.mubr.msk.f32.mxu1 %vm26944_vm1, %v26943_v14  ;;  %25160 = vmatprep.subr.mxu0 %v26943_v14 }
 0xe29   : > { %25153 = vmatmul.mubr.msk.f32.vlgmr.msra.gmra.mrb[80].mxu0 %vm473_vm2, %v28076_v33  ;;  %25155 = vmatprep.subr.mxu1 %v26943_v14 }
 0xe2a   : > { %25148 = vmatmul.mubr.msk.f32.vlgmr.msra.gmra.mrb[80].mxu1 %vm473_vm2, %v28078_v46  ;;  %25162 = vmatprep.mubr.msk.f32.mxu0 %vm26944_vm1, %v26943_v14 }
 0xe2b   : > { %25157 = vmatprep.mubr.msk.f32.mxu1 %vm26944_vm1, %v26943_v14 }
 0xe2d   : > { %v6768_v63 = vpop.permute.xlu1 %6767 }
 0xe2e   : > { %25161 = vmatpush3.xpose.msk.msra.mxu0 %vm473_vm2, %v6768_v63  ;;  %v6691_v60 = vpop.permute.xlu0 %6690 }
 0xe2f   : > { %25156 = vmatpush3.xpose.msk.msra.mxu1 %vm473_vm2, %v6691_v60  ;;  %25170 = vmatprep.subr.mxu0 %v26943_v14 }
 0xe30   : > { %25165 = vmatprep.subr.mxu1 %v26943_v14 }
 0xe31   : > { %25163 = vmatmul.mubr.msk.f32.vlgmr.msra.gmra.mrb[82].mxu0 %vm473_vm2, %v28084_v19 }
 0xe32   : > { %25158 = vmatmul.mubr.msk.f32.vlgmr.msra.gmra.mrb[82].mxu1 %vm473_vm2, %v28086_v13  ;;  %25172 = vmatprep.mubr.msk.f32.mxu0 %vm26944_vm1, %v26943_v14 }
 0xe33   : > { %25167 = vmatprep.mubr.msk.f32.mxu1 %vm26944_vm1, %v26943_v14 }
 0xef0   : > { %v6377_v16 = vpop.f32.mrb[76].mxu0 }
 0xef1   : > { %v6844_v25 = vmul.f32 0.17677669, %v6377_v16  ;;  %v6300_v31 = vpop.f32.mrb[76].mxu1  ;;  %v25134_v17 = vpop.f32.mrb[77].mxu0 }
 0xef2   : > { %v28140_v20 = vmul.f32 0.17677669, %v6300_v31  ;;  %v25129_v53 = vpop.f32.mrb[77].mxu1 }
 0xef3   : > { %v6854_v28 = vsel %vm473_vm2, %v6844_v25, -inf }
 0xef4   : > { %6855 = vmax.xlane.f32.xlu1 %v6854_v28  ;;  %v6851_v45 = vsel %vm473_vm2, %v28140_v20, -inf }
 0xef5   : > { %6852 = vmax.xlane.f32.xlu0 %v6851_v45 }
 0xef8   : > { %v6531_v62 = vpop.f32.mrb[78].mxu0 }
 0xef9   : > { %v6454_v50 = vpop.f32.mrb[78].mxu1  ;;  %v25144_v59 = vpop.f32.mrb[79].mxu0  ;;  %v6846_v29 = vmul.f32 0.17677669, %v6531_v62 }
 0xefa   : > { %v28145_v52 = vmul.f32 0.17677669, %v6454_v50  ;;  %v25139_v10 = vpop.f32.mrb[79].mxu1 }
 0xefb   : > { %v6860_v32 = vsel %vm473_vm2, %v6846_v29, -inf }
 0xefc   : > { %v6685_v4 = vpop.f32.mrb[80].mxu0  ;;  %v6857_v47 = vsel %vm473_vm2, %v28145_v52, -inf }
 0xefd   : > { %v25154_v15 = vpop.f32.mrb[81].mxu0  ;;  %6858 = vmax.xlane.f32.xlu0 %v6857_v47  ;;  %v6608_v54 = vpop.f32.mrb[80].mxu1  ;;  %v6848_v24 = vmul.f32 0.17677669, %v6685_v4 }
 0xefe   : > { %v25149_v38 = vpop.f32.mrb[81].mxu1  ;;  %v28158_v39 = vmul.f32 0.17677669, %v6608_v54 }
 0xeff   : > { %v6866_v22 = vsel %vm473_vm2, %v6848_v24, -inf }
 0xf00   : > { %v6863_v41 = vsel %vm473_vm2, %v28158_v39, -inf }
 0xf01   : > { %6861 = vmax.xlane.f32.xlu0 %v6860_v32 }
 0xf04   : > { %v6839_v34 = vpop.f32.mrb[82].mxu0 }
 0xf05   : > { %v6850_v42 = vmul.f32 0.17677669, %v6839_v34  ;;  %v25164_v49 = vpop.f32.mrb[83].mxu0  ;;  %6867 = vmax.xlane.f32.xlu0 %v6866_v22  ;;  %v6762_v21 = vpop.f32.mrb[82].mxu1  ;;  %6939 = vrot.lane.b32.xlu1 %v28062_v23, %s31014_s20 }
 0xf06   : > { %v25159_v37 = vpop.f32.mrb[83].mxu1  ;;  %v28182_v5 = vmul.f32 0.17677669, %v6762_v21 }
 0xf07   : > { %v6872_v18 = vsel %vm473_vm2, %v6850_v42, -inf }
 0xf08   : > { %v6869_v44 = vsel %vm473_vm2, %v28182_v5, -inf }
 0xf09   : > { %6873 = vmax.xlane.f32.xlu0 %v6872_v18 }
 0xf1f   : > { %7015 = vrot.lane.b32.xlu0 %v28060_v1, %s31014_s20 }
 0xf23   : > { %7243 = vrot.lane.b32.xlu0 %v28078_v46, %s31014_s20 }
 0xf27   : > { %7395 = vrot.lane.b32.xlu0 %v28086_v13, %s31014_s20 }
 0xf29   : > { %6864 = vmax.xlane.f32.xlu1 %v6863_v41 }
 0xf2b   : > { %7557 = vrot.lane.b32.xlu0 %v28062_v23, %s31016_s26 }
 0xf2f   : > { %7555 = vrot.lane.b32.xlu0 %v28062_v23, %s31018_s19 }
 0xf33   : > { %7713 = vrot.lane.b32.xlu0 %v28070_v35, %s31016_s26 }
 0xf3a   : > { %7091 = vrot.lane.b32.xlu1 %v28070_v35, %s31014_s20 }
 0xf3e   : > { %7167 = vrot.lane.b32.xlu1 %v28068_v9, %s31014_s20 }
 0xf42   : > { %7319 = vrot.lane.b32.xlu1 %v28076_v33, %s31014_s20 }
 0xf46   : > { %7471 = vrot.lane.b32.xlu1 %v28084_v19, %s31014_s20  ;;  %s31051_s20 = smov 96  }
 0xf4a   : > { %7635 = vrot.lane.b32.xlu1 %v28060_v1, %s31016_s26 }
 0xf4e   : > { %7633 = vrot.lane.b32.xlu1 %v28060_v1, %s31018_s19 }
 0xf72   : > { %6870 = vmax.xlane.f32.xlu1 %v6869_v44 }
 0xf81   : > { %v6856_v48 = vpop.xlane.xlu1 %6855 }
 0xf82   : > { %v6876_v40 = vsub.f32 %v6844_v25, %v6856_v48  ;;  %v6853_v51 = vpop.xlane.xlu0 %6852 }
 0xf83   : > { %7791 = vrot.lane.b32.xlu1 %v28068_v9, %s31016_s26  ;;  %v6875_v6 = vsub.f32 %v28140_v20, %v6853_v51 }
 0xf84   : > { %v6885_v61 = vmul.f32 1.442695, %v6876_v40 }
 0xf85   : > { %v6940_v56 = vpop.permute.xlu1 %6939  ;;  %v6883_v36 = vmul.f32 1.442695, %v6875_v6 }
 0xf86   : > { %26459 = vpow2.f32 %v6885_v61  ;;  %25166 = vmatpush3.msra.mxu1 %v6940_v56 }
 0xf87   : > { %25175 = vmatprep.subr.mxu1 %v26943_v14 }
 0xf8a   : > { %v6859_v26 = vpop.xlane.xlu0 %6858 }
 0xf8b   : > { %v6877_v8 = vsub.f32 %v28145_v52, %v6859_v26 }
 0xf8d   : > { %v6887_v11 = vmul.f32 1.442695, %v6877_v8 }
 0xf8e   : > { %v6862_v43 = vpop.xlane.xlu0 %6861 }
 0xf8f   : > { %v6878_v0 = vsub.f32 %v6846_v29, %v6862_v43 }
 0xf90   : > { %v28189_v3 = vpop.eup %26459 }
 0xf91   : > { %v6889_v58 = vmul.f32 1.442695, %v6878_v0  ;;  %v6902_v12 = vsel %vm473_vm2, %v28189_v3, 0.0 }
 0xf92   : > { %v6868_v55 = vpop.xlane.xlu0 %6867  ;;  %6903 = vadd.xlane.f32.xlu0 %v6902_v12 }
 0xf93   : > { %26461 = vpow2.f32 %v6889_v58  ;;  %v6880_v27 = vsub.f32 %v6848_v24, %v6868_v55 }
 0xf95   : > { %v6893_v57 = vmul.f32 1.442695, %v6880_v27 }
 0xf96   : > { %v6874_v2 = vpop.xlane.xlu0 %6873 }
 0xf97   : > { %26463 = vpow2.f32 %v6893_v57  ;;  %v6882_v7 = vsub.f32 %v6850_v42, %v6874_v2 }
 0xf98   : > { %26465 = vpow2.f32 %v6883_v36 }
 0xf99   : > { %v6897_v30 = vmul.f32 1.442695, %v6882_v7 }
 0xf9a   : > { %v7016_v63 = vpop.permute.xlu0 %7015 }
 0xf9b   : > { %26467 = vpow2.f32 %v6897_v30  ;;  %25171 = vmatpush3.msra.mxu0 %v7016_v63 }
 0xf9c   : > { %25180 = vmatprep.subr.mxu0 %v26943_v14  ;;  %26469 = vpow2.f32 %v6887_v11 }
 0xf9d   : > { %v28196_v60 = vpop.eup %26461 }
 0xf9e   : > { %v6908_v16 = vsel %vm473_vm2, %v28196_v60, 0.0  ;;  %v7244_v42 = vpop.permute.xlu0 %7243 }
 0xf9f   : > { %6909 = vadd.xlane.f32.xlu0 %v6908_v16 }
 0xfa1   : > { %v28200_v25 = vpop.eup %26463 }
 0xfa2   : > { %v6914_v31 = vsel %vm473_vm2, %v28200_v25, 0.0  ;;  %v28204_v17 = vpop.eup %26465  ;;  %v28236_v49 = vpop.permute.xlu0 %7395 }
 0xfa3   : > { %6915 = vadd.xlane.f32.xlu0 %v6914_v31  ;;  %v6899_v28 = vsel %vm473_vm2, %v28204_v17, 0.0 }
 0xfa5   : > { %v28206_v20 = vpop.eup %26467 }
 0xfa6   : > { %v6920_v53 = vsel %vm473_vm2, %v28206_v20, 0.0  ;;  %v28212_v45 = vpop.eup %26469  ;;  %v28240_v37 = vpop.permute.xlu0 %7557 }
 0xfa7   : > { %6921 = vadd.xlane.f32.xlu0 %v6920_v53  ;;  %6900 = vadd.xlane.f32.xlu1 %v6899_v28  ;;  %v6905_v62 = vsel %vm473_vm2, %v28212_v45, 0.0 }
 0xfab   : > { %6906 = vadd.xlane.f32.xlu1 %v6905_v62 }
 0xfb6   : > { %v6865_v50 = vpop.xlane.xlu1 %6864 }
 0xfb7   : > { %v6879_v59 = vsub.f32 %v28158_v39, %v6865_v50  ;;  %v28244_v39 = vpop.permute.xlu0 %7555 }
 0xfb9   : > { %v6891_v52 = vmul.f32 1.442695, %v6879_v59 }
 0xfba   : > { %v7092_v4 = vpop.permute.xlu1 %7091 }
 0xfbb   : > { %26471 = vpow2.f32 %v6891_v52  ;;  %v28246_v41 = vpop.permute.xlu0 %7713 }
 0xfbd   : > { %7711 = vrot.lane.b32.xlu0 %v28070_v35, %s31018_s19 }
 0xfbe   : > { %v7168_v47 = vpop.permute.xlu1 %7167 }
 0xfc1   : > { %7869 = vrot.lane.b32.xlu0 %v28078_v46, %s31016_s26 }
 0xfc2   : > { %v7320_v15 = vpop.permute.xlu1 %7319 }
 0xfc5   : > { %v28221_v10 = vpop.eup %26471  ;;  %7867 = vrot.lane.b32.xlu0 %v28078_v46, %s31018_s19 }
 0xfc6   : > { %v6911_v29 = vsel %vm473_vm2, %v28221_v10, 0.0  ;;  %v7472_v54 = vpop.permute.xlu1 %7471 }
 0xfc7   : > { %6912 = vadd.xlane.f32.xlu1 %v6911_v29 }
 0xfc9   : > { %8025 = vrot.lane.b32.xlu0 %v28086_v13, %s31016_s26 }
 0xfca   : > { %v7636_v38 = vpop.permute.xlu1 %7635 }
 0xfcd   : > { %8023 = vrot.lane.b32.xlu0 %v28086_v13, %s31018_s19 }
 0xfce   : > { %v28233_v24 = vpop.permute.xlu1 %7633 }
 0xfd8   : > { %7789 = vrot.lane.b32.xlu1 %v28068_v9, %s31018_s19 }
 0xfff   : > { %v6871_v32 = vpop.xlane.xlu1 %6870 }
0x1000   : > { %v6881_v34 = vsub.f32 %v28182_v5, %v6871_v32 }
0x1002   : > { %v6895_v22 = vmul.f32 1.442695, %v6881_v34 }
0x1003   : > { %v7792_v61 = vpop.permute.xlu1 %7791 }
0x1004   : > { %26473 = vpow2.f32 %v6895_v22 }
0x100e   : > { %v28238_v21 = vpop.eup %26473 }
0x100f   : > { %v6917_v18 = vsel %vm473_vm2, %v28238_v21, 0.0 }
0x1010   : > { %6918 = vadd.xlane.f32.xlu1 %v6917_v18 }
0x101f   : > { %v6904_v44 = vpop.xlane.xlu0 %6903 }
0x1020   : > { %26475 = vrcp.f32 %v6904_v44 }
0x1021   : > { %7947 = vrot.lane.b32.xlu1 %v28076_v33, %s31016_s26 }
0x1025   : > { %7945 = vrot.lane.b32.xlu1 %v28076_v33, %s31018_s19 }
0x1029   : > { %8103 = vrot.lane.b32.xlu1 %v28084_v19, %s31016_s26 }
0x102a   : > { %v26476_v5 = vpop.eup %26475 }
0x102b   : > { %v6932_v48 = vmul.f32 %v26476_v5, %v28189_v3 }
0x102c   : > { %v6910_v40 = vpop.xlane.xlu0 %6909 }
0x102d   : > { %26477 = vrcp.f32 %v6910_v40  ;;  %8101 = vrot.lane.b32.xlu1 %v28084_v19, %s31018_s19  ;;  %25173 = vmatmul.mubr.msk.f32.vlgmr.msra.gmra.mrb[84].mxu0 %vm473_vm2, %v6932_v48  ;;  %s31053_s19 = smov 120  }
0x102e   : > { %25181 = vmatpush3.msra.mxu0 %v7168_v47  ;;  %25182 = vmatprep.mubr.msk.f32.mxu0 %vm26944_vm1, %v26943_v14 }
0x102f   : > { %25190 = vmatprep.subr.mxu0 %v26943_v14 }
0x1030   : > { %v6916_v56 = vpop.xlane.xlu0 %6915 }
0x1031   : > { %26479 = vrcp.f32 %v6916_v56 }
0x1034   : > { %v6922_v51 = vpop.xlane.xlu0 %6921  ;;  %v6901_v26 = vpop.xlane.xlu1 %6900 }
0x1035   : > { %26481 = vrcp.f32 %v6922_v51 }
0x1036   : > { %26483 = vrcp.f32 %v6901_v26 }
0x1037   : > { %v26478_v43 = vpop.eup %26477 }
0x1038   : > { %v6907_v0 = vpop.xlane.xlu1 %6906  ;;  %v6934_v3 = vmul.f32 %v26478_v43, %v28196_v60  ;;  %v7712_v16 = vpop.permute.xlu0 %7711 }
0x1039   : > { %26485 = vrcp.f32 %v6907_v0 }
0x103a   : > { %25183 = vmatmul.mubr.msk.f32.vlgmr.msra.gmra.mrb[86].mxu0 %vm473_vm2, %v6934_v3 }
0x103b   : > { %v26480_v6 = vpop.eup %26479  ;;  %25191 = vmatpush3.msra.mxu0 %v7320_v15  ;;  %25192 = vmatprep.mubr.msk.f32.mxu0 %vm26944_vm1, %v26943_v14 }
0x103c   : > { %25200 = vmatprep.subr.mxu0 %v26943_v14  ;;  %v6936_v58 = vmul.f32 %v26480_v6, %v28200_v25 }
0x103e   : > { %25193 = vmatmul.mubr.msk.f32.vlgmr.msra.gmra.mrb[88].mxu0 %vm473_vm2, %v6936_v58 }
0x103f   : > { %v26482_v12 = vpop.eup %26481  ;;  %25201 = vmatpush3.msra.mxu0 %v7472_v54  ;;  %25202 = vmatprep.mubr.msk.f32.mxu0 %vm26944_vm1, %v26943_v14 }
0x1040   : > { %v26484_v55 = vpop.eup %26483  ;;  %v6938_v27 = vmul.f32 %v26482_v12, %v28206_v20  ;;  %25210 = vmatprep.subr.mxu0 %v26943_v14 }
0x1041   : > { %v6931_v36 = vmul.f32 %v26484_v55, %v28204_v17  ;;  %v7870_v17 = vpop.permute.xlu0 %7869 }
0x1042   : > { %25203 = vmatmul.mubr.msk.f32.vlgmr.msra.gmra.mrb[90].mxu0 %vm473_vm2, %v6938_v27 }
0x1043   : > { %v26486_v8 = vpop.eup %26485  ;;  %25168 = vmatmul.mubr.msk.f32.vlgmr.msra.gmra.mrb[84].mxu1 %vm473_vm2, %v6931_v36  ;;  %25212 = vmatprep.mubr.msk.f32.mxu0 %vm26944_vm1, %v26943_v14 }
0x1044   : > { %25176 = vmatpush3.msra.mxu1 %v7092_v4  ;;  %25177 = vmatprep.mubr.msk.f32.mxu1 %vm26944_vm1, %v26943_v14  ;;  %v6933_v57 = vmul.f32 %v26486_v8, %v28212_v45 }
0x1045   : > { %25185 = vmatprep.subr.mxu1 %v26943_v14  ;;  %v7868_v45 = vpop.permute.xlu0 %7867 }
0x1046   : > { %25211 = vmatpush3.xpose.msk.msra.mxu0 %vm473_vm2, %v7636_v38 }
0x1047   : > { %25178 = vmatmul.mubr.msk.f32.vlgmr.msra.gmra.mrb[86].mxu1 %vm473_vm2, %v6933_v57  ;;  %25220 = vmatprep.subr.mxu0 %v26943_v14 }
0x1048   : > { %25186 = vmatpush3.msra.mxu1 %v7244_v42  ;;  %25187 = vmatprep.mubr.msk.f32.mxu1 %vm26944_vm1, %v26943_v14 }
0x1049   : > { %25213 = vmatmul.mubr.msk.f32.vlgmr.msra.gmra.mrb[92].mxu0 %vm473_vm2, %v28233_v24  ;;  %25195 = vmatprep.subr.mxu1 %v26943_v14  ;;  %v8026_v62 = vpop.permute.xlu0 %8025 }
0x104a   : > { %25221 = vmatpush3.xpose.msk.msra.mxu0 %vm473_vm2, %v7792_v61  ;;  %25222 = vmatprep.mubr.msk.f32.mxu0 %vm26944_vm1, %v26943_v14 }
0x104b   : > { %25230 = vmatprep.subr.mxu0 %v26943_v14 }
0x104d   : > { %v8024_v50 = vpop.permute.xlu0 %8023 }
0x1054   : > { %v6913_v2 = vpop.xlane.xlu1 %6912 }
0x1055   : > { %26487 = vrcp.f32 %v6913_v2 }
0x1058   : > { %v7790_v7 = vpop.permute.xlu1 %7789 }
0x1059   : > { %25223 = vmatmul.mubr.msk.f32.vlgmr.msra.gmra.mrb[94].mxu0 %vm473_vm2, %v7790_v7 }
0x105a   : > { %25232 = vmatprep.mubr.msk.f32.mxu0 %vm26944_vm1, %v26943_v14 }
0x105f   : > { %v26488_v11 = vpop.eup %26487 }
0x1060   : > { %v6935_v30 = vmul.f32 %v26488_v11, %v28221_v10 }
0x1062   : > { %25188 = vmatmul.mubr.msk.f32.vlgmr.msra.gmra.mrb[88].mxu1 %vm473_vm2, %v6935_v30 }
0x1063   : > { %25196 = vmatpush3.msra.mxu1 %v28236_v49  ;;  %25197 = vmatprep.mubr.msk.f32.mxu1 %vm26944_vm1, %v26943_v14 }
0x1064   : > { %25205 = vmatprep.subr.mxu1 %v26943_v14 }
0x109d   : > { %v6919_v63 = vpop.xlane.xlu1 %6918 }
0x109e   : > { %26489 = vrcp.f32 %v6919_v63 }
0x10a1   : > { %v7948_v60 = vpop.permute.xlu1 %7947 }
0x10a2   : > { %25231 = vmatpush3.xpose.msk.msra.mxu0 %vm473_vm2, %v7948_v60 }
0x10a3   : > { %25240 = vmatprep.subr.mxu0 %v26943_v14 }
0x10a5   : > { %v7946_v25 = vpop.permute.xlu1 %7945 }
0x10a6   : > { %25233 = vmatmul.mubr.msk.f32.vlgmr.msra.gmra.mrb[96].mxu0 %vm473_vm2, %v7946_v25 }
0x10a7   : > { %25242 = vmatprep.mubr.msk.f32.mxu0 %vm26944_vm1, %v26943_v14 }
0x10a8   : > { %v26490_v31 = vpop.eup %26489 }
0x10a9   : > { %v8104_v20 = vpop.permute.xlu1 %8103  ;;  %v6937_v53 = vmul.f32 %v26490_v31, %v28238_v21 }
0x10aa   : > { %25241 = vmatpush3.xpose.msk.msra.mxu0 %vm473_vm2, %v8104_v20 }
0x10ab   : > { %25198 = vmatmul.mubr.msk.f32.vlgmr.msra.gmra.mrb[90].mxu1 %vm473_vm2, %v6937_v53  ;;  %25250 = vmatprep.subr.mxu0 %v26943_v14 }
0x10ac   : > { %25206 = vmatpush3.xpose.msk.msra.mxu1 %vm473_vm2, %v28240_v37  ;;  %25207 = vmatprep.mubr.msk.f32.mxu1 %vm26944_vm1, %v26943_v14 }
0x10ad   : > { %v8102_v28 = vpop.permute.xlu1 %8101  ;;  %25215 = vmatprep.subr.mxu1 %v26943_v14 }
0x10ae   : > { %25243 = vmatmul.mubr.msk.f32.vlgmr.msra.gmra.mrb[98].mxu0 %vm473_vm2, %v8102_v28 }
0x10af   : > { %25208 = vmatmul.mubr.msk.f32.vlgmr.msra.gmra.mrb[92].mxu1 %vm473_vm2, %v28244_v39  ;;  %25252 = vmatprep.mubr.msk.f32.mxu0 %vm26944_vm1, %v26943_v14 }
0x10b0   : > { %25216 = vmatpush3.xpose.msk.msra.mxu1 %vm473_vm2, %v28246_v41  ;;  %25217 = vmatprep.mubr.msk.f32.mxu1 %vm26944_vm1, %v26943_v14 }
0x10b1   : > { %25225 = vmatprep.subr.mxu1 %v26943_v14 }
0x10b3   : > { %25218 = vmatmul.mubr.msk.f32.vlgmr.msra.gmra.mrb[94].mxu1 %vm473_vm2, %v7712_v16 }
0x10b4   : > { %25226 = vmatpush3.xpose.msk.msra.mxu1 %vm473_vm2, %v7870_v17  ;;  %25227 = vmatprep.mubr.msk.f32.mxu1 %vm26944_vm1, %v26943_v14 }
0x10b5   : > { %25235 = vmatprep.subr.mxu1 %v26943_v14 }
0x10b7   : > { %25228 = vmatmul.mubr.msk.f32.vlgmr.msra.gmra.mrb[96].mxu1 %vm473_vm2, %v7868_v45 }
0x10b8   : > { %25236 = vmatpush3.xpose.msk.msra.mxu1 %vm473_vm2, %v8026_v62  ;;  %25237 = vmatprep.mubr.msk.f32.mxu1 %vm26944_vm1, %v26943_v14 }
0x10b9   : > { %25245 = vmatprep.subr.mxu1 %v26943_v14 }
0x10bb   : > { %25238 = vmatmul.mubr.msk.f32.vlgmr.msra.gmra.mrb[98].mxu1 %vm473_vm2, %v8024_v50 }
0x10bc   : > { %25247 = vmatprep.mubr.msk.f32.mxu1 %vm26944_vm1, %v26943_v14 }
0x1100   : > { %v28339_v59 = vpop.f32.mrb[84].mxu0 }
0x1101   : > { %v25174_v52 = vpop.f32.mrb[85].mxu0 }
0x110d   : > { %v28341_v10 = vpop.f32.mrb[86].mxu0 }
0x110e   : > { %v25184_v29 = vpop.f32.mrb[87].mxu0 }
0x1111   : > { %v28343_v4 = vpop.f32.mrb[88].mxu0 }
0x1112   : > { %v25194_v47 = vpop.f32.mrb[89].mxu0 }
0x1115   : > { %v28345_v15 = vpop.f32.mrb[90].mxu0 }
0x1116   : > { %v28347_v54 = vpop.f32.mrb[84].mxu1  ;;  %v25204_v38 = vpop.f32.mrb[91].mxu0 }
0x1117   : > { %v25169_v24 = vpop.f32.mrb[85].mxu1 }
0x111a   : > { %v28349_v32 = vpop.f32.mrb[86].mxu1 }
0x111b   : > { %v25179_v34 = vpop.f32.mrb[87].mxu1 }
0x111c   : > { %v7707_v22 = vpop.f32.mrb[92].mxu0 }
0x111d   : > { %v8180_v42 = vmul.f32 0.17677669, %v7707_v22  ;;  %v25214_v49 = vpop.f32.mrb[93].mxu0 }
0x111f   : > { %v8190_v21 = vsel %vm473_vm2, %v8180_v42, -inf }
0x1120   : > { %8191 = vmax.xlane.f32.xlu1 %v8190_v21 }
0x112c   : > { %v7863_v37 = vpop.f32.mrb[94].mxu0 }
0x112d   : > { %v25224_v18 = vpop.f32.mrb[95].mxu0  ;;  %v8182_v12 = vmul.f32 0.17677669, %v7863_v37 }
0x112f   : > { %v8196_v2 = vsel %vm473_vm2, %v8182_v12, -inf }
0x1131   : > { %8275 = vrot.lane.b32.xlu1 %v28062_v23, %s31012_s10 }
0x1135   : > { %v28354_v39 = vpop.f32.mrb[88].mxu1 }
0x1136   : > { %v25189_v41 = vpop.f32.mrb[89].mxu1 }
0x1179   : > { %v8019_v44 = vpop.f32.mrb[96].mxu0 }
0x117a   : > { %v25234_v5 = vpop.f32.mrb[97].mxu0  ;;  %v8184_v57 = vmul.f32 0.17677669, %v8019_v44 }
0x117c   : > { %v8202_v60 = vsel %vm473_vm2, %v8184_v57, -inf }
0x117e   : > { %v28356_v48 = vpop.f32.mrb[90].mxu1 }
0x117f   : > { %v25199_v40 = vpop.f32.mrb[91].mxu1 }
0x1181   : > { %v8175_v61 = vpop.f32.mrb[98].mxu0 }
0x1182   : > { %v7629_v56 = vpop.f32.mrb[92].mxu1  ;;  %v25244_v51 = vpop.f32.mrb[99].mxu0  ;;  %v8186_v63 = vmul.f32 0.17677669, %v8175_v61 }
0x1183   : > { %v8179_v26 = vmul.f32 0.17677669, %v7629_v56  ;;  %v25209_v43 = vpop.f32.mrb[93].mxu1 }
0x1184   : > { %v8208_v16 = vsel %vm473_vm2, %v8186_v63, -inf }
0x1185   : > { %v8187_v0 = vsel %vm473_vm2, %v8179_v26, -inf }
0x1186   : > { %8188 = vmax.xlane.f32.xlu0 %v8187_v0  ;;  %v7785_v3 = vpop.f32.mrb[94].mxu1 }
0x1187   : > { %v8181_v6 = vmul.f32 0.17677669, %v7785_v3  ;;  %v25219_v58 = vpop.f32.mrb[95].mxu1 }
0x1189   : > { %v8193_v55 = vsel %vm473_vm2, %v8181_v6, -inf }
0x118a   : > { %8194 = vmax.xlane.f32.xlu0 %v8193_v55  ;;  %v7941_v27 = vpop.f32.mrb[96].mxu1 }
0x118b   : > { %v8183_v36 = vmul.f32 0.17677669, %v7941_v27  ;;  %v25229_v8 = vpop.f32.mrb[97].mxu1 }
0x118d   : > { %v8199_v7 = vsel %vm473_vm2, %v8183_v36, -inf }
0x118e   : > { %8197 = vmax.xlane.f32.xlu0 %v8196_v2  ;;  %8200 = vmax.xlane.f32.xlu1 %v8199_v7  ;;  %v8097_v11 = vpop.f32.mrb[98].mxu1 }
0x118f   : > { %v25239_v30 = vpop.f32.mrb[99].mxu1  ;;  %v28389_v53 = vmul.f32 0.17677669, %v8097_v11 }
0x1191   : > { %v8205_v28 = vsel %vm473_vm2, %v28389_v53, -inf }
0x1192   : > { %8203 = vmax.xlane.f32.xlu0 %v8202_v60 }
0x1196   : > { %8209 = vmax.xlane.f32.xlu0 %v8208_v16 }
0x119f   : > { %8427 = vrot.lane.b32.xlu1 %v28070_v35, %s31012_s10 }
0x11a3   : > { %8503 = vrot.lane.b32.xlu1 %v28068_v9, %s31012_s10 }
0x11a7   : > { %8655 = vrot.lane.b32.xlu1 %v28076_v33, %s31012_s10 }
0x11ab   : > { %8807 = vrot.lane.b32.xlu1 %v28084_v19, %s31012_s10 }
0x11ac   : > { %8351 = vrot.lane.b32.xlu0 %v28060_v1, %s31012_s10 }
0x11ad   : > { %v8192_v25 = vpop.xlane.xlu1 %8191 }
0x11ae   : > { %v8212_v17 = vsub.f32 %v8180_v42, %v8192_v25 }
0x11af   : > { %9003 = vrot.lane.b32.xlu1 %v28060_v1, %s31042_s13 }
0x11b0   : > { %8579 = vrot.lane.b32.xlu0 %v28078_v46, %s31012_s10  ;;  %v8221_v20 = vmul.f32 1.442695, %v8212_v17 }
0x11b1   : > { %v8276_v31 = vpop.permute.xlu1 %8275 }
0x11b2   : > { %25246 = vmatpush3.msra.mxu1 %v8276_v31  ;;  %26491 = vpow2.f32 %v8221_v20 }
0x11b3   : > { %9001 = vrot.lane.b32.xlu1 %v28060_v1, %s31043_s18  ;;  %25255 = vmatprep.subr.mxu1 %v26943_v14 }
0x11b4   : > { %8731 = vrot.lane.b32.xlu0 %v28086_v13, %s31012_s10  ;;  %s31050_s10 = smov 24  }
0x11b8   : > { %8925 = vrot.lane.b32.xlu0 %v28062_v23, %s31042_s13 }
0x11bc   : > { %8923 = vrot.lane.b32.xlu0 %v28062_v23, %s31043_s18  ;;  %v28393_v45 = vpop.eup %26491 }
0x11bd   : > { %v8238_v62 = vsel %vm473_vm2, %v28393_v45, 0.0 }
0x11c0   : > { %9081 = vrot.lane.b32.xlu0 %v28070_v35, %s31042_s13 }
0x11d7   : > { %8206 = vmax.xlane.f32.xlu1 %v8205_v28 }
0x11df   : > { %8239 = vadd.xlane.f32.xlu0 %v8238_v62 }
0x11e8   : > { %9159 = vrot.lane.b32.xlu1 %v28068_v9, %s31042_s13 }
0x1213   : > { %v8189_v50 = vpop.xlane.xlu0 %8188 }
0x1214   : > { %v8211_v52 = vsub.f32 %v8179_v26, %v8189_v50 }
0x1216   : > { %v8219_v29 = vmul.f32 1.442695, %v8211_v52 }
0x1217   : > { %v8195_v47 = vpop.xlane.xlu0 %8194 }
0x1218   : > { %26493 = vpow2.f32 %v8219_v29  ;;  %v8213_v38 = vsub.f32 %v8181_v6, %v8195_v47 }
0x121a   : > { %v8223_v24 = vmul.f32 1.442695, %v8213_v38 }
0x121b   : > { %v8201_v34 = vpop.xlane.xlu1 %8200  ;;  %v8198_v22 = vpop.xlane.xlu0 %8197 }
0x121c   : > { %26495 = vpow2.f32 %v8223_v24  ;;  %v8215_v42 = vsub.f32 %v8183_v36, %v8201_v34  ;;  %v8214_v49 = vsub.f32 %v8182_v12, %v8198_v22 }
0x121e   : > { %v8227_v21 = vmul.f32 1.442695, %v8215_v42  ;;  %v8225_v37 = vmul.f32 1.442695, %v8214_v49 }
0x121f   : > { %v8204_v18 = vpop.xlane.xlu0 %8203 }
0x1220   : > { %26497 = vpow2.f32 %v8227_v21  ;;  %v8216_v41 = vsub.f32 %v8184_v57, %v8204_v18  ;;  %v8428_v57 = vpop.permute.xlu1 %8427 }
0x1221   : > { %26499 = vpow2.f32 %v8225_v37 }
0x1222   : > { %v28399_v44 = vpop.eup %26493  ;;  %v8229_v5 = vmul.f32 1.442695, %v8216_v41 }
0x1223   : > { %v8210_v40 = vpop.xlane.xlu0 %8209  ;;  %v8235_v61 = vsel %vm473_vm2, %v28399_v44, 0.0 }
0x1224   : > { %26501 = vpow2.f32 %v8229_v5  ;;  %v8218_v56 = vsub.f32 %v8186_v63, %v8210_v40  ;;  %8236 = vadd.xlane.f32.xlu1 %v8235_v61  ;;  %v8504_v2 = vpop.permute.xlu1 %8503 }
0x1226   : > { %v28403_v51 = vpop.eup %26495  ;;  %v8233_v26 = vmul.f32 1.442695, %v8218_v56 }
0x1227   : > { %v8352_v43 = vpop.permute.xlu0 %8351  ;;  %v8241_v0 = vsel %vm473_vm2, %v28403_v51, 0.0 }
0x1228   : > { %26503 = vpow2.f32 %v8233_v26  ;;  %8242 = vadd.xlane.f32.xlu1 %v8241_v0  ;;  %25251 = vmatpush3.msra.mxu0 %v8352_v43  ;;  %v28428_v7 = vpop.permute.xlu1 %8655 }
0x1229   : > { %25260 = vmatprep.subr.mxu0 %v26943_v14 }
0x122a   : > { %v28408_v3 = vpop.eup %26497 }
0x122b   : > { %v28410_v6 = vpop.eup %26499  ;;  %v8247_v58 = vsel %vm473_vm2, %v28408_v3, 0.0  ;;  %v8580_v11 = vpop.permute.xlu0 %8579 }
0x122c   : > { %8248 = vadd.xlane.f32.xlu1 %v8247_v58  ;;  %v8244_v12 = vsel %vm473_vm2, %v28410_v6, 0.0  ;;  %v28434_v30 = vpop.permute.xlu1 %8807 }
0x122d   : > { %8245 = vadd.xlane.f32.xlu0 %v8244_v12 }
0x122e   : > { %v28416_v55 = vpop.eup %26501 }
0x122f   : > { %v8250_v27 = vsel %vm473_vm2, %v28416_v55, 0.0  ;;  %v8732_v63 = vpop.permute.xlu0 %8731 }
0x1230   : > { %v28438_v60 = vpop.permute.xlu1 %9003 }
0x1231   : > { %8251 = vadd.xlane.f32.xlu0 %v8250_v27 }
0x1232   : > { %v28420_v36 = vpop.eup %26503 }
0x1233   : > { %v8256_v8 = vsel %vm473_vm2, %v28420_v36, 0.0  ;;  %v28442_v16 = vpop.permute.xlu0 %8925 }
0x1234   : > { %v28444_v25 = vpop.permute.xlu1 %9001 }
0x1235   : > { %8257 = vadd.xlane.f32.xlu0 %v8256_v8 }
0x1237   : > { %v28446_v31 = vpop.permute.xlu0 %8923 }
0x123b   : > { %v28449_v62 = vpop.permute.xlu0 %9081 }
0x123d   : > { %9157 = vrot.lane.b32.xlu1 %v28068_v9, %s31043_s18 }
0x124b   : > { %9079 = vrot.lane.b32.xlu0 %v28070_v35, %s31043_s18 }
0x124f   : > { %9237 = vrot.lane.b32.xlu0 %v28078_v46, %s31042_s13 }
0x1253   : > { %9235 = vrot.lane.b32.xlu0 %v28078_v46, %s31043_s18 }
0x1257   : > { %9393 = vrot.lane.b32.xlu0 %v28086_v13, %s31042_s13 }
0x125b   : > { %9391 = vrot.lane.b32.xlu0 %v28086_v13, %s31043_s18 }
0x1264   : > { %v8207_v17 = vpop.xlane.xlu1 %8206 }
0x1265   : > { %v8217_v20 = vsub.f32 %v28389_v53, %v8207_v17 }
0x1267   : > { %v8231_v28 = vmul.f32 1.442695, %v8217_v20 }
0x1268   : > { %v9160_v53 = vpop.permute.xlu1 %9159 }
0x1269   : > { %26505 = vpow2.f32 %v8231_v28 }
0x126c   : > { %v8240_v50 = vpop.xlane.xlu0 %8239 }
0x126d   : > { %26507 = vrcp.f32 %v8240_v50 }
0x1273   : > { %v28451_v52 = vpop.eup %26505 }
0x1274   : > { %v8253_v29 = vsel %vm473_vm2, %v28451_v52, 0.0 }
0x1275   : > { %8254 = vadd.xlane.f32.xlu1 %v8253_v29 }
0x1277   : > { %v26508_v47 = vpop.eup %26507 }
0x1278   : > { %v8268_v38 = vmul.f32 %v26508_v47, %v28393_v45 }
0x127a   : > { %25253 = vmatmul.mubr.msk.f32.vlgmr.msra.gmra.mrb[100].mxu0 %vm473_vm2, %v8268_v38 }
0x127b   : > { %25261 = vmatpush3.msra.mxu0 %v8504_v2  ;;  %25262 = vmatprep.mubr.msk.f32.mxu0 %vm26944_vm1, %v26943_v14 }
0x127c   : > { %25270 = vmatprep.subr.mxu0 %v26943_v14 }
0x1286   : > { %9315 = vrot.lane.b32.xlu1 %v28076_v33, %s31042_s13 }
0x128a   : > { %9313 = vrot.lane.b32.xlu1 %v28076_v33, %s31043_s18 }
0x128e   : > { %9471 = vrot.lane.b32.xlu1 %v28084_v19, %s31042_s13 }
0x1292   : > { %9469 = vrot.lane.b32.xlu1 %v28084_v19, %s31043_s18 }
0x12b1   : > { %v8237_v45 = vpop.xlane.xlu1 %8236 }
0x12b2   : > { %26509 = vrcp.f32 %v8237_v45 }
0x12b5   : > { %v8243_v24 = vpop.xlane.xlu1 %8242 }
0x12b6   : > { %26511 = vrcp.f32 %v8243_v24 }
0x12b9   : > { %v8249_v34 = vpop.xlane.xlu1 %8248 }
0x12ba   : > { %26513 = vrcp.f32 %v8249_v34  ;;  %v8246_v22 = vpop.xlane.xlu0 %8245 }
0x12bb   : > { %26515 = vrcp.f32 %v8246_v22 }
0x12bc   : > { %v26510_v42 = vpop.eup %26509 }
0x12bd   : > { %v8267_v49 = vmul.f32 %v26510_v42, %v28399_v44  ;;  %v9158_v0 = vpop.permute.xlu1 %9157 }
0x12be   : > { %v8252_v21 = vpop.xlane.xlu0 %8251 }
0x12bf   : > { %26517 = vrcp.f32 %v8252_v21  ;;  %25248 = vmatmul.mubr.msk.f32.vlgmr.msra.gmra.mrb[100].mxu1 %vm473_vm2, %v8267_v49 }
0x12c0   : > { %v26512_v37 = vpop.eup %26511  ;;  %25256 = vmatpush3.msra.mxu1 %v8428_v57  ;;  %25257 = vmatprep.mubr.msk.f32.mxu1 %vm26944_vm1, %v26943_v14 }
0x12c1   : > { %25265 = vmatprep.subr.mxu1 %v26943_v14  ;;  %v8269_v18 = vmul.f32 %v26512_v37, %v28403_v51 }
0x12c2   : > { %v8258_v41 = vpop.xlane.xlu0 %8257 }
0x12c3   : > { %26519 = vrcp.f32 %v8258_v41  ;;  %25258 = vmatmul.mubr.msk.f32.vlgmr.msra.gmra.mrb[102].mxu1 %vm473_vm2, %v8269_v18 }
0x12c4   : > { %v26514_v5 = vpop.eup %26513  ;;  %25266 = vmatpush3.msra.mxu1 %v8580_v11  ;;  %25267 = vmatprep.mubr.msk.f32.mxu1 %vm26944_vm1, %v26943_v14 }
0x12c5   : > { %v26516_v44 = vpop.eup %26515  ;;  %25275 = vmatprep.subr.mxu1 %v26943_v14  ;;  %v8271_v40 = vmul.f32 %v26514_v5, %v28408_v3 }
0x12c6   : > { %v8270_v61 = vmul.f32 %v26516_v44, %v28410_v6  ;;  %v9080_v58 = vpop.permute.xlu0 %9079 }
0x12c7   : > { %25268 = vmatmul.mubr.msk.f32.vlgmr.msra.gmra.mrb[104].mxu1 %vm473_vm2, %v8271_v40 }
0x12c8   : > { %25263 = vmatmul.mubr.msk.f32.vlgmr.msra.gmra.mrb[102].mxu0 %vm473_vm2, %v8270_v61  ;;  %25276 = vmatpush3.msra.mxu1 %v8732_v63 }
0x12c9   : > { %v26518_v56 = vpop.eup %26517  ;;  %25271 = vmatpush3.msra.mxu0 %v28428_v7  ;;  %25272 = vmatprep.mubr.msk.f32.mxu0 %vm26944_vm1, %v26943_v14 }
0x12ca   : > { %25280 = vmatprep.subr.mxu0 %v26943_v14  ;;  %v8272_v51 = vmul.f32 %v26518_v56, %v28416_v55  ;;  %25277 = vmatprep.mubr.msk.f32.mxu1 %vm26944_vm1, %v26943_v14  ;;  %v9238_v27 = vpop.permute.xlu0 %9237 }
0x12cb   : > { %25285 = vmatprep.subr.mxu1 %v26943_v14 }
0x12cc   : > { %25273 = vmatmul.mubr.msk.f32.vlgmr.msra.gmra.mrb[104].mxu0 %vm473_vm2, %v8272_v51 }
0x12cd   : > { %v26520_v26 = vpop.eup %26519  ;;  %25281 = vmatpush3.msra.mxu0 %v28434_v30  ;;  %25282 = vmatprep.mubr.msk.f32.mxu0 %vm26944_vm1, %v26943_v14 }
0x12ce   : > { %v8274_v43 = vmul.f32 %v26520_v26, %v28420_v36  ;;  %25290 = vmatprep.subr.mxu0 %v26943_v14  ;;  %v9236_v2 = vpop.permute.xlu0 %9235 }
0x12d0   : > { %25283 = vmatmul.mubr.msk.f32.vlgmr.msra.gmra.mrb[106].mxu0 %vm473_vm2, %v8274_v43 }
0x12d1   : > { %25292 = vmatprep.mubr.msk.f32.mxu0 %vm26944_vm1, %v26943_v14 }
0x12d2   : > { %v9394_v7 = vpop.permute.xlu0 %9393 }
0x12d4   : > { %25291 = vmatpush3.xpose.msk.msra.mxu0 %vm473_vm2, %v28438_v60 }
0x12d5   : > { %25300 = vmatprep.subr.mxu0 %v26943_v14 }
0x12d6   : > { %v9392_v11 = vpop.permute.xlu0 %9391 }
0x12d7   : > { %25293 = vmatmul.mubr.msk.f32.vlgmr.msra.gmra.mrb[108].mxu0 %vm473_vm2, %v28444_v25 }
0x12d8   : > { %25301 = vmatpush3.xpose.msk.msra.mxu0 %vm473_vm2, %v9160_v53  ;;  %25302 = vmatprep.mubr.msk.f32.mxu0 %vm26944_vm1, %v26943_v14 }
0x12d9   : > { %25310 = vmatprep.subr.mxu0 %v26943_v14 }
0x12db   : > { %25303 = vmatmul.mubr.msk.f32.vlgmr.msra.gmra.mrb[110].mxu0 %vm473_vm2, %v9158_v0 }
0x12dc   : > { %25312 = vmatprep.mubr.msk.f32.mxu0 %vm26944_vm1, %v26943_v14 }
0x1302   : > { %v8255_v3 = vpop.xlane.xlu1 %8254 }
0x1303   : > { %26521 = vrcp.f32 %v8255_v3 }
0x1306   : > { %v9316_v6 = vpop.permute.xlu1 %9315 }
0x1307   : > { %25311 = vmatpush3.xpose.msk.msra.mxu0 %vm473_vm2, %v9316_v6 }
0x1308   : > { %25320 = vmatprep.subr.mxu0 %v26943_v14 }
0x130a   : > { %v9314_v12 = vpop.permute.xlu1 %9313 }
0x130b   : > { %25313 = vmatmul.mubr.msk.f32.vlgmr.msra.gmra.mrb[112].mxu0 %vm473_vm2, %v9314_v12 }
0x130c   : > { %25322 = vmatprep.mubr.msk.f32.mxu0 %vm26944_vm1, %v26943_v14 }
0x130d   : > { %v26522_v55 = vpop.eup %26521 }
0x130e   : > { %v9472_v36 = vpop.permute.xlu1 %9471  ;;  %v8273_v8 = vmul.f32 %v26522_v55, %v28451_v52 }
0x130f   : > { %25321 = vmatpush3.xpose.msk.msra.mxu0 %vm473_vm2, %v9472_v36 }
0x1310   : > { %25278 = vmatmul.mubr.msk.f32.vlgmr.msra.gmra.mrb[106].mxu1 %vm473_vm2, %v8273_v8  ;;  %25330 = vmatprep.subr.mxu0 %v26943_v14 }
0x1311   : > { %25286 = vmatpush3.xpose.msk.msra.mxu1 %vm473_vm2, %v28442_v16  ;;  %25287 = vmatprep.mubr.msk.f32.mxu1 %vm26944_vm1, %v26943_v14 }
0x1312   : > { %v9470_v57 = vpop.permute.xlu1 %9469  ;;  %25295 = vmatprep.subr.mxu1 %v26943_v14 }
0x1313   : > { %25323 = vmatmul.mubr.msk.f32.vlgmr.msra.gmra.mrb[114].mxu0 %vm473_vm2, %v9470_v57 }
0x1314   : > { %25288 = vmatmul.mubr.msk.f32.vlgmr.msra.gmra.mrb[108].mxu1 %vm473_vm2, %v28446_v31  ;;  %25332 = vmatprep.mubr.msk.f32.mxu0 %vm26944_vm1, %v26943_v14 }
0x1315   : > { %25296 = vmatpush3.xpose.msk.msra.mxu1 %vm473_vm2, %v28449_v62  ;;  %25297 = vmatprep.mubr.msk.f32.mxu1 %vm26944_vm1, %v26943_v14 }
0x1316   : > { %25305 = vmatprep.subr.mxu1 %v26943_v14 }
0x1318   : > { %25298 = vmatmul.mubr.msk.f32.vlgmr.msra.gmra.mrb[110].mxu1 %vm473_vm2, %v9080_v58 }
0x1319   : > { %25306 = vmatpush3.xpose.msk.msra.mxu1 %vm473_vm2, %v9238_v27  ;;  %25307 = vmatprep.mubr.msk.f32.mxu1 %vm26944_vm1, %v26943_v14 }
0x131a   : > { %25315 = vmatprep.subr.mxu1 %v26943_v14 }
0x131c   : > { %25308 = vmatmul.mubr.msk.f32.vlgmr.msra.gmra.mrb[112].mxu1 %vm473_vm2, %v9236_v2 }
0x131d   : > { %25316 = vmatpush3.xpose.msk.msra.mxu1 %vm473_vm2, %v9394_v7  ;;  %25317 = vmatprep.mubr.msk.f32.mxu1 %vm26944_vm1, %v26943_v14 }
0x131e   : > { %25325 = vmatprep.subr.mxu1 %v26943_v14 }
0x1320   : > { %25318 = vmatmul.mubr.msk.f32.vlgmr.msra.gmra.mrb[114].mxu1 %vm473_vm2, %v9392_v11 }
0x1321   : > { %25327 = vmatprep.mubr.msk.f32.mxu1 %vm26944_vm1, %v26943_v14 }
0x134d   : > { %v28548_v30 = vpop.f32.mrb[100].mxu0 }
0x134e   : > { %v25254_v63 = vpop.f32.mrb[101].mxu0 }
0x1392   : > { %v28550_v60 = vpop.f32.mrb[100].mxu1 }
0x1393   : > { %v25249_v16 = vpop.f32.mrb[101].mxu1 }
0x1396   : > { %v28552_v25 = vpop.f32.mrb[102].mxu1 }
0x1397   : > { %v25259_v31 = vpop.f32.mrb[103].mxu1 }
0x139a   : > { %v28554_v17 = vpop.f32.mrb[104].mxu1 }
0x139b   : > { %v28556_v20 = vpop.f32.mrb[102].mxu0  ;;  %v25269_v28 = vpop.f32.mrb[105].mxu1 }
0x139c   : > { %v25264_v62 = vpop.f32.mrb[103].mxu0 }
0x139f   : > { %v28558_v50 = vpop.f32.mrb[104].mxu0 }
0x13a0   : > { %v25274_v52 = vpop.f32.mrb[105].mxu0 }
0x13a3   : > { %v28560_v29 = vpop.f32.mrb[106].mxu0 }
0x13a4   : > { %v25284_v47 = vpop.f32.mrb[107].mxu0 }
0x13aa   : > { %v9075_v38 = vpop.f32.mrb[108].mxu0 }
0x13ab   : > { %v9548_v53 = vmul.f32 0.17677669, %v9075_v38  ;;  %v25294_v45 = vpop.f32.mrb[109].mxu0 }
0x13ad   : > { %v9558_v24 = vsel %vm473_vm2, %v9548_v53, -inf }
0x13ae   : > { %9559 = vmax.xlane.f32.xlu1 %v9558_v24  ;;  %v9231_v34 = vpop.f32.mrb[110].mxu0 }
0x13af   : > { %v25304_v22 = vpop.f32.mrb[111].mxu0  ;;  %v9550_v43 = vmul.f32 0.17677669, %v9231_v34 }
0x13b1   : > { %v9564_v55 = vsel %vm473_vm2, %v9550_v43, -inf }
0x13bf   : > { %9643 = vrot.lane.b32.xlu1 %v28062_v23, %s31044_s21 }
0x13de   : > { %v9387_v42 = vpop.f32.mrb[112].mxu0 }
0x13df   : > { %v25314_v49 = vpop.f32.mrb[113].mxu0  ;;  %v9552_v12 = vmul.f32 0.17677669, %v9387_v42 }
0x13e1   : > { %v9570_v2 = vsel %vm473_vm2, %v9552_v12, -inf }
0x13e3   : > { %v28565_v21 = vpop.f32.mrb[106].mxu1 }
0x13e4   : > { %v25279_v37 = vpop.f32.mrb[107].mxu1 }
0x13e6   : > { %v9543_v18 = vpop.f32.mrb[114].mxu0 }
0x13e7   : > { %v8997_v41 = vpop.f32.mrb[108].mxu1  ;;  %v25324_v5 = vpop.f32.mrb[115].mxu0  ;;  %v9554_v57 = vmul.f32 0.17677669, %v9543_v18 }
0x13e8   : > { %v9547_v44 = vmul.f32 0.17677669, %v8997_v41  ;;  %v25289_v40 = vpop.f32.mrb[109].mxu1 }
0x13e9   : > { %v9576_v7 = vsel %vm473_vm2, %v9554_v57, -inf }
0x13ea   : > { %v9555_v61 = vsel %vm473_vm2, %v9547_v44, -inf }
0x13eb   : > { %9556 = vmax.xlane.f32.xlu0 %v9555_v61  ;;  %v9153_v56 = vpop.f32.mrb[110].mxu1 }
0x13ec   : > { %v9549_v51 = vmul.f32 0.17677669, %v9153_v56  ;;  %v25299_v26 = vpop.f32.mrb[111].mxu1 }
0x13ee   : > { %v9561_v0 = vsel %vm473_vm2, %v9549_v51, -inf }
0x13ef   : > { %9562 = vmax.xlane.f32.xlu0 %v9561_v0  ;;  %v9309_v3 = vpop.f32.mrb[112].mxu1 }
0x13f0   : > { %v9551_v6 = vmul.f32 0.17677669, %v9309_v3  ;;  %v25309_v58 = vpop.f32.mrb[113].mxu1 }
0x13f2   : > { %v9567_v27 = vsel %vm473_vm2, %v9551_v6, -inf }
0x13f3   : > { %9565 = vmax.xlane.f32.xlu0 %v9564_v55  ;;  %9568 = vmax.xlane.f32.xlu1 %v9567_v27  ;;  %v9465_v36 = vpop.f32.mrb[114].mxu1 }
0x13f4   : > { %v25319_v8 = vpop.f32.mrb[115].mxu1  ;;  %v28597_v11 = vmul.f32 0.17677669, %v9465_v36 }
0x13f6   : > { %v9573_v16 = vsel %vm473_vm2, %v28597_v11, -inf }
0x13f7   : > { %9571 = vmax.xlane.f32.xlu0 %v9570_v2 }
0x13fb   : > { %9577 = vmax.xlane.f32.xlu0 %v9576_v7 }
0x1404   : > { %9795 = vrot.lane.b32.xlu1 %v28070_v35, %s31044_s21 }
0x1408   : > { %9871 = vrot.lane.b32.xlu1 %v28068_v9, %s31044_s21 }
0x140c   : > { %10023 = vrot.lane.b32.xlu1 %v28076_v33, %s31044_s21 }
0x1410   : > { %10175 = vrot.lane.b32.xlu1 %v28084_v19, %s31044_s21 }
0x1411   : > { %9719 = vrot.lane.b32.xlu0 %v28060_v1, %s31044_s21 }
0x1414   : > { %10371 = vrot.lane.b32.xlu1 %v28060_v1, %s31045_s22 }
0x1415   : > { %9947 = vrot.lane.b32.xlu0 %v28078_v46, %s31044_s21 }
0x1418   : > { %10369 = vrot.lane.b32.xlu1 %v28060_v1, %s31046_s23 }
0x1419   : > { %10099 = vrot.lane.b32.xlu0 %v28086_v13, %s31044_s21 }
0x141d   : > { %10293 = vrot.lane.b32.xlu0 %v28062_v23, %s31045_s22 }
0x1421   : > { %10291 = vrot.lane.b32.xlu0 %v28062_v23, %s31046_s23 }
0x1425   : > { %10449 = vrot.lane.b32.xlu0 %v28070_v35, %s31045_s22 }
0x143b   : > { %v9560_v63 = vpop.xlane.xlu1 %9559 }
0x143c   : > { %v9580_v31 = vsub.f32 %v9548_v53, %v9560_v63  ;;  %9574 = vmax.xlane.f32.xlu1 %v9573_v16 }
0x143e   : > { %v9589_v28 = vmul.f32 1.442695, %v9580_v31 }
0x143f   : > { %v9644_v62 = vpop.permute.xlu1 %9643 }
0x1440   : > { %26523 = vpow2.f32 %v9589_v28  ;;  %25326 = vmatpush3.msra.mxu1 %v9644_v62 }
0x1441   : > { %25335 = vmatprep.subr.mxu1 %v26943_v14 }
0x144a   : > { %v28602_v52 = vpop.eup %26523 }
0x144b   : > { %v9606_v47 = vsel %vm473_vm2, %v28602_v52, 0.0 }
0x144c   : > { %9607 = vadd.xlane.f32.xlu0 %v9606_v47 }
0x144d   : > { %10527 = vrot.lane.b32.xlu1 %v28068_v9, %s31045_s22 }
0x1478   : > { %v9557_v38 = vpop.xlane.xlu0 %9556 }
0x1479   : > { %v9579_v45 = vsub.f32 %v9547_v44, %v9557_v38 }
0x147b   : > { %v9587_v24 = vmul.f32 1.442695, %v9579_v45 }
0x147c   : > { %v9563_v53 = vpop.xlane.xlu0 %9562 }
0x147d   : > { %26525 = vpow2.f32 %v9587_v24  ;;  %v9581_v34 = vsub.f32 %v9549_v51, %v9563_v53 }
0x147f   : > { %v9591_v22 = vmul.f32 1.442695, %v9581_v34 }
0x1480   : > { %v9569_v42 = vpop.xlane.xlu1 %9568  ;;  %v9566_v49 = vpop.xlane.xlu0 %9565 }
0x1481   : > { %26527 = vpow2.f32 %v9591_v22  ;;  %v9583_v37 = vsub.f32 %v9551_v6, %v9569_v42  ;;  %v9582_v18 = vsub.f32 %v9550_v43, %v9566_v49 }
0x1483   : > { %v9595_v41 = vmul.f32 1.442695, %v9583_v37  ;;  %v9593_v5 = vmul.f32 1.442695, %v9582_v18 }
0x1484   : > { %v9572_v40 = vpop.xlane.xlu0 %9571  ;;  %v9796_v63 = vpop.permute.xlu1 %9795 }
0x1485   : > { %26529 = vpow2.f32 %v9595_v41  ;;  %v9584_v61 = vsub.f32 %v9552_v12, %v9572_v40 }
0x1486   : > { %26531 = vpow2.f32 %v9593_v5 }
0x1487   : > { %v28608_v56 = vpop.eup %26525  ;;  %v9597_v26 = vmul.f32 1.442695, %v9584_v61 }
0x1488   : > { %v9578_v44 = vpop.xlane.xlu0 %9577  ;;  %v9603_v0 = vsel %vm473_vm2, %v28608_v56, 0.0  ;;  %v9872_v16 = vpop.permute.xlu1 %9871 }
0x1489   : > { %26533 = vpow2.f32 %v9597_v26  ;;  %v9586_v51 = vsub.f32 %v9554_v57, %v9578_v44  ;;  %9604 = vadd.xlane.f32.xlu1 %v9603_v0 }
0x148b   : > { %v28612_v3 = vpop.eup %26527  ;;  %v9601_v6 = vmul.f32 1.442695, %v9586_v51 }
0x148c   : > { %v9720_v43 = vpop.permute.xlu0 %9719  ;;  %v9609_v58 = vsel %vm473_vm2, %v28612_v3, 0.0  ;;  %v28637_v31 = vpop.permute.xlu1 %10023 }
0x148d   : > { %26535 = vpow2.f32 %v9601_v6  ;;  %9610 = vadd.xlane.f32.xlu1 %v9609_v58  ;;  %25331 = vmatpush3.msra.mxu0 %v9720_v43 }
0x148e   : > { %25340 = vmatprep.subr.mxu0 %v26943_v14 }
0x148f   : > { %v28617_v12 = vpop.eup %26529 }
0x1490   : > { %v28619_v55 = vpop.eup %26531  ;;  %v9615_v27 = vsel %vm473_vm2, %v28617_v12, 0.0  ;;  %v28643_v28 = vpop.permute.xlu1 %10175 }
0x1491   : > { %9616 = vadd.xlane.f32.xlu1 %v9615_v27  ;;  %v9612_v36 = vsel %vm473_vm2, %v28619_v55, 0.0  ;;  %v9948_v62 = vpop.permute.xlu0 %9947 }
0x1492   : > { %9613 = vadd.xlane.f32.xlu0 %v9612_v36 }
0x1493   : > { %v28625_v8 = vpop.eup %26533 }
0x1494   : > { %v9618_v57 = vsel %vm473_vm2, %v28625_v8, 0.0  ;;  %v28647_v47 = vpop.permute.xlu1 %10371 }
0x1495   : > { %v10100_v38 = vpop.permute.xlu0 %10099 }
0x1496   : > { %9619 = vadd.xlane.f32.xlu0 %v9618_v57 }
0x1497   : > { %v28629_v2 = vpop.eup %26535 }
0x1498   : > { %v9624_v7 = vsel %vm473_vm2, %v28629_v2, 0.0  ;;  %v28651_v45 = vpop.permute.xlu1 %10369 }
0x1499   : > { %v28653_v24 = vpop.permute.xlu0 %10293 }
0x149a   : > { %9625 = vadd.xlane.f32.xlu0 %v9624_v7 }
0x149d   : > { %v28656_v42 = vpop.permute.xlu0 %10291 }
0x14a1   : > { %v28658_v49 = vpop.permute.xlu0 %10449 }
0x14a2   : > { %10525 = vrot.lane.b32.xlu1 %v28068_v9, %s31046_s23 }
0x14b0   : > { %10447 = vrot.lane.b32.xlu0 %v28070_v35, %s31046_s23 }
0x14b4   : > { %10605 = vrot.lane.b32.xlu0 %v28078_v46, %s31045_s22 }
0x14b8   : > { %10603 = vrot.lane.b32.xlu0 %v28078_v46, %s31046_s23 }
0x14bc   : > { %10761 = vrot.lane.b32.xlu0 %v28086_v13, %s31045_s22 }
0x14c0   : > { %10759 = vrot.lane.b32.xlu0 %v28086_v13, %s31046_s23 }
0x14c9   : > { %v9575_v53 = vpop.xlane.xlu1 %9574 }
0x14ca   : > { %v9585_v34 = vsub.f32 %v28597_v11, %v9575_v53 }
0x14cc   : > { %v9599_v22 = vmul.f32 1.442695, %v9585_v34 }
0x14cd   : > { %v10528_v11 = vpop.permute.xlu1 %10527 }
0x14ce   : > { %26537 = vpow2.f32 %v9599_v22 }
0x14d8   : > { %v28660_v37 = vpop.eup %26537 }
0x14d9   : > { %v9608_v18 = vpop.xlane.xlu0 %9607  ;;  %v9621_v41 = vsel %vm473_vm2, %v28660_v37, 0.0 }
0x14da   : > { %26539 = vrcp.f32 %v9608_v18  ;;  %9622 = vadd.xlane.f32.xlu1 %v9621_v41 }
0x14e4   : > { %v26540_v5 = vpop.eup %26539 }
0x14e5   : > { %v9636_v40 = vmul.f32 %v26540_v5, %v28602_v52 }
0x14e7   : > { %25333 = vmatmul.mubr.msk.f32.vlgmr.msra.gmra.mrb[116].mxu0 %vm473_vm2, %v9636_v40 }
0x14e8   : > { %25341 = vmatpush3.msra.mxu0 %v9872_v16  ;;  %25342 = vmatprep.mubr.msk.f32.mxu0 %vm26944_vm1, %v26943_v14 }
0x14e9   : > { %25350 = vmatprep.subr.mxu0 %v26943_v14 }
0x14eb   : > { %10683 = vrot.lane.b32.xlu1 %v28076_v33, %s31045_s22 }
0x14ef   : > { %10681 = vrot.lane.b32.xlu1 %v28076_v33, %s31046_s23 }
0x14f3   : > { %10839 = vrot.lane.b32.xlu1 %v28084_v19, %s31045_s22 }
0x14f7   : > { %10837 = vrot.lane.b32.xlu1 %v28084_v19, %s31046_s23 }
0x1516   : > { %v9605_v52 = vpop.xlane.xlu1 %9604 }
0x1517   : > { %26541 = vrcp.f32 %v9605_v52 }
0x151a   : > { %v9611_v61 = vpop.xlane.xlu1 %9610 }
0x151b   : > { %26543 = vrcp.f32 %v9611_v61 }
0x151e   : > { %v9617_v26 = vpop.xlane.xlu1 %9616 }
0x151f   : > { %26545 = vrcp.f32 %v9617_v26  ;;  %v9614_v44 = vpop.xlane.xlu0 %9613 }
0x1520   : > { %26547 = vrcp.f32 %v9614_v44 }
0x1521   : > { %v26542_v0 = vpop.eup %26541 }
0x1522   : > { %v9635_v51 = vmul.f32 %v26542_v0, %v28608_v56 }
0x1523   : > { %v9620_v6 = vpop.xlane.xlu0 %9619 }
0x1524   : > { %26549 = vrcp.f32 %v9620_v6  ;;  %25328 = vmatmul.mubr.msk.f32.vlgmr.msra.gmra.mrb[116].mxu1 %vm473_vm2, %v9635_v51 }
0x1525   : > { %v26544_v43 = vpop.eup %26543  ;;  %25336 = vmatpush3.msra.mxu1 %v9796_v63  ;;  %25337 = vmatprep.mubr.msk.f32.mxu1 %vm26944_vm1, %v26943_v14 }
0x1526   : > { %25345 = vmatprep.subr.mxu1 %v26943_v14  ;;  %v9637_v58 = vmul.f32 %v26544_v43, %v28612_v3 }
0x1527   : > { %v9626_v27 = vpop.xlane.xlu0 %9625 }
0x1528   : > { %26551 = vrcp.f32 %v9626_v27  ;;  %25338 = vmatmul.mubr.msk.f32.vlgmr.msra.gmra.mrb[118].mxu1 %vm473_vm2, %v9637_v58 }
0x1529   : > { %v26546_v36 = vpop.eup %26545  ;;  %25346 = vmatpush3.msra.mxu1 %v9948_v62  ;;  %25347 = vmatprep.mubr.msk.f32.mxu1 %vm26944_vm1, %v26943_v14 }
0x152a   : > { %v26548_v56 = vpop.eup %26547  ;;  %25355 = vmatprep.subr.mxu1 %v26943_v14  ;;  %v9639_v57 = vmul.f32 %v26546_v36, %v28617_v12 }
0x152b   : > { %v9638_v7 = vmul.f32 %v26548_v56, %v28619_v55 }
0x152c   : > { %25348 = vmatmul.mubr.msk.f32.vlgmr.msra.gmra.mrb[120].mxu1 %vm473_vm2, %v9639_v57 }
0x152d   : > { %25343 = vmatmul.mubr.msk.f32.vlgmr.msra.gmra.mrb[118].mxu0 %vm473_vm2, %v9638_v7  ;;  %25356 = vmatpush3.msra.mxu1 %v10100_v38 }
0x152e   : > { %v26550_v3 = vpop.eup %26549  ;;  %25351 = vmatpush3.msra.mxu0 %v28637_v31  ;;  %25352 = vmatprep.mubr.msk.f32.mxu0 %vm26944_vm1, %v26943_v14  ;;  %v10448_v31 = vpop.permute.xlu0 %10447 }
0x152f   : > { %25360 = vmatprep.subr.mxu0 %v26943_v14  ;;  %v9640_v63 = vmul.f32 %v26550_v3, %v28625_v8  ;;  %25357 = vmatprep.mubr.msk.f32.mxu1 %vm26944_vm1, %v26943_v14  ;;  %v10526_v8 = vpop.permute.xlu1 %10525 }
0x1530   : > { %25365 = vmatprep.subr.mxu1 %v26943_v14 }
0x1531   : > { %25353 = vmatmul.mubr.msk.f32.vlgmr.msra.gmra.mrb[120].mxu0 %vm473_vm2, %v9640_v63 }
0x1532   : > { %v26552_v12 = vpop.eup %26551  ;;  %25361 = vmatpush3.msra.mxu0 %v28643_v28  ;;  %25362 = vmatprep.mubr.msk.f32.mxu0 %vm26944_vm1, %v26943_v14 }
0x1533   : > { %v9642_v55 = vmul.f32 %v26552_v12, %v28629_v2  ;;  %25370 = vmatprep.subr.mxu0 %v26943_v14 }
0x1535   : > { %25363 = vmatmul.mubr.msk.f32.vlgmr.msra.gmra.mrb[122].mxu0 %vm473_vm2, %v9642_v55 }
0x1536   : > { %25372 = vmatprep.mubr.msk.f32.mxu0 %vm26944_vm1, %v26943_v14 }
0x1539   : > { %25371 = vmatpush3.xpose.msk.msra.mxu0 %vm473_vm2, %v28647_v47  ;;  %v10606_v47 = vpop.permute.xlu0 %10605 }
0x153a   : > { %25380 = vmatprep.subr.mxu0 %v26943_v14 }
0x153c   : > { %25373 = vmatmul.mubr.msk.f32.vlgmr.msra.gmra.mrb[124].mxu0 %vm473_vm2, %v28651_v45 }
0x153d   : > { %25381 = vmatpush3.xpose.msk.msra.mxu0 %vm473_vm2, %v10528_v11  ;;  %25382 = vmatprep.mubr.msk.f32.mxu0 %vm26944_vm1, %v26943_v14  ;;  %v10604_v34 = vpop.permute.xlu0 %10603 }
0x153e   : > { %25390 = vmatprep.subr.mxu0 %v26943_v14 }
0x1540   : > { %25383 = vmatmul.mubr.msk.f32.vlgmr.msra.gmra.mrb[126].mxu0 %vm473_vm2, %v10526_v8 }
0x1541   : > { %25392 = vmatprep.mubr.msk.f32.mxu0 %vm26944_vm1, %v26943_v14 }
0x1567   : > { %v9623_v2 = vpop.xlane.xlu1 %9622 }
0x1568   : > { %26553 = vrcp.f32 %v9623_v2 }
0x156b   : > { %v10684_v16 = vpop.permute.xlu1 %10683 }
0x156c   : > { %25391 = vmatpush3.xpose.msk.msra.mxu0 %vm473_vm2, %v10684_v16 }
0x156d   : > { %25400 = vmatprep.subr.mxu0 %v26943_v14 }
0x156f   : > { %v10682_v28 = vpop.permute.xlu1 %10681 }
0x1570   : > { %25393 = vmatmul.mubr.msk.f32.vlgmr.msra.gmra.mrb[128].mxu0 %vm473_vm2, %v10682_v28 }
0x1571   : > { %25402 = vmatprep.mubr.msk.f32.mxu0 %vm26944_vm1, %v26943_v14 }
0x1572   : > { %v26554_v62 = vpop.eup %26553 }
0x1573   : > { %v10840_v38 = vpop.permute.xlu1 %10839  ;;  %v9641_v45 = vmul.f32 %v26554_v62, %v28660_v37 }
0x1574   : > { %25401 = vmatpush3.xpose.msk.msra.mxu0 %vm473_vm2, %v10840_v38 }
0x1575   : > { %25358 = vmatmul.mubr.msk.f32.vlgmr.msra.gmra.mrb[122].mxu1 %vm473_vm2, %v9641_v45  ;;  %25410 = vmatprep.subr.mxu0 %v26943_v14 }
0x1576   : > { %25366 = vmatpush3.xpose.msk.msra.mxu1 %vm473_vm2, %v28653_v24  ;;  %25367 = vmatprep.mubr.msk.f32.mxu1 %vm26944_vm1, %v26943_v14  ;;  %v10762_v24 = vpop.permute.xlu0 %10761 }
0x1577   : > { %v10838_v53 = vpop.permute.xlu1 %10837  ;;  %25375 = vmatprep.subr.mxu1 %v26943_v14 }
0x1578   : > { %25403 = vmatmul.mubr.msk.f32.vlgmr.msra.gmra.mrb[130].mxu0 %vm473_vm2, %v10838_v53 }
0x1579   : > { %25368 = vmatmul.mubr.msk.f32.vlgmr.msra.gmra.mrb[124].mxu1 %vm473_vm2, %v28656_v42  ;;  %25412 = vmatprep.mubr.msk.f32.mxu0 %vm26944_vm1, %v26943_v14 }
0x157a   : > { %25376 = vmatpush3.xpose.msk.msra.mxu1 %vm473_vm2, %v28658_v49  ;;  %25377 = vmatprep.mubr.msk.f32.mxu1 %vm26944_vm1, %v26943_v14  ;;  %v10760_v22 = vpop.permute.xlu0 %10759 }
0x157b   : > { %25385 = vmatprep.subr.mxu1 %v26943_v14 }
0x157d   : > { %25378 = vmatmul.mubr.msk.f32.vlgmr.msra.gmra.mrb[126].mxu1 %vm473_vm2, %v10448_v31 }
0x157e   : > { %25386 = vmatpush3.xpose.msk.msra.mxu1 %vm473_vm2, %v10606_v47  ;;  %25387 = vmatprep.mubr.msk.f32.mxu1 %vm26944_vm1, %v26943_v14 }
0x157f   : > { %25395 = vmatprep.subr.mxu1 %v26943_v14 }
0x1581   : > { %25388 = vmatmul.mubr.msk.f32.vlgmr.msra.gmra.mrb[128].mxu1 %vm473_vm2, %v10604_v34 }
0x1582   : > { %25396 = vmatpush3.xpose.msk.msra.mxu1 %vm473_vm2, %v10762_v24  ;;  %25397 = vmatprep.mubr.msk.f32.mxu1 %vm26944_vm1, %v26943_v14 }
0x1583   : > { %25405 = vmatprep.subr.mxu1 %v26943_v14 }
0x1585   : > { %25398 = vmatmul.mubr.msk.f32.vlgmr.msra.gmra.mrb[130].mxu1 %vm473_vm2, %v10760_v22 }
0x1586   : > { %25407 = vmatprep.mubr.msk.f32.mxu1 %vm26944_vm1, %v26943_v14 }
0x15ba   : > { %v28757_v42 = vpop.f32.mrb[116].mxu0 }
0x15bb   : > { %v25334_v49 = vpop.f32.mrb[117].mxu0 }
0x15f7   : > { %v28759_v37 = vpop.f32.mrb[116].mxu1 }
0x15f8   : > { %v25329_v18 = vpop.f32.mrb[117].mxu1 }
0x15fb   : > { %v28761_v41 = vpop.f32.mrb[118].mxu1 }
0x15fc   : > { %v25339_v5 = vpop.f32.mrb[119].mxu1 }
0x15ff   : > { %v28763_v40 = vpop.f32.mrb[120].mxu1 }
0x1600   : > { %v28765_v11 = vpop.f32.mrb[118].mxu0  ;;  %v25349_v52 = vpop.f32.mrb[121].mxu1 }
0x1601   : > { %v25344_v61 = vpop.f32.mrb[119].mxu0 }
0x1604   : > { %v28767_v26 = vpop.f32.mrb[120].mxu0 }
0x1605   : > { %v25354_v44 = vpop.f32.mrb[121].mxu0 }
0x1608   : > { %v28769_v0 = vpop.f32.mrb[122].mxu0 }
0x1609   : > { %v25364_v51 = vpop.f32.mrb[123].mxu0 }
0x160f   : > { %v10443_v6 = vpop.f32.mrb[124].mxu0 }
0x1610   : > { %v10916_v43 = vmul.f32 0.17677669, %v10443_v6  ;;  %v25374_v58 = vpop.f32.mrb[125].mxu0 }
0x1612   : > { %v10926_v27 = vsel %vm473_vm2, %v10916_v43, -inf }
0x1613   : > { %10927 = vmax.xlane.f32.xlu1 %v10926_v27  ;;  %v10599_v36 = vpop.f32.mrb[126].mxu0 }
0x1614   : > { %v25384_v56 = vpop.f32.mrb[127].mxu0  ;;  %v10918_v38 = vmul.f32 0.17677669, %v10599_v36 }
0x1616   : > { %v10932_v49 = vsel %vm473_vm2, %v10918_v38, -inf }
0x1643   : > { %v10755_v57 = vpop.f32.mrb[128].mxu0 }
0x1644   : > { %v25394_v7 = vpop.f32.mrb[129].mxu0  ;;  %v10920_v22 = vmul.f32 0.17677669, %v10755_v57 }
0x1646   : > { %v10938_v51 = vsel %vm473_vm2, %v10920_v22, -inf }
0x1648   : > { %v28772_v3 = vpop.f32.mrb[122].mxu1 }
0x1649   : > { %v25359_v63 = vpop.f32.mrb[123].mxu1 }
0x164b   : > { %v10911_v12 = vpop.f32.mrb[130].mxu0 }
0x164c   : > { %v10365_v55 = vpop.f32.mrb[124].mxu1  ;;  %v25404_v8 = vpop.f32.mrb[131].mxu0  ;;  %v10922_v44 = vmul.f32 0.17677669, %v10911_v12 }
0x164d   : > { %v10915_v2 = vmul.f32 0.17677669, %v10365_v55  ;;  %v25369_v16 = vpop.f32.mrb[125].mxu1 }
0x164e   : > { %v10944_v58 = vsel %vm473_vm2, %v10922_v44, -inf }
0x164f   : > { %v10923_v31 = vsel %vm473_vm2, %v10915_v2, -inf }
0x1650   : > { %10924 = vmax.xlane.f32.xlu0 %v10923_v31  ;;  %v10521_v28 = vpop.f32.mrb[126].mxu1 }
0x1651   : > { %v10917_v62 = vmul.f32 0.17677669, %v10521_v28  ;;  %v25379_v47 = vpop.f32.mrb[127].mxu1 }
0x1653   : > { %v10929_v45 = vsel %vm473_vm2, %v10917_v62, -inf }
0x1654   : > { %10930 = vmax.xlane.f32.xlu0 %v10929_v45  ;;  %v10677_v53 = vpop.f32.mrb[128].mxu1 }
0x1655   : > { %v10919_v34 = vmul.f32 0.17677669, %v10677_v53  ;;  %v25389_v24 = vpop.f32.mrb[129].mxu1 }
0x1657   : > { %v10935_v18 = vsel %vm473_vm2, %v10919_v34, -inf }
0x1658   : > { %10933 = vmax.xlane.f32.xlu0 %v10932_v49  ;;  %10936 = vmax.xlane.f32.xlu1 %v10935_v18  ;;  %v10833_v5 = vpop.f32.mrb[130].mxu1 }
0x1659   : > { %v10921_v52 = vmul.f32 0.17677669, %v10833_v5  ;;  %v25399_v61 = vpop.f32.mrb[131].mxu1 }
0x165b   : > { %v10941_v6 = vsel %vm473_vm2, %v10921_v52, -inf }
0x165c   : > { %10939 = vmax.xlane.f32.xlu0 %v10938_v51  ;;  %10942 = vmax.xlane.f32.xlu1 %v10941_v6 }
0x1660   : > { %10945 = vmax.xlane.f32.xlu0 %v10944_v58 }
0x166d   : > { %11011 = vrot.lane.b32.xlu1 %v28062_v23, %s31047_s24 }
0x1671   : > { %11163 = vrot.lane.b32.xlu1 %v28070_v35, %s31047_s24 }
0x1675   : > { %11239 = vrot.lane.b32.xlu1 %v28068_v9, %s31047_s24 }
0x1676   : > { %11087 = vrot.lane.b32.xlu0 %v28060_v1, %s31047_s24 }
0x1679   : > { %11391 = vrot.lane.b32.xlu1 %v28076_v33, %s31047_s24 }
0x167a   : > { %11315 = vrot.lane.b32.xlu0 %v28078_v46, %s31047_s24 }
0x16a0   : > { %v10928_v27 = vpop.xlane.xlu1 %10927 }
0x16a1   : > { %v10948_v36 = vsub.f32 %v10916_v43, %v10928_v27 }
0x16a3   : > { %v10957_v56 = vmul.f32 1.442695, %v10948_v36 }
0x16a5   : > { %26555 = vpow2.f32 %v10957_v56 }
0x16af   : > { %v28793_v57 = vpop.eup %26555 }
0x16b0   : > { %v10974_v7 = vsel %vm473_vm2, %v28793_v57, 0.0 }
0x16b1   : > { %10975 = vadd.xlane.f32.xlu0 %v10974_v7 }
0x16dd   : > { %v10925_v63 = vpop.xlane.xlu0 %10924 }
0x16de   : > { %v10947_v12 = vsub.f32 %v10915_v2, %v10925_v63 }
0x16e0   : > { %v10955_v55 = vmul.f32 1.442695, %v10947_v12 }
0x16e1   : > { %v10931_v8 = vpop.xlane.xlu0 %10930 }
0x16e2   : > { %26557 = vpow2.f32 %v10955_v55  ;;  %v10949_v16 = vsub.f32 %v10917_v62, %v10931_v8 }
0x16e4   : > { %v10959_v31 = vmul.f32 1.442695, %v10949_v16 }
0x16e5   : > { %v10937_v28 = vpop.xlane.xlu1 %10936  ;;  %v10934_v47 = vpop.xlane.xlu0 %10933 }
0x16e6   : > { %26559 = vpow2.f32 %v10959_v31  ;;  %v10951_v45 = vsub.f32 %v10919_v34, %v10937_v28  ;;  %v10950_v43 = vsub.f32 %v10918_v38, %v10934_v47 }
0x16e8   : > { %v10963_v53 = vmul.f32 1.442695, %v10951_v45  ;;  %v10961_v24 = vmul.f32 1.442695, %v10950_v43 }
0x16e9   : > { %v10943_v49 = vpop.xlane.xlu1 %10942  ;;  %v10940_v18 = vpop.xlane.xlu0 %10939 }
0x16ea   : > { %26561 = vpow2.f32 %v10963_v53  ;;  %v10953_v5 = vsub.f32 %v10921_v52, %v10943_v49  ;;  %v10952_v61 = vsub.f32 %v10920_v22, %v10940_v18 }
0x16eb   : > { %26563 = vpow2.f32 %v10961_v24 }
0x16ec   : > { %v28797_v51 = vpop.eup %26557  ;;  %v10967_v2 = vmul.f32 1.442695, %v10953_v5  ;;  %v10965_v6 = vmul.f32 1.442695, %v10952_v61 }
0x16ed   : > { %v11012_v58 = vpop.permute.xlu1 %11011  ;;  %v10946_v62 = vpop.xlane.xlu0 %10945  ;;  %v10971_v27 = vsel %vm473_vm2, %v28797_v51, 0.0 }
0x16ee   : > { %26565 = vpow2.f32 %v10967_v2  ;;  %v10954_v34 = vsub.f32 %v10922_v44, %v10946_v62  ;;  %25406 = vmatpush3.msra.mxu1 %v11012_v58  ;;  %10972 = vadd.xlane.f32.xlu1 %v10971_v27 }
0x16ef   : > { %26567 = vpow2.f32 %v10965_v6  ;;  %25415 = vmatprep.subr.mxu1 %v26943_v14 }
0x16f0   : > { %v28802_v38 = vpop.eup %26559  ;;  %v10969_v22 = vmul.f32 1.442695, %v10954_v34  ;;  %v11684_v34 = vld [vmem:[#allocation2 + $0x20] sm:$0xff] }
0x16f1   : > { %v11088_v52 = vpop.permute.xlu0 %11087  ;;  %v10977_v36 = vsel %vm473_vm2, %v28802_v38, 0.0 }
0x16f2   : > { %26569 = vpow2.f32 %v10969_v22  ;;  %10978 = vadd.xlane.f32.xlu1 %v10977_v36  ;;  %25411 = vmatpush3.msra.mxu0 %v11088_v52 }
0x16f3   : > { %25420 = vmatprep.subr.mxu0 %v26943_v14 }
0x16f4   : > { %v28807_v56 = vpop.eup %26561 }
0x16f5   : > { %v28809_v44 = vpop.eup %26563  ;;  %v10983_v7 = vsel %vm473_vm2, %v28807_v56, 0.0 }
0x16f6   : > { %10984 = vadd.xlane.f32.xlu1 %v10983_v7  ;;  %v10980_v63 = vsel %vm473_vm2, %v28809_v44, 0.0 }
0x16f7   : > { %10981 = vadd.xlane.f32.xlu0 %v10980_v63 }
0x16f8   : > { %v28815_v12 = vpop.eup %26565 }
0x16f9   : > { %v28817_v55 = vpop.eup %26567  ;;  %v10989_v8 = vsel %vm473_vm2, %v28815_v12, 0.0 }
0x16fa   : > { %10990 = vadd.xlane.f32.xlu1 %v10989_v8  ;;  %v10986_v16 = vsel %vm473_vm2, %v28817_v55, 0.0 }
0x16fb   : > { %10987 = vadd.xlane.f32.xlu0 %v10986_v16 }
0x16fc   : > { %v28823_v31 = vpop.eup %26569 }
0x16fd   : > { %v10992_v28 = vsel %vm473_vm2, %v28823_v31, 0.0 }
0x16ff   : > { %10993 = vadd.xlane.f32.xlu0 %v10992_v28 }
0x170b   : > { %11543 = vrot.lane.b32.xlu1 %v28084_v19, %s31047_s24 }
0x170f   : > { %8893 = vrot.lane.b32.xlu1 %v28548_v30, %s31048_s17  ;;  %v11316_v30 = vpop.permute.xlu0 %11315 }
0x1713   : > { %10261 = vrot.lane.b32.xlu1 %v28757_v42, %s31049_s12 }
0x1715   : > { %11467 = vrot.lane.b32.xlu0 %v28086_v13, %s31047_s24 }
0x1717   : > { %8897 = vrot.lane.b32.xlu1 %v28556_v20, %s31048_s17 }
0x1719   : > { %8891 = vrot.lane.b32.xlu0 %v28550_v60, %s31048_s17 }
0x171b   : > { %10265 = vrot.lane.b32.xlu1 %v28765_v11, %s31049_s12 }
0x171d   : > { %10259 = vrot.lane.b32.xlu0 %v28759_v37, %s31049_s12 }
0x171f   : > { %8901 = vrot.lane.b32.xlu1 %v28558_v50, %s31048_s17 }
0x1721   : > { %8895 = vrot.lane.b32.xlu0 %v28552_v25, %s31048_s17  ;;  %v11164_v25 = vpop.permute.xlu1 %11163 }
0x1723   : > { %10269 = vrot.lane.b32.xlu1 %v28767_v26, %s31049_s12 }
0x1725   : > { %10263 = vrot.lane.b32.xlu0 %v28761_v41, %s31049_s12  ;;  %v11240_v42 = vpop.permute.xlu1 %11239 }
0x1727   : > { %8905 = vrot.lane.b32.xlu1 %v28560_v29, %s31048_s17 }
0x1729   : > { %8899 = vrot.lane.b32.xlu0 %v28554_v17, %s31048_s17  ;;  %v11392_v17 = vpop.permute.xlu1 %11391 }
0x172d   : > { %10267 = vrot.lane.b32.xlu0 %v28763_v40, %s31049_s12 }
0x1731   : > { %8903 = vrot.lane.b32.xlu0 %v28565_v21, %s31048_s17 }
0x173e   : > { %v10976_v60 = vpop.xlane.xlu0 %10975 }
0x173f   : > { %26571 = vrcp.f32 %v10976_v60 }
0x1749   : > { %v26572_v20 = vpop.eup %26571 }
0x174a   : > { %v11004_v50 = vmul.f32 %v26572_v20, %v28793_v57 }
0x174c   : > { %25413 = vmatmul.mubr.msk.f32.vlgmr.msra.gmra.mrb[132].mxu0 %vm473_vm2, %v11004_v50 }
0x174d   : > { %25421 = vmatpush3.msra.mxu0 %v11240_v42  ;;  %25422 = vmatprep.mubr.msk.f32.mxu0 %vm26944_vm1, %v26943_v14  ;;  %v23872_v42 = vld [vmem:[%s30984_s2 + $0x40] sm:$0xff] }
0x174e   : > { %25430 = vmatprep.subr.mxu0 %v26943_v14 }
0x177b   : > { %v10973_v29 = vpop.xlane.xlu1 %10972 }
0x177c   : > { %26573 = vrcp.f32 %v10973_v29 }
0x177f   : > { %v10979_v21 = vpop.xlane.xlu1 %10978 }
0x1780   : > { %26575 = vrcp.f32 %v10979_v21 }
0x1783   : > { %v10985_v37 = vpop.xlane.xlu1 %10984 }
0x1784   : > { %26577 = vrcp.f32 %v10985_v37  ;;  %v10982_v41 = vpop.xlane.xlu0 %10981  ;;  %v23874_v37 = vld [vmem:[%s30984_s2 + $0x50] sm:$0xff] }
0x1785   : > { %26579 = vrcp.f32 %v10982_v41  ;;  %v23875_v41 = vld [vmem:[%s30984_s2 + $0x58] sm:$0xff] }
0x1786   : > { %v26574_v40 = vpop.eup %26573 }
0x1787   : > { %v10991_v11 = vpop.xlane.xlu1 %10990  ;;  %v11003_v26 = vmul.f32 %v26574_v40, %v28797_v51  ;;  %v26326_v40 = vpack.i.bf16 %v23875_v41, %v23874_v37 }
0x1788   : > { %26581 = vrcp.f32 %v10991_v11  ;;  %v10988_v57 = vpop.xlane.xlu0 %10987 }
0x1789   : > { %26583 = vrcp.f32 %v10988_v57  ;;  %25408 = vmatmul.mubr.msk.f32.vlgmr.msra.gmra.mrb[132].mxu1 %vm473_vm2, %v11003_v26 }
0x178a   : > { %v26576_v47 = vpop.eup %26575  ;;  %25416 = vmatpush3.msra.mxu1 %v11164_v25  ;;  %25417 = vmatprep.mubr.msk.f32.mxu1 %vm26944_vm1, %v26943_v14 }
0x178b   : > { %25425 = vmatprep.subr.mxu1 %v26943_v14  ;;  %v11005_v45 = vmul.f32 %v26576_v47, %v28802_v38  ;;  %v11544_v58 = vpop.permute.xlu1 %11543  ;;  %v11685_v38 = vld [vmem:[#allocation2 + $0x28] sm:$0xff] }
0x178c   : > { %v10994_v43 = vpop.xlane.xlu0 %10993  ;;  %v26205_v22 = vpack.c.bf16 %v11685_v38, %v11684_v34  ;;  %v7548_v38 = vadd.f32 %v28339_v59, %v28060_v1 }
0x178d   : > { %26585 = vrcp.f32 %v10994_v43  ;;  %25418 = vmatmul.mubr.msk.f32.vlgmr.msra.gmra.mrb[134].mxu1 %vm473_vm2, %v11005_v45 }
0x178e   : > { %v26578_v53 = vpop.eup %26577  ;;  %25426 = vmatpush3.msra.mxu1 %v11316_v30  ;;  %25427 = vmatprep.mubr.msk.f32.mxu1 %vm26944_vm1, %v26943_v14 }
0x178f   : > { %v26580_v24 = vpop.eup %26579  ;;  %25435 = vmatprep.subr.mxu1 %v26943_v14  ;;  %v11007_v49 = vmul.f32 %v26578_v53, %v28807_v56  ;;  %v11686_v56 = vld [vmem:[#allocation2 + $0x30] sm:$0xff]  ;;  %v8894_v11 = vpop.permute.xlu1 %8893 }
0x1790   : > { %v11468_v18 = vpop.permute.xlu0 %11467  ;;  %v11006_v5 = vmul.f32 %v26580_v24, %v28809_v44  ;;  %v11687_v44 = vld [vmem:[#allocation2 + $0x38] sm:$0xff] }
0x1791   : > { %25428 = vmatmul.mubr.msk.f32.vlgmr.msra.gmra.mrb[136].mxu1 %vm473_vm2, %v11007_v49  ;;  %v26209_v7 = vpack.c.bf16 %v11687_v44, %v11686_v56 }
0x1792   : > { %v26582_v61 = vpop.eup %26581  ;;  %25423 = vmatmul.mubr.msk.f32.vlgmr.msra.gmra.mrb[134].mxu0 %vm473_vm2, %v11006_v5  ;;  %25436 = vmatpush3.msra.mxu1 %v11468_v18 }
0x1793   : > { %v26584_v51 = vpop.eup %26583  ;;  %25431 = vmatpush3.msra.mxu0 %v11392_v17  ;;  %25432 = vmatprep.mubr.msk.f32.mxu0 %vm26944_vm1, %v26943_v14  ;;  %v11009_v2 = vmul.f32 %v26582_v61, %v28815_v12  ;;  %v23873_v17 = vld [vmem:[%s30984_s2 + $0x48] sm:$0xff]  ;;  %v10262_v57 = vpop.permute.xlu1 %10261 }
0x1794   : > { %25437 = vmatprep.mubr.msk.f32.mxu1 %vm26944_vm1, %v26943_v14  ;;  %25440 = vmatprep.subr.mxu0 %v26943_v14  ;;  %v11008_v6 = vmul.f32 %v26584_v51, %v28817_v55  ;;  %v26321_v21 = vpack.i.bf16 %v23873_v17, %v23872_v42  ;;  %v8892_v26 = vpop.permute.xlu0 %8891  ;;  %v10284_v34 = vadd.f32 %v10262_v57, %v28060_v1 }
0x1795   : > { %25438 = vmatmul.mubr.msk.f32.vlgmr.msra.gmra.mrb[138].mxu1 %vm473_vm2, %v11009_v2  ;;  %26206 = vmatprep.subr.bf16.mxu1 %v26205_v22  ;;  %v8915_v2 = vadd.f32 %v8892_v26, %v28062_v23 }
0x1796   : > { %25433 = vmatmul.mubr.msk.f32.vlgmr.msra.gmra.mrb[136].mxu0 %vm473_vm2, %v11008_v6  ;;  %26208 = vmatpush3.bf16.msra.mxu1 %v26205_v22 }
0x1797   : > { %v26586_v62 = vpop.eup %26585  ;;  %25441 = vmatpush3.msra.mxu0 %v11544_v58  ;;  %25442 = vmatprep.mubr.msk.f32.mxu0 %vm26944_vm1, %v26943_v14  ;;  %v8898_v47 = vpop.permute.xlu1 %8897  ;;  %v8916_v58 = vadd.f32 %v8894_v11, %v28060_v1  ;;  %v7552_v11 = vadd.f32 %v28343_v4, %v28076_v33  ;;  %v7553_v4 = vadd.f32 %v28356_v48, %v28086_v13 }
0x1798   : > { %v11010_v27 = vmul.f32 %v26586_v62, %v28823_v31  ;;  %26210 = vmatprep.subr.bf16.mxu1 %v26209_v7 }
0x179a   : > { %25443 = vmatmul.mubr.msk.f32.vlgmr.msra.gmra.mrb[138].mxu0 %vm473_vm2, %v11010_v27  ;;  %26212 = vmatpush3.bf16.msra.mxu1 %v26209_v7  ;;  %v7547_v27 = vadd.f32 %v28347_v54, %v28062_v23  ;;  %v11660_v7 = vsel %vm473_vm2, %v7548_v38, %v8916_v58 }
0x179b   : > { %25485 = vmatprep.subr.mxu1 %v26943_v14  ;;  %v10266_v43 = vpop.permute.xlu1 %10265  ;;  %v11668_v59 = vsel %vm5911_vm3, %v11660_v7, %v10284_v34  ;;  %v23863_v7 = vld [vmem:[%s30987_s5 + $0x1] ss:$0 sm:$0xff] }
0x179f   : > { %v8902_v24 = vpop.permute.xlu1 %8901 }
0x17a3   : > { %v10270_v18 = vpop.permute.xlu1 %10269 }
0x17a4   : > { %v10288_v41 = vadd.f32 %v10270_v18, %v28076_v33 }
0x17a7   : > { %v28918_v61 = vpop.permute.xlu1 %8905 }
0x181f   : > { %v11159_v52 = vpop.f32.mrb[132].mxu0 }
0x1820   : > { %11629 = vrot.lane.b32.xlu1 %v11159_v52, %s31050_s10  ;;  %v25414_v36 = vpop.f32.mrb[133].mxu0 }
0x1821   : > { %v11659_v36 = vsel %vm473_vm2, %v7547_v27, %v8915_v2 }
0x185c   : > { %v11083_v63 = vpop.f32.mrb[132].mxu1 }
0x185d   : > { %v25409_v12 = vpop.f32.mrb[133].mxu1  ;;  %11627 = vrot.lane.b32.xlu0 %v11083_v63, %s31050_s10 }
0x185e   : > { %v7549_v12 = vadd.f32 %v28349_v32, %v28070_v35  ;;  %v8918_v32 = vadd.f32 %v8898_v47, %v28068_v9 }
0x1860   : > { %v11235_v55 = vpop.f32.mrb[134].mxu1 }
0x1861   : > { %v25419_v8 = vpop.f32.mrb[135].mxu1  ;;  %11631 = vrot.lane.b32.xlu0 %v11235_v55, %s31050_s10 }
0x1864   : > { %v11387_v16 = vpop.f32.mrb[136].mxu1 }
0x1865   : > { %v11311_v31 = vpop.f32.mrb[134].mxu0  ;;  %11635 = vrot.lane.b32.xlu0 %v11387_v16, %s31050_s10  ;;  %v25429_v28 = vpop.f32.mrb[137].mxu1 }
0x1866   : > { %11633 = vrot.lane.b32.xlu1 %v11311_v31, %s31050_s10  ;;  %v25424_v30 = vpop.f32.mrb[135].mxu0 }
0x1868   : > { %v11539_v60 = vpop.f32.mrb[138].mxu1 }
0x1869   : > { %v11463_v25 = vpop.f32.mrb[136].mxu0  ;;  %10271 = vrot.lane.b32.xlu0 %v28772_v3, %s31049_s12  ;;  %v25439_v20 = vpop.f32.mrb[139].mxu1 }
0x186a   : > { %11637 = vrot.lane.b32.xlu1 %v11463_v25, %s31050_s10  ;;  %v25434_v50 = vpop.f32.mrb[137].mxu0  ;;  %v10286_v25 = vadd.f32 %v10266_v43, %v28068_v9 }
0x186d   : > { %v11615_v29 = vpop.f32.mrb[138].mxu0  ;;  %11639 = vrot.lane.b32.xlu0 %v11539_v60, %s31050_s10  ;;  %v7551_v60 = vadd.f32 %v28354_v39, %v28078_v46  ;;  %v8920_v39 = vadd.f32 %v8902_v24, %v28076_v33 }
0x186e   : > { %10273 = vrot.lane.b32.xlu1 %v28769_v0, %s31049_s12  ;;  %v25444_v3 = vpop.f32.mrb[139].mxu0  ;;  %v10260_v0 = vpop.permute.xlu0 %10259 }
0x186f   : > { %v10283_v62 = vadd.f32 %v10260_v0, %v28062_v23 }
0x1871   : > { %26322 = vrot.lane.b32.xlu0 %v26321_v21, %s31051_s20  ;;  %v11667_v54 = vsel %vm5911_vm3, %v11659_v36, %v10283_v62 }
0x1872   : > { %11641 = vrot.lane.b32.xlu1 %v11615_v29, %s31050_s10  ;;  %v8896_v45 = vpop.permute.xlu0 %8895 }
0x1873   : > { %v8917_v56 = vadd.f32 %v8896_v45, %v28070_v35 }
0x1875   : > { %v11661_v8 = vsel %vm473_vm2, %v7549_v12, %v8917_v56 }
0x1876   : > { %26327 = vrot.lane.b32.xlu1 %v26326_v40, %s31051_s20  ;;  %v10264_v53 = vpop.permute.xlu0 %10263 }
0x1877   : > { %v10285_v63 = vadd.f32 %v10264_v53, %v28070_v35 }
0x1879   : > { %v11669_v30 = vsel %vm5911_vm3, %v11661_v8, %v10285_v63 }
0x187a   : > { %v8900_v49 = vpop.permute.xlu0 %8899 }
0x187b   : > { %v8919_v16 = vadd.f32 %v8900_v49, %v28078_v46 }
0x187d   : > { %v11663_v42 = vsel %vm473_vm2, %v7551_v60, %v8919_v16 }
0x187e   : > { %v10268_v5 = vpop.permute.xlu0 %10267 }
0x187f   : > { %v10287_v28 = vadd.f32 %v10268_v5, %v28078_v46  ;;  %v8922_v5 = vadd.f32 %v28918_v61, %v28084_v19 }
0x1881   : > { %v11671_v37 = vsel %vm5911_vm3, %v11663_v42, %v10287_v28 }
0x1882   : > { %v8904_v51 = vpop.permute.xlu0 %8903 }
0x1883   : > { %v8921_v57 = vadd.f32 %v8904_v51, %v28086_v13 }
0x1885   : > { %v11665_v49 = vsel %vm473_vm2, %v7553_v4, %v8921_v57 }
0x1892   : > { %v11630_v6 = vpop.permute.xlu1 %11629 }
0x1893   : > { %v11652_v22 = vadd.f32 %v11630_v6, %v28060_v1  ;;  %v7554_v6 = vadd.f32 %v28345_v15, %v28084_v19 }
0x1895   : > { %v11666_v62 = vsel %vm473_vm2, %v7554_v6, %v8922_v5 }
0x18cf   : > { %v11628_v52 = vpop.permute.xlu0 %11627 }
0x18d0   : > { %v11651_v44 = vadd.f32 %v11628_v52, %v28062_v23  ;;  %v28944_v23 = vsel %vm5920_vm4, %v11668_v59, %v11652_v22 }
0x18d2   : > { %v28939_v1 = vsel %vm5920_vm4, %v11667_v54, %v11651_v44 }
0x18d3   : > { %25453 = vmatprep.mubr.msk.f32.mxu1 %vm340_vm0, %v28939_v1  ;;  %v11632_v55 = vpop.permute.xlu0 %11631 }
0x18d4   : > { %v11653_v31 = vadd.f32 %v11632_v55, %v28070_v35  ;;  %25454 = vmatmul.mubr.msk.f32.vlgmr.msra.gmra.mrb[140].mxu1 %vm340_vm0, %v28944_v23  ;;  %v7550_v35 = vadd.f32 %v28341_v10, %v28068_v9 }
0x18d6   : > { %v28958_v20 = vsel %vm5920_vm4, %v11669_v30, %v11653_v31  ;;  %v11662_v21 = vsel %vm473_vm2, %v7550_v35, %v8918_v32 }
0x18d7   : > { %25456 = vmatprep.mubr.msk.f32.mxu1 %vm340_vm0, %v28958_v20  ;;  %v11636_v50 = vpop.permute.xlu0 %11635  ;;  %v11670_v10 = vsel %vm5911_vm3, %v11662_v21, %v10286_v25 }
0x18d8   : > { %v11634_v17 = vpop.permute.xlu1 %11633  ;;  %v11655_v29 = vadd.f32 %v11636_v50, %v28078_v46 }
0x18d9   : > { %v11654_v3 = vadd.f32 %v11634_v17, %v28068_v9  ;;  %v11664_v9 = vsel %vm473_vm2, %v7552_v11, %v8920_v39 }
0x18da   : > { %v28973_v40 = vsel %vm5920_vm4, %v11671_v37, %v11655_v29  ;;  %v11672_v43 = vsel %vm5911_vm3, %v11664_v9, %v10288_v41 }
0x18db   : > { %v28978_v46 = vsel %vm5920_vm4, %v11670_v10, %v11654_v3  ;;  %v10272_v26 = vpop.permute.xlu0 %10271 }
0x18dc   : > { %v11638_v0 = vpop.permute.xlu1 %11637  ;;  %25457 = vmatmul.mubr.msk.f32.gmra.mrb[142].mxu1 %vm340_vm0, %v28978_v46  ;;  %v10289_v45 = vadd.f32 %v10272_v26, %v28086_v13 }
0x18dd   : > { %v11656_v47 = vadd.f32 %v11638_v0, %v28076_v33  ;;  %25459 = vmatprep.mubr.msk.f32.mxu1 %vm340_vm0, %v28973_v40 }
0x18de   : > { %v11673_v51 = vsel %vm5911_vm3, %v11665_v49, %v10289_v45 }
0x18df   : > { %v11680_v53 = vsel %vm5920_vm4, %v11672_v43, %v11656_v47  ;;  %v11640_v24 = vpop.permute.xlu0 %11639  ;;  %v29042_v43 = vld [vmem:[%s31052_s1] sm:$0xf] }
0x18e0   : > { %v10274_v18 = vpop.permute.xlu1 %10273  ;;  %25460 = vmatmul.mubr.msk.f32.gmra.mrb[144].mxu1 %vm340_vm0, %v11680_v53  ;;  %v11657_v33 = vadd.f32 %v11640_v24, %v28086_v13 }
0x18e1   : > { %v10290_v2 = vadd.f32 %v10274_v18, %v28084_v19 }
0x18e2   : > { %v11681_v48 = vsel %vm5920_vm4, %v11673_v51, %v11657_v33 }
0x18e3   : > { %25462 = vmatprep.mubr.msk.f32.mxu1 %vm340_vm0, %v11681_v48  ;;  %v11674_v13 = vsel %vm5911_vm3, %v11666_v62, %v10290_v2  ;;  %v26323_v34 = vpop.permute.xlu0 %26322 }
0x18e4   : > { %v11642_v58 = vpop.permute.xlu1 %11641  ;;  %v26325_v38 = vunpack.i.h.bf16 %v26323_v34  ;;  %v26324_v22 = vunpack.i.l.bf16 %v26323_v34 }
0x18e5   : > { %v11658_v27 = vadd.f32 %v11642_v58, %v28084_v19  ;;  %v23877_v19 = vld [vmem:[%s30985_s3 + $0x2] ss:$0 sm:$0xff] }
0x18e6   : > { %v26213_v56 = vpack.c.bf16 %v26325_v38, %v26324_v22  ;;  %11869 = vrot.lane.b32.xlu0 %v23877_v19, %s31051_s20 }
0x18e7   : > { %v11682_v61 = vsel %vm5920_vm4, %v11674_v13, %v11658_v27 }
0x18e8   : > { %25463 = vmatmul.mubr.msk.f32.gmra.mrb[146].mxu1 %vm340_vm0, %v11682_v61  ;;  %v26328_v15 = vpop.permute.xlu1 %26327  ;;  %26214 = vmatprep.subr.bf16.mxu0 %v26213_v56 }
0x18e9   : > { %25487 = vmatprep.mubr.msk.f32.mxu1 %vm26944_vm1, %v26943_v14  ;;  %v26330_v52 = vunpack.i.h.bf16 %v26328_v15  ;;  %v26329_v36 = vunpack.i.l.bf16 %v26328_v15  ;;  %26216 = vmatpush3.bf16.msra.mxu0 %v26213_v56 }
0x18eb   : > { %v26217_v44 = vpack.c.bf16 %v26330_v52, %v26329_v36 }
0x18ed   : > { %26218 = vmatprep.subr.bf16.mxu0 %v26217_v44 }
0x18ee   : > { %26220 = vmatpush3.bf16.msra.mxu0 %v26217_v44 }
0x18ef   : > { %25490 = vmatprep.subr.mxu0 %v26943_v14 }
0x19a7   : > { %v25455_v63 = vpop.f32.mrb[140].mxu1 }
0x19a8   : > { %v11792_v54 = vadd.f32 %v25455_v63, %v23863_v7  ;;  %v11786_v12 = vpop.f32.mrb[141].mxu1 }
0x19a9   : > { %v11787_v59 = vadd.f32 %v23863_v7, %v11786_v12 }
0x19aa   : > { %v11826_v55 = vmax.f32 %v11792_v54, 0.0 }
0x19ab   : > { %v11825_v8 = vmax.f32 %v11787_v59, 0.0 }
0x19ac   : > { %v11834_v31 = vadd.f32 %v11826_v55, %v28944_v23 }
0x19ad   : > { %v11833_v16 = vadd.f32 %v11825_v8, %v28939_v1 }
0x19af   : > { %v25458_v32 = vpop.f32.mrb[142].mxu1  ;;  %25473 = vmatprep.mubr.msk.f32.mxu0 %vm340_vm0, %v11833_v16 }
0x19b0   : > { %v11802_v28 = vadd.f32 %v25458_v32, %v23863_v7  ;;  %v11796_v30 = vpop.f32.mrb[143].mxu1  ;;  %25474 = vmatmul.mubr.msk.f32.vlgmr.msra.gmra.mrb[140].mxu0 %vm340_vm0, %v11834_v31 }
0x19b1   : > { %v11797_v60 = vadd.f32 %v23863_v7, %v11796_v30 }
0x19b2   : > { %v11828_v25 = vmax.f32 %v11802_v28, 0.0 }
0x19b3   : > { %v11827_v35 = vmax.f32 %v11797_v60, 0.0  ;;  %v25461_v50 = vpop.f32.mrb[144].mxu1 }
0x19b4   : > { %v11812_v42 = vadd.f32 %v25461_v50, %v23863_v7  ;;  %v11806_v17 = vpop.f32.mrb[145].mxu1  ;;  %v11836_v1 = vadd.f32 %v11828_v25, %v28978_v46 }
0x19b5   : > { %v11835_v29 = vadd.f32 %v11827_v35, %v28958_v20  ;;  %v11807_v21 = vadd.f32 %v23863_v7, %v11806_v17 }
0x19b6   : > { %v11830_v39 = vmax.f32 %v11812_v42, 0.0 }
0x19b7   : > { %v11829_v23 = vmax.f32 %v11807_v21, 0.0  ;;  %25476 = vmatprep.mubr.msk.f32.mxu0 %vm340_vm0, %v11835_v29 }
0x19b8   : > { %25477 = vmatmul.mubr.msk.f32.gmra.mrb[142].mxu0 %vm340_vm0, %v11836_v1  ;;  %v11838_v37 = vadd.f32 %v11830_v39, %v11680_v53 }
0x19b9   : > { %v11837_v3 = vadd.f32 %v11829_v23, %v28973_v40  ;;  %v11870_v40 = vpop.permute.xlu0 %11869 }
0x19bb   : > { %v25464_v41 = vpop.f32.mrb[146].mxu1  ;;  %25479 = vmatprep.mubr.msk.f32.mxu0 %vm340_vm0, %v11837_v3 }
0x19bc   : > { %v11822_v10 = vadd.f32 %v25464_v41, %v23863_v7  ;;  %v11816_v11 = vpop.f32.mrb[147].mxu1  ;;  %25480 = vmatmul.mubr.msk.f32.gmra.mrb[144].mxu0 %vm340_vm0, %v11838_v37 }
0x19bd   : > { %v11817_v20 = vadd.f32 %v23863_v7, %v11816_v11 }
0x19be   : > { %v11832_v26 = vmax.f32 %v11822_v10, 0.0 }
0x19bf   : > { %v11831_v57 = vmax.f32 %v11817_v20, 0.0 }
0x19c0   : > { %v11840_v0 = vadd.f32 %v11832_v26, %v11682_v61 }
0x19c1   : > { %v11839_v46 = vadd.f32 %v11831_v57, %v11681_v48 }
0x19c3   : > { %25482 = vmatprep.mubr.msk.f32.mxu0 %vm340_vm0, %v11839_v46 }
0x19c4   : > { %25483 = vmatmul.mubr.msk.f32.gmra.mrb[146].mxu0 %vm340_vm0, %v11840_v0 }
0x19c5   : > { %25492 = vmatprep.mubr.msk.f32.mxu0 %vm26944_vm1, %v26943_v14 }
0x1a83   : > { %v25475_v9 = vpop.f32.mrb[140].mxu0 }
0x1a84   : > { %v29033_v47 = vadd.f32 %v25475_v9, %v11870_v40  ;;  %v11962_v45 = vpop.f32.mrb[141].mxu0 }
0x1a85   : > { %v29035_v4 = vadd.f32 %v11962_v45, %v11870_v40 }
0x1a86   : > { %25491 = vmatpush3.xpose.msk.msra.mxu0 %vm473_vm2, %v29033_v47 }
0x1a87   : > { %25486 = vmatpush3.xpose.msk.msra.mxu1 %vm473_vm2, %v29035_v4  ;;  %25500 = vmatprep.subr.mxu0 %v26943_v14 }
0x1a88   : > { %25495 = vmatprep.subr.mxu1 %v26943_v14 }
0x1a89   : > { %25493 = vmatmul.mubr.msk.f32.vlgmr.msra.gmra.mrb[148].mxu0 %vm473_vm2, %v29042_v43 }
0x1a8a   : > { %25488 = vmatmul.mubr.msk.f32.vlgmr.msra.gmra.mrb[148].mxu1 %vm473_vm2, %v29042_v43  ;;  %25502 = vmatprep.mubr.msk.f32.mxu0 %vm26944_vm1, %v26943_v14 }
0x1a8b   : > { %v25478_v53 = vpop.f32.mrb[142].mxu0  ;;  %25497 = vmatprep.mubr.msk.f32.mxu1 %vm26944_vm1, %v26943_v14 }
0x1a8c   : > { %v29056_v24 = vadd.f32 %v25478_v53, %v11870_v40  ;;  %v11972_v49 = vpop.f32.mrb[143].mxu0 }
0x1a8d   : > { %v29058_v18 = vadd.f32 %v11972_v49, %v11870_v40 }
0x1a8e   : > { %25501 = vmatpush3.xpose.msk.msra.mxu0 %vm473_vm2, %v29056_v24 }
0x1a8f   : > { %v25481_v33 = vpop.f32.mrb[144].mxu0  ;;  %25496 = vmatpush3.xpose.msk.msra.mxu1 %vm473_vm2, %v29058_v18  ;;  %25510 = vmatprep.subr.mxu0 %v26943_v14 }
0x1a90   : > { %v29065_v5 = vadd.f32 %v25481_v33, %v11870_v40  ;;  %v11982_v51 = vpop.f32.mrb[145].mxu0  ;;  %25505 = vmatprep.subr.mxu1 %v26943_v14 }
0x1a91   : > { %v29068_v2 = vadd.f32 %v11982_v51, %v11870_v40  ;;  %25503 = vmatmul.mubr.msk.f32.vlgmr.msra.gmra.mrb[150].mxu0 %vm473_vm2, %v29042_v43 }
0x1a92   : > { %25498 = vmatmul.mubr.msk.f32.vlgmr.msra.gmra.mrb[150].mxu1 %vm473_vm2, %v29042_v43  ;;  %25511 = vmatpush3.xpose.msk.msra.mxu0 %vm473_vm2, %v29065_v5 }
0x1a93   : > { %25506 = vmatpush3.xpose.msk.msra.mxu1 %vm473_vm2, %v29068_v2  ;;  %25512 = vmatprep.mubr.msk.f32.mxu0 %vm26944_vm1, %v26943_v14 }
0x1a94   : > { %25507 = vmatprep.mubr.msk.f32.mxu1 %vm26944_vm1, %v26943_v14  ;;  %25520 = vmatprep.subr.mxu0 %v26943_v14 }
0x1a95   : > { %25513 = vmatmul.mubr.msk.f32.vlgmr.msra.gmra.mrb[152].mxu0 %vm473_vm2, %v29042_v43  ;;  %25515 = vmatprep.subr.mxu1 %v26943_v14 }
0x1a96   : > { %25508 = vmatmul.mubr.msk.f32.vlgmr.msra.gmra.mrb[152].mxu1 %vm473_vm2, %v29042_v43  ;;  %25522 = vmatprep.mubr.msk.f32.mxu0 %vm26944_vm1, %v26943_v14 }
0x1a97   : > { %v25484_v48 = vpop.f32.mrb[146].mxu0  ;;  %25517 = vmatprep.mubr.msk.f32.mxu1 %vm26944_vm1, %v26943_v14 }
0x1a98   : > { %v29092_v6 = vadd.f32 %v25484_v48, %v11870_v40  ;;  %v11992_v58 = vpop.f32.mrb[147].mxu0 }
0x1a99   : > { %v29094_v62 = vadd.f32 %v11992_v58, %v11870_v40 }
0x1a9a   : > { %25521 = vmatpush3.xpose.msk.msra.mxu0 %vm473_vm2, %v29092_v6 }
0x1a9b   : > { %25516 = vmatpush3.xpose.msk.msra.mxu1 %vm473_vm2, %v29094_v62  ;;  %25530 = vmatprep.subr.mxu0 %v26943_v14 }
0x1a9c   : > { %25525 = vmatprep.subr.mxu1 %v26943_v14 }
0x1a9d   : > { %25523 = vmatmul.mubr.msk.f32.vlgmr.msra.gmra.mrb[154].mxu0 %vm473_vm2, %v29042_v43 }
0x1a9e   : > { %25518 = vmatmul.mubr.msk.f32.vlgmr.msra.gmra.mrb[154].mxu1 %vm473_vm2, %v29042_v43  ;;  %25532 = vmatprep.mubr.msk.f32.mxu0 %vm26944_vm1, %v26943_v14 }
0x1a9f   : > { %25527 = vmatprep.mubr.msk.f32.mxu1 %vm26944_vm1, %v26943_v14 }
0x1b5c   : > { %v12147_v27 = vpop.f32.mrb[148].mxu0 }
0x1b5d   : > { %v12590_v13 = vmul.f32 0.17677669, %v12147_v27  ;;  %v12074_v61 = vpop.f32.mrb[148].mxu1  ;;  %v25494_v34 = vpop.f32.mrb[149].mxu0 }
0x1b5e   : > { %v12589_v38 = vmul.f32 0.17677669, %v12074_v61  ;;  %v25489_v22 = vpop.f32.mrb[149].mxu1 }
0x1b5f   : > { %v12601_v15 = vsel %vm12597_vm5, %v12590_v13, -inf }
0x1b60   : > { %12602 = vmax.xlane.f32.xlu0 %v12601_v15  ;;  %v12598_v52 = vsel %vm12597_vm5, %v12589_v38, -inf }
0x1b61   : > { %12599 = vmax.xlane.f32.xlu1 %v12598_v52 }
0x1b64   : > { %v12293_v36 = vpop.f32.mrb[150].mxu0 }
0x1b65   : > { %v12592_v56 = vmul.f32 0.17677669, %v12293_v36  ;;  %v12220_v44 = vpop.f32.mrb[150].mxu1  ;;  %v25504_v19 = vpop.f32.mrb[151].mxu0 }
0x1b66   : > { %v12591_v7 = vmul.f32 0.17677669, %v12220_v44  ;;  %v25499_v63 = vpop.f32.mrb[151].mxu1 }
0x1b67   : > { %v12607_v54 = vsel %vm12597_vm5, %v12592_v56, -inf }
0x1b68   : > { %v12439_v12 = vpop.f32.mrb[152].mxu0  ;;  %12608 = vmax.xlane.f32.xlu1 %v12607_v54  ;;  %v12604_v59 = vsel %vm12597_vm5, %v12591_v7, -inf }
0x1b69   : > { %v12594_v55 = vmul.f32 0.17677669, %v12439_v12  ;;  %12605 = vmax.xlane.f32.xlu0 %v12604_v59  ;;  %v12366_v8 = vpop.f32.mrb[152].mxu1  ;;  %v25514_v16 = vpop.f32.mrb[153].mxu0 }
0x1b6a   : > { %v12593_v31 = vmul.f32 0.17677669, %v12366_v8  ;;  %v25509_v32 = vpop.f32.mrb[153].mxu1 }
0x1b6b   : > { %v12613_v28 = vsel %vm12597_vm5, %v12594_v55, -inf }
0x1b6c   : > { %12614 = vmax.xlane.f32.xlu1 %v12613_v28  ;;  %v12610_v30 = vsel %vm12597_vm5, %v12593_v31, -inf }
0x1b6d   : > { %12611 = vmax.xlane.f32.xlu0 %v12610_v30 }
0x1b70   : > { %v12585_v60 = vpop.f32.mrb[154].mxu0 }
0x1b71   : > { %v12596_v25 = vmul.f32 0.17677669, %v12585_v60  ;;  %v12512_v35 = vpop.f32.mrb[154].mxu1  ;;  %v25524_v50 = vpop.f32.mrb[155].mxu0 }
0x1b72   : > { %v12595_v42 = vmul.f32 0.17677669, %v12512_v35  ;;  %v25519_v17 = vpop.f32.mrb[155].mxu1 }
0x1b73   : > { %v12619_v29 = vsel %vm12597_vm5, %v12596_v25, -inf }
0x1b74   : > { %12620 = vmax.xlane.f32.xlu1 %v12619_v29  ;;  %v12616_v21 = vsel %vm12597_vm5, %v12595_v42, -inf }
0x1b75   : > { %12617 = vmax.xlane.f32.xlu0 %v12616_v21 }
0x1b85   : > { %12762 = vrot.lane.b32.xlu1 %v29033_v47, %s31051_s20 }
0x1b89   : > { %12838 = vrot.lane.b32.xlu1 %v29058_v18, %s31051_s20 }
0x1b8b   : > { %12686 = vrot.lane.b32.xlu0 %v29035_v4, %s31051_s20 }
0x1b8d   : > { %12990 = vrot.lane.b32.xlu1 %v29068_v2, %s31051_s20 }
0x1b8f   : > { %12914 = vrot.lane.b32.xlu0 %v29056_v24, %s31051_s20 }
0x1b91   : > { %13142 = vrot.lane.b32.xlu1 %v29094_v62, %s31051_s20 }
0x1b93   : > { %13066 = vrot.lane.b32.xlu0 %v29065_v5, %s31051_s20 }
0x1b95   : > { %13304 = vrot.lane.b32.xlu1 %v29035_v4, %s31053_s19 }
0x1b97   : > { %13218 = vrot.lane.b32.xlu0 %v29092_v6, %s31051_s20 }
0x1bed   : > { %v12603_v1 = vpop.xlane.xlu0 %12602 }
0x1bee   : > { %v12623_v39 = vsub.f32 %v12590_v13, %v12603_v1  ;;  %v12600_v23 = vpop.xlane.xlu1 %12599 }
0x1bef   : > { %v12622_v3 = vsub.f32 %v12589_v38, %v12600_v23 }
0x1bf0   : > { %v12632_v37 = vmul.f32 1.442695, %v12623_v39 }
0x1bf1   : > { %v12630_v41 = vmul.f32 1.442695, %v12622_v3 }
0x1bf2   : > { %26587 = vpow2.f32 %v12632_v37 }
0x1bf3   : > { %26589 = vpow2.f32 %v12630_v41 }
0x1bf5   : > { %v12609_v10 = vpop.xlane.xlu1 %12608 }
0x1bf6   : > { %v12625_v11 = vsub.f32 %v12592_v56, %v12609_v10  ;;  %v12606_v20 = vpop.xlane.xlu0 %12605 }
0x1bf7   : > { %v12624_v26 = vsub.f32 %v12591_v7, %v12606_v20 }
0x1bf8   : > { %v12636_v57 = vmul.f32 1.442695, %v12625_v11 }
0x1bf9   : > { %v12634_v46 = vmul.f32 1.442695, %v12624_v26  ;;  %v12615_v0 = vpop.xlane.xlu1 %12614 }
0x1bfa   : > { %26591 = vpow2.f32 %v12636_v57  ;;  %v12627_v40 = vsub.f32 %v12594_v55, %v12615_v0  ;;  %v12612_v9 = vpop.xlane.xlu0 %12611 }
0x1bfb   : > { %26593 = vpow2.f32 %v12634_v46  ;;  %v12626_v45 = vsub.f32 %v12593_v31, %v12612_v9 }
0x1bfc   : > { %v29136_v53 = vpop.eup %26587  ;;  %v12640_v49 = vmul.f32 1.442695, %v12627_v40 }
0x1bfd   : > { %v29138_v33 = vpop.eup %26589  ;;  %v12638_v51 = vmul.f32 1.442695, %v12626_v45  ;;  %v12649_v48 = vsel %vm12597_vm5, %v29136_v53, 0.0 }
0x1bfe   : > { %26595 = vpow2.f32 %v12640_v49  ;;  %12650 = vadd.xlane.f32.xlu1 %v12649_v48  ;;  %v12646_v58 = vsel %vm12597_vm5, %v29138_v33, 0.0 }
0x1bff   : > { %26597 = vpow2.f32 %v12638_v51  ;;  %12647 = vadd.xlane.f32.xlu0 %v12646_v58 }
0x1c01   : > { %v12621_v27 = vpop.xlane.xlu1 %12620 }
0x1c02   : > { %v12629_v13 = vsub.f32 %v12596_v25, %v12621_v27  ;;  %v12618_v61 = vpop.xlane.xlu0 %12617 }
0x1c03   : > { %v12628_v34 = vsub.f32 %v12595_v42, %v12618_v61 }
0x1c04   : > { %v29144_v38 = vpop.eup %26591  ;;  %v12644_v22 = vmul.f32 1.442695, %v12629_v13 }
0x1c05   : > { %v29146_v15 = vpop.eup %26593  ;;  %v12642_v52 = vmul.f32 1.442695, %v12628_v34  ;;  %v12763_v36 = vpop.permute.xlu1 %12762  ;;  %v12655_v56 = vsel %vm12597_vm5, %v29144_v38, 0.0 }
0x1c06   : > { %26599 = vpow2.f32 %v12644_v22  ;;  %12656 = vadd.xlane.f32.xlu1 %v12655_v56  ;;  %25531 = vmatpush3.msra.mxu0 %v12763_v36  ;;  %v12687_v44 = vpop.permute.xlu0 %12686  ;;  %v12652_v19 = vsel %vm12597_vm5, %v29146_v15, 0.0 }
0x1c07   : > { %26601 = vpow2.f32 %v12642_v52  ;;  %12653 = vadd.xlane.f32.xlu0 %v12652_v19  ;;  %25526 = vmatpush3.msra.mxu1 %v12687_v44 }
0x1c08   : > { %v29152_v7 = vpop.eup %26595  ;;  %25540 = vmatprep.subr.mxu0 %v26943_v14  ;;  %25535 = vmatprep.subr.mxu1 %v26943_v14 }
0x1c09   : > { %v29156_v63 = vpop.eup %26597  ;;  %v12661_v54 = vsel %vm12597_vm5, %v29152_v7, 0.0  ;;  %v12839_v31 = vpop.permute.xlu1 %12838 }
0x1c0a   : > { %12662 = vadd.xlane.f32.xlu1 %v12661_v54  ;;  %v12658_v12 = vsel %vm12597_vm5, %v29156_v63, 0.0  ;;  %v12915_v28 = vpop.permute.xlu0 %12914 }
0x1c0b   : > { %12659 = vadd.xlane.f32.xlu0 %v12658_v12 }
0x1c0d   : > { %v12991_v32 = vpop.permute.xlu1 %12990 }
0x1c0e   : > { %v13067_v60 = vpop.permute.xlu0 %13066 }
0x1c10   : > { %v29162_v59 = vpop.eup %26599 }
0x1c11   : > { %v29164_v55 = vpop.eup %26601  ;;  %v12667_v8 = vsel %vm12597_vm5, %v29162_v59, 0.0  ;;  %v13143_v30 = vpop.permute.xlu1 %13142 }
0x1c12   : > { %12668 = vadd.xlane.f32.xlu1 %v12667_v8  ;;  %v12664_v16 = vsel %vm12597_vm5, %v29164_v55, 0.0  ;;  %v13219_v35 = vpop.permute.xlu0 %13218 }
0x1c13   : > { %12665 = vadd.xlane.f32.xlu0 %v12664_v16 }
0x1c15   : > { %v29186_v25 = vpop.permute.xlu1 %13304 }
0x1c23   : > { %13302 = vrot.lane.b32.xlu1 %v29042_v43, %s31053_s19 }
0x1c27   : > { %13528 = vrot.lane.b32.xlu1 %v29056_v24, %s31053_s19 }
0x1c29   : > { %13380 = vrot.lane.b32.xlu0 %v29033_v47, %s31053_s19 }
0x1c2b   : > { %13676 = vrot.lane.b32.xlu1 %v29065_v5, %s31053_s19 }
0x1c2d   : > { %13454 = vrot.lane.b32.xlu0 %v29058_v18, %s31053_s19 }
0x1c2f   : > { %13824 = vrot.lane.b32.xlu1 %v29092_v6, %s31053_s19 }
0x1c31   : > { %13602 = vrot.lane.b32.xlu0 %v29068_v2, %s31053_s19 }
0x1c35   : > { %13750 = vrot.lane.b32.xlu0 %v29094_v62, %s31053_s19 }
0x1c8b   : > { %v12651_v50 = vpop.xlane.xlu1 %12650 }
0x1c8c   : > { %26603 = vrcp.f32 %v12651_v50  ;;  %v12648_v42 = vpop.xlane.xlu0 %12647 }
0x1c8d   : > { %26605 = vrcp.f32 %v12648_v42 }
0x1c93   : > { %v12657_v17 = vpop.xlane.xlu1 %12656 }
0x1c94   : > { %26607 = vrcp.f32 %v12657_v17  ;;  %v12654_v29 = vpop.xlane.xlu0 %12653 }
0x1c95   : > { %26609 = vrcp.f32 %v12654_v29 }
0x1c96   : > { %v26604_v21 = vpop.eup %26603 }
0x1c97   : > { %v26606_v1 = vpop.eup %26605  ;;  %v12663_v39 = vpop.xlane.xlu1 %12662  ;;  %v12679_v23 = vmul.f32 %v26604_v21, %v29136_v53 }
0x1c98   : > { %26611 = vrcp.f32 %v12663_v39  ;;  %v12660_v3 = vpop.xlane.xlu0 %12659  ;;  %v12678_v37 = vmul.f32 %v26606_v1, %v29138_v33 }
0x1c99   : > { %26613 = vrcp.f32 %v12660_v3  ;;  %25533 = vmatmul.mubr.msk.f32.vlgmr.msra.gmra.mrb[156].mxu0 %vm473_vm2, %v12679_v23 }
0x1c9a   : > { %25541 = vmatpush3.msra.mxu0 %v12915_v28  ;;  %25528 = vmatmul.mubr.msk.f32.vlgmr.msra.gmra.mrb[156].mxu1 %vm473_vm2, %v12678_v37 }
0x1c9b   : > { %25536 = vmatpush3.msra.mxu1 %v12839_v31  ;;  %25542 = vmatprep.mubr.msk.f32.mxu0 %vm26944_vm1, %v26943_v14 }
0x1c9c   : > { %25550 = vmatprep.subr.mxu0 %v26943_v14  ;;  %25537 = vmatprep.mubr.msk.f32.mxu1 %vm26944_vm1, %v26943_v14 }
0x1c9d   : > { %25545 = vmatprep.subr.mxu1 %v26943_v14 }
0x1c9e   : > { %v26608_v41 = vpop.eup %26607 }
0x1c9f   : > { %v26610_v10 = vpop.eup %26609  ;;  %v12669_v11 = vpop.xlane.xlu1 %12668  ;;  %v12681_v20 = vmul.f32 %v26608_v41, %v29144_v38 }
0x1ca0   : > { %26615 = vrcp.f32 %v12669_v11  ;;  %v12666_v26 = vpop.xlane.xlu0 %12665  ;;  %v12680_v57 = vmul.f32 %v26610_v10, %v29146_v15 }
0x1ca1   : > { %26617 = vrcp.f32 %v12666_v26  ;;  %25543 = vmatmul.mubr.msk.f32.vlgmr.msra.gmra.mrb[158].mxu0 %vm473_vm2, %v12681_v20 }
0x1ca2   : > { %v26612_v46 = vpop.eup %26611  ;;  %25551 = vmatpush3.msra.mxu0 %v13067_v60  ;;  %25538 = vmatmul.mubr.msk.f32.vlgmr.msra.gmra.mrb[158].mxu1 %vm473_vm2, %v12680_v57 }
0x1ca3   : > { %v26614_v0 = vpop.eup %26613  ;;  %25546 = vmatpush3.msra.mxu1 %v12991_v32  ;;  %25552 = vmatprep.mubr.msk.f32.mxu0 %vm26944_vm1, %v26943_v14  ;;  %v12683_v40 = vmul.f32 %v26612_v46, %v29152_v7  ;;  %v13303_v45 = vpop.permute.xlu1 %13302 }
0x1ca4   : > { %25560 = vmatprep.subr.mxu0 %v26943_v14  ;;  %25547 = vmatprep.mubr.msk.f32.mxu1 %vm26944_vm1, %v26943_v14  ;;  %v12682_v9 = vmul.f32 %v26614_v0, %v29156_v63  ;;  %v13381_v53 = vpop.permute.xlu0 %13380 }
0x1ca5   : > { %25553 = vmatmul.mubr.msk.f32.vlgmr.msra.gmra.mrb[160].mxu0 %vm473_vm2, %v12683_v40  ;;  %25555 = vmatprep.subr.mxu1 %v26943_v14 }
0x1ca6   : > { %25561 = vmatpush3.msra.mxu0 %v13219_v35  ;;  %25548 = vmatmul.mubr.msk.f32.vlgmr.msra.gmra.mrb[160].mxu1 %vm473_vm2, %v12682_v9 }
0x1ca7   : > { %25556 = vmatpush3.msra.mxu1 %v13143_v30  ;;  %25562 = vmatprep.mubr.msk.f32.mxu0 %vm26944_vm1, %v26943_v14  ;;  %v13529_v58 = vpop.permute.xlu1 %13528 }
0x1ca8   : > { %25570 = vmatprep.subr.mxu0 %v26943_v14  ;;  %25557 = vmatprep.mubr.msk.f32.mxu1 %vm26944_vm1, %v26943_v14  ;;  %v13455_v27 = vpop.permute.xlu0 %13454 }
0x1ca9   : > { %25565 = vmatprep.subr.mxu1 %v26943_v14 }
0x1caa   : > { %v26616_v49 = vpop.eup %26615 }
0x1cab   : > { %v26618_v33 = vpop.eup %26617  ;;  %v12685_v51 = vmul.f32 %v26616_v49, %v29162_v59  ;;  %v13677_v13 = vpop.permute.xlu1 %13676 }
0x1cac   : > { %v12684_v48 = vmul.f32 %v26618_v33, %v29164_v55  ;;  %v13603_v61 = vpop.permute.xlu0 %13602 }
0x1cad   : > { %25563 = vmatmul.mubr.msk.f32.vlgmr.msra.gmra.mrb[162].mxu0 %vm473_vm2, %v12685_v51 }
0x1cae   : > { %25571 = vmatpush3.xpose.msk.msra.mxu0 %vm473_vm2, %v13381_v53  ;;  %25558 = vmatmul.mubr.msk.f32.vlgmr.msra.gmra.mrb[162].mxu1 %vm473_vm2, %v12684_v48 }
0x1caf   : > { %25566 = vmatpush3.xpose.msk.msra.mxu1 %vm473_vm2, %v29186_v25  ;;  %25572 = vmatprep.mubr.msk.f32.mxu0 %vm26944_vm1, %v26943_v14  ;;  %v13825_v34 = vpop.permute.xlu1 %13824 }
0x1cb0   : > { %25580 = vmatprep.subr.mxu0 %v26943_v14  ;;  %25567 = vmatprep.mubr.msk.f32.mxu1 %vm26944_vm1, %v26943_v14  ;;  %v13751_v38 = vpop.permute.xlu0 %13750 }
0x1cb1   : > { %25573 = vmatmul.mubr.msk.f32.vlgmr.msra.gmra.mrb[164].mxu0 %vm473_vm2, %v13303_v45  ;;  %25575 = vmatprep.subr.mxu1 %v26943_v14 }
0x1cb2   : > { %25581 = vmatpush3.xpose.msk.msra.mxu0 %vm473_vm2, %v13529_v58  ;;  %25568 = vmatmul.mubr.msk.f32.vlgmr.msra.gmra.mrb[164].mxu1 %vm473_vm2, %v13303_v45 }
0x1cb3   : > { %25576 = vmatpush3.xpose.msk.msra.mxu1 %vm473_vm2, %v13455_v27  ;;  %25582 = vmatprep.mubr.msk.f32.mxu0 %vm26944_vm1, %v26943_v14 }
0x1cb4   : > { %25590 = vmatprep.subr.mxu0 %v26943_v14  ;;  %25577 = vmatprep.mubr.msk.f32.mxu1 %vm26944_vm1, %v26943_v14 }
0x1cb5   : > { %25583 = vmatmul.mubr.msk.f32.vlgmr.msra.gmra.mrb[166].mxu0 %vm473_vm2, %v13303_v45  ;;  %25585 = vmatprep.subr.mxu1 %v26943_v14 }
0x1cb6   : > { %25591 = vmatpush3.xpose.msk.msra.mxu0 %vm473_vm2, %v13677_v13  ;;  %25578 = vmatmul.mubr.msk.f32.vlgmr.msra.gmra.mrb[166].mxu1 %vm473_vm2, %v13303_v45 }
0x1cb7   : > { %25586 = vmatpush3.xpose.msk.msra.mxu1 %vm473_vm2, %v13603_v61  ;;  %25592 = vmatprep.mubr.msk.f32.mxu0 %vm26944_vm1, %v26943_v14 }
0x1cb8   : > { %25600 = vmatprep.subr.mxu0 %v26943_v14  ;;  %25587 = vmatprep.mubr.msk.f32.mxu1 %vm26944_vm1, %v26943_v14 }
0x1cb9   : > { %25593 = vmatmul.mubr.msk.f32.vlgmr.msra.gmra.mrb[168].mxu0 %vm473_vm2, %v13303_v45  ;;  %25595 = vmatprep.subr.mxu1 %v26943_v14 }
0x1cba   : > { %25601 = vmatpush3.xpose.msk.msra.mxu0 %vm473_vm2, %v13825_v34  ;;  %25588 = vmatmul.mubr.msk.f32.vlgmr.msra.gmra.mrb[168].mxu1 %vm473_vm2, %v13303_v45 }
0x1cbb   : > { %25596 = vmatpush3.xpose.msk.msra.mxu1 %vm473_vm2, %v13751_v38  ;;  %25602 = vmatprep.mubr.msk.f32.mxu0 %vm26944_vm1, %v26943_v14 }
0x1cbc   : > { %25597 = vmatprep.mubr.msk.f32.mxu1 %vm26944_vm1, %v26943_v14  ;;  %25605 = vmatprep.subr.mxu1 %v26943_v14 }
0x1cbd   : > { %25603 = vmatmul.mubr.msk.f32.vlgmr.msra.gmra.mrb[170].mxu0 %vm473_vm2, %v13303_v45  ;;  %25610 = vmatprep.subr.mxu0 %v26943_v14 }
0x1cbe   : > { %25598 = vmatmul.mubr.msk.f32.vlgmr.msra.gmra.mrb[170].mxu1 %vm473_vm2, %v13303_v45  ;;  %25612 = vmatprep.mubr.msk.f32.mxu0 %vm26944_vm1, %v26943_v14 }
0x1cbf   : > { %25607 = vmatprep.mubr.msk.f32.mxu1 %vm26944_vm1, %v26943_v14 }
0x1d6c   : > { %v29267_v22 = vpop.f32.mrb[156].mxu0 }
0x1d6d   : > { %v29269_v15 = vpop.f32.mrb[156].mxu1  ;;  %v25534_v52 = vpop.f32.mrb[157].mxu0 }
0x1d6e   : > { %v25529_v36 = vpop.f32.mrb[157].mxu1 }
0x1d74   : > { %v29271_v56 = vpop.f32.mrb[158].mxu0 }
0x1d75   : > { %v29273_v44 = vpop.f32.mrb[158].mxu1  ;;  %v25544_v19 = vpop.f32.mrb[159].mxu0 }
0x1d76   : > { %v25539_v7 = vpop.f32.mrb[159].mxu1 }
0x1d78   : > { %v29275_v63 = vpop.f32.mrb[160].mxu0 }
0x1d79   : > { %v29277_v54 = vpop.f32.mrb[160].mxu1  ;;  %v25554_v12 = vpop.f32.mrb[161].mxu0 }
0x1d7a   : > { %v25549_v59 = vpop.f32.mrb[161].mxu1 }
0x1d80   : > { %v29279_v55 = vpop.f32.mrb[162].mxu0 }
0x1d81   : > { %v29281_v8 = vpop.f32.mrb[162].mxu1  ;;  %v25564_v16 = vpop.f32.mrb[163].mxu0 }
0x1d82   : > { %v25559_v31 = vpop.f32.mrb[163].mxu1 }
0x1d84   : > { %v13450_v32 = vpop.f32.mrb[164].mxu0 }
0x1d85   : > { %v13899_v28 = vmul.f32 0.17677669, %v13450_v32  ;;  %v13376_v30 = vpop.f32.mrb[164].mxu1  ;;  %v25574_v60 = vpop.f32.mrb[165].mxu0 }
0x1d86   : > { %v13898_v25 = vmul.f32 0.17677669, %v13376_v30  ;;  %v25569_v35 = vpop.f32.mrb[165].mxu1 }
0x1d87   : > { %v13909_v50 = vsel %vm12597_vm5, %v13899_v28, -inf }
0x1d88   : > { %13910 = vmax.xlane.f32.xlu1 %v13909_v50  ;;  %v13598_v42 = vpop.f32.mrb[166].mxu0  ;;  %v13906_v17 = vsel %vm12597_vm5, %v13898_v25, -inf }
0x1d89   : > { %v13901_v29 = vmul.f32 0.17677669, %v13598_v42  ;;  %13907 = vmax.xlane.f32.xlu0 %v13906_v17  ;;  %v13524_v21 = vpop.f32.mrb[166].mxu1  ;;  %v25584_v1 = vpop.f32.mrb[167].mxu0 }
0x1d8a   : > { %v25579_v39 = vpop.f32.mrb[167].mxu1  ;;  %v13900_v3 = vmul.f32 0.17677669, %v13524_v21 }
0x1d8b   : > { %v13915_v23 = vsel %vm12597_vm5, %v13901_v29, -inf }
0x1d8c   : > { %v13746_v37 = vpop.f32.mrb[168].mxu0  ;;  %v13912_v46 = vsel %vm12597_vm5, %v13900_v3, -inf }
0x1d8d   : > { %v25594_v41 = vpop.f32.mrb[169].mxu0  ;;  %13916 = vmax.xlane.f32.xlu0 %v13915_v23  ;;  %v13672_v10 = vpop.f32.mrb[168].mxu1  ;;  %v13903_v26 = vmul.f32 0.17677669, %v13746_v37 }
0x1d8e   : > { %v13902_v11 = vmul.f32 0.17677669, %v13672_v10  ;;  %v25589_v20 = vpop.f32.mrb[169].mxu1 }
0x1d8f   : > { %v13921_v49 = vsel %vm12597_vm5, %v13903_v26, -inf }
0x1d90   : > { %v13894_v57 = vpop.f32.mrb[170].mxu0  ;;  %v13918_v0 = vsel %vm12597_vm5, %v13902_v11, -inf }
0x1d91   : > { %v25604_v40 = vpop.f32.mrb[171].mxu0  ;;  %13913 = vmax.xlane.f32.xlu0 %v13912_v46  ;;  %13919 = vmax.xlane.f32.xlu1 %v13918_v0  ;;  %v13820_v9 = vpop.f32.mrb[170].mxu1  ;;  %v13905_v53 = vmul.f32 0.17677669, %v13894_v57 }
0x1d92   : > { %v25599_v45 = vpop.f32.mrb[171].mxu1  ;;  %v29308_v51 = vmul.f32 0.17677669, %v13820_v9 }
0x1d93   : > { %v13927_v33 = vsel %vm12597_vm5, %v13905_v53, -inf }
0x1d94   : > { %v13924_v48 = vsel %vm12597_vm5, %v29308_v51, -inf }
0x1d95   : > { %13922 = vmax.xlane.f32.xlu0 %v13921_v49 }
0x1d99   : > { %13928 = vmax.xlane.f32.xlu0 %v13927_v33 }
0x1da2   : > { %13994 = vrot.lane.b32.xlu1 %v29035_v4, %s31054_s0 }
0x1da6   : > { %14146 = vrot.lane.b32.xlu1 %v29058_v18, %s31054_s0 }
0x1daa   : > { %14222 = vrot.lane.b32.xlu1 %v29056_v24, %s31054_s0 }
0x1dae   : > { %14374 = vrot.lane.b32.xlu1 %v29065_v5, %s31054_s0 }
0x1daf   : > { %14070 = vrot.lane.b32.xlu0 %v29033_v47, %s31054_s0 }
0x1db2   : > { %14526 = vrot.lane.b32.xlu1 %v29092_v6, %s31054_s0 }
0x1db3   : > { %14298 = vrot.lane.b32.xlu0 %v29068_v2, %s31054_s0 }
0x1db7   : > { %14450 = vrot.lane.b32.xlu0 %v29094_v62, %s31054_s0 }
0x1dbb   : > { %14644 = vrot.lane.b32.xlu0 %v29035_v4, %s31043_s18 }
0x1dd6   : > { %13925 = vmax.xlane.f32.xlu1 %v13924_v48 }
0x1de7   : > { %14720 = vrot.lane.b32.xlu1 %v29033_v47, %s31043_s18 }
0x1e15   : > { %v13911_v58 = vpop.xlane.xlu1 %13910 }
0x1e16   : > { %v13931_v27 = vsub.f32 %v13899_v28, %v13911_v58  ;;  %v13908_v13 = vpop.xlane.xlu0 %13907 }
0x1e17   : > { %v13930_v61 = vsub.f32 %v13898_v25, %v13908_v13 }
0x1e18   : > { %v13940_v34 = vmul.f32 1.442695, %v13931_v27 }
0x1e19   : > { %v13938_v38 = vmul.f32 1.442695, %v13930_v61 }
0x1e1a   : > { %26619 = vpow2.f32 %v13940_v34  ;;  %v13917_v52 = vpop.xlane.xlu0 %13916 }
0x1e1b   : > { %26621 = vpow2.f32 %v13938_v38  ;;  %v13933_v36 = vsub.f32 %v13901_v29, %v13917_v52 }
0x1e1d   : > { %v13944_v19 = vmul.f32 1.442695, %v13933_v36 }
0x1e1e   : > { %v13914_v7 = vpop.xlane.xlu0 %13913  ;;  %v13920_v12 = vpop.xlane.xlu1 %13919 }
0x1e1f   : > { %26623 = vpow2.f32 %v13944_v19  ;;  %v13932_v59 = vsub.f32 %v13900_v3, %v13914_v7  ;;  %v13934_v16 = vsub.f32 %v13902_v11, %v13920_v12 }
0x1e21   : > { %v13942_v31 = vmul.f32 1.442695, %v13932_v59  ;;  %v13946_v32 = vmul.f32 1.442695, %v13934_v16 }
0x1e22   : > { %v13923_v30 = vpop.xlane.xlu0 %13922  ;;  %v13995_v60 = vpop.permute.xlu1 %13994 }
0x1e23   : > { %26625 = vpow2.f32 %v13942_v31  ;;  %v13935_v28 = vsub.f32 %v13903_v26, %v13923_v30  ;;  %25606 = vmatpush3.msra.mxu1 %v13995_v60 }
0x1e24   : > { %v29314_v25 = vpop.eup %26619  ;;  %25615 = vmatprep.subr.mxu1 %v26943_v14  ;;  %26627 = vpow2.f32 %v13946_v32 }
0x1e25   : > { %v29317_v35 = vpop.eup %26621  ;;  %v13948_v50 = vmul.f32 1.442695, %v13935_v28  ;;  %v13957_v42 = vsel %vm12597_vm5, %v29314_v25, 0.0 }
0x1e26   : > { %13958 = vadd.xlane.f32.xlu0 %v13957_v42  ;;  %v13929_v17 = vpop.xlane.xlu0 %13928  ;;  %v13954_v29 = vsel %vm12597_vm5, %v29317_v35, 0.0  ;;  %v14147_v0 = vpop.permute.xlu1 %14146 }
0x1e27   : > { %26629 = vpow2.f32 %v13948_v50  ;;  %v13937_v21 = vsub.f32 %v13905_v53, %v13929_v17  ;;  %13955 = vadd.xlane.f32.xlu1 %v13954_v29 }
0x1e29   : > { %v29323_v1 = vpop.eup %26623  ;;  %v13952_v39 = vmul.f32 1.442695, %v13937_v21 }
0x1e2a   : > { %v14071_v23 = vpop.permute.xlu0 %14070  ;;  %v13963_v3 = vsel %vm12597_vm5, %v29323_v1, 0.0  ;;  %v14223_v40 = vpop.permute.xlu1 %14222 }
0x1e2b   : > { %26631 = vpow2.f32 %v13952_v39  ;;  %13964 = vadd.xlane.f32.xlu0 %v13963_v3  ;;  %25611 = vmatpush3.msra.mxu0 %v14071_v23 }
0x1e2c   : > { %25620 = vmatprep.subr.mxu0 %v26943_v14 }
0x1e2d   : > { %v29328_v37 = vpop.eup %26625 }
0x1e2e   : > { %v13960_v41 = vsel %vm12597_vm5, %v29328_v37, 0.0  ;;  %v29332_v10 = vpop.eup %26627  ;;  %v14375_v9 = vpop.permute.xlu1 %14374 }
0x1e2f   : > { %13961 = vadd.xlane.f32.xlu1 %v13960_v41  ;;  %v13966_v26 = vsel %vm12597_vm5, %v29332_v10, 0.0  ;;  %v14299_v58 = vpop.permute.xlu0 %14298 }
0x1e31   : > { %v29334_v11 = vpop.eup %26629 }
0x1e32   : > { %v13969_v20 = vsel %vm12597_vm5, %v29334_v11, 0.0  ;;  %v14527_v45 = vpop.permute.xlu1 %14526 }
0x1e33   : > { %13970 = vadd.xlane.f32.xlu0 %v13969_v20  ;;  %13967 = vadd.xlane.f32.xlu1 %v13966_v26  ;;  %v14451_v27 = vpop.permute.xlu0 %14450 }
0x1e35   : > { %v29340_v57 = vpop.eup %26631 }
0x1e36   : > { %v13975_v46 = vsel %vm12597_vm5, %v29340_v57, 0.0 }
0x1e37   : > { %13976 = vadd.xlane.f32.xlu0 %v13975_v46  ;;  %v29363_v13 = vpop.permute.xlu0 %14644 }
0x1e44   : > { %14794 = vrot.lane.b32.xlu1 %v29058_v18, %s31043_s18 }
0x1e4d   : > { %14642 = vrot.lane.b32.xlu0 %v29042_v43, %s31043_s18 }
0x1e51   : > { %14868 = vrot.lane.b32.xlu0 %v29056_v24, %s31043_s18 }
0x1e55   : > { %15016 = vrot.lane.b32.xlu0 %v29065_v5, %s31043_s18 }
0x1e59   : > { %15164 = vrot.lane.b32.xlu0 %v29092_v6, %s31043_s18 }
0x1e63   : > { %v13926_v53 = vpop.xlane.xlu1 %13925 }
0x1e64   : > { %v13936_v49 = vsub.f32 %v29308_v51, %v13926_v53 }
0x1e66   : > { %v13950_v33 = vmul.f32 1.442695, %v13936_v49 }
0x1e67   : > { %v14721_v61 = vpop.permute.xlu1 %14720 }
0x1e68   : > { %26633 = vpow2.f32 %v13950_v33 }
0x1e72   : > { %v29355_v48 = vpop.eup %26633 }
0x1e73   : > { %v13972_v43 = vsel %vm12597_vm5, %v29355_v48, 0.0 }
0x1e74   : > { %13973 = vadd.xlane.f32.xlu1 %v13972_v43 }
0x1e85   : > { %14942 = vrot.lane.b32.xlu1 %v29068_v2, %s31043_s18 }
0x1e89   : > { %15090 = vrot.lane.b32.xlu1 %v29094_v62, %s31043_s18 }
0x1eb3   : > { %v13959_v51 = vpop.xlane.xlu0 %13958 }
0x1eb4   : > { %26635 = vrcp.f32 %v13959_v51  ;;  %v13956_v34 = vpop.xlane.xlu1 %13955 }
0x1eb5   : > { %26637 = vrcp.f32 %v13956_v34 }
0x1eb8   : > { %v13965_v38 = vpop.xlane.xlu0 %13964 }
0x1eb9   : > { %26639 = vrcp.f32 %v13965_v38 }
0x1ebc   : > { %v13962_v52 = vpop.xlane.xlu1 %13961 }
0x1ebd   : > { %26641 = vrcp.f32 %v13962_v52 }
0x1ebe   : > { %v26636_v36 = vpop.eup %26635 }
0x1ebf   : > { %v26638_v19 = vpop.eup %26637  ;;  %v13987_v7 = vmul.f32 %v26636_v36, %v29314_v25 }
0x1ec0   : > { %v13971_v12 = vpop.xlane.xlu0 %13970  ;;  %v13968_v59 = vpop.xlane.xlu1 %13967  ;;  %v13986_v16 = vmul.f32 %v26638_v19, %v29317_v35 }
0x1ec1   : > { %26643 = vrcp.f32 %v13971_v12  ;;  %25613 = vmatmul.mubr.msk.f32.vlgmr.msra.gmra.mrb[172].mxu0 %vm473_vm2, %v13987_v7 }
0x1ec2   : > { %26645 = vrcp.f32 %v13968_v59  ;;  %25621 = vmatpush3.msra.mxu0 %v14223_v40  ;;  %25608 = vmatmul.mubr.msk.f32.vlgmr.msra.gmra.mrb[172].mxu1 %vm473_vm2, %v13986_v16 }
0x1ec3   : > { %v26640_v31 = vpop.eup %26639  ;;  %25616 = vmatpush3.msra.mxu1 %v14147_v0  ;;  %25622 = vmatprep.mubr.msk.f32.mxu0 %vm26944_vm1, %v26943_v14 }
0x1ec4   : > { %v13977_v32 = vpop.xlane.xlu0 %13976  ;;  %25630 = vmatprep.subr.mxu0 %v26943_v14  ;;  %v13989_v30 = vmul.f32 %v26640_v31, %v29323_v1  ;;  %25617 = vmatprep.mubr.msk.f32.mxu1 %vm26944_vm1, %v26943_v14  ;;  %v14795_v3 = vpop.permute.xlu1 %14794 }
0x1ec5   : > { %26647 = vrcp.f32 %v13977_v32  ;;  %25625 = vmatprep.subr.mxu1 %v26943_v14 }
0x1ec6   : > { %25623 = vmatmul.mubr.msk.f32.vlgmr.msra.gmra.mrb[174].mxu0 %vm473_vm2, %v13989_v30 }
0x1ec7   : > { %v26642_v60 = vpop.eup %26641  ;;  %25631 = vmatpush3.msra.mxu0 %v14375_v9  ;;  %25632 = vmatprep.mubr.msk.f32.mxu0 %vm26944_vm1, %v26943_v14 }
0x1ec8   : > { %v13988_v28 = vmul.f32 %v26642_v60, %v29328_v37  ;;  %25640 = vmatprep.subr.mxu0 %v26943_v14  ;;  %v14643_v29 = vpop.permute.xlu0 %14642 }
0x1eca   : > { %25618 = vmatmul.mubr.msk.f32.vlgmr.msra.gmra.mrb[174].mxu1 %vm473_vm2, %v13988_v28 }
0x1ecb   : > { %v26644_v25 = vpop.eup %26643  ;;  %25626 = vmatpush3.msra.mxu1 %v14299_v58  ;;  %25627 = vmatprep.mubr.msk.f32.mxu1 %vm26944_vm1, %v26943_v14 }
0x1ecc   : > { %v26646_v35 = vpop.eup %26645  ;;  %25635 = vmatprep.subr.mxu1 %v26943_v14  ;;  %v13991_v50 = vmul.f32 %v26644_v25, %v29334_v11  ;;  %v14869_v1 = vpop.permute.xlu0 %14868 }
0x1ecd   : > { %v13990_v42 = vmul.f32 %v26646_v35, %v29332_v10 }
0x1ece   : > { %25633 = vmatmul.mubr.msk.f32.vlgmr.msra.gmra.mrb[176].mxu0 %vm473_vm2, %v13991_v50 }
0x1ecf   : > { %v26648_v17 = vpop.eup %26647  ;;  %25628 = vmatmul.mubr.msk.f32.vlgmr.msra.gmra.mrb[176].mxu1 %vm473_vm2, %v13990_v42  ;;  %25641 = vmatpush3.msra.mxu0 %v14527_v45 }
0x1ed0   : > { %25636 = vmatpush3.msra.mxu1 %v14451_v27  ;;  %25642 = vmatprep.mubr.msk.f32.mxu0 %vm26944_vm1, %v26943_v14  ;;  %v13993_v21 = vmul.f32 %v26648_v17, %v29340_v57  ;;  %v15017_v39 = vpop.permute.xlu0 %15016 }
0x1ed1   : > { %25650 = vmatprep.subr.mxu0 %v26943_v14  ;;  %25637 = vmatprep.mubr.msk.f32.mxu1 %vm26944_vm1, %v26943_v14 }
0x1ed2   : > { %25643 = vmatmul.mubr.msk.f32.vlgmr.msra.gmra.mrb[178].mxu0 %vm473_vm2, %v13993_v21  ;;  %25645 = vmatprep.subr.mxu1 %v26943_v14 }
0x1ed3   : > { %25652 = vmatprep.mubr.msk.f32.mxu0 %vm26944_vm1, %v26943_v14 }
0x1ed4   : > { %v15165_v23 = vpop.permute.xlu0 %15164 }
0x1ed6   : > { %25651 = vmatpush3.xpose.msk.msra.mxu0 %vm473_vm2, %v14721_v61 }
0x1ed7   : > { %25660 = vmatprep.subr.mxu0 %v26943_v14 }
0x1ed9   : > { %25653 = vmatmul.mubr.msk.f32.vlgmr.msra.gmra.mrb[180].mxu0 %vm473_vm2, %v14643_v29 }
0x1eda   : > { %25661 = vmatpush3.xpose.msk.msra.mxu0 %vm473_vm2, %v14869_v1  ;;  %25662 = vmatprep.mubr.msk.f32.mxu0 %vm26944_vm1, %v26943_v14 }
0x1edb   : > { %25670 = vmatprep.subr.mxu0 %v26943_v14 }
0x1edd   : > { %25663 = vmatmul.mubr.msk.f32.vlgmr.msra.gmra.mrb[182].mxu0 %vm473_vm2, %v14643_v29 }
0x1ede   : > { %25671 = vmatpush3.xpose.msk.msra.mxu0 %vm473_vm2, %v15017_v39  ;;  %25672 = vmatprep.mubr.msk.f32.mxu0 %vm26944_vm1, %v26943_v14 }
0x1edf   : > { %25680 = vmatprep.subr.mxu0 %v26943_v14 }
0x1ee1   : > { %25673 = vmatmul.mubr.msk.f32.vlgmr.msra.gmra.mrb[184].mxu0 %vm473_vm2, %v14643_v29 }
0x1ee2   : > { %25681 = vmatpush3.xpose.msk.msra.mxu0 %vm473_vm2, %v15165_v23  ;;  %25682 = vmatprep.mubr.msk.f32.mxu0 %vm26944_vm1, %v26943_v14 }
0x1ee3   : > { %25690 = vmatprep.subr.mxu0 %v26943_v14 }
0x1ee5   : > { %25683 = vmatmul.mubr.msk.f32.vlgmr.msra.gmra.mrb[186].mxu0 %vm473_vm2, %v14643_v29 }
0x1ee6   : > { %25692 = vmatprep.mubr.msk.f32.mxu0 %vm26944_vm1, %v26943_v14 }
0x1f01   : > { %v13974_v37 = vpop.xlane.xlu1 %13973 }
0x1f02   : > { %26649 = vrcp.f32 %v13974_v37 }
0x1f05   : > { %v14943_v11 = vpop.permute.xlu1 %14942 }
0x1f09   : > { %v15091_v20 = vpop.permute.xlu1 %15090 }
0x1f0c   : > { %v26650_v41 = vpop.eup %26649 }
0x1f0d   : > { %v13992_v10 = vmul.f32 %v26650_v41, %v29355_v48 }
0x1f0f   : > { %25638 = vmatmul.mubr.msk.f32.vlgmr.msra.gmra.mrb[178].mxu1 %vm473_vm2, %v13992_v10 }
0x1f10   : > { %25646 = vmatpush3.xpose.msk.msra.mxu1 %vm473_vm2, %v29363_v13  ;;  %25647 = vmatprep.mubr.msk.f32.mxu1 %vm26944_vm1, %v26943_v14 }
0x1f11   : > { %25655 = vmatprep.subr.mxu1 %v26943_v14 }
0x1f13   : > { %25648 = vmatmul.mubr.msk.f32.vlgmr.msra.gmra.mrb[180].mxu1 %vm473_vm2, %v14643_v29 }
0x1f14   : > { %25656 = vmatpush3.xpose.msk.msra.mxu1 %vm473_vm2, %v14795_v3  ;;  %25657 = vmatprep.mubr.msk.f32.mxu1 %vm26944_vm1, %v26943_v14 }
0x1f15   : > { %25665 = vmatprep.subr.mxu1 %v26943_v14 }
0x1f17   : > { %25658 = vmatmul.mubr.msk.f32.vlgmr.msra.gmra.mrb[182].mxu1 %vm473_vm2, %v14643_v29 }
0x1f18   : > { %25666 = vmatpush3.xpose.msk.msra.mxu1 %vm473_vm2, %v14943_v11  ;;  %25667 = vmatprep.mubr.msk.f32.mxu1 %vm26944_vm1, %v26943_v14 }
0x1f19   : > { %25675 = vmatprep.subr.mxu1 %v26943_v14 }
0x1f1b   : > { %25668 = vmatmul.mubr.msk.f32.vlgmr.msra.gmra.mrb[184].mxu1 %vm473_vm2, %v14643_v29 }
0x1f1c   : > { %25676 = vmatpush3.xpose.msk.msra.mxu1 %vm473_vm2, %v15091_v20  ;;  %25677 = vmatprep.mubr.msk.f32.mxu1 %vm26944_vm1, %v26943_v14 }
0x1f1d   : > { %25685 = vmatprep.subr.mxu1 %v26943_v14 }
0x1f1f   : > { %25678 = vmatmul.mubr.msk.f32.vlgmr.msra.gmra.mrb[186].mxu1 %vm473_vm2, %v14643_v29 }
0x1f20   : > { %25687 = vmatprep.mubr.msk.f32.mxu1 %vm26944_vm1, %v26943_v14 }
0x1f94   : > { %v29444_v26 = vpop.f32.mrb[172].mxu0 }
0x1f95   : > { %v29446_v57 = vpop.f32.mrb[172].mxu1  ;;  %v25614_v46 = vpop.f32.mrb[173].mxu0 }
0x1f96   : > { %v25609_v0 = vpop.f32.mrb[173].mxu1 }
0x1f99   : > { %v29448_v40 = vpop.f32.mrb[174].mxu0 }
0x1f9a   : > { %v25624_v9 = vpop.f32.mrb[175].mxu0 }
0x1f9d   : > { %v29450_v45 = vpop.f32.mrb[174].mxu1 }
0x1f9e   : > { %v25619_v53 = vpop.f32.mrb[175].mxu1 }
0x1fa1   : > { %v29452_v49 = vpop.f32.mrb[176].mxu0 }
0x1fa2   : > { %v29454_v33 = vpop.f32.mrb[176].mxu1  ;;  %v25634_v48 = vpop.f32.mrb[177].mxu0 }
0x1fa3   : > { %v25629_v43 = vpop.f32.mrb[177].mxu1 }
0x1fa5   : > { %v29456_v58 = vpop.f32.mrb[178].mxu0 }
0x1fa6   : > { %v25644_v27 = vpop.f32.mrb[179].mxu0 }
0x1fac   : > { %v14790_v13 = vpop.f32.mrb[180].mxu0 }
0x1fad   : > { %v15239_v61 = vmul.f32 0.17677669, %v14790_v13  ;;  %v25654_v51 = vpop.f32.mrb[181].mxu0 }
0x1faf   : > { %v15249_v34 = vsel %vm12597_vm5, %v15239_v61, -inf }
0x1fb0   : > { %15250 = vmax.xlane.f32.xlu0 %v15249_v34  ;;  %v14938_v38 = vpop.f32.mrb[182].mxu0 }
0x1fb1   : > { %v25664_v52 = vpop.f32.mrb[183].mxu0  ;;  %v15241_v60 = vmul.f32 0.17677669, %v14938_v38 }
0x1fb3   : > { %v15255_v17 = vsel %vm12597_vm5, %v15241_v60, -inf }
0x1fb4   : > { %v15086_v36 = vpop.f32.mrb[184].mxu0 }
0x1fb5   : > { %v25674_v19 = vpop.f32.mrb[185].mxu0  ;;  %v15243_v42 = vmul.f32 0.17677669, %v15086_v36 }
0x1fb7   : > { %v15261_v3 = vsel %vm12597_vm5, %v15243_v42, -inf }
0x1fb8   : > { %v15234_v7 = vpop.f32.mrb[186].mxu0 }
0x1fb9   : > { %v25684_v12 = vpop.f32.mrb[187].mxu0  ;;  %v15245_v23 = vmul.f32 0.17677669, %v15234_v7 }
0x1fbb   : > { %v15267_v20 = vsel %vm12597_vm5, %v15245_v23, -inf }
0x1fe2   : > { %v29459_v59 = vpop.f32.mrb[178].mxu1 }
0x1fe3   : > { %v25639_v16 = vpop.f32.mrb[179].mxu1 }
0x1fe6   : > { %v14716_v31 = vpop.f32.mrb[180].mxu1 }
0x1fe7   : > { %v15238_v32 = vmul.f32 0.17677669, %v14716_v31  ;;  %v25649_v30 = vpop.f32.mrb[181].mxu1 }
0x1fe9   : > { %v15246_v28 = vsel %vm12597_vm5, %v15238_v32, -inf }
0x1fea   : > { %15247 = vmax.xlane.f32.xlu1 %v15246_v28  ;;  %v14864_v25 = vpop.f32.mrb[182].mxu1 }
0x1feb   : > { %v15240_v35 = vmul.f32 0.17677669, %v14864_v25  ;;  %v25659_v50 = vpop.f32.mrb[183].mxu1 }
0x1fed   : > { %v15252_v29 = vsel %vm12597_vm5, %v15240_v35, -inf }
0x1fee   : > { %15256 = vmax.xlane.f32.xlu1 %v15255_v17  ;;  %15253 = vmax.xlane.f32.xlu0 %v15252_v29  ;;  %v15012_v21 = vpop.f32.mrb[184].mxu1 }
0x1fef   : > { %v15242_v1 = vmul.f32 0.17677669, %v15012_v21  ;;  %v25669_v39 = vpop.f32.mrb[185].mxu1 }
0x1ff1   : > { %v15258_v37 = vsel %vm12597_vm5, %v15242_v1, -inf }
0x1ff2   : > { %15262 = vmax.xlane.f32.xlu1 %v15261_v3  ;;  %15259 = vmax.xlane.f32.xlu0 %v15258_v37  ;;  %v15160_v41 = vpop.f32.mrb[186].mxu1 }
0x1ff3   : > { %v15244_v10 = vmul.f32 0.17677669, %v15160_v41  ;;  %v25679_v11 = vpop.f32.mrb[187].mxu1 }
0x1ff5   : > { %v15264_v46 = vsel %vm12597_vm5, %v15244_v10, -inf }
0x1ff6   : > { %15268 = vmax.xlane.f32.xlu1 %v15267_v20  ;;  %15265 = vmax.xlane.f32.xlu0 %v15264_v46 }
0x2007   : > { %15410 = vrot.lane.b32.xlu1 %v29033_v47, %s31042_s13 }
0x200b   : > { %15486 = vrot.lane.b32.xlu1 %v29058_v18, %s31042_s13 }
0x200c   : > { %15334 = vrot.lane.b32.xlu0 %v29035_v4, %s31042_s13 }
0x200f   : > { %15638 = vrot.lane.b32.xlu1 %v29068_v2, %s31042_s13 }
0x2010   : > { %15562 = vrot.lane.b32.xlu0 %v29056_v24, %s31042_s13 }
0x2013   : > { %15790 = vrot.lane.b32.xlu1 %v29094_v62, %s31042_s13 }
0x2014   : > { %15714 = vrot.lane.b32.xlu0 %v29065_v5, %s31042_s13 }
0x2017   : > { %15984 = vrot.lane.b32.xlu1 %v29035_v4, %s31046_s23 }
0x2018   : > { %15866 = vrot.lane.b32.xlu0 %v29092_v6, %s31042_s13 }
0x203d   : > { %v15251_v0 = vpop.xlane.xlu0 %15250 }
0x203e   : > { %v15271_v9 = vsub.f32 %v15239_v61, %v15251_v0 }
0x2040   : > { %v15280_v53 = vmul.f32 1.442695, %v15271_v9 }
0x2042   : > { %26651 = vpow2.f32 %v15280_v53 }
0x204c   : > { %v29486_v48 = vpop.eup %26651 }
0x204d   : > { %v15297_v43 = vsel %vm12597_vm5, %v29486_v48, 0.0 }
0x204e   : > { %15298 = vadd.xlane.f32.xlu1 %v15297_v43  ;;  %v29523_v43 = vld [vmem:[%s31052_s1] sm:$0xf]  ;;  %s23635_s1 = sshll.u32 %s312_s25, 3 }
0x204f   : > { %s314_s11 = scalar_lea.vmem [#allocation5], %s23635_s1 }
0x2077   : > { %v15248_v27 = vpop.xlane.xlu1 %15247 }
0x2078   : > { %v15270_v13 = vsub.f32 %v15238_v32, %v15248_v27 }
0x207a   : > { %v15278_v51 = vmul.f32 1.442695, %v15270_v13 }
0x207b   : > { %v15257_v34 = vpop.xlane.xlu1 %15256  ;;  %v15254_v38 = vpop.xlane.xlu0 %15253 }
0x207c   : > { %26653 = vpow2.f32 %v15278_v51  ;;  %v15273_v52 = vsub.f32 %v15241_v60, %v15257_v34  ;;  %v15272_v36 = vsub.f32 %v15240_v35, %v15254_v38 }
0x207e   : > { %v15284_v19 = vmul.f32 1.442695, %v15273_v52  ;;  %v15282_v7 = vmul.f32 1.442695, %v15272_v36 }
0x207f   : > { %v15263_v12 = vpop.xlane.xlu1 %15262  ;;  %v15260_v61 = vpop.xlane.xlu0 %15259 }
0x2080   : > { %26655 = vpow2.f32 %v15284_v19  ;;  %v15275_v16 = vsub.f32 %v15243_v42, %v15263_v12  ;;  %v15274_v31 = vsub.f32 %v15242_v1, %v15260_v61 }
0x2081   : > { %26657 = vpow2.f32 %v15282_v7 }
0x2082   : > { %v15288_v30 = vmul.f32 1.442695, %v15275_v16  ;;  %v15286_v28 = vmul.f32 1.442695, %v15274_v31 }
0x2083   : > { %v15269_v25 = vpop.xlane.xlu1 %15268  ;;  %v15266_v50 = vpop.xlane.xlu0 %15265 }
0x2084   : > { %26659 = vpow2.f32 %v15288_v30  ;;  %v15277_v32 = vsub.f32 %v15245_v23, %v15269_v25  ;;  %v15276_v17 = vsub.f32 %v15244_v10, %v15266_v50 }
0x2085   : > { %26661 = vpow2.f32 %v15286_v28 }
0x2086   : > { %v29490_v29 = vpop.eup %26653  ;;  %v15292_v60 = vmul.f32 1.442695, %v15277_v32  ;;  %v15290_v35 = vmul.f32 1.442695, %v15276_v17 }
0x2087   : > { %v15411_v21 = vpop.permute.xlu1 %15410  ;;  %v15335_v39 = vpop.permute.xlu0 %15334  ;;  %v15294_v3 = vsel %vm12597_vm5, %v29490_v29, 0.0 }
0x2088   : > { %26663 = vpow2.f32 %v15292_v60  ;;  %25691 = vmatpush3.msra.mxu0 %v15411_v21  ;;  %15295 = vadd.xlane.f32.xlu0 %v15294_v3 }
0x2089   : > { %26665 = vpow2.f32 %v15290_v35  ;;  %25686 = vmatpush3.msra.mxu1 %v15335_v39  ;;  %25700 = vmatprep.subr.mxu0 %v26943_v14 }
0x208a   : > { %v29495_v42 = vpop.eup %26655  ;;  %25695 = vmatprep.subr.mxu1 %v26943_v14 }
0x208b   : > { %v29498_v1 = vpop.eup %26657  ;;  %v15303_v23 = vsel %vm12597_vm5, %v29495_v42, 0.0  ;;  %v15487_v27 = vpop.permute.xlu1 %15486 }
0x208c   : > { %15304 = vadd.xlane.f32.xlu1 %v15303_v23  ;;  %v15300_v37 = vsel %vm12597_vm5, %v29498_v1, 0.0  ;;  %v15563_v19 = vpop.permute.xlu0 %15562 }
0x208d   : > { %15301 = vadd.xlane.f32.xlu0 %v15300_v37 }
0x208e   : > { %v29504_v41 = vpop.eup %26659 }
0x208f   : > { %v29506_v10 = vpop.eup %26661  ;;  %v15309_v11 = vsel %vm12597_vm5, %v29504_v41, 0.0  ;;  %v15639_v13 = vpop.permute.xlu1 %15638 }
0x2090   : > { %15310 = vadd.xlane.f32.xlu1 %v15309_v11  ;;  %v15306_v20 = vsel %vm12597_vm5, %v29506_v10, 0.0  ;;  %v15715_v7 = vpop.permute.xlu0 %15714 }
0x2091   : > { %15307 = vadd.xlane.f32.xlu0 %v15306_v20 }
0x2092   : > { %v29512_v46 = vpop.eup %26663 }
0x2093   : > { %v29514_v0 = vpop.eup %26665  ;;  %v15315_v9 = vsel %vm12597_vm5, %v29512_v46, 0.0  ;;  %v15791_v51 = vpop.permute.xlu1 %15790 }
0x2094   : > { %15316 = vadd.xlane.f32.xlu1 %v15315_v9  ;;  %v15312_v53 = vsel %vm12597_vm5, %v29514_v0, 0.0  ;;  %v15867_v12 = vpop.permute.xlu0 %15866 }
0x2095   : > { %15313 = vadd.xlane.f32.xlu0 %v15312_v53 }
0x2097   : > { %v29541_v34 = vpop.permute.xlu1 %15984 }
0x20a5   : > { %15982 = vrot.lane.b32.xlu1 %v29523_v43, %s31046_s23 }
0x20a9   : > { %16208 = vrot.lane.b32.xlu1 %v29056_v24, %s31046_s23 }
0x20ab   : > { %16060 = vrot.lane.b32.xlu0 %v29033_v47, %s31046_s23 }
0x20ad   : > { %16356 = vrot.lane.b32.xlu1 %v29065_v5, %s31046_s23 }
0x20af   : > { %16134 = vrot.lane.b32.xlu0 %v29058_v18, %s31046_s23 }
0x20b1   : > { %16504 = vrot.lane.b32.xlu1 %v29092_v6, %s31046_s23 }
0x20b3   : > { %16282 = vrot.lane.b32.xlu0 %v29068_v2, %s31046_s23 }
0x20b7   : > { %16430 = vrot.lane.b32.xlu0 %v29094_v62, %s31046_s23 }
0x20db   : > { %v15299_v38 = vpop.xlane.xlu1 %15298 }
0x20dc   : > { %26667 = vrcp.f32 %v15299_v38 }
0x20e6   : > { %v26668_v52 = vpop.eup %26667 }
0x20e7   : > { %v15327_v36 = vmul.f32 %v26668_v52, %v29486_v48 }
0x20e9   : > { %25693 = vmatmul.mubr.msk.f32.vlgmr.msra.gmra.mrb[188].mxu0 %vm473_vm2, %v15327_v36 }
0x20ea   : > { %25701 = vmatpush3.msra.mxu0 %v15563_v19  ;;  %25702 = vmatprep.mubr.msk.f32.mxu0 %vm26944_vm1, %v26943_v14 }
0x20eb   : > { %25710 = vmatprep.subr.mxu0 %v26943_v14 }
0x2115   : > { %v15296_v61 = vpop.xlane.xlu0 %15295 }
0x2116   : > { %26669 = vrcp.f32 %v15296_v61 }
0x2119   : > { %v15305_v16 = vpop.xlane.xlu1 %15304 }
0x211a   : > { %26671 = vrcp.f32 %v15305_v16  ;;  %v15302_v31 = vpop.xlane.xlu0 %15301 }
0x211b   : > { %26673 = vrcp.f32 %v15302_v31 }
0x211d   : > { %v15311_v30 = vpop.xlane.xlu1 %15310 }
0x211e   : > { %26675 = vrcp.f32 %v15311_v30  ;;  %v15308_v48 = vpop.xlane.xlu0 %15307 }
0x211f   : > { %26677 = vrcp.f32 %v15308_v48 }
0x2120   : > { %v26670_v28 = vpop.eup %26669 }
0x2121   : > { %v15317_v25 = vpop.xlane.xlu1 %15316  ;;  %v15326_v50 = vmul.f32 %v26670_v28, %v29490_v29 }
0x2122   : > { %26679 = vrcp.f32 %v15317_v25  ;;  %v15314_v32 = vpop.xlane.xlu0 %15313 }
0x2123   : > { %26681 = vrcp.f32 %v15314_v32  ;;  %25688 = vmatmul.mubr.msk.f32.vlgmr.msra.gmra.mrb[188].mxu1 %vm473_vm2, %v15326_v50 }
0x2124   : > { %v26672_v17 = vpop.eup %26671  ;;  %25696 = vmatpush3.msra.mxu1 %v15487_v27  ;;  %25697 = vmatprep.mubr.msk.f32.mxu1 %vm26944_vm1, %v26943_v14 }
0x2125   : > { %v26674_v60 = vpop.eup %26673  ;;  %25705 = vmatprep.subr.mxu1 %v26943_v14  ;;  %v15329_v35 = vmul.f32 %v26672_v17, %v29495_v42  ;;  %v15983_v23 = vpop.permute.xlu1 %15982 }
0x2126   : > { %v15328_v21 = vmul.f32 %v26674_v60, %v29498_v1  ;;  %v16061_v11 = vpop.permute.xlu0 %16060 }
0x2127   : > { %25703 = vmatmul.mubr.msk.f32.vlgmr.msra.gmra.mrb[190].mxu0 %vm473_vm2, %v15329_v35 }
0x2128   : > { %v26676_v29 = vpop.eup %26675  ;;  %25698 = vmatmul.mubr.msk.f32.vlgmr.msra.gmra.mrb[190].mxu1 %vm473_vm2, %v15328_v21  ;;  %25711 = vmatpush3.msra.mxu0 %v15715_v7 }
0x2129   : > { %v26678_v39 = vpop.eup %26677  ;;  %25706 = vmatpush3.msra.mxu1 %v15639_v13  ;;  %25707 = vmatprep.mubr.msk.f32.mxu1 %vm26944_vm1, %v26943_v14  ;;  %v15331_v3 = vmul.f32 %v26676_v29, %v29504_v41  ;;  %v16209_v20 = vpop.permute.xlu1 %16208 }
0x212a   : > { %25712 = vmatprep.mubr.msk.f32.mxu0 %vm26944_vm1, %v26943_v14  ;;  %25715 = vmatprep.subr.mxu1 %v26943_v14  ;;  %v15330_v42 = vmul.f32 %v26678_v39, %v29506_v10 }
0x212b   : > { %25720 = vmatprep.subr.mxu0 %v26943_v14  ;;  %25713 = vmatmul.mubr.msk.f32.vlgmr.msra.gmra.mrb[192].mxu0 %vm473_vm2, %v15331_v3 }
0x212c   : > { %v26680_v1 = vpop.eup %26679  ;;  %25708 = vmatmul.mubr.msk.f32.vlgmr.msra.gmra.mrb[192].mxu1 %vm473_vm2, %v15330_v42  ;;  %25721 = vmatpush3.msra.mxu0 %v15867_v12 }
0x212d   : > { %v26682_v37 = vpop.eup %26681  ;;  %25716 = vmatpush3.msra.mxu1 %v15791_v51  ;;  %25717 = vmatprep.mubr.msk.f32.mxu1 %vm26944_vm1, %v26943_v14  ;;  %v15333_v41 = vmul.f32 %v26680_v1, %v29512_v46  ;;  %v16135_v46 = vpop.permute.xlu0 %16134 }
0x212e   : > { %25722 = vmatprep.mubr.msk.f32.mxu0 %vm26944_vm1, %v26943_v14  ;;  %v15332_v10 = vmul.f32 %v26682_v37, %v29514_v0  ;;  %25725 = vmatprep.subr.mxu1 %v26943_v14  ;;  %v16357_v0 = vpop.permute.xlu1 %16356 }
0x212f   : > { %25723 = vmatmul.mubr.msk.f32.vlgmr.msra.gmra.mrb[194].mxu0 %vm473_vm2, %v15333_v41  ;;  %25730 = vmatprep.subr.mxu0 %v26943_v14 }
0x2130   : > { %25718 = vmatmul.mubr.msk.f32.vlgmr.msra.gmra.mrb[194].mxu1 %vm473_vm2, %v15332_v10  ;;  %25732 = vmatprep.mubr.msk.f32.mxu0 %vm26944_vm1, %v26943_v14 }
0x2131   : > { %25727 = vmatprep.mubr.msk.f32.mxu1 %vm26944_vm1, %v26943_v14  ;;  %v16283_v9 = vpop.permute.xlu0 %16282 }
0x2132   : > { %v16505_v53 = vpop.permute.xlu1 %16504 }
0x2133   : > { %25731 = vmatpush3.xpose.msk.msra.mxu0 %vm473_vm2, %v16061_v11 }
0x2134   : > { %25726 = vmatpush3.xpose.msk.msra.mxu1 %vm473_vm2, %v29541_v34  ;;  %25740 = vmatprep.subr.mxu0 %v26943_v14 }
0x2135   : > { %25735 = vmatprep.subr.mxu1 %v26943_v14  ;;  %v16431_v27 = vpop.permute.xlu0 %16430 }
0x2136   : > { %25733 = vmatmul.mubr.msk.f32.vlgmr.msra.gmra.mrb[196].mxu0 %vm473_vm2, %v15983_v23 }
0x2137   : > { %25728 = vmatmul.mubr.msk.f32.vlgmr.msra.gmra.mrb[196].mxu1 %vm473_vm2, %v15983_v23  ;;  %25741 = vmatpush3.xpose.msk.msra.mxu0 %vm473_vm2, %v16209_v20 }
0x2138   : > { %25736 = vmatpush3.xpose.msk.msra.mxu1 %vm473_vm2, %v16135_v46  ;;  %25737 = vmatprep.mubr.msk.f32.mxu1 %vm26944_vm1, %v26943_v14 }
0x2139   : > { %25742 = vmatprep.mubr.msk.f32.mxu0 %vm26944_vm1, %v26943_v14  ;;  %25745 = vmatprep.subr.mxu1 %v26943_v14 }
0x213a   : > { %25743 = vmatmul.mubr.msk.f32.vlgmr.msra.gmra.mrb[198].mxu0 %vm473_vm2, %v15983_v23  ;;  %25750 = vmatprep.subr.mxu0 %v26943_v14 }
0x213b   : > { %25738 = vmatmul.mubr.msk.f32.vlgmr.msra.gmra.mrb[198].mxu1 %vm473_vm2, %v15983_v23  ;;  %25751 = vmatpush3.xpose.msk.msra.mxu0 %vm473_vm2, %v16357_v0 }
0x213c   : > { %25746 = vmatpush3.xpose.msk.msra.mxu1 %vm473_vm2, %v16283_v9  ;;  %25747 = vmatprep.mubr.msk.f32.mxu1 %vm26944_vm1, %v26943_v14 }
0x213d   : > { %25752 = vmatprep.mubr.msk.f32.mxu0 %vm26944_vm1, %v26943_v14  ;;  %25755 = vmatprep.subr.mxu1 %v26943_v14 }
0x213e   : > { %25753 = vmatmul.mubr.msk.f32.vlgmr.msra.gmra.mrb[200].mxu0 %vm473_vm2, %v15983_v23  ;;  %25760 = vmatprep.subr.mxu0 %v26943_v14 }
0x213f   : > { %25748 = vmatmul.mubr.msk.f32.vlgmr.msra.gmra.mrb[200].mxu1 %vm473_vm2, %v15983_v23  ;;  %25761 = vmatpush3.xpose.msk.msra.mxu0 %vm473_vm2, %v16505_v53 }
0x2140   : > { %25756 = vmatpush3.xpose.msk.msra.mxu1 %vm473_vm2, %v16431_v27  ;;  %25757 = vmatprep.mubr.msk.f32.mxu1 %vm26944_vm1, %v26943_v14 }
0x2141   : > { %25762 = vmatprep.mubr.msk.f32.mxu0 %vm26944_vm1, %v26943_v14  ;;  %25765 = vmatprep.subr.mxu1 %v26943_v14 }
0x2142   : > { %25763 = vmatmul.mubr.msk.f32.vlgmr.msra.gmra.mrb[202].mxu0 %vm473_vm2, %v15983_v23  ;;  %25770 = vmatprep.subr.mxu0 %v26943_v14 }
0x2143   : > { %25758 = vmatmul.mubr.msk.f32.vlgmr.msra.gmra.mrb[202].mxu1 %vm473_vm2, %v15983_v23  ;;  %25772 = vmatprep.mubr.msk.f32.mxu0 %vm26944_vm1, %v26943_v14 }
0x2144   : > { %25767 = vmatprep.mubr.msk.f32.mxu1 %vm26944_vm1, %v26943_v14 }
0x21bc   : > { %v29622_v13 = vpop.f32.mrb[188].mxu0 }
0x21bd   : > { %v25694_v51 = vpop.f32.mrb[189].mxu0 }
0x21f6   : > { %v29624_v34 = vpop.f32.mrb[188].mxu1 }
0x21f7   : > { %v25689_v38 = vpop.f32.mrb[189].mxu1 }
0x21fa   : > { %v29626_v52 = vpop.f32.mrb[190].mxu0 }
0x21fb   : > { %v29628_v36 = vpop.f32.mrb[190].mxu1  ;;  %v25704_v19 = vpop.f32.mrb[191].mxu0 }
0x21fc   : > { %v25699_v7 = vpop.f32.mrb[191].mxu1 }
0x21fe   : > { %v29630_v12 = vpop.f32.mrb[192].mxu0 }
0x21ff   : > { %v29632_v61 = vpop.f32.mrb[192].mxu1  ;;  %v25714_v16 = vpop.f32.mrb[193].mxu0 }
0x2200   : > { %v25709_v31 = vpop.f32.mrb[193].mxu1 }
0x2202   : > { %v29634_v30 = vpop.f32.mrb[194].mxu0 }
0x2203   : > { %v29636_v48 = vpop.f32.mrb[194].mxu1  ;;  %v25724_v28 = vpop.f32.mrb[195].mxu0 }
0x2204   : > { %v25719_v25 = vpop.f32.mrb[195].mxu1 }
0x2209   : > { %v16130_v50 = vpop.f32.mrb[196].mxu0 }
0x220a   : > { %v16056_v32 = vpop.f32.mrb[196].mxu1  ;;  %v16579_v17 = vmul.f32 0.17677669, %v16130_v50  ;;  %v25734_v60 = vpop.f32.mrb[197].mxu0 }
0x220b   : > { %v16578_v35 = vmul.f32 0.17677669, %v16056_v32  ;;  %v25729_v21 = vpop.f32.mrb[197].mxu1 }
0x220c   : > { %v16589_v29 = vsel %vm12597_vm5, %v16579_v17, -inf }
0x220d   : > { %16590 = vmax.xlane.f32.xlu1 %v16589_v29  ;;  %v16278_v39 = vpop.f32.mrb[198].mxu0  ;;  %v16586_v3 = vsel %vm12597_vm5, %v16578_v35, -inf }
0x220e   : > { %v16581_v42 = vmul.f32 0.17677669, %v16278_v39  ;;  %16587 = vmax.xlane.f32.xlu0 %v16586_v3  ;;  %v16204_v1 = vpop.f32.mrb[198].mxu1  ;;  %v25744_v23 = vpop.f32.mrb[199].mxu0 }
0x220f   : > { %v25739_v37 = vpop.f32.mrb[199].mxu1  ;;  %v16580_v41 = vmul.f32 0.17677669, %v16204_v1 }
0x2210   : > { %v16595_v11 = vsel %vm12597_vm5, %v16581_v42, -inf }
0x2211   : > { %v16426_v10 = vpop.f32.mrb[200].mxu0  ;;  %v16592_v51 = vsel %vm12597_vm5, %v16580_v41, -inf }
0x2212   : > { %16596 = vmax.xlane.f32.xlu0 %v16595_v11  ;;  %v16352_v20 = vpop.f32.mrb[200].mxu1  ;;  %v25754_v46 = vpop.f32.mrb[201].mxu0  ;;  %v16583_v53 = vmul.f32 0.17677669, %v16426_v10 }
0x2213   : > { %v16582_v0 = vmul.f32 0.17677669, %v16352_v20  ;;  %v25749_v9 = vpop.f32.mrb[201].mxu1 }
0x2214   : > { %v16601_v25 = vsel %vm12597_vm5, %v16583_v53, -inf }
0x2215   : > { %v16574_v27 = vpop.f32.mrb[202].mxu0  ;;  %v16598_v38 = vsel %vm12597_vm5, %v16582_v0, -inf }
0x2216   : > { %16593 = vmax.xlane.f32.xlu0 %v16592_v51  ;;  %16599 = vmax.xlane.f32.xlu1 %v16598_v38  ;;  %v16500_v19 = vpop.f32.mrb[202].mxu1  ;;  %v25764_v7 = vpop.f32.mrb[203].mxu0  ;;  %v16585_v28 = vmul.f32 0.17677669, %v16574_v27 }
0x2217   : > { %v16584_v16 = vmul.f32 0.17677669, %v16500_v19  ;;  %v25759_v31 = vpop.f32.mrb[203].mxu1 }
0x2218   : > { %v16607_v32 = vsel %vm12597_vm5, %v16585_v28, -inf }
0x2219   : > { %v16604_v50 = vsel %vm12597_vm5, %v16584_v16, -inf }
0x221a   : > { %16602 = vmax.xlane.f32.xlu0 %v16601_v25  ;;  %16605 = vmax.xlane.f32.xlu1 %v16604_v50 }
0x221e   : > { %16608 = vmax.xlane.f32.xlu0 %v16607_v32 }
0x222b   : > { %16674 = vrot.lane.b32.xlu1 %v29035_v4, %s31045_s22 }
0x222f   : > { %16826 = vrot.lane.b32.xlu1 %v29058_v18, %s31045_s22 }
0x2233   : > { %16902 = vrot.lane.b32.xlu1 %v29056_v24, %s31045_s22 }
0x2234   : > { %16750 = vrot.lane.b32.xlu0 %v29033_v47, %s31045_s22 }
0x2237   : > { %17054 = vrot.lane.b32.xlu1 %v29065_v5, %s31045_s22 }
0x2238   : > { %16978 = vrot.lane.b32.xlu0 %v29068_v2, %s31045_s22 }
0x229a   : > { %v16591_v60 = vpop.xlane.xlu1 %16590 }
0x229b   : > { %v16611_v21 = vsub.f32 %v16579_v17, %v16591_v60  ;;  %v16588_v29 = vpop.xlane.xlu0 %16587 }
0x229c   : > { %v16610_v39 = vsub.f32 %v16578_v35, %v16588_v29 }
0x229d   : > { %v16620_v4 = vmul.f32 1.442695, %v16611_v21 }
0x229e   : > { %v16618_v3 = vmul.f32 1.442695, %v16610_v39 }
0x229f   : > { %26683 = vpow2.f32 %v16620_v4  ;;  %v16597_v18 = vpop.xlane.xlu0 %16596 }
0x22a0   : > { %26685 = vpow2.f32 %v16618_v3  ;;  %v16613_v1 = vsub.f32 %v16581_v42, %v16597_v18 }
0x22a2   : > { %v16624_v24 = vmul.f32 1.442695, %v16613_v1 }
0x22a3   : > { %v16594_v23 = vpop.xlane.xlu0 %16593  ;;  %v16600_v37 = vpop.xlane.xlu1 %16599 }
0x22a4   : > { %26687 = vpow2.f32 %v16624_v24  ;;  %v16612_v47 = vsub.f32 %v16580_v41, %v16594_v23  ;;  %v16614_v11 = vsub.f32 %v16582_v0, %v16600_v37 }
0x22a6   : > { %v16622_v5 = vmul.f32 1.442695, %v16612_v47  ;;  %v16626_v10 = vmul.f32 1.442695, %v16614_v11 }
0x22a7   : > { %v16603_v20 = vpop.xlane.xlu0 %16602  ;;  %v16606_v2 = vpop.xlane.xlu1 %16605 }
0x22a8   : > { %26689 = vpow2.f32 %v16622_v5  ;;  %v16615_v17 = vsub.f32 %v16583_v53, %v16603_v20  ;;  %v16616_v46 = vsub.f32 %v16584_v16, %v16606_v2 }
0x22a9   : > { %v29658_v35 = vpop.eup %26683  ;;  %26691 = vpow2.f32 %v16626_v10 }
0x22aa   : > { %v29660_v9 = vpop.eup %26685  ;;  %v16628_v27 = vmul.f32 1.442695, %v16615_v17  ;;  %v16630_v42 = vmul.f32 1.442695, %v16616_v46  ;;  %v16637_v51 = vsel %vm12597_vm5, %v29658_v35, 0.0  ;;  %v17347_v46 = vld [vmem:[#allocation2 + $0x40] sm:$0xff] }
0x22ab   : > { %v16609_v38 = vpop.xlane.xlu0 %16608  ;;  %v16675_v41 = vpop.permute.xlu1 %16674  ;;  %16638 = vadd.xlane.f32.xlu0 %v16637_v51  ;;  %v16634_v0 = vsel %vm12597_vm5, %v29660_v9, 0.0 }
0x22ac   : > { %26693 = vpow2.f32 %v16628_v27  ;;  %v16617_v19 = vsub.f32 %v16585_v28, %v16609_v38  ;;  %16635 = vadd.xlane.f32.xlu1 %v16634_v0  ;;  %25766 = vmatpush3.msra.mxu1 %v16675_v41  ;;  %v17349_v27 = vld [vmem:[#allocation2 + $0x50] sm:$0xff] }
0x22ad   : > { %25775 = vmatprep.subr.mxu1 %v26943_v14  ;;  %26695 = vpow2.f32 %v16630_v42  ;;  %v17350_v42 = vld [vmem:[#allocation2 + $0x58] sm:$0xff] }
0x22ae   : > { %v29667_v53 = vpop.eup %26687  ;;  %v16632_v7 = vmul.f32 1.442695, %v16617_v19  ;;  %v26225_v51 = vpack.c.bf16 %v17350_v42, %v17349_v27 }
0x22af   : > { %v16751_v16 = vpop.permute.xlu0 %16750  ;;  %v16643_v31 = vsel %vm12597_vm5, %v29667_v53, 0.0 }
0x22b0   : > { %26697 = vpow2.f32 %v16632_v7  ;;  %16644 = vadd.xlane.f32.xlu0 %v16643_v31  ;;  %25771 = vmatpush3.msra.mxu0 %v16751_v16 }
0x22b1   : > { %25780 = vmatprep.subr.mxu0 %v26943_v14 }
0x22b2   : > { %v29672_v25 = vpop.eup %26689 }
0x22b3   : > { %v16640_v28 = vsel %vm12597_vm5, %v29672_v25, 0.0  ;;  %v29676_v50 = vpop.eup %26691 }
0x22b4   : > { %16641 = vadd.xlane.f32.xlu1 %v16640_v28  ;;  %v16646_v21 = vsel %vm12597_vm5, %v29676_v50, 0.0 }
0x22b6   : > { %v29678_v32 = vpop.eup %26693 }
0x22b7   : > { %v16649_v60 = vsel %vm12597_vm5, %v29678_v32, 0.0  ;;  %v29684_v29 = vpop.eup %26695 }
0x22b8   : > { %16650 = vadd.xlane.f32.xlu0 %v16649_v60  ;;  %16647 = vadd.xlane.f32.xlu1 %v16646_v21  ;;  %v16652_v3 = vsel %vm12597_vm5, %v29684_v29, 0.0 }
0x22ba   : > { %v29686_v39 = vpop.eup %26697 }
0x22bb   : > { %v16655_v4 = vsel %vm12597_vm5, %v29686_v39, 0.0 }
0x22bc   : > { %16656 = vadd.xlane.f32.xlu0 %v16655_v4  ;;  %16653 = vadd.xlane.f32.xlu1 %v16652_v3 }
0x22cd   : > { %17206 = vrot.lane.b32.xlu1 %v29092_v6, %s31045_s22  ;;  %v16827_v6 = vpop.permute.xlu1 %16826 }
0x22d1   : > { %14612 = vrot.lane.b32.xlu1 %v29444_v26, %s31048_s17  ;;  %v16979_v26 = vpop.permute.xlu0 %16978 }
0x22d2   : > { %17130 = vrot.lane.b32.xlu0 %v29094_v62, %s31045_s22  ;;  %v16903_v62 = vpop.permute.xlu1 %16902 }
0x22d5   : > { %14616 = vrot.lane.b32.xlu1 %v29448_v40, %s31048_s17 }
0x22d6   : > { %14610 = vrot.lane.b32.xlu0 %v29446_v57, %s31048_s17  ;;  %v17055_v57 = vpop.permute.xlu1 %17054 }
0x22d9   : > { %15952 = vrot.lane.b32.xlu1 %v29622_v13, %s31049_s12 }
0x22da   : > { %14614 = vrot.lane.b32.xlu0 %v29450_v45, %s31048_s17 }
0x22dd   : > { %15956 = vrot.lane.b32.xlu1 %v29626_v52, %s31049_s12 }
0x22de   : > { %15950 = vrot.lane.b32.xlu0 %v29624_v34, %s31049_s12 }
0x22e1   : > { %14620 = vrot.lane.b32.xlu1 %v29452_v49, %s31048_s17 }
0x22e2   : > { %15954 = vrot.lane.b32.xlu0 %v29628_v36, %s31049_s12 }
0x22e5   : > { %14624 = vrot.lane.b32.xlu1 %v29456_v58, %s31048_s17 }
0x22e6   : > { %14618 = vrot.lane.b32.xlu0 %v29454_v33, %s31048_s17 }
0x22e9   : > { %15960 = vrot.lane.b32.xlu1 %v29630_v12, %s31049_s12 }
0x22ea   : > { %14622 = vrot.lane.b32.xlu0 %v29459_v59, %s31048_s17 }
0x22ed   : > { %15964 = vrot.lane.b32.xlu1 %v29634_v30, %s31049_s12 }
0x22ee   : > { %15958 = vrot.lane.b32.xlu0 %v29632_v61, %s31049_s12 }
0x22f2   : > { %15962 = vrot.lane.b32.xlu0 %v29636_v48, %s31049_s12 }
0x2338   : > { %v16639_v40 = vpop.xlane.xlu0 %16638 }
0x2339   : > { %26699 = vrcp.f32 %v16639_v40  ;;  %v16636_v45 = vpop.xlane.xlu1 %16635 }
0x233a   : > { %26701 = vrcp.f32 %v16636_v45 }
0x233d   : > { %v16645_v49 = vpop.xlane.xlu0 %16644 }
0x233e   : > { %26703 = vrcp.f32 %v16645_v49 }
0x2341   : > { %v16642_v33 = vpop.xlane.xlu1 %16641 }
0x2342   : > { %26705 = vrcp.f32 %v16642_v33 }
0x2343   : > { %v26700_v58 = vpop.eup %26699 }
0x2344   : > { %v26702_v59 = vpop.eup %26701  ;;  %v16667_v13 = vmul.f32 %v26700_v58, %v29658_v35  ;;  %v17348_v35 = vld [vmem:[#allocation2 + $0x48] sm:$0xff] }
0x2345   : > { %v16651_v34 = vpop.xlane.xlu0 %16650  ;;  %v16648_v52 = vpop.xlane.xlu1 %16647  ;;  %v16666_v36 = vmul.f32 %v26702_v59, %v29660_v9  ;;  %v26221_v9 = vpack.c.bf16 %v17348_v35, %v17347_v46 }
0x2346   : > { %26707 = vrcp.f32 %v16651_v34  ;;  %25773 = vmatmul.mubr.msk.f32.vlgmr.msra.gmra.mrb[204].mxu0 %vm473_vm2, %v16667_v13 }
0x2347   : > { %26709 = vrcp.f32 %v16648_v52  ;;  %25768 = vmatmul.mubr.msk.f32.vlgmr.msra.gmra.mrb[204].mxu1 %vm473_vm2, %v16666_v36  ;;  %25781 = vmatpush3.msra.mxu0 %v16903_v62 }
0x2348   : > { %v26704_v12 = vpop.eup %26703  ;;  %25776 = vmatpush3.msra.mxu1 %v16827_v6  ;;  %25782 = vmatprep.mubr.msk.f32.mxu0 %vm26944_vm1, %v26943_v14 }
0x2349   : > { %v16657_v61 = vpop.xlane.xlu0 %16656  ;;  %v16654_v30 = vpop.xlane.xlu1 %16653  ;;  %25790 = vmatprep.subr.mxu0 %v26943_v14  ;;  %v16669_v48 = vmul.f32 %v26704_v12, %v29667_v53  ;;  %25777 = vmatprep.mubr.msk.f32.mxu1 %vm26944_vm1, %v26943_v14 }
0x234a   : > { %26711 = vrcp.f32 %v16657_v61  ;;  %25785 = vmatprep.subr.mxu1 %v26943_v14 }
0x234b   : > { %26713 = vrcp.f32 %v16654_v30  ;;  %25783 = vmatmul.mubr.msk.f32.vlgmr.msra.gmra.mrb[206].mxu0 %vm473_vm2, %v16669_v48  ;;  %v13295_v48 = vadd.f32 %v29523_v43, %v29267_v22 }
0x234c   : > { %v26706_v18 = vpop.eup %26705  ;;  %25791 = vmatpush3.msra.mxu0 %v17055_v57  ;;  %25792 = vmatprep.mubr.msk.f32.mxu0 %vm26944_vm1, %v26943_v14 }
0x234d   : > { %v16668_v1 = vmul.f32 %v26706_v18, %v29672_v25  ;;  %25800 = vmatprep.subr.mxu0 %v26943_v14  ;;  %v17207_v11 = vpop.permute.xlu1 %17206  ;;  %v17131_v10 = vpop.permute.xlu0 %17130 }
0x234f   : > { %25778 = vmatmul.mubr.msk.f32.vlgmr.msra.gmra.mrb[206].mxu1 %vm473_vm2, %v16668_v1  ;;  %v13294_v1 = vadd.f32 %v29523_v43, %v29269_v15 }
0x2350   : > { %v26708_v24 = vpop.eup %26707  ;;  %25786 = vmatpush3.msra.mxu1 %v16979_v26  ;;  %25787 = vmatprep.mubr.msk.f32.mxu1 %vm26944_vm1, %v26943_v14 }
0x2351   : > { %v26710_v23 = vpop.eup %26709  ;;  %25795 = vmatprep.subr.mxu1 %v26943_v14  ;;  %v16671_v37 = vmul.f32 %v26708_v24, %v29678_v32  ;;  %v14613_v4 = vpop.permute.xlu1 %14612 }
0x2352   : > { %v16670_v47 = vmul.f32 %v26710_v23, %v29676_v50  ;;  %v14611_v3 = vpop.permute.xlu0 %14610  ;;  %v14635_v36 = vadd.f32 %v29523_v43, %v14613_v4 }
0x2353   : > { %25793 = vmatmul.mubr.msk.f32.vlgmr.msra.gmra.mrb[208].mxu0 %vm473_vm2, %v16671_v37  ;;  %v14634_v61 = vadd.f32 %v29523_v43, %v14611_v3 }
0x2354   : > { %v26712_v5 = vpop.eup %26711  ;;  %25788 = vmatmul.mubr.msk.f32.vlgmr.msra.gmra.mrb[208].mxu1 %vm473_vm2, %v16670_v47  ;;  %25801 = vmatpush3.msra.mxu0 %v17207_v11  ;;  %v17323_v23 = vsel %vm473_vm2, %v13295_v48, %v14635_v36 }
0x2355   : > { %v26714_v20 = vpop.eup %26713  ;;  %25796 = vmatpush3.msra.mxu1 %v17131_v10  ;;  %25797 = vmatprep.mubr.msk.f32.mxu1 %vm26944_vm1, %v26943_v14  ;;  %v16673_v2 = vmul.f32 %v26712_v5, %v29686_v39  ;;  %v14617_v6 = vpop.permute.xlu1 %14616  ;;  %v17322_v11 = vsel %vm473_vm2, %v13294_v1, %v14634_v61 }
0x2356   : > { %25802 = vmatprep.mubr.msk.f32.mxu0 %vm26944_vm1, %v26943_v14  ;;  %v16672_v17 = vmul.f32 %v26714_v20, %v29684_v29  ;;  %26222 = vmatprep.subr.bf16.mxu1 %v26221_v9  ;;  %v14615_v62 = vpop.permute.xlu0 %14614  ;;  %v14637_v35 = vadd.f32 %v29523_v43, %v14617_v6 }
0x2357   : > { %25803 = vmatmul.mubr.msk.f32.vlgmr.msra.gmra.mrb[210].mxu0 %vm473_vm2, %v16673_v2  ;;  %v14636_v15 = vadd.f32 %v29523_v43, %v14615_v62 }
0x2358   : > { %25798 = vmatmul.mubr.msk.f32.vlgmr.msra.gmra.mrb[210].mxu1 %vm473_vm2, %v16672_v17 }
0x2359   : > { %26224 = vmatpush3.bf16.msra.mxu1 %v26221_v9  ;;  %v15953_v26 = vpop.permute.xlu1 %15952  ;;  %v13296_v9 = vadd.f32 %v29523_v43, %v29273_v44 }
0x235a   : > { %26226 = vmatprep.subr.bf16.mxu1 %v26225_v51  ;;  %v15951_v57 = vpop.permute.xlu0 %15950  ;;  %v15975_v30 = vadd.f32 %v29523_v43, %v15953_v26 }
0x235b   : > { %v15974_v18 = vadd.f32 %v29523_v43, %v15951_v57 }
0x235c   : > { %v17331_v5 = vsel %vm5911_vm3, %v17323_v23, %v15975_v30 }
0x235d   : > { %26228 = vmatpush3.bf16.msra.mxu1 %v26225_v51  ;;  %v15957_v40 = vpop.permute.xlu1 %15956  ;;  %v17330_v20 = vsel %vm5911_vm3, %v17322_v11, %v15974_v18  ;;  %v13297_v51 = vadd.f32 %v29523_v43, %v29271_v56 }
0x235e   : > { %25833 = vmatprep.subr.mxu1 %v26943_v14  ;;  %v15955_v45 = vpop.permute.xlu0 %15954  ;;  %v15977_v42 = vadd.f32 %v29523_v43, %v15957_v40  ;;  %v13301_v40 = vadd.f32 %v29523_v43, %v29279_v55 }
0x235f   : > { %v15976_v27 = vadd.f32 %v29523_v43, %v15955_v45 }
0x2361   : > { %v14621_v49 = vpop.permute.xlu1 %14620 }
0x2362   : > { %v14619_v33 = vpop.permute.xlu0 %14618  ;;  %v14639_v44 = vadd.f32 %v29523_v43, %v14621_v49 }
0x2365   : > { %v14625_v58 = vpop.permute.xlu1 %14624 }
0x2366   : > { %v14623_v59 = vpop.permute.xlu0 %14622  ;;  %v14641_v4 = vadd.f32 %v29523_v43, %v14625_v58  ;;  %v13300_v58 = vadd.f32 %v29523_v43, %v29281_v8 }
0x2367   : > { %v14640_v62 = vadd.f32 %v29523_v43, %v14623_v59 }
0x2369   : > { %v15961_v13 = vpop.permute.xlu1 %15960  ;;  %v17328_v55 = vsel %vm473_vm2, %v13300_v58, %v14640_v62 }
0x236a   : > { %v15959_v34 = vpop.permute.xlu0 %15958 }
0x236d   : > { %v15965_v52 = vpop.permute.xlu1 %15964 }
0x236e   : > { %v15963_v12 = vpop.permute.xlu0 %15962  ;;  %v15981_v26 = vadd.f32 %v29523_v43, %v15965_v52 }
0x236f   : > { %v15980_v49 = vadd.f32 %v29523_v43, %v15963_v12 }
0x2371   : > { %v17336_v48 = vsel %vm5911_vm3, %v17328_v55, %v15980_v49 }
0x2419   : > { %v16822_v38 = vpop.f32.mrb[204].mxu0 }
0x241a   : > { %v16746_v41 = vpop.f32.mrb[204].mxu1  ;;  %v25774_v0 = vpop.f32.mrb[205].mxu0  ;;  %17292 = vrot.lane.b32.xlu1 %v16822_v38, %s31050_s10 }
0x241b   : > { %17290 = vrot.lane.b32.xlu0 %v16746_v41, %s31050_s10  ;;  %v25769_v19 = vpop.f32.mrb[205].mxu1  ;;  %v17324_v41 = vsel %vm473_vm2, %v13296_v9, %v14636_v15 }
0x241c   : > { %v17325_v19 = vsel %vm473_vm2, %v13297_v51, %v14637_v35 }
0x241d   : > { %v17333_v56 = vsel %vm5911_vm3, %v17325_v19, %v15977_v42 }
0x241e   : > { %v16974_v53 = vpop.f32.mrb[206].mxu0 }
0x241f   : > { %17296 = vrot.lane.b32.xlu1 %v16974_v53, %s31050_s10  ;;  %v25784_v7 = vpop.f32.mrb[207].mxu0  ;;  %v14638_v53 = vadd.f32 %v29523_v43, %v14619_v33 }
0x2422   : > { %v16898_v16 = vpop.f32.mrb[206].mxu1 }
0x2423   : > { %17294 = vrot.lane.b32.xlu0 %v16898_v16, %s31050_s10  ;;  %v25779_v31 = vpop.f32.mrb[207].mxu1  ;;  %v13299_v16 = vadd.f32 %v29523_v43, %v29275_v63 }
0x2424   : > { %v17332_v31 = vsel %vm5911_vm3, %v17324_v41, %v15976_v27 }
0x2425   : > { %v17327_v63 = vsel %vm473_vm2, %v13299_v16, %v14639_v44 }
0x2426   : > { %v17126_v25 = vpop.f32.mrb[208].mxu0 }
0x2427   : > { %v17050_v28 = vpop.f32.mrb[208].mxu1  ;;  %17300 = vrot.lane.b32.xlu1 %v17126_v25, %s31050_s10  ;;  %v25794_v50 = vpop.f32.mrb[209].mxu0  ;;  %v15979_v25 = vadd.f32 %v29523_v43, %v15961_v13 }
0x2428   : > { %17298 = vrot.lane.b32.xlu0 %v17050_v28, %s31050_s10  ;;  %v25789_v32 = vpop.f32.mrb[209].mxu1  ;;  %v13298_v28 = vadd.f32 %v29523_v43, %v29277_v54  ;;  %v15978_v50 = vadd.f32 %v29523_v43, %v15959_v34  ;;  %v17329_v34 = vsel %vm473_vm2, %v13301_v40, %v14641_v4 }
0x2429   : > { %v17335_v54 = vsel %vm5911_vm3, %v17327_v63, %v15979_v25  ;;  %v17337_v30 = vsel %vm5911_vm3, %v17329_v34, %v15981_v26 }
0x242a   : > { %v17278_v60 = vpop.f32.mrb[210].mxu0 }
0x242b   : > { %v17202_v21 = vpop.f32.mrb[210].mxu1  ;;  %17304 = vrot.lane.b32.xlu1 %v17278_v60, %s31050_s10  ;;  %v25804_v29 = vpop.f32.mrb[211].mxu0 }
0x242c   : > { %17302 = vrot.lane.b32.xlu0 %v17202_v21, %s31050_s10  ;;  %v25799_v39 = vpop.f32.mrb[211].mxu1 }
0x242d   : > { %v17326_v39 = vsel %vm473_vm2, %v13298_v28, %v14638_v53 }
0x242e   : > { %v17334_v45 = vsel %vm5911_vm3, %v17326_v39, %v15978_v50 }
0x248c   : > { %v17293_v24 = vpop.permute.xlu1 %17292 }
0x248d   : > { %v17315_v37 = vadd.f32 %v29523_v43, %v17293_v24  ;;  %v17291_v47 = vpop.permute.xlu0 %17290  ;;  %v23988_v24 = vld [vmem:[%s30984_s2 + $0x60] sm:$0xff] }
0x248e   : > { %v17314_v10 = vadd.f32 %v29523_v43, %v17291_v47  ;;  %v23991_v47 = vld [vmem:[%s30984_s2 + $0x78] sm:$0xff] }
0x248f   : > { %v29784_v22 = vsel %vm5920_vm4, %v17331_v5, %v17315_v37  ;;  %v23990_v37 = vld [vmem:[%s30984_s2 + $0x70] sm:$0xff]  ;;  %v23983_v5 = vld [vmem:[%s30987_s5 + $0x2] ss:$0 sm:$0xff] }
0x2490   : > { %v29787_v2 = vsel %vm5920_vm4, %v17330_v20, %v17314_v10  ;;  %v26233_v11 = vpack.c.bf16 %v23991_v47, %v23990_v37 }
0x2491   : > { %v17367_v17 = vcombine.low %v29787_v2, %v29784_v22  ;;  %v17297_v46 = vpop.permute.xlu1 %17296 }
0x2492   : > { %v17317_v38 = vadd.f32 %v29523_v43, %v17297_v46 }
0x2493   : > { %25813 = vmatprep.mubr.msk.f32.mxu1 %vm340_vm0, %v17367_v17 }
0x2494   : > { %v17341_v32 = vsel %vm5920_vm4, %v17333_v56, %v17317_v38 }
0x2495   : > { %v17295_v0 = vpop.permute.xlu0 %17294 }
0x2496   : > { %v17316_v7 = vadd.f32 %v29523_v43, %v17295_v0 }
0x2498   : > { %v17340_v60 = vsel %vm5920_vm4, %v17332_v31, %v17316_v7 }
0x2499   : > { %v17368_v21 = vcombine.low %v17340_v60, %v17341_v32  ;;  %v17301_v29 = vpop.permute.xlu1 %17300 }
0x249a   : > { %v17319_v3 = vadd.f32 %v29523_v43, %v17301_v29  ;;  %v17299_v6 = vpop.permute.xlu0 %17298  ;;  %v23993_v29 = vld [vmem:[%s30985_s3 + $0x3] ss:$0 sm:$0xff] }
0x249b   : > { %v17318_v57 = vadd.f32 %v29523_v43, %v17299_v6  ;;  %25814 = vmatmul.mubr.msk.f32.vlgmr.msra.gmra.mrb[212].mxu1 %vm340_vm0, %v17368_v21 }
0x249c   : > { %v17343_v33 = vsel %vm5920_vm4, %v17335_v54, %v17319_v3 }
0x249d   : > { %v17342_v59 = vsel %vm5920_vm4, %v17334_v45, %v17318_v57  ;;  %v17305_v13 = vpop.permute.xlu1 %17304 }
0x249e   : > { %v17369_v52 = vcombine.low %v17342_v59, %v17343_v33  ;;  %v17321_v36 = vadd.f32 %v29523_v43, %v17305_v13  ;;  %v17303_v61 = vpop.permute.xlu0 %17302 }
0x249f   : > { %v17320_v12 = vadd.f32 %v29523_v43, %v17303_v61  ;;  %v23989_v43 = vld [vmem:[%s30984_s2 + $0x68] sm:$0xff] }
0x24a0   : > { %v17345_v18 = vsel %vm5920_vm4, %v17337_v30, %v17321_v36  ;;  %25816 = vmatprep.mubr.msk.f32.mxu1 %vm340_vm0, %v17369_v52  ;;  %v26229_v23 = vpack.c.bf16 %v23989_v43, %v23988_v24 }
0x24a1   : > { %v17344_v8 = vsel %vm5920_vm4, %v17336_v48, %v17320_v12 }
0x24a2   : > { %v17370_v1 = vcombine.low %v17344_v8, %v17345_v18  ;;  %26230 = vmatprep.subr.bf16.mxu0 %v26229_v23 }
0x24a3   : > { %26232 = vmatpush3.bf16.msra.mxu0 %v26229_v23 }
0x24a4   : > { %25817 = vmatmul.mubr.msk.f32.gmra.mrb[214].mxu1 %vm340_vm0, %v17370_v1  ;;  %26234 = vmatprep.subr.bf16.mxu0 %v26233_v11 }
0x24a5   : > { %25835 = vmatprep.mubr.msk.f32.mxu1 %vm26944_vm1, %v26943_v14 }
0x24a7   : > { %26236 = vmatpush3.bf16.msra.mxu0 %v26233_v11 }
0x24a8   : > { %25838 = vmatprep.subr.mxu0 %v26943_v14 }
0x256e   : > { %v25815_v10 = vpop.f32.mrb[212].mxu1 }
0x256f   : > { %v17451_v20 = vadd.f32 %v25815_v10, %v23983_v5  ;;  %v17445_v15 = vpop.f32.mrb[213].mxu1 }
0x2570   : > { %v17446_v17 = vadd.f32 %v23983_v5, %v17445_v15 }
0x2571   : > { %v17465_v46 = vmax.f32 %v17451_v20, 0.0 }
0x2572   : > { %v17464_v35 = vmax.f32 %v17446_v17, 0.0 }
0x2573   : > { %v17473_v9 = vcombine.high %v17465_v46, %v17465_v46  ;;  %v17482_v41 = vadd.f32 %v17465_v46, %v17340_v60 }
0x2574   : > { %v17472_v27 = vcombine.high %v17464_v35, %v17464_v35  ;;  %v17480_v51 = vadd.f32 %v17464_v35, %v29787_v2 }
0x2575   : > { %v17483_v42 = vadd.f32 %v17473_v9, %v17341_v32 }
0x2576   : > { %v17481_v38 = vadd.f32 %v17472_v27, %v29784_v22 }
0x2577   : > { %v25818_v0 = vpop.f32.mrb[214].mxu1  ;;  %v17510_v7 = vcombine.low %v17482_v41, %v17483_v42 }
0x2578   : > { %v17509_v19 = vcombine.low %v17480_v51, %v17481_v38  ;;  %v17461_v53 = vadd.f32 %v25818_v0, %v23983_v5  ;;  %v17455_v44 = vpop.f32.mrb[215].mxu1 }
0x2579   : > { %v17456_v16 = vadd.f32 %v23983_v5, %v17455_v44 }
0x257a   : > { %v17467_v31 = vmax.f32 %v17461_v53, 0.0  ;;  %25827 = vmatprep.mubr.msk.f32.mxu0 %vm340_vm0, %v17509_v19 }
0x257b   : > { %v17466_v56 = vmax.f32 %v17456_v16, 0.0  ;;  %25828 = vmatmul.mubr.msk.f32.vlgmr.msra.gmra.mrb[212].mxu0 %vm340_vm0, %v17510_v7 }
0x257c   : > { %v17475_v25 = vcombine.high %v17467_v31, %v17467_v31  ;;  %v17486_v21 = vadd.f32 %v17467_v31, %v17344_v8 }
0x257d   : > { %v17474_v28 = vcombine.high %v17466_v56, %v17466_v56  ;;  %v17484_v32 = vadd.f32 %v17466_v56, %v17342_v59 }
0x257e   : > { %v17487_v50 = vadd.f32 %v17475_v25, %v17345_v18 }
0x257f   : > { %v17485_v2 = vadd.f32 %v17474_v28, %v17343_v33 }
0x2580   : > { %v17512_v60 = vcombine.low %v17486_v21, %v17487_v50 }
0x2581   : > { %v17511_v22 = vcombine.low %v17484_v32, %v17485_v2 }
0x2583   : > { %25830 = vmatprep.mubr.msk.f32.mxu0 %vm340_vm0, %v17511_v22 }
0x2584   : > { %25831 = vmatmul.mubr.msk.f32.gmra.mrb[214].mxu0 %vm340_vm0, %v17512_v60 }
0x2585   : > { %25840 = vmatprep.mubr.msk.f32.mxu0 %vm26944_vm1, %v26943_v14 }
0x264e   : > { %v25829_v39 = vpop.f32.mrb[212].mxu0 }
0x264f   : > { %v17587_v63 = vpop.f32.mrb[213].mxu0  ;;  %v29874_v3 = vadd.f32 %v25829_v39, %v23993_v29 }
0x2650   : > { %v29872_v4 = vadd.f32 %v23993_v29, %v17587_v63 }
0x2651   : > { %v29888_v62 = vcombine.high %v29874_v3, %v29874_v3 }
0x2652   : > { %17618 = vrot.lane.b32.xlu0 %v29872_v4, %s31051_s20  ;;  %v29880_v6 = vcombine.high %v29872_v4, %v29872_v4 }
0x2654   : > { %17694 = vrot.lane.b32.xlu1 %v29880_v6, %s31051_s20 }
0x2656   : > { %17770 = vrot.lane.b32.xlu0 %v29874_v3, %s31051_s20 }
0x2657   : > { %v25832_v54 = vpop.f32.mrb[214].mxu0 }
0x2658   : > { %v17597_v26 = vpop.f32.mrb[215].mxu0  ;;  %17846 = vrot.lane.b32.xlu1 %v29888_v62, %s31051_s20  ;;  %v29894_v40 = vadd.f32 %v25832_v54, %v23993_v29 }
0x2659   : > { %v29892_v57 = vadd.f32 %v23993_v29, %v17597_v26 }
0x265a   : > { %v29908_v49 = vcombine.high %v29894_v40, %v29894_v40 }
0x265b   : > { %17922 = vrot.lane.b32.xlu0 %v29892_v57, %s31051_s20  ;;  %v29900_v45 = vcombine.high %v29892_v57, %v29892_v57 }
0x265d   : > { %17998 = vrot.lane.b32.xlu1 %v29900_v45, %s31051_s20 }
0x265f   : > { %18074 = vrot.lane.b32.xlu0 %v29894_v40, %s31051_s20 }
0x2661   : > { %18150 = vrot.lane.b32.xlu1 %v29908_v49, %s31051_s20  ;;  %s31056_s20 = smov 56  }
0x26c4   : > { %v17619_v33 = vpop.permute.xlu0 %17618 }
0x26c5   : > { %25834 = vmatpush3.xpose.msk.msra.mxu1 %vm473_vm2, %v17619_v33 }
0x26c6   : > { %v17695_v58 = vpop.permute.xlu1 %17694  ;;  %25843 = vmatprep.subr.mxu1 %v26943_v14 }
0x26c7   : > { %25839 = vmatpush3.xpose.msk.msra.mxu0 %vm473_vm2, %v17695_v58 }
0x26c8   : > { %25836 = vmatmul.mubr.msk.f32.vlgmr.msra.gmra.mrb[216].mxu1 %vm473_vm2, %v29872_v4  ;;  %v17771_v59 = vpop.permute.xlu0 %17770  ;;  %25848 = vmatprep.subr.mxu0 %v26943_v14 }
0x26c9   : > { %25844 = vmatpush3.xpose.msk.msra.mxu1 %vm473_vm2, %v17771_v59  ;;  %25845 = vmatprep.mubr.msk.f32.mxu1 %vm26944_vm1, %v26943_v14 }
0x26ca   : > { %25841 = vmatmul.mubr.msk.f32.vlgmr.msra.gmra.mrb[216].mxu0 %vm473_vm2, %v29880_v6  ;;  %v17847_v13 = vpop.permute.xlu1 %17846  ;;  %25853 = vmatprep.subr.mxu1 %v26943_v14 }
0x26cb   : > { %25849 = vmatpush3.xpose.msk.msra.mxu0 %vm473_vm2, %v17847_v13  ;;  %25850 = vmatprep.mubr.msk.f32.mxu0 %vm26944_vm1, %v26943_v14 }
0x26cc   : > { %25846 = vmatmul.mubr.msk.f32.vlgmr.msra.gmra.mrb[218].mxu1 %vm473_vm2, %v29874_v3  ;;  %25858 = vmatprep.subr.mxu0 %v26943_v14 }
0x26cd   : > { %v17923_v34 = vpop.permute.xlu0 %17922  ;;  %25855 = vmatprep.mubr.msk.f32.mxu1 %vm26944_vm1, %v26943_v14 }
0x26ce   : > { %25854 = vmatpush3.xpose.msk.msra.mxu1 %vm473_vm2, %v17923_v34  ;;  %25851 = vmatmul.mubr.msk.f32.vlgmr.msra.gmra.mrb[218].mxu0 %vm473_vm2, %v29888_v62 }
0x26cf   : > { %v17999_v52 = vpop.permute.xlu1 %17998  ;;  %25863 = vmatprep.subr.mxu1 %v26943_v14  ;;  %25860 = vmatprep.mubr.msk.f32.mxu0 %vm26944_vm1, %v26943_v14 }
0x26d0   : > { %25859 = vmatpush3.xpose.msk.msra.mxu0 %vm473_vm2, %v17999_v52 }
0x26d1   : > { %25856 = vmatmul.mubr.msk.f32.vlgmr.msra.gmra.mrb[220].mxu1 %vm473_vm2, %v29892_v57  ;;  %v18075_v36 = vpop.permute.xlu0 %18074  ;;  %25868 = vmatprep.subr.mxu0 %v26943_v14 }
0x26d2   : > { %25864 = vmatpush3.xpose.msk.msra.mxu1 %vm473_vm2, %v18075_v36  ;;  %25865 = vmatprep.mubr.msk.f32.mxu1 %vm26944_vm1, %v26943_v14 }
0x26d3   : > { %25861 = vmatmul.mubr.msk.f32.vlgmr.msra.gmra.mrb[220].mxu0 %vm473_vm2, %v29900_v45  ;;  %v18151_v61 = vpop.permute.xlu1 %18150  ;;  %25873 = vmatprep.subr.mxu1 %v26943_v14 }
0x26d4   : > { %25869 = vmatpush3.xpose.msk.msra.mxu0 %vm473_vm2, %v18151_v61  ;;  %25870 = vmatprep.mubr.msk.f32.mxu0 %vm26944_vm1, %v26943_v14 }
0x26d5   : > { %25866 = vmatmul.mubr.msk.f32.vlgmr.msra.gmra.mrb[222].mxu1 %vm473_vm2, %v29894_v40  ;;  %25878 = vmatprep.subr.mxu0 %v26943_v14 }
0x26d6   : > { %25875 = vmatprep.mubr.msk.f32.mxu1 %vm26944_vm1, %v26943_v14 }
0x26d7   : > { %25871 = vmatmul.mubr.msk.f32.vlgmr.msra.gmra.mrb[222].mxu0 %vm473_vm2, %v29908_v49 }
0x26d8   : > { %25880 = vmatprep.mubr.msk.f32.mxu0 %vm26944_vm1, %v26943_v14 }
0x279b   : > { %v17690_v55 = vpop.f32.mrb[216].mxu1 }
0x279c   : > { %v18226_v30 = vmul.f32 0.17677669, %v17690_v55  ;;  %v25837_v12 = vpop.f32.mrb[217].mxu1 }
0x279d   : > { %v17766_v48 = vpop.f32.mrb[216].mxu0 }
0x279e   : > { %v18227_v18 = vmul.f32 0.17677669, %v17766_v48  ;;  %v25842_v8 = vpop.f32.mrb[217].mxu0  ;;  %v18235_v1 = vsel %vm18234_vm6, %v18226_v30, -inf }
0x279f   : > { %18236 = vmax.xlane.f32.xlu0 %v18235_v1  ;;  %v17842_v24 = vpop.f32.mrb[218].mxu1 }
0x27a0   : > { %v18228_v43 = vmul.f32 0.17677669, %v17842_v24  ;;  %v25847_v23 = vpop.f32.mrb[219].mxu1  ;;  %v18238_v37 = vsel %vm18234_vm6, %v18227_v18, -inf }
0x27a1   : > { %18239 = vmax.xlane.f32.xlu1 %v18238_v37  ;;  %v17918_v47 = vpop.f32.mrb[218].mxu0 }
0x27a2   : > { %v18229_v11 = vmul.f32 0.17677669, %v17918_v47  ;;  %v25852_v5 = vpop.f32.mrb[219].mxu0  ;;  %v18241_v10 = vsel %vm18234_vm6, %v18228_v43, -inf }
0x27a3   : > { %18242 = vmax.xlane.f32.xlu0 %v18241_v10 }
0x27a4   : > { %v17994_v20 = vpop.f32.mrb[220].mxu1  ;;  %v18244_v35 = vsel %vm18234_vm6, %v18229_v11, -inf }
0x27a5   : > { %v18230_v15 = vmul.f32 0.17677669, %v17994_v20  ;;  %v25857_v17 = vpop.f32.mrb[221].mxu1 }
0x27a6   : > { %v18070_v46 = vpop.f32.mrb[220].mxu0 }
0x27a7   : > { %v18231_v9 = vmul.f32 0.17677669, %v18070_v46  ;;  %v25862_v27 = vpop.f32.mrb[221].mxu0  ;;  %v18247_v42 = vsel %vm18234_vm6, %v18230_v15, -inf  ;;  %18245 = vmax.xlane.f32.xlu0 %v18244_v35 }
0x27a8   : > { %v18146_v51 = vpop.f32.mrb[222].mxu1  ;;  %18248 = vmax.xlane.f32.xlu1 %v18247_v42 }
0x27a9   : > { %v18232_v38 = vmul.f32 0.17677669, %v18146_v51  ;;  %v25867_v41 = vpop.f32.mrb[223].mxu1  ;;  %v18250_v19 = vsel %vm18234_vm6, %v18231_v9, -inf }
0x27aa   : > { %v18222_v0 = vpop.f32.mrb[222].mxu0 }
0x27ab   : > { %v18233_v53 = vmul.f32 0.17677669, %v18222_v0  ;;  %v25872_v44 = vpop.f32.mrb[223].mxu0  ;;  %v18253_v7 = vsel %vm18234_vm6, %v18232_v38, -inf  ;;  %18251 = vmax.xlane.f32.xlu0 %v18250_v19 }
0x27ac   : > { %18254 = vmax.xlane.f32.xlu1 %v18253_v7 }
0x27ad   : > { %v18256_v16 = vsel %vm18234_vm6, %v18233_v53, -inf }
0x27af   : > { %18257 = vmax.xlane.f32.xlu0 %v18256_v16 }
0x27bd   : > { %18323 = vrot.lane.b32.xlu1 %v29872_v4, %s31055_s16 }
0x27c1   : > { %18479 = vrot.lane.b32.xlu1 %v29874_v3, %s31055_s16 }
0x27c5   : > { %18556 = vrot.lane.b32.xlu1 %v29888_v62, %s31055_s16  ;;  %18402 = vrot.lane.b32.xlu0 %v29880_v6, %s31055_s16 }
0x27c9   : > { %18710 = vrot.lane.b32.xlu1 %v29900_v45, %s31055_s16  ;;  %18633 = vrot.lane.b32.xlu0 %v29892_v57, %s31055_s16 }
0x27cd   : > { %18864 = vrot.lane.b32.xlu1 %v29908_v49, %s31055_s16  ;;  %18787 = vrot.lane.b32.xlu0 %v29894_v40, %s31055_s16 }
0x27d1   : > { %19029 = vrot.lane.b32.xlu1 %v29880_v6, %s31054_s0  ;;  %18951 = vrot.lane.b32.xlu0 %v29872_v4, %s31054_s0 }
0x27d5   : > { %19027 = vrot.lane.b32.xlu1 %v29880_v6, %s31053_s19  ;;  %18949 = vrot.lane.b32.xlu0 %v29872_v4, %s31053_s19 }
0x27d9   : > { %19185 = vrot.lane.b32.xlu1 %v29888_v62, %s31054_s0  ;;  %19107 = vrot.lane.b32.xlu0 %v29874_v3, %s31054_s0 }
0x282c   : > { %v18237_v31 = vpop.xlane.xlu0 %18236 }
0x282d   : > { %v18259_v56 = vsub.f32 %v18226_v30, %v18237_v31 }
0x282e   : > { %v18240_v25 = vpop.xlane.xlu1 %18239 }
0x282f   : > { %v18267_v28 = vmul.f32 1.442695, %v18259_v56  ;;  %v18260_v50 = vsub.f32 %v18227_v18, %v18240_v25 }
0x2830   : > { %v18243_v32 = vpop.xlane.xlu0 %18242 }
0x2831   : > { %26715 = vpow2.f32 %v18267_v28  ;;  %v18269_v2 = vmul.f32 1.442695, %v18260_v50  ;;  %v18261_v21 = vsub.f32 %v18228_v43, %v18243_v32 }
0x2833   : > { %26717 = vpow2.f32 %v18269_v2  ;;  %v18271_v22 = vmul.f32 1.442695, %v18261_v21 }
0x2834   : > { %v18246_v60 = vpop.xlane.xlu0 %18245 }
0x2835   : > { %26719 = vpow2.f32 %v18271_v22  ;;  %v18262_v29 = vsub.f32 %v18229_v11, %v18246_v60  ;;  %v18249_v39 = vpop.xlane.xlu1 %18248 }
0x2836   : > { %v18263_v63 = vsub.f32 %v18230_v15, %v18249_v39 }
0x2837   : > { %v18273_v54 = vmul.f32 1.442695, %v18262_v29 }
0x2838   : > { %v18275_v26 = vmul.f32 1.442695, %v18263_v63  ;;  %v18252_v33 = vpop.xlane.xlu0 %18251 }
0x2839   : > { %26721 = vpow2.f32 %v18273_v54  ;;  %v18264_v58 = vsub.f32 %v18231_v9, %v18252_v33  ;;  %v18255_v59 = vpop.xlane.xlu1 %18254 }
0x283a   : > { %26723 = vpow2.f32 %v18275_v26  ;;  %v18265_v13 = vsub.f32 %v18232_v38, %v18255_v59 }
0x283b   : > { %v29996_v34 = vpop.eup %26715  ;;  %v18277_v52 = vmul.f32 1.442695, %v18264_v58 }
0x283c   : > { %v18279_v36 = vmul.f32 1.442695, %v18265_v13  ;;  %v18258_v61 = vpop.xlane.xlu0 %18257  ;;  %v18283_v55 = vsel %vm18234_vm6, %v29996_v34, 0.0 }
0x283d   : > { %v30000_v30 = vpop.eup %26717  ;;  %26725 = vpow2.f32 %v18277_v52  ;;  %v18266_v12 = vsub.f32 %v18233_v53, %v18258_v61  ;;  %v18324_v48 = vpop.permute.xlu1 %18323  ;;  %18284 = vadd.xlane.f32.xlu1 %v18283_v55 }
0x283e   : > { %26727 = vpow2.f32 %v18279_v36  ;;  %25874 = vmatpush3.msk.msra.mxu1 %vm18329_vm7, %v18324_v48  ;;  %v18286_v18 = vsel %vm18234_vm6, %v30000_v30, 0.0 }
0x283f   : > { %v30005_v8 = vpop.eup %26719  ;;  %v18281_v1 = vmul.f32 1.442695, %v18266_v12  ;;  %18287 = vadd.xlane.f32.xlu0 %v18286_v18  ;;  %25883 = vmatprep.subr.mxu1 %v26943_v14 }
0x2840   : > { %v18403_v24 = vpop.permute.xlu0 %18402  ;;  %v18289_v43 = vsel %vm18234_vm6, %v30005_v8, 0.0 }
0x2841   : > { %26729 = vpow2.f32 %v18281_v1  ;;  %18290 = vadd.xlane.f32.xlu1 %v18289_v43  ;;  %25879 = vmatpush3.msk.msra.mxu0 %vm18329_vm7, %v18403_v24  ;;  %v18480_v35 = vpop.permute.xlu1 %18479 }
0x2842   : > { %25888 = vmatprep.subr.mxu0 %v26943_v14 }
0x2843   : > { %v30012_v23 = vpop.eup %26721 }
0x2844   : > { %v30014_v37 = vpop.eup %26723  ;;  %v18292_v47 = vsel %vm18234_vm6, %v30012_v23, 0.0  ;;  %v18634_v42 = vpop.permute.xlu0 %18633 }
0x2845   : > { %18293 = vadd.xlane.f32.xlu0 %v18292_v47  ;;  %v18295_v11 = vsel %vm18234_vm6, %v30014_v37, 0.0  ;;  %v18557_v9 = vpop.permute.xlu1 %18556 }
0x2846   : > { %18296 = vadd.xlane.f32.xlu1 %v18295_v11 }
0x2847   : > { %v30020_v5 = vpop.eup %26725 }
0x2848   : > { %v30022_v10 = vpop.eup %26727  ;;  %v18298_v20 = vsel %vm18234_vm6, %v30020_v5, 0.0  ;;  %v18788_v38 = vpop.permute.xlu0 %18787 }
0x2849   : > { %18299 = vadd.xlane.f32.xlu0 %v18298_v20  ;;  %v18301_v15 = vsel %vm18234_vm6, %v30022_v10, 0.0  ;;  %v18711_v27 = vpop.permute.xlu1 %18710 }
0x284a   : > { %18302 = vadd.xlane.f32.xlu1 %v18301_v15 }
0x284b   : > { %v30028_v17 = vpop.eup %26729 }
0x284c   : > { %v18304_v46 = vsel %vm18234_vm6, %v30028_v17, 0.0  ;;  %v30056_v0 = vpop.permute.xlu0 %18951 }
0x284d   : > { %18305 = vadd.xlane.f32.xlu0 %v18304_v46  ;;  %v30052_v51 = vpop.permute.xlu1 %18864 }
0x2850   : > { %v30060_v53 = vpop.permute.xlu0 %18949 }
0x2851   : > { %v30054_v41 = vpop.permute.xlu1 %19029 }
0x2854   : > { %v30064_v7 = vpop.permute.xlu0 %19107 }
0x2855   : > { %v30058_v19 = vpop.permute.xlu1 %19027 }
0x2859   : > { %v30062_v44 = vpop.permute.xlu1 %19185 }
0x285b   : > { %19183 = vrot.lane.b32.xlu1 %v29888_v62, %s31053_s19 }
0x285f   : > { %19341 = vrot.lane.b32.xlu1 %v29900_v45, %s31054_s0 }
0x2863   : > { %19339 = vrot.lane.b32.xlu1 %v29900_v45, %s31053_s19  ;;  %19105 = vrot.lane.b32.xlu0 %v29874_v3, %s31053_s19 }
0x2867   : > { %19497 = vrot.lane.b32.xlu1 %v29908_v49, %s31054_s0  ;;  %19263 = vrot.lane.b32.xlu0 %v29892_v57, %s31054_s0 }
0x286b   : > { %19495 = vrot.lane.b32.xlu1 %v29908_v49, %s31053_s19  ;;  %19261 = vrot.lane.b32.xlu0 %v29892_v57, %s31053_s19 }
0x286f   : > { %19419 = vrot.lane.b32.xlu0 %v29894_v40, %s31054_s0 }
0x2873   : > { %19417 = vrot.lane.b32.xlu0 %v29894_v40, %s31053_s19 }
0x28ca   : > { %v18285_v16 = vpop.xlane.xlu1 %18284 }
0x28cb   : > { %26731 = vrcp.f32 %v18285_v16 }
0x28cc   : > { %v18288_v31 = vpop.xlane.xlu0 %18287 }
0x28cd   : > { %26733 = vrcp.f32 %v18288_v31 }
0x28ce   : > { %v18291_v56 = vpop.xlane.xlu1 %18290 }
0x28cf   : > { %26735 = vrcp.f32 %v18291_v56 }
0x28d2   : > { %v18294_v25 = vpop.xlane.xlu0 %18293 }
0x28d3   : > { %26737 = vrcp.f32 %v18294_v25  ;;  %v18297_v28 = vpop.xlane.xlu1 %18296 }
0x28d4   : > { %26739 = vrcp.f32 %v18297_v28 }
0x28d5   : > { %v26732_v50 = vpop.eup %26731 }
0x28d6   : > { %v18300_v32 = vpop.xlane.xlu0 %18299  ;;  %v18315_v2 = vmul.f32 %v26732_v50, %v29996_v34 }
0x28d7   : > { %v26734_v21 = vpop.eup %26733  ;;  %26741 = vrcp.f32 %v18300_v32  ;;  %v18303_v22 = vpop.xlane.xlu1 %18302 }
0x28d8   : > { %26743 = vrcp.f32 %v18303_v22  ;;  %25876 = vmatmul.mubr.msk.f32.vlgmr.msra.gmra.mrb[224].mxu1 %vm18325_vm8, %v18315_v2  ;;  %v18316_v60 = vmul.f32 %v26734_v21, %v30000_v30 }
0x28d9   : > { %v26736_v29 = vpop.eup %26735  ;;  %25884 = vmatpush3.msk.msra.mxu1 %vm18329_vm7, %v18480_v35  ;;  %25885 = vmatprep.mubr.msk.f32.mxu1 %vm26944_vm1, %v26943_v14 }
0x28da   : > { %25881 = vmatmul.mubr.msk.f32.vlgmr.msra.gmra.mrb[224].mxu0 %vm18325_vm8, %v18316_v60  ;;  %v18306_v39 = vpop.xlane.xlu0 %18305  ;;  %25893 = vmatprep.subr.mxu1 %v26943_v14  ;;  %v18317_v63 = vmul.f32 %v26736_v29, %v30005_v8 }
0x28db   : > { %26745 = vrcp.f32 %v18306_v39  ;;  %25889 = vmatpush3.msk.msra.mxu0 %vm18329_vm7, %v18557_v9  ;;  %25890 = vmatprep.mubr.msk.f32.mxu0 %vm26944_vm1, %v26943_v14  ;;  %v19184_v52 = vpop.permute.xlu1 %19183 }
0x28dc   : > { %25886 = vmatmul.mubr.msk.f32.vlgmr.msra.gmra.mrb[226].mxu1 %vm18325_vm8, %v18317_v63  ;;  %25898 = vmatprep.subr.mxu0 %v26943_v14 }
0x28dd   : > { %v26738_v54 = vpop.eup %26737  ;;  %25894 = vmatpush3.msk.msra.mxu1 %vm18329_vm7, %v18634_v42  ;;  %25895 = vmatprep.mubr.msk.f32.mxu1 %vm26944_vm1, %v26943_v14 }
0x28de   : > { %v26740_v26 = vpop.eup %26739  ;;  %25903 = vmatprep.subr.mxu1 %v26943_v14  ;;  %v18318_v33 = vmul.f32 %v26738_v54, %v30012_v23  ;;  %v19106_v58 = vpop.permute.xlu0 %19105 }
0x28df   : > { %v18319_v59 = vmul.f32 %v26740_v26, %v30014_v37  ;;  %v19342_v48 = vpop.permute.xlu1 %19341 }
0x28e0   : > { %25891 = vmatmul.mubr.msk.f32.vlgmr.msra.gmra.mrb[226].mxu0 %vm18325_vm8, %v18318_v33 }
0x28e1   : > { %v26742_v13 = vpop.eup %26741  ;;  %25896 = vmatmul.mubr.msk.f32.vlgmr.msra.gmra.mrb[228].mxu1 %vm18325_vm8, %v18319_v59  ;;  %25899 = vmatpush3.msk.msra.mxu0 %vm18329_vm7, %v18711_v27 }
0x28e2   : > { %v26744_v34 = vpop.eup %26743  ;;  %25904 = vmatpush3.msk.msra.mxu1 %vm18329_vm7, %v18788_v38  ;;  %25900 = vmatprep.mubr.msk.f32.mxu0 %vm26944_vm1, %v26943_v14  ;;  %v18320_v36 = vmul.f32 %v26742_v13, %v30020_v5  ;;  %v19264_v30 = vpop.permute.xlu0 %19263 }
0x28e3   : > { %25905 = vmatprep.mubr.msk.f32.mxu1 %vm26944_vm1, %v26943_v14  ;;  %25908 = vmatprep.subr.mxu0 %v26943_v14  ;;  %v18321_v61 = vmul.f32 %v26744_v34, %v30022_v10  ;;  %v19340_v8 = vpop.permute.xlu1 %19339 }
0x28e4   : > { %25901 = vmatmul.mubr.msk.f32.vlgmr.msra.gmra.mrb[228].mxu0 %vm18325_vm8, %v18320_v36  ;;  %25913 = vmatprep.subr.mxu1 %v26943_v14 }
0x28e5   : > { %v26746_v55 = vpop.eup %26745  ;;  %25906 = vmatmul.mubr.msk.f32.vlgmr.msra.gmra.mrb[230].mxu1 %vm18325_vm8, %v18321_v61  ;;  %25909 = vmatpush3.msk.msra.mxu0 %vm18329_vm7, %v30052_v51 }
0x28e6   : > { %25910 = vmatprep.mubr.msk.f32.mxu0 %vm26944_vm1, %v26943_v14  ;;  %v18322_v12 = vmul.f32 %v26746_v55, %v30028_v17  ;;  %25915 = vmatprep.mubr.msk.f32.mxu1 %vm26944_vm1, %v26943_v14  ;;  %v19262_v18 = vpop.permute.xlu0 %19261 }
0x28e7   : > { %25918 = vmatprep.subr.mxu0 %v26943_v14  ;;  %v19498_v24 = vpop.permute.xlu1 %19497 }
0x28e8   : > { %25911 = vmatmul.mubr.msk.f32.vlgmr.msra.gmra.mrb[230].mxu0 %vm18325_vm8, %v18322_v12 }
0x28e9   : > { %25914 = vmatpush3.xpose.msk.msra.mxu1 %vm473_vm2, %v30056_v0  ;;  %25920 = vmatprep.mubr.msk.f32.mxu0 %vm26944_vm1, %v26943_v14 }
0x28ea   : > { %25923 = vmatprep.subr.mxu1 %v26943_v14  ;;  %v19420_v1 = vpop.permute.xlu0 %19419 }
0x28eb   : > { %v19496_v23 = vpop.permute.xlu1 %19495 }
0x28ec   : > { %25916 = vmatmul.mubr.msk.f32.vlgmr.msra.gmra.mrb[232].mxu1 %vm473_vm2, %v30060_v53  ;;  %25919 = vmatpush3.xpose.msk.msra.mxu0 %vm473_vm2, %v30054_v41 }
0x28ed   : > { %25924 = vmatpush3.xpose.msk.msra.mxu1 %vm473_vm2, %v30064_v7  ;;  %25925 = vmatprep.mubr.msk.f32.mxu1 %vm26944_vm1, %v26943_v14 }
0x28ee   : > { %25928 = vmatprep.subr.mxu0 %v26943_v14  ;;  %25933 = vmatprep.subr.mxu1 %v26943_v14  ;;  %v19418_v43 = vpop.permute.xlu0 %19417 }
0x28ef   : > { %25921 = vmatmul.mubr.msk.f32.vlgmr.msra.gmra.mrb[232].mxu0 %vm473_vm2, %v30058_v19 }
0x28f0   : > { %25926 = vmatmul.mubr.msk.f32.vlgmr.msra.gmra.mrb[234].mxu1 %vm473_vm2, %v19106_v58  ;;  %25929 = vmatpush3.xpose.msk.msra.mxu0 %vm473_vm2, %v30062_v44 }
0x28f1   : > { %25934 = vmatpush3.xpose.msk.msra.mxu1 %vm473_vm2, %v19264_v30  ;;  %25930 = vmatprep.mubr.msk.f32.mxu0 %vm26944_vm1, %v26943_v14 }
0x28f2   : > { %25935 = vmatprep.mubr.msk.f32.mxu1 %vm26944_vm1, %v26943_v14  ;;  %25938 = vmatprep.subr.mxu0 %v26943_v14 }
0x28f3   : > { %25931 = vmatmul.mubr.msk.f32.vlgmr.msra.gmra.mrb[234].mxu0 %vm473_vm2, %v19184_v52  ;;  %25943 = vmatprep.subr.mxu1 %v26943_v14 }
0x28f4   : > { %25936 = vmatmul.mubr.msk.f32.vlgmr.msra.gmra.mrb[236].mxu1 %vm473_vm2, %v19262_v18  ;;  %25939 = vmatpush3.xpose.msk.msra.mxu0 %vm473_vm2, %v19342_v48 }
0x28f5   : > { %25944 = vmatpush3.xpose.msk.msra.mxu1 %vm473_vm2, %v19420_v1  ;;  %25940 = vmatprep.mubr.msk.f32.mxu0 %vm26944_vm1, %v26943_v14 }
0x28f6   : > { %25945 = vmatprep.mubr.msk.f32.mxu1 %vm26944_vm1, %v26943_v14  ;;  %25948 = vmatprep.subr.mxu0 %v26943_v14 }
0x28f7   : > { %25941 = vmatmul.mubr.msk.f32.vlgmr.msra.gmra.mrb[236].mxu0 %vm473_vm2, %v19340_v8  ;;  %25953 = vmatprep.subr.mxu1 %v26943_v14 }
0x28f8   : > { %25946 = vmatmul.mubr.msk.f32.vlgmr.msra.gmra.mrb[238].mxu1 %vm473_vm2, %v19418_v43  ;;  %25949 = vmatpush3.xpose.msk.msra.mxu0 %vm473_vm2, %v19498_v24 }
0x28f9   : > { %25950 = vmatprep.mubr.msk.f32.mxu0 %vm26944_vm1, %v26943_v14  ;;  %25958 = vmatprep.subr.mxu0 %v26943_v14 }
0x28fa   : > { %25955 = vmatprep.mubr.msk.f32.mxu1 %vm26944_vm1, %v26943_v14 }
0x28fb   : > { %25951 = vmatmul.mubr.msk.f32.vlgmr.msra.gmra.mrb[238].mxu0 %vm473_vm2, %v19496_v23 }
0x28fc   : > { %25960 = vmatprep.mubr.msk.f32.mxu0 %vm26944_vm1, %v26943_v14 }
0x29ab   : > { %v30157_v37 = vpop.f32.mrb[224].mxu1 }
0x29ac   : > { %v25877_v47 = vpop.f32.mrb[225].mxu1 }
0x29ad   : > { %v30159_v11 = vpop.f32.mrb[224].mxu0 }
0x29ae   : > { %v25882_v5 = vpop.f32.mrb[225].mxu0 }
0x29af   : > { %v30161_v10 = vpop.f32.mrb[226].mxu1 }
0x29b0   : > { %v25887_v20 = vpop.f32.mrb[227].mxu1 }
0x29b3   : > { %v30163_v15 = vpop.f32.mrb[226].mxu0 }
0x29b4   : > { %v30165_v17 = vpop.f32.mrb[228].mxu1  ;;  %v25892_v46 = vpop.f32.mrb[227].mxu0 }
0x29b5   : > { %v25897_v35 = vpop.f32.mrb[229].mxu1 }
0x29b7   : > { %v30167_v9 = vpop.f32.mrb[228].mxu0 }
0x29b8   : > { %v30169_v27 = vpop.f32.mrb[230].mxu1  ;;  %v25902_v42 = vpop.f32.mrb[229].mxu0 }
0x29b9   : > { %v25907_v51 = vpop.f32.mrb[231].mxu1 }
0x29bb   : > { %v30171_v38 = vpop.f32.mrb[230].mxu0 }
0x29bc   : > { %v25912_v41 = vpop.f32.mrb[231].mxu0 }
0x29bf   : > { %v19023_v0 = vpop.f32.mrb[232].mxu1 }
0x29c0   : > { %v19573_v19 = vmul.f32 0.17677669, %v19023_v0  ;;  %v25917_v53 = vpop.f32.mrb[233].mxu1 }
0x29c2   : > { %v19101_v44 = vpop.f32.mrb[232].mxu0  ;;  %v19581_v7 = vsel %vm18234_vm6, %v19573_v19, -inf }
0x29c3   : > { %v19574_v16 = vmul.f32 0.17677669, %v19101_v44  ;;  %19582 = vmax.xlane.f32.xlu0 %v19581_v7  ;;  %v19179_v31 = vpop.f32.mrb[234].mxu1  ;;  %v25922_v56 = vpop.f32.mrb[233].mxu0 }
0x29c4   : > { %v19575_v25 = vmul.f32 0.17677669, %v19179_v31  ;;  %v25927_v28 = vpop.f32.mrb[235].mxu1 }
0x29c5   : > { %v19584_v50 = vsel %vm18234_vm6, %v19574_v16, -inf }
0x29c6   : > { %19585 = vmax.xlane.f32.xlu1 %v19584_v50  ;;  %v19587_v32 = vsel %vm18234_vm6, %v19575_v25, -inf  ;;  %v19257_v2 = vpop.f32.mrb[234].mxu0 }
0x29c7   : > { %19588 = vmax.xlane.f32.xlu0 %v19587_v32  ;;  %v19576_v21 = vmul.f32 0.17677669, %v19257_v2  ;;  %v19335_v22 = vpop.f32.mrb[236].mxu1  ;;  %v25932_v60 = vpop.f32.mrb[235].mxu0 }
0x29c8   : > { %v19577_v29 = vmul.f32 0.17677669, %v19335_v22  ;;  %v25937_v39 = vpop.f32.mrb[237].mxu1 }
0x29c9   : > { %v19590_v63 = vsel %vm18234_vm6, %v19576_v21, -inf }
0x29ca   : > { %v19593_v54 = vsel %vm18234_vm6, %v19577_v29, -inf  ;;  %v19413_v26 = vpop.f32.mrb[236].mxu0 }
0x29cb   : > { %19594 = vmax.xlane.f32.xlu1 %v19593_v54  ;;  %v19491_v33 = vpop.f32.mrb[238].mxu1  ;;  %19591 = vmax.xlane.f32.xlu0 %v19590_v63  ;;  %v19578_v58 = vmul.f32 0.17677669, %v19413_v26  ;;  %v25942_v59 = vpop.f32.mrb[237].mxu0 }
0x29cc   : > { %v19579_v13 = vmul.f32 0.17677669, %v19491_v33  ;;  %v25947_v34 = vpop.f32.mrb[239].mxu1 }
0x29cd   : > { %v19596_v52 = vsel %vm18234_vm6, %v19578_v58, -inf }
0x29ce   : > { %v19599_v36 = vsel %vm18234_vm6, %v19579_v13, -inf  ;;  %v19569_v61 = vpop.f32.mrb[238].mxu0 }
0x29cf   : > { %19600 = vmax.xlane.f32.xlu1 %v19599_v36  ;;  %19597 = vmax.xlane.f32.xlu0 %v19596_v52  ;;  %v19580_v55 = vmul.f32 0.17677669, %v19569_v61  ;;  %v25952_v30 = vpop.f32.mrb[239].mxu0 }
0x29d1   : > { %v19602_v12 = vsel %vm18234_vm6, %v19580_v55, -inf }
0x29d3   : > { %19603 = vmax.xlane.f32.xlu0 %v19602_v12 }
0x29e0   : > { %19669 = vrot.lane.b32.xlu1 %v29872_v4, %s31056_s20 }
0x29e4   : > { %19823 = vrot.lane.b32.xlu1 %v29874_v3, %s31056_s20 }
0x29e8   : > { %19900 = vrot.lane.b32.xlu1 %v29888_v62, %s31056_s20 }
0x29e9   : > { %19746 = vrot.lane.b32.xlu0 %v29880_v6, %s31056_s20 }
0x29ec   : > { %20054 = vrot.lane.b32.xlu1 %v29900_v45, %s31056_s20 }
0x29ed   : > { %19977 = vrot.lane.b32.xlu0 %v29892_v57, %s31056_s20 }
0x29f0   : > { %20208 = vrot.lane.b32.xlu1 %v29908_v49, %s31056_s20 }
0x29f1   : > { %20131 = vrot.lane.b32.xlu0 %v29894_v40, %s31056_s20 }
0x29f4   : > { %20405 = vrot.lane.b32.xlu1 %v29880_v6, %s31042_s13 }
0x29f5   : > { %20327 = vrot.lane.b32.xlu0 %v29872_v4, %s31042_s13 }
0x29f8   : > { %20403 = vrot.lane.b32.xlu1 %v29880_v6, %s31043_s18 }
0x29f9   : > { %20325 = vrot.lane.b32.xlu0 %v29872_v4, %s31043_s18 }
0x29fc   : > { %20561 = vrot.lane.b32.xlu1 %v29888_v62, %s31042_s13 }
0x29fd   : > { %20483 = vrot.lane.b32.xlu0 %v29874_v3, %s31042_s13 }
0x2a50   : > { %v19583_v48 = vpop.xlane.xlu0 %19582 }
0x2a51   : > { %v19605_v18 = vsub.f32 %v19573_v19, %v19583_v48 }
0x2a53   : > { %v19613_v8 = vmul.f32 1.442695, %v19605_v18  ;;  %v19586_v1 = vpop.xlane.xlu1 %19585 }
0x2a54   : > { %v19589_v24 = vpop.xlane.xlu0 %19588  ;;  %v19606_v43 = vsub.f32 %v19574_v16, %v19586_v1 }
0x2a55   : > { %26747 = vpow2.f32 %v19613_v8  ;;  %v19607_v23 = vsub.f32 %v19575_v25, %v19589_v24 }
0x2a56   : > { %v19615_v47 = vmul.f32 1.442695, %v19606_v43 }
0x2a57   : > { %v19617_v5 = vmul.f32 1.442695, %v19607_v23 }
0x2a58   : > { %26749 = vpow2.f32 %v19615_v47  ;;  %v19592_v20 = vpop.xlane.xlu0 %19591  ;;  %v19595_v46 = vpop.xlane.xlu1 %19594 }
0x2a59   : > { %26751 = vpow2.f32 %v19617_v5  ;;  %v19608_v35 = vsub.f32 %v19576_v21, %v19592_v20  ;;  %v19609_v42 = vsub.f32 %v19577_v29, %v19595_v46 }
0x2a5b   : > { %v19619_v51 = vmul.f32 1.442695, %v19608_v35  ;;  %v19621_v41 = vmul.f32 1.442695, %v19609_v42 }
0x2a5c   : > { %v19598_v0 = vpop.xlane.xlu0 %19597  ;;  %v19601_v53 = vpop.xlane.xlu1 %19600 }
0x2a5d   : > { %26753 = vpow2.f32 %v19619_v51  ;;  %v19610_v19 = vsub.f32 %v19578_v58, %v19598_v0  ;;  %v19611_v44 = vsub.f32 %v19579_v13, %v19601_v53 }
0x2a5e   : > { %26755 = vpow2.f32 %v19621_v41 }
0x2a5f   : > { %v30209_v7 = vpop.eup %26747  ;;  %v19623_v16 = vmul.f32 1.442695, %v19610_v19  ;;  %v19625_v31 = vmul.f32 1.442695, %v19611_v44 }
0x2a60   : > { %v19604_v56 = vpop.xlane.xlu0 %19603  ;;  %v19670_v25 = vpop.permute.xlu1 %19669  ;;  %v19629_v28 = vsel %vm18234_vm6, %v30209_v7, 0.0 }
0x2a61   : > { %26757 = vpow2.f32 %v19623_v16  ;;  %v19612_v50 = vsub.f32 %v19580_v55, %v19604_v56  ;;  %19630 = vadd.xlane.f32.xlu1 %v19629_v28  ;;  %25954 = vmatpush3.msk.msra.mxu1 %vm18329_vm7, %v19670_v25 }
0x2a62   : > { %v30214_v32 = vpop.eup %26749  ;;  %26759 = vpow2.f32 %v19625_v31  ;;  %25963 = vmatprep.subr.mxu1 %v26943_v14 }
0x2a63   : > { %v30217_v2 = vpop.eup %26751  ;;  %v19627_v21 = vmul.f32 1.442695, %v19612_v50  ;;  %v19632_v22 = vsel %vm18234_vm6, %v30214_v32, 0.0 }
0x2a64   : > { %v19747_v60 = vpop.permute.xlu0 %19746  ;;  %v19635_v29 = vsel %vm18234_vm6, %v30217_v2, 0.0  ;;  %19633 = vadd.xlane.f32.xlu0 %v19632_v22  ;;  %v19824_v36 = vpop.permute.xlu1 %19823 }
0x2a65   : > { %26761 = vpow2.f32 %v19627_v21  ;;  %19636 = vadd.xlane.f32.xlu1 %v19635_v29  ;;  %25959 = vmatpush3.msk.msra.mxu0 %vm18329_vm7, %v19747_v60 }
0x2a66   : > { %25968 = vmatprep.subr.mxu0 %v26943_v14 }
0x2a67   : > { %v30225_v39 = vpop.eup %26753 }
0x2a68   : > { %v30227_v63 = vpop.eup %26755  ;;  %v19638_v54 = vsel %vm18234_vm6, %v30225_v39, 0.0  ;;  %v19901_v61 = vpop.permute.xlu1 %19900 }
0x2a69   : > { %19639 = vadd.xlane.f32.xlu0 %v19638_v54  ;;  %v19641_v26 = vsel %vm18234_vm6, %v30227_v63, 0.0  ;;  %v19978_v30 = vpop.permute.xlu0 %19977 }
0x2a6a   : > { %19642 = vadd.xlane.f32.xlu1 %v19641_v26 }
0x2a6b   : > { %v30233_v33 = vpop.eup %26757 }
0x2a6c   : > { %v30235_v58 = vpop.eup %26759  ;;  %v19644_v59 = vsel %vm18234_vm6, %v30233_v33, 0.0  ;;  %v20055_v55 = vpop.permute.xlu1 %20054 }
0x2a6d   : > { %19645 = vadd.xlane.f32.xlu0 %v19644_v59  ;;  %v19647_v13 = vsel %vm18234_vm6, %v30235_v58, 0.0  ;;  %v20132_v48 = vpop.permute.xlu0 %20131 }
0x2a6e   : > { %19648 = vadd.xlane.f32.xlu1 %v19647_v13 }
0x2a6f   : > { %v30241_v34 = vpop.eup %26761 }
0x2a70   : > { %v19650_v52 = vsel %vm18234_vm6, %v30241_v34, 0.0  ;;  %v30289_v12 = vpop.permute.xlu1 %20208 }
0x2a71   : > { %19651 = vadd.xlane.f32.xlu0 %v19650_v52  ;;  %v30293_v8 = vpop.permute.xlu0 %20327 }
0x2a74   : > { %v30291_v18 = vpop.permute.xlu1 %20405 }
0x2a75   : > { %v30297_v24 = vpop.permute.xlu0 %20325 }
0x2a78   : > { %v30295_v1 = vpop.permute.xlu1 %20403 }
0x2a79   : > { %v30301_v23 = vpop.permute.xlu0 %20483 }
0x2a7c   : > { %v30299_v43 = vpop.permute.xlu1 %20561 }
0x2a7f   : > { %20559 = vrot.lane.b32.xlu1 %v29888_v62, %s31043_s18 }
0x2a83   : > { %20717 = vrot.lane.b32.xlu1 %v29900_v45, %s31042_s13 }
0x2a87   : > { %20715 = vrot.lane.b32.xlu1 %v29900_v45, %s31043_s18  ;;  %20481 = vrot.lane.b32.xlu0 %v29874_v3, %s31043_s18 }
0x2a8b   : > { %20873 = vrot.lane.b32.xlu1 %v29908_v49, %s31042_s13  ;;  %20639 = vrot.lane.b32.xlu0 %v29892_v57, %s31042_s13 }
0x2a8f   : > { %20871 = vrot.lane.b32.xlu1 %v29908_v49, %s31043_s18  ;;  %20637 = vrot.lane.b32.xlu0 %v29892_v57, %s31043_s18 }
0x2a93   : > { %21045 = vrot.lane.b32.xlu1 %v29872_v4, %s31044_s21  ;;  %20795 = vrot.lane.b32.xlu0 %v29894_v40, %s31042_s13 }
0x2a97   : > { %21199 = vrot.lane.b32.xlu1 %v29874_v3, %s31044_s21  ;;  %20793 = vrot.lane.b32.xlu0 %v29894_v40, %s31043_s18  ;;  %s26959_s18 = smov [#allocation5]  }
0x2a9b   : > { %21276 = vrot.lane.b32.xlu1 %v29888_v62, %s31044_s21  ;;  %21122 = vrot.lane.b32.xlu0 %v29880_v6, %s31044_s21 }
0x2a9f   : > { %21430 = vrot.lane.b32.xlu1 %v29900_v45, %s31044_s21  ;;  %21353 = vrot.lane.b32.xlu0 %v29892_v57, %s31044_s21 }
0x2aa3   : > { %21584 = vrot.lane.b32.xlu1 %v29908_v49, %s31044_s21  ;;  %21507 = vrot.lane.b32.xlu0 %v29894_v40, %s31044_s21  ;;  %s26876_s21 = sshll.u32 %s26959_s18, 4  ;;  %s26877_s21 = int_to_ptr.vmem [resolvable:$false] %s26876_s21 }
0x2aa7   : > { %21781 = vrot.lane.b32.xlu1 %v29880_v6, %s31045_s22  ;;  %21703 = vrot.lane.b32.xlu0 %v29872_v4, %s31045_s22 }
0x2aab   : > { %21779 = vrot.lane.b32.xlu1 %v29880_v6, %s31046_s23  ;;  %21701 = vrot.lane.b32.xlu0 %v29872_v4, %s31046_s23 }
0x2aee   : > { %v19631_v47 = vpop.xlane.xlu1 %19630 }
0x2aef   : > { %26763 = vrcp.f32 %v19631_v47 }
0x2af1   : > { %v19634_v5 = vpop.xlane.xlu0 %19633 }
0x2af2   : > { %26765 = vrcp.f32 %v19634_v5  ;;  %v19637_v20 = vpop.xlane.xlu1 %19636 }
0x2af3   : > { %26767 = vrcp.f32 %v19637_v20 }
0x2af6   : > { %v19640_v46 = vpop.xlane.xlu0 %19639 }
0x2af7   : > { %26769 = vrcp.f32 %v19640_v46  ;;  %v19643_v35 = vpop.xlane.xlu1 %19642 }
0x2af8   : > { %26771 = vrcp.f32 %v19643_v35 }
0x2af9   : > { %v26764_v42 = vpop.eup %26763 }
0x2afa   : > { %v19646_v51 = vpop.xlane.xlu0 %19645  ;;  %v19661_v41 = vmul.f32 %v26764_v42, %v30209_v7 }
0x2afb   : > { %26773 = vrcp.f32 %v19646_v51  ;;  %v19649_v0 = vpop.xlane.xlu1 %19648 }
0x2afc   : > { %v26766_v53 = vpop.eup %26765  ;;  %26775 = vrcp.f32 %v19649_v0  ;;  %25956 = vmatmul.mubr.msk.f32.vlgmr.msra.gmra.mrb[240].mxu1 %vm18325_vm8, %v19661_v41 }
0x2afd   : > { %v26768_v19 = vpop.eup %26767  ;;  %25964 = vmatpush3.msk.msra.mxu1 %vm18329_vm7, %v19824_v36  ;;  %25965 = vmatprep.mubr.msk.f32.mxu1 %vm26944_vm1, %v26943_v14  ;;  %v19662_v44 = vmul.f32 %v26766_v53, %v30214_v32 }
0x2afe   : > { %v19652_v16 = vpop.xlane.xlu0 %19651  ;;  %25973 = vmatprep.subr.mxu1 %v26943_v14  ;;  %v19663_v31 = vmul.f32 %v26768_v19, %v30217_v2 }
0x2aff   : > { %26777 = vrcp.f32 %v19652_v16  ;;  %v20560_v7 = vpop.permute.xlu1 %20559  ;;  %25961 = vmatmul.mubr.msk.f32.vlgmr.msra.gmra.mrb[240].mxu0 %vm18325_vm8, %v19662_v44 }
0x2b00   : > { %25966 = vmatmul.mubr.msk.f32.vlgmr.msra.gmra.mrb[242].mxu1 %vm18325_vm8, %v19663_v31  ;;  %25969 = vmatpush3.msk.msra.mxu0 %vm18329_vm7, %v19901_v61 }
0x2b01   : > { %v26770_v56 = vpop.eup %26769  ;;  %25974 = vmatpush3.msk.msra.mxu1 %vm18329_vm7, %v19978_v30  ;;  %25970 = vmatprep.mubr.msk.f32.mxu0 %vm26944_vm1, %v26943_v14 }
0x2b02   : > { %v26772_v25 = vpop.eup %26771  ;;  %v20482_v28 = vpop.permute.xlu0 %20481  ;;  %25975 = vmatprep.mubr.msk.f32.mxu1 %vm26944_vm1, %v26943_v14  ;;  %25978 = vmatprep.subr.mxu0 %v26943_v14  ;;  %v19664_v50 = vmul.f32 %v26770_v56, %v30225_v39 }
0x2b03   : > { %25983 = vmatprep.subr.mxu1 %v26943_v14  ;;  %v19665_v32 = vmul.f32 %v26772_v25, %v30227_v63  ;;  %v20718_v2 = vpop.permute.xlu1 %20717 }
0x2b04   : > { %25971 = vmatmul.mubr.msk.f32.vlgmr.msra.gmra.mrb[242].mxu0 %vm18325_vm8, %v19664_v50 }
0x2b05   : > { %v26774_v21 = vpop.eup %26773  ;;  %25976 = vmatmul.mubr.msk.f32.vlgmr.msra.gmra.mrb[244].mxu1 %vm18325_vm8, %v19665_v32  ;;  %25979 = vmatpush3.msk.msra.mxu0 %vm18329_vm7, %v20055_v55 }
0x2b06   : > { %v26776_v22 = vpop.eup %26775  ;;  %25984 = vmatpush3.msk.msra.mxu1 %vm18329_vm7, %v20132_v48  ;;  %25980 = vmatprep.mubr.msk.f32.mxu0 %vm26944_vm1, %v26943_v14  ;;  %v19666_v60 = vmul.f32 %v26774_v21, %v30233_v33  ;;  %v20640_v29 = vpop.permute.xlu0 %20639 }
0x2b07   : > { %25985 = vmatprep.mubr.msk.f32.mxu1 %vm26944_vm1, %v26943_v14  ;;  %25988 = vmatprep.subr.mxu0 %v26943_v14  ;;  %v19667_v39 = vmul.f32 %v26776_v22, %v30235_v58  ;;  %v20716_v54 = vpop.permute.xlu1 %20715 }
0x2b08   : > { %25981 = vmatmul.mubr.msk.f32.vlgmr.msra.gmra.mrb[244].mxu0 %vm18325_vm8, %v19666_v60  ;;  %25993 = vmatprep.subr.mxu1 %v26943_v14 }
0x2b09   : > { %v26778_v63 = vpop.eup %26777  ;;  %25986 = vmatmul.mubr.msk.f32.vlgmr.msra.gmra.mrb[246].mxu1 %vm18325_vm8, %v19667_v39  ;;  %25989 = vmatpush3.msk.msra.mxu0 %vm18329_vm7, %v30289_v12 }
0x2b0a   : > { %25990 = vmatprep.mubr.msk.f32.mxu0 %vm26944_vm1, %v26943_v14  ;;  %v19668_v26 = vmul.f32 %v26778_v63, %v30241_v34  ;;  %25995 = vmatprep.mubr.msk.f32.mxu1 %vm26944_vm1, %v26943_v14  ;;  %v20638_v33 = vpop.permute.xlu0 %20637 }
0x2b0b   : > { %25998 = vmatprep.subr.mxu0 %v26943_v14  ;;  %v20874_v58 = vpop.permute.xlu1 %20873 }
0x2b0c   : > { %25991 = vmatmul.mubr.msk.f32.vlgmr.msra.gmra.mrb[246].mxu0 %vm18325_vm8, %v19668_v26 }
0x2b0d   : > { %25994 = vmatpush3.xpose.msk.msra.mxu1 %vm473_vm2, %v30293_v8  ;;  %26000 = vmatprep.mubr.msk.f32.mxu0 %vm26944_vm1, %v26943_v14 }
0x2b0e   : > { %26003 = vmatprep.subr.mxu1 %v26943_v14  ;;  %v20796_v59 = vpop.permute.xlu0 %20795 }
0x2b0f   : > { %v20872_v13 = vpop.permute.xlu1 %20871 }
0x2b10   : > { %25996 = vmatmul.mubr.msk.f32.vlgmr.msra.gmra.mrb[248].mxu1 %vm473_vm2, %v30297_v24  ;;  %25999 = vmatpush3.xpose.msk.msra.mxu0 %vm473_vm2, %v30291_v18 }
0x2b11   : > { %26004 = vmatpush3.xpose.msk.msra.mxu1 %vm473_vm2, %v30301_v23  ;;  %26005 = vmatprep.mubr.msk.f32.mxu1 %vm26944_vm1, %v26943_v14 }
0x2b12   : > { %26008 = vmatprep.subr.mxu0 %v26943_v14  ;;  %26013 = vmatprep.subr.mxu1 %v26943_v14  ;;  %v20794_v34 = vpop.permute.xlu0 %20793 }
0x2b13   : > { %26001 = vmatmul.mubr.msk.f32.vlgmr.msra.gmra.mrb[248].mxu0 %vm473_vm2, %v30295_v1  ;;  %v21046_v52 = vpop.permute.xlu1 %21045 }
0x2b14   : > { %26006 = vmatmul.mubr.msk.f32.vlgmr.msra.gmra.mrb[250].mxu1 %vm473_vm2, %v20482_v28  ;;  %26009 = vmatpush3.xpose.msk.msra.mxu0 %vm473_vm2, %v30299_v43 }
0x2b15   : > { %26014 = vmatpush3.xpose.msk.msra.mxu1 %vm473_vm2, %v20640_v29  ;;  %26010 = vmatprep.mubr.msk.f32.mxu0 %vm26944_vm1, %v26943_v14 }
0x2b16   : > { %26015 = vmatprep.mubr.msk.f32.mxu1 %vm26944_vm1, %v26943_v14  ;;  %26018 = vmatprep.subr.mxu0 %v26943_v14  ;;  %v21123_v36 = vpop.permute.xlu0 %21122 }
0x2b17   : > { %26011 = vmatmul.mubr.msk.f32.vlgmr.msra.gmra.mrb[250].mxu0 %vm473_vm2, %v20560_v7  ;;  %26023 = vmatprep.subr.mxu1 %v26943_v14 }
0x2b18   : > { %26016 = vmatmul.mubr.msk.f32.vlgmr.msra.gmra.mrb[252].mxu1 %vm473_vm2, %v20638_v33  ;;  %26019 = vmatpush3.xpose.msk.msra.mxu0 %vm473_vm2, %v20718_v2 }
0x2b19   : > { %26024 = vmatpush3.xpose.msk.msra.mxu1 %vm473_vm2, %v20796_v59  ;;  %26020 = vmatprep.mubr.msk.f32.mxu0 %vm26944_vm1, %v26943_v14 }
0x2b1a   : > { %26025 = vmatprep.mubr.msk.f32.mxu1 %vm26944_vm1, %v26943_v14  ;;  %26028 = vmatprep.subr.mxu0 %v26943_v14 }
0x2b1b   : > { %26021 = vmatmul.mubr.msk.f32.vlgmr.msra.gmra.mrb[252].mxu0 %vm473_vm2, %v20716_v54  ;;  %26033 = vmatprep.subr.mxu1 %v26943_v14 }
0x2b1c   : > { %26026 = vmatmul.mubr.msk.f32.vlgmr.msra.gmra.mrb[254].mxu1 %vm473_vm2, %v20794_v34  ;;  %26029 = vmatpush3.xpose.msk.msra.mxu0 %vm473_vm2, %v20874_v58 }
0x2b1d   : > { %26034 = vmatpush3.msk.msra.mxu1 %vm18329_vm7, %v21046_v52  ;;  %26030 = vmatprep.mubr.msk.f32.mxu0 %vm26944_vm1, %v26943_v14 }
0x2b1e   : > { %26038 = vmatprep.subr.mxu0 %v26943_v14  ;;  %26035 = vmatprep.mubr.msk.f32.mxu1 %vm26944_vm1, %v26943_v14 }
0x2b1f   : > { %26031 = vmatmul.mubr.msk.f32.vlgmr.msra.gmra.mrb[254].mxu0 %vm473_vm2, %v20872_v13  ;;  %26043 = vmatprep.subr.mxu1 %v26943_v14 }
0x2b20   : > { %26039 = vmatpush3.msk.msra.mxu0 %vm18329_vm7, %v21123_v36  ;;  %26040 = vmatprep.mubr.msk.f32.mxu0 %vm26944_vm1, %v26943_v14 }
0x2b21   : > { %26048 = vmatprep.subr.mxu0 %v26943_v14 }
0x2bcf   : > { %v30398_v61 = vpop.f32.mrb[240].mxu1 }
0x2bd0   : > { %v25957_v55 = vpop.f32.mrb[241].mxu1 }
0x2bd2   : > { %v30400_v30 = vpop.f32.mrb[240].mxu0 }
0x2bd3   : > { %v30402_v12 = vpop.f32.mrb[242].mxu1  ;;  %v25962_v48 = vpop.f32.mrb[241].mxu0 }
0x2bd4   : > { %v25967_v18 = vpop.f32.mrb[243].mxu1  ;;  %v30432_v48 = vpop.permute.xlu1 %21199 }
0x2bd7   : > { %v30404_v8 = vpop.f32.mrb[242].mxu0 }
0x2bd8   : > { %v30406_v1 = vpop.f32.mrb[244].mxu1  ;;  %v25972_v24 = vpop.f32.mrb[243].mxu0 }
0x2bd9   : > { %v25977_v43 = vpop.f32.mrb[245].mxu1  ;;  %v30434_v18 = vpop.permute.xlu1 %21276 }
0x2bda   : > { %v30436_v24 = vpop.permute.xlu0 %21353 }
0x2bdb   : > { %v30408_v23 = vpop.f32.mrb[244].mxu0 }
0x2bdc   : > { %v30410_v47 = vpop.f32.mrb[246].mxu1  ;;  %v25982_v5 = vpop.f32.mrb[245].mxu0 }
0x2bdd   : > { %v25987_v20 = vpop.f32.mrb[247].mxu1  ;;  %v30438_v43 = vpop.permute.xlu1 %21430 }
0x2bde   : > { %v30440_v5 = vpop.permute.xlu0 %21507 }
0x2bdf   : > { %v30412_v46 = vpop.f32.mrb[246].mxu0 }
0x2be0   : > { %v25992_v35 = vpop.f32.mrb[247].mxu0 }
0x2be1   : > { %v30442_v20 = vpop.permute.xlu1 %21584 }
0x2be2   : > { %v30444_v35 = vpop.permute.xlu0 %21703 }
0x2be3   : > { %v20399_v42 = vpop.f32.mrb[248].mxu1 }
0x2be4   : > { %v20949_v51 = vmul.f32 0.17677669, %v20399_v42  ;;  %v25997_v41 = vpop.f32.mrb[249].mxu1 }
0x2be5   : > { %v30446_v42 = vpop.permute.xlu1 %21781 }
0x2be6   : > { %v20477_v0 = vpop.f32.mrb[248].mxu0  ;;  %v20957_v53 = vsel %vm18234_vm6, %v20949_v51, -inf  ;;  %v30448_v41 = vpop.permute.xlu0 %21701 }
0x2be7   : > { %v20950_v19 = vmul.f32 0.17677669, %v20477_v0  ;;  %20958 = vmax.xlane.f32.xlu0 %v20957_v53  ;;  %v20555_v44 = vpop.f32.mrb[250].mxu1  ;;  %v26002_v16 = vpop.f32.mrb[249].mxu0 }
0x2be8   : > { %v20951_v31 = vmul.f32 0.17677669, %v20555_v44  ;;  %v26007_v7 = vpop.f32.mrb[251].mxu1 }
0x2be9   : > { %v20960_v56 = vsel %vm18234_vm6, %v20950_v19, -inf  ;;  %v30450_v0 = vpop.permute.xlu1 %21779 }
0x2bea   : > { %20961 = vmax.xlane.f32.xlu1 %v20960_v56  ;;  %v20963_v25 = vsel %vm18234_vm6, %v20951_v31, -inf  ;;  %v20633_v28 = vpop.f32.mrb[250].mxu0 }
0x2beb   : > { %20964 = vmax.xlane.f32.xlu0 %v20963_v25  ;;  %v20952_v50 = vmul.f32 0.17677669, %v20633_v28  ;;  %v20711_v32 = vpop.f32.mrb[252].mxu1  ;;  %v26012_v2 = vpop.f32.mrb[251].mxu0 }
0x2bec   : > { %v20953_v21 = vmul.f32 0.17677669, %v20711_v32  ;;  %v26017_v22 = vpop.f32.mrb[253].mxu1 }
0x2bed   : > { %v20966_v60 = vsel %vm18234_vm6, %v20952_v50, -inf }
0x2bee   : > { %v20969_v29 = vsel %vm18234_vm6, %v20953_v21, -inf  ;;  %v20789_v39 = vpop.f32.mrb[252].mxu0 }
0x2bef   : > { %20970 = vmax.xlane.f32.xlu1 %v20969_v29  ;;  %v20867_v63 = vpop.f32.mrb[254].mxu1  ;;  %20967 = vmax.xlane.f32.xlu0 %v20966_v60  ;;  %v20954_v54 = vmul.f32 0.17677669, %v20789_v39  ;;  %v26022_v26 = vpop.f32.mrb[253].mxu0 }
0x2bf0   : > { %v30419_v33 = vmul.f32 0.17677669, %v20867_v63  ;;  %v26027_v58 = vpop.f32.mrb[255].mxu1 }
0x2bf1   : > { %v20972_v59 = vsel %vm18234_vm6, %v20954_v54, -inf }
0x2bf2   : > { %v20975_v13 = vsel %vm18234_vm6, %v30419_v33, -inf  ;;  %v20945_v34 = vpop.f32.mrb[254].mxu0 }
0x2bf3   : > { %20976 = vmax.xlane.f32.xlu1 %v20975_v13  ;;  %20973 = vmax.xlane.f32.xlu0 %v20972_v59  ;;  %v30424_v52 = vmul.f32 0.17677669, %v20945_v34  ;;  %v26032_v36 = vpop.f32.mrb[255].mxu0 }
0x2bf5   : > { %v20978_v55 = vsel %vm18234_vm6, %v30424_v52, -inf }
0x2bf7   : > { %20979 = vmax.xlane.f32.xlu0 %v20978_v55 }
0x2c04   : > { %21937 = vrot.lane.b32.xlu1 %v29888_v62, %s31045_s22 }
0x2c0d   : > { %21859 = vrot.lane.b32.xlu0 %v29874_v3, %s31045_s22 }
0x2c74   : > { %v20959_v53 = vpop.xlane.xlu0 %20958 }
0x2c75   : > { %v20981_v44 = vsub.f32 %v20949_v51, %v20959_v53 }
0x2c77   : > { %v20989_v16 = vmul.f32 1.442695, %v20981_v44  ;;  %v20962_v7 = vpop.xlane.xlu1 %20961 }
0x2c78   : > { %v20965_v56 = vpop.xlane.xlu0 %20964  ;;  %v20982_v25 = vsub.f32 %v20950_v19, %v20962_v7 }
0x2c79   : > { %26779 = vpow2.f32 %v20989_v16  ;;  %v20983_v28 = vsub.f32 %v20951_v31, %v20965_v56 }
0x2c7a   : > { %v20991_v32 = vmul.f32 1.442695, %v20982_v25 }
0x2c7b   : > { %v20993_v2 = vmul.f32 1.442695, %v20983_v28 }
0x2c7c   : > { %26781 = vpow2.f32 %v20991_v32  ;;  %v20968_v22 = vpop.xlane.xlu0 %20967  ;;  %v20971_v60 = vpop.xlane.xlu1 %20970 }
0x2c7d   : > { %26783 = vpow2.f32 %v20993_v2  ;;  %v20984_v29 = vsub.f32 %v20952_v50, %v20968_v22  ;;  %v20985_v39 = vsub.f32 %v20953_v21, %v20971_v60 }
0x2c7f   : > { %v20995_v63 = vmul.f32 1.442695, %v20984_v29  ;;  %v20997_v26 = vmul.f32 1.442695, %v20985_v39 }
0x2c80   : > { %v20974_v58 = vpop.xlane.xlu0 %20973  ;;  %v20977_v7 = vpop.xlane.xlu1 %20976 }
0x2c81   : > { %26785 = vpow2.f32 %v20995_v63  ;;  %v20986_v59 = vsub.f32 %v20954_v54, %v20974_v58  ;;  %v20987_v56 = vsub.f32 %v30419_v33, %v20977_v7 }
0x2c82   : > { %26787 = vpow2.f32 %v20997_v26 }
0x2c83   : > { %v26780_v51 = vpop.eup %26779  ;;  %v20999_v13 = vmul.f32 1.442695, %v20986_v59  ;;  %v21001_v32 = vmul.f32 1.442695, %v20987_v56 }
0x2c84   : > { %v21005_v19 = vsel %vm18234_vm6, %v26780_v51, 0.0  ;;  %v20980_v25 = vpop.xlane.xlu0 %20979  ;;  %v30497_v33 = vpop.permute.xlu1 %21937 }
0x2c85   : > { %26789 = vpow2.f32 %v20999_v13  ;;  %21006 = vadd.xlane.f32.xlu1 %v21005_v19  ;;  %v20988_v28 = vsub.f32 %v30424_v52, %v20980_v25 }
0x2c86   : > { %v26782_v31 = vpop.eup %26781  ;;  %26791 = vpow2.f32 %v21001_v32 }
0x2c87   : > { %v26784_v34 = vpop.eup %26783  ;;  %v21008_v36 = vsel %vm18234_vm6, %v26782_v31, 0.0  ;;  %v21003_v2 = vmul.f32 1.442695, %v20988_v28 }
0x2c88   : > { %v21011_v55 = vsel %vm18234_vm6, %v26784_v34, 0.0  ;;  %21009 = vadd.xlane.f32.xlu0 %v21008_v36  ;;  %v30499_v52 = vpop.permute.xlu0 %21859 }
0x2c89   : > { %21012 = vadd.xlane.f32.xlu1 %v21011_v55  ;;  %26793 = vpow2.f32 %v21003_v2 }
0x2c8b   : > { %v30455_v50 = vpop.eup %26785 }
0x2c8c   : > { %v30457_v21 = vpop.eup %26787  ;;  %v21014_v54 = vsel %vm18234_vm6, %v30455_v50, 0.0 }
0x2c8d   : > { %21015 = vadd.xlane.f32.xlu0 %v21014_v54  ;;  %v21017_v53 = vsel %vm18234_vm6, %v30457_v21, 0.0 }
0x2c8e   : > { %21018 = vadd.xlane.f32.xlu1 %v21017_v53 }
0x2c8f   : > { %v30463_v44 = vpop.eup %26789 }
0x2c90   : > { %v21020_v16 = vsel %vm18234_vm6, %v30463_v44, 0.0  ;;  %v30473_v22 = vpop.eup %26791 }
0x2c91   : > { %21021 = vadd.xlane.f32.xlu0 %v21020_v16  ;;  %v21023_v29 = vsel %vm18234_vm6, %v30473_v22, 0.0 }
0x2c93   : > { %v30475_v60 = vpop.eup %26793 }
0x2c94   : > { %v21026_v39 = vsel %vm18234_vm6, %v30475_v60, 0.0 }
0x2c9f   : > { %21935 = vrot.lane.b32.xlu1 %v29888_v62, %s31046_s23 }
0x2ca7   : > { %21857 = vrot.lane.b32.xlu0 %v29874_v3, %s31046_s23 }
0x2cc3   : > { %21024 = vadd.xlane.f32.xlu1 %v21023_v29 }
0x2cc6   : > { %21027 = vadd.xlane.f32.xlu0 %v21026_v39 }
0x2cd4   : > { %22093 = vrot.lane.b32.xlu1 %v29900_v45, %s31045_s22 }
0x2cd8   : > { %22091 = vrot.lane.b32.xlu1 %v29900_v45, %s31046_s23 }
0x2cdc   : > { %22249 = vrot.lane.b32.xlu1 %v29908_v49, %s31045_s22  ;;  %22015 = vrot.lane.b32.xlu0 %v29892_v57, %s31045_s22 }
0x2ce0   : > { %22247 = vrot.lane.b32.xlu1 %v29908_v49, %s31046_s23  ;;  %22013 = vrot.lane.b32.xlu0 %v29892_v57, %s31046_s23 }
0x2ce4   : > { %22171 = vrot.lane.b32.xlu0 %v29894_v40, %s31045_s22  ;;  %s26878_s22 = scalar_lea.vmem %s26877_s21, 256 }
0x2ce8   : > { %22169 = vrot.lane.b32.xlu0 %v29894_v40, %s31046_s23 }
0x2d12   : > { %v21007_v63 = vpop.xlane.xlu1 %21006 }
0x2d13   : > { %26795 = vrcp.f32 %v21007_v63 }
0x2d15   : > { %v21010_v26 = vpop.xlane.xlu0 %21009 }
0x2d16   : > { %26797 = vrcp.f32 %v21010_v26  ;;  %v21013_v58 = vpop.xlane.xlu1 %21012 }
0x2d17   : > { %26799 = vrcp.f32 %v21013_v58 }
0x2d1a   : > { %v21016_v59 = vpop.xlane.xlu0 %21015 }
0x2d1b   : > { %26801 = vrcp.f32 %v21016_v59  ;;  %v21019_v13 = vpop.xlane.xlu1 %21018 }
0x2d1c   : > { %26803 = vrcp.f32 %v21019_v13 }
0x2d1d   : > { %v26796_v19 = vpop.eup %26795 }
0x2d1e   : > { %v21037_v36 = vmul.f32 %v26796_v19, %v26780_v51  ;;  %v21022_v55 = vpop.xlane.xlu0 %21021 }
0x2d1f   : > { %26805 = vrcp.f32 %v21022_v55 }
0x2d20   : > { %v26798_v54 = vpop.eup %26797  ;;  %26036 = vmatmul.mubr.msk.f32.vlgmr.msra.gmra.mrb[0].mxu1 %vm18325_vm8, %v21037_v36 }
0x2d21   : > { %v26800_v53 = vpop.eup %26799  ;;  %v21038_v16 = vmul.f32 %v26798_v54, %v26782_v31  ;;  %26044 = vmatpush3.msk.msra.mxu1 %vm18329_vm7, %v30432_v48  ;;  %26045 = vmatprep.mubr.msk.f32.mxu1 %vm26944_vm1, %v26943_v14 }
0x2d22   : > { %v21039_v7 = vmul.f32 %v26800_v53, %v26784_v34  ;;  %26053 = vmatprep.subr.mxu1 %v26943_v14 }
0x2d23   : > { %26041 = vmatmul.mubr.msk.f32.vlgmr.msra.gmra.mrb[0].mxu0 %vm18325_vm8, %v21038_v16 }
0x2d24   : > { %26046 = vmatmul.mubr.msk.f32.vlgmr.msra.gmra.mrb[2].mxu1 %vm18325_vm8, %v21039_v7  ;;  %26049 = vmatpush3.msk.msra.mxu0 %vm18329_vm7, %v30434_v18 }
0x2d25   : > { %v26802_v51 = vpop.eup %26801  ;;  %26054 = vmatpush3.msk.msra.mxu1 %vm18329_vm7, %v30436_v24  ;;  %26050 = vmatprep.mubr.msk.f32.mxu0 %vm26944_vm1, %v26943_v14 }
0x2d26   : > { %v26804_v48 = vpop.eup %26803  ;;  %v21040_v31 = vmul.f32 %v26802_v51, %v30455_v50  ;;  %26055 = vmatprep.mubr.msk.f32.mxu1 %vm26944_vm1, %v26943_v14  ;;  %26058 = vmatprep.subr.mxu0 %v26943_v14 }
0x2d27   : > { %v21041_v34 = vmul.f32 %v26804_v48, %v30457_v21  ;;  %26063 = vmatprep.subr.mxu1 %v26943_v14 }
0x2d28   : > { %26051 = vmatmul.mubr.msk.f32.vlgmr.msra.gmra.mrb[2].mxu0 %vm18325_vm8, %v21040_v31 }
0x2d29   : > { %v26806_v18 = vpop.eup %26805  ;;  %26056 = vmatmul.mubr.msk.f32.vlgmr.msra.gmra.mrb[4].mxu1 %vm18325_vm8, %v21041_v34  ;;  %26059 = vmatpush3.msk.msra.mxu0 %vm18329_vm7, %v30438_v43  ;;  %v21936_v43 = vpop.permute.xlu1 %21935 }
0x2d2a   : > { %v21042_v24 = vmul.f32 %v26806_v18, %v30463_v44  ;;  %26064 = vmatpush3.msk.msra.mxu1 %vm18329_vm7, %v30440_v5  ;;  %26060 = vmatprep.mubr.msk.f32.mxu0 %vm26944_vm1, %v26943_v14  ;;  %v21858_v5 = vpop.permute.xlu0 %21857 }
0x2d2b   : > { %26068 = vmatprep.subr.mxu0 %v26943_v14  ;;  %26065 = vmatprep.mubr.msk.f32.mxu1 %vm26944_vm1, %v26943_v14 }
0x2d2c   : > { %26061 = vmatmul.mubr.msk.f32.vlgmr.msra.gmra.mrb[4].mxu0 %vm18325_vm8, %v21042_v24  ;;  %26073 = vmatprep.subr.mxu1 %v26943_v14 }
0x2d2d   : > { %26069 = vmatpush3.msk.msra.mxu0 %vm18329_vm7, %v30442_v20  ;;  %26070 = vmatprep.mubr.msk.f32.mxu0 %vm26944_vm1, %v26943_v14 }
0x2d2e   : > { %26078 = vmatprep.subr.mxu0 %v26943_v14 }
0x2d50   : > { %v21025_v50 = vpop.xlane.xlu1 %21024 }
0x2d51   : > { %26807 = vrcp.f32 %v21025_v50 }
0x2d53   : > { %v21028_v21 = vpop.xlane.xlu0 %21027 }
0x2d54   : > { %26809 = vrcp.f32 %v21028_v21  ;;  %v22094_v32 = vpop.permute.xlu1 %22093 }
0x2d57   : > { %v22016_v56 = vpop.permute.xlu0 %22015 }
0x2d5b   : > { %v26808_v44 = vpop.eup %26807  ;;  %v22014_v2 = vpop.permute.xlu0 %22013 }
0x2d5c   : > { %v21043_v25 = vmul.f32 %v26808_v44, %v30473_v22 }
0x2d5e   : > { %v26810_v28 = vpop.eup %26809  ;;  %26066 = vmatmul.mubr.msk.f32.vlgmr.msra.gmra.mrb[6].mxu1 %vm18325_vm8, %v21043_v25 }
0x2d5f   : > { %v21044_v20 = vmul.f32 %v26810_v28, %v30475_v60  ;;  %26074 = vmatpush3.xpose.msk.msra.mxu1 %vm473_vm2, %v30444_v35  ;;  %26075 = vmatprep.mubr.msk.f32.mxu1 %vm26944_vm1, %v26943_v14  ;;  %v22092_v35 = vpop.permute.xlu1 %22091 }
0x2d60   : > { %26083 = vmatprep.subr.mxu1 %v26943_v14 }
0x2d61   : > { %26071 = vmatmul.mubr.msk.f32.vlgmr.msra.gmra.mrb[6].mxu0 %vm18325_vm8, %v21044_v20 }
0x2d62   : > { %26076 = vmatmul.mubr.msk.f32.vlgmr.msra.gmra.mrb[8].mxu1 %vm473_vm2, %v30448_v41  ;;  %26079 = vmatpush3.xpose.msk.msra.mxu0 %vm473_vm2, %v30446_v42  ;;  %v22172_v42 = vpop.permute.xlu0 %22171 }
0x2d63   : > { %26084 = vmatpush3.xpose.msk.msra.mxu1 %vm473_vm2, %v30499_v52  ;;  %26080 = vmatprep.mubr.msk.f32.mxu0 %vm26944_vm1, %v26943_v14  ;;  %v22250_v41 = vpop.permute.xlu1 %22249 }
0x2d64   : > { %26085 = vmatprep.mubr.msk.f32.mxu1 %vm26944_vm1, %v26943_v14  ;;  %26088 = vmatprep.subr.mxu0 %v26943_v14 }
0x2d65   : > { %26093 = vmatprep.subr.mxu1 %v26943_v14  ;;  %26081 = vmatmul.mubr.msk.f32.vlgmr.msra.gmra.mrb[8].mxu0 %vm473_vm2, %v30450_v0 }
0x2d66   : > { %26086 = vmatmul.mubr.msk.f32.vlgmr.msra.gmra.mrb[10].mxu1 %vm473_vm2, %v21858_v5  ;;  %26089 = vmatpush3.xpose.msk.msra.mxu0 %vm473_vm2, %v30497_v33  ;;  %v22170_v0 = vpop.permute.xlu0 %22169 }
0x2d67   : > { %26094 = vmatpush3.xpose.msk.msra.mxu1 %vm473_vm2, %v22016_v56  ;;  %26090 = vmatprep.mubr.msk.f32.mxu0 %vm26944_vm1, %v26943_v14  ;;  %v22248_v22 = vpop.permute.xlu1 %22247 }
0x2d68   : > { %26095 = vmatprep.mubr.msk.f32.mxu1 %vm26944_vm1, %v26943_v14  ;;  %26098 = vmatprep.subr.mxu0 %v26943_v14 }
0x2d69   : > { %26103 = vmatprep.subr.mxu1 %v26943_v14  ;;  %26091 = vmatmul.mubr.msk.f32.vlgmr.msra.gmra.mrb[10].mxu0 %vm473_vm2, %v21936_v43 }
0x2d6a   : > { %26096 = vmatmul.mubr.msk.f32.vlgmr.msra.gmra.mrb[12].mxu1 %vm473_vm2, %v22014_v2  ;;  %26099 = vmatpush3.xpose.msk.msra.mxu0 %vm473_vm2, %v22094_v32 }
0x2d6b   : > { %26104 = vmatpush3.xpose.msk.msra.mxu1 %vm473_vm2, %v22172_v42  ;;  %26100 = vmatprep.mubr.msk.f32.mxu0 %vm26944_vm1, %v26943_v14 }
0x2d6c   : > { %26105 = vmatprep.mubr.msk.f32.mxu1 %vm26944_vm1, %v26943_v14  ;;  %26108 = vmatprep.subr.mxu0 %v26943_v14 }
0x2d6d   : > { %26101 = vmatmul.mubr.msk.f32.vlgmr.msra.gmra.mrb[12].mxu0 %vm473_vm2, %v22092_v35  ;;  %26113 = vmatprep.subr.mxu1 %v26943_v14 }
0x2d6e   : > { %26106 = vmatmul.mubr.msk.f32.vlgmr.msra.gmra.mrb[14].mxu1 %vm473_vm2, %v22170_v0  ;;  %26109 = vmatpush3.xpose.msk.msra.mxu0 %vm473_vm2, %v22250_v41 }
0x2d6f   : > { %26110 = vmatprep.mubr.msk.f32.mxu0 %vm26944_vm1, %v26943_v14  ;;  %26118 = vmatprep.subr.mxu0 %v26943_v14 }
0x2d70   : > { %26115 = vmatprep.mubr.msk.f32.mxu1 %vm26944_vm1, %v26943_v14 }
0x2d71   : > { %26111 = vmatmul.mubr.msk.f32.vlgmr.msra.gmra.mrb[14].mxu0 %vm473_vm2, %v22248_v22 }
0x2d72   : > { %26120 = vmatprep.mubr.msk.f32.mxu0 %vm26944_vm1, %v26943_v14 }
0x2df3   : > { %v30594_v60 = vpop.f32.mrb[0].mxu1 }
0x2df4   : > { %v26037_v29 = vpop.f32.mrb[1].mxu1 }
0x2df6   : > { %v30596_v39 = vpop.f32.mrb[0].mxu0 }
0x2df7   : > { %v30598_v33 = vpop.f32.mrb[2].mxu1  ;;  %v26042_v52 = vpop.f32.mrb[1].mxu0 }
0x2df8   : > { %v26047_v63 = vpop.f32.mrb[3].mxu1 }
0x2dfb   : > { %v30600_v26 = vpop.f32.mrb[2].mxu0 }
0x2dfc   : > { %v30602_v58 = vpop.f32.mrb[4].mxu1  ;;  %v26052_v59 = vpop.f32.mrb[3].mxu0 }
0x2dfd   : > { %v26057_v13 = vpop.f32.mrb[5].mxu1 }
0x2dff   : > { %v30604_v19 = vpop.f32.mrb[4].mxu0 }
0x2e00   : > { %v26062_v36 = vpop.f32.mrb[5].mxu0 }
0x2e31   : > { %v30606_v55 = vpop.f32.mrb[6].mxu1 }
0x2e32   : > { %v26067_v54 = vpop.f32.mrb[7].mxu1 }
0x2e34   : > { %v30608_v53 = vpop.f32.mrb[6].mxu0 }
0x2e35   : > { %v21775_v16 = vpop.f32.mrb[8].mxu1  ;;  %v26072_v7 = vpop.f32.mrb[7].mxu0 }
0x2e36   : > { %v22325_v51 = vmul.f32 0.17677669, %v21775_v16  ;;  %v26077_v48 = vpop.f32.mrb[9].mxu1 }
0x2e38   : > { %v21853_v31 = vpop.f32.mrb[8].mxu0  ;;  %v22333_v34 = vsel %vm18234_vm6, %v22325_v51, -inf }
0x2e39   : > { %v22326_v18 = vmul.f32 0.17677669, %v21853_v31  ;;  %22334 = vmax.xlane.f32.xlu0 %v22333_v34  ;;  %v21931_v24 = vpop.f32.mrb[10].mxu1  ;;  %v26082_v43 = vpop.f32.mrb[9].mxu0 }
0x2e3a   : > { %v22327_v5 = vmul.f32 0.17677669, %v21931_v24  ;;  %v26087_v50 = vpop.f32.mrb[11].mxu1 }
0x2e3b   : > { %v22336_v21 = vsel %vm18234_vm6, %v22326_v18, -inf }
0x2e3c   : > { %22337 = vmax.xlane.f32.xlu1 %v22336_v21  ;;  %v22009_v44 = vpop.f32.mrb[10].mxu0  ;;  %v22339_v56 = vsel %vm18234_vm6, %v22327_v5, -inf }
0x2e3d   : > { %v22328_v25 = vmul.f32 0.17677669, %v22009_v44  ;;  %22340 = vmax.xlane.f32.xlu0 %v22339_v56  ;;  %v22087_v28 = vpop.f32.mrb[12].mxu1  ;;  %v26092_v32 = vpop.f32.mrb[11].mxu0 }
0x2e3e   : > { %v22329_v20 = vmul.f32 0.17677669, %v22087_v28  ;;  %v26097_v2 = vpop.f32.mrb[13].mxu1 }
0x2e3f   : > { %v22342_v35 = vsel %vm18234_vm6, %v22328_v25, -inf }
0x2e40   : > { %v22345_v42 = vsel %vm18234_vm6, %v22329_v20, -inf  ;;  %v22165_v41 = vpop.f32.mrb[12].mxu0 }
0x2e41   : > { %22343 = vmax.xlane.f32.xlu0 %v22342_v35  ;;  %22346 = vmax.xlane.f32.xlu1 %v22345_v42  ;;  %v22330_v0 = vmul.f32 0.17677669, %v22165_v41  ;;  %v22243_v22 = vpop.f32.mrb[14].mxu1  ;;  %v26102_v29 = vpop.f32.mrb[13].mxu0 }
0x2e42   : > { %v22331_v52 = vmul.f32 0.17677669, %v22243_v22  ;;  %v26107_v63 = vpop.f32.mrb[15].mxu1 }
0x2e43   : > { %v22348_v59 = vsel %vm18234_vm6, %v22330_v0, -inf }
0x2e44   : > { %v22351_v13 = vsel %vm18234_vm6, %v22331_v52, -inf  ;;  %v22321_v36 = vpop.f32.mrb[14].mxu0 }
0x2e45   : > { %22352 = vmax.xlane.f32.xlu1 %v22351_v13  ;;  %22349 = vmax.xlane.f32.xlu0 %v22348_v59  ;;  %v22332_v54 = vmul.f32 0.17677669, %v22321_v36  ;;  %v26112_v16 = vpop.f32.mrb[15].mxu0 }
0x2e47   : > { %v22354_v7 = vsel %vm18234_vm6, %v22332_v54, -inf }
0x2e49   : > { %22355 = vmax.xlane.f32.xlu0 %v22354_v7 }
0x2e56   : > { %22421 = vrot.lane.b32.xlu1 %v29872_v4, %s31047_s24 }
0x2e5a   : > { %22575 = vrot.lane.b32.xlu1 %v29874_v3, %s31047_s24 }
0x2e5e   : > { %22652 = vrot.lane.b32.xlu1 %v29888_v62, %s31047_s24 }
0x2e5f   : > { %22498 = vrot.lane.b32.xlu0 %v29880_v6, %s31047_s24 }
0x2e62   : > { %22806 = vrot.lane.b32.xlu1 %v29900_v45, %s31047_s24 }
0x2e63   : > { %22729 = vrot.lane.b32.xlu0 %v29892_v57, %s31047_s24 }
0x2ec6   : > { %v22335_v48 = vpop.xlane.xlu0 %22334 }
0x2ec7   : > { %v22357_v31 = vsub.f32 %v22325_v51, %v22335_v48 }
0x2ec9   : > { %v22365_v34 = vmul.f32 1.442695, %v22357_v31  ;;  %v22338_v24 = vpop.xlane.xlu1 %22337 }
0x2eca   : > { %v22341_v43 = vpop.xlane.xlu0 %22340  ;;  %v22358_v50 = vsub.f32 %v22326_v18, %v22338_v24 }
0x2ecb   : > { %26811 = vpow2.f32 %v22365_v34  ;;  %v22359_v21 = vsub.f32 %v22327_v5, %v22341_v43 }
0x2ecc   : > { %v22367_v44 = vmul.f32 1.442695, %v22358_v50 }
0x2ecd   : > { %v22369_v56 = vmul.f32 1.442695, %v22359_v21 }
0x2ece   : > { %26813 = vpow2.f32 %v22367_v44  ;;  %v22344_v28 = vpop.xlane.xlu0 %22343  ;;  %v22347_v32 = vpop.xlane.xlu1 %22346 }
0x2ecf   : > { %26815 = vpow2.f32 %v22369_v56  ;;  %v22360_v2 = vsub.f32 %v22328_v25, %v22344_v28  ;;  %v22361_v35 = vsub.f32 %v22329_v20, %v22347_v32 }
0x2ed1   : > { %v22371_v42 = vmul.f32 1.442695, %v22360_v2  ;;  %v22373_v41 = vmul.f32 1.442695, %v22361_v35 }
0x2ed2   : > { %v22350_v22 = vpop.xlane.xlu0 %22349  ;;  %v22353_v29 = vpop.xlane.xlu1 %22352 }
0x2ed3   : > { %26817 = vpow2.f32 %v22371_v42  ;;  %v22362_v51 = vsub.f32 %v22330_v0, %v22350_v22  ;;  %v22363_v63 = vsub.f32 %v22331_v52, %v22353_v29 }
0x2ed4   : > { %26819 = vpow2.f32 %v22373_v41 }
0x2ed5   : > { %v30630_v59 = vpop.eup %26811  ;;  %v22375_v18 = vmul.f32 1.442695, %v22362_v51  ;;  %v22377_v5 = vmul.f32 1.442695, %v22363_v63 }
0x2ed6   : > { %v22356_v13 = vpop.xlane.xlu0 %22355  ;;  %v22422_v36 = vpop.permute.xlu1 %22421  ;;  %v22381_v16 = vsel %vm18234_vm6, %v30630_v59, 0.0 }
0x2ed7   : > { %26821 = vpow2.f32 %v22375_v18  ;;  %v22364_v25 = vsub.f32 %v22332_v54, %v22356_v13  ;;  %22382 = vadd.xlane.f32.xlu1 %v22381_v16  ;;  %26114 = vmatpush3.msk.msra.mxu1 %vm18329_vm7, %v22422_v36 }
0x2ed8   : > { %v30635_v20 = vpop.eup %26813  ;;  %26823 = vpow2.f32 %v22377_v5  ;;  %26123 = vmatprep.subr.mxu1 %v26943_v14 }
0x2ed9   : > { %v30638_v0 = vpop.eup %26815  ;;  %v22379_v52 = vmul.f32 1.442695, %v22364_v25  ;;  %v22384_v7 = vsel %vm18234_vm6, %v30635_v20, 0.0  ;;  %v23102_v25 = vld [vmem:[#allocation2 + $0x60] sm:$0xff] }
0x2eda   : > { %v22499_v48 = vpop.permute.xlu0 %22498  ;;  %v22387_v31 = vsel %vm18234_vm6, %v30638_v0, 0.0  ;;  %22385 = vadd.xlane.f32.xlu0 %v22384_v7  ;;  %v23105_v7 = vld [vmem:[#allocation2 + $0x78] sm:$0xff] }
0x2edb   : > { %26825 = vpow2.f32 %v22379_v52  ;;  %22388 = vadd.xlane.f32.xlu1 %v22387_v31  ;;  %26119 = vmatpush3.msk.msra.mxu0 %vm18329_vm7, %v22499_v48  ;;  %v23104_v52 = vld [vmem:[#allocation2 + $0x70] sm:$0xff] }
0x2edc   : > { %26128 = vmatprep.subr.mxu0 %v26943_v14  ;;  %v26241_v48 = vpack.c.bf16 %v23105_v7, %v23104_v52 }
0x2edd   : > { %v30646_v54 = vpop.eup %26817 }
0x2ede   : > { %v30648_v34 = vpop.eup %26819  ;;  %v22390_v24 = vsel %vm18234_vm6, %v30646_v54, 0.0 }
0x2edf   : > { %22391 = vadd.xlane.f32.xlu0 %v22390_v24  ;;  %v22393_v43 = vsel %vm18234_vm6, %v30648_v34, 0.0 }
0x2ee0   : > { %22394 = vadd.xlane.f32.xlu1 %v22393_v43 }
0x2ee1   : > { %v30654_v50 = vpop.eup %26821 }
0x2ee2   : > { %v30656_v21 = vpop.eup %26823  ;;  %v22396_v44 = vsel %vm18234_vm6, %v30654_v50, 0.0 }
0x2ee3   : > { %22397 = vadd.xlane.f32.xlu0 %v22396_v44  ;;  %v22399_v56 = vsel %vm18234_vm6, %v30656_v21, 0.0 }
0x2ee4   : > { %22400 = vadd.xlane.f32.xlu1 %v22399_v56 }
0x2ee5   : > { %v30662_v28 = vpop.eup %26825 }
0x2ee6   : > { %v22402_v32 = vsel %vm18234_vm6, %v30662_v28, 0.0 }
0x2ee7   : > { %22403 = vadd.xlane.f32.xlu0 %v22402_v32 }
0x2ef5   : > { %22960 = vrot.lane.b32.xlu1 %v29908_v49, %s31047_s24 }
0x2ef9   : > { %20295 = vrot.lane.b32.xlu1 %v30400_v30, %s31048_s17 }
0x2efd   : > { %20299 = vrot.lane.b32.xlu1 %v30404_v8, %s31048_s17  ;;  %22883 = vrot.lane.b32.xlu0 %v29894_v40, %s31047_s24  ;;  %v22730_v8 = vpop.permute.xlu0 %22729 }
0x2f01   : > { %21671 = vrot.lane.b32.xlu1 %v30596_v39, %s31049_s12  ;;  %20293 = vrot.lane.b32.xlu0 %v30398_v61, %s31048_s17  ;;  %v22576_v61 = vpop.permute.xlu1 %22575 }
0x2f05   : > { %21675 = vrot.lane.b32.xlu1 %v30600_v26, %s31049_s12  ;;  %20297 = vrot.lane.b32.xlu0 %v30402_v12, %s31048_s17  ;;  %v22653_v30 = vpop.permute.xlu1 %22652 }
0x2f09   : > { %20303 = vrot.lane.b32.xlu1 %v30408_v23, %s31048_s17  ;;  %21669 = vrot.lane.b32.xlu0 %v30594_v60, %s31049_s12  ;;  %v22807_v12 = vpop.permute.xlu1 %22806 }
0x2f0d   : > { %20307 = vrot.lane.b32.xlu1 %v30412_v46, %s31048_s17  ;;  %21673 = vrot.lane.b32.xlu0 %v30598_v33, %s31049_s12 }
0x2f11   : > { %21679 = vrot.lane.b32.xlu1 %v30604_v19, %s31049_s12  ;;  %20301 = vrot.lane.b32.xlu0 %v30406_v1, %s31048_s17 }
0x2f15   : > { %21683 = vrot.lane.b32.xlu1 %v30608_v53, %s31049_s12  ;;  %20305 = vrot.lane.b32.xlu0 %v30410_v47, %s31048_s17 }
0x2f19   : > { %21677 = vrot.lane.b32.xlu0 %v30602_v58, %s31049_s12 }
0x2f1d   : > { %21681 = vrot.lane.b32.xlu0 %v30606_v55, %s31049_s12 }
0x2f64   : > { %v22383_v23 = vpop.xlane.xlu1 %22382 }
0x2f65   : > { %26827 = vrcp.f32 %v22383_v23 }
0x2f67   : > { %v22386_v46 = vpop.xlane.xlu0 %22385 }
0x2f68   : > { %26829 = vrcp.f32 %v22386_v46  ;;  %v22389_v1 = vpop.xlane.xlu1 %22388 }
0x2f69   : > { %26831 = vrcp.f32 %v22389_v1 }
0x2f6c   : > { %v22392_v60 = vpop.xlane.xlu0 %22391 }
0x2f6d   : > { %26833 = vrcp.f32 %v22392_v60  ;;  %v22395_v39 = vpop.xlane.xlu1 %22394 }
0x2f6e   : > { %26835 = vrcp.f32 %v22395_v39 }
0x2f6f   : > { %v26828_v47 = vpop.eup %26827 }
0x2f70   : > { %v22413_v33 = vmul.f32 %v26828_v47, %v30630_v59  ;;  %v22398_v26 = vpop.xlane.xlu0 %22397 }
0x2f71   : > { %26837 = vrcp.f32 %v22398_v26  ;;  %v22401_v58 = vpop.xlane.xlu1 %22400 }
0x2f72   : > { %v26830_v19 = vpop.eup %26829  ;;  %26839 = vrcp.f32 %v22401_v58  ;;  %26116 = vmatmul.mubr.msk.f32.vlgmr.msra.gmra.mrb[16].mxu1 %vm18325_vm8, %v22413_v33 }
0x2f73   : > { %v26832_v55 = vpop.eup %26831  ;;  %v22414_v53 = vmul.f32 %v26830_v19, %v30635_v20  ;;  %26124 = vmatpush3.msk.msra.mxu1 %vm18329_vm7, %v22576_v61  ;;  %26125 = vmatprep.mubr.msk.f32.mxu1 %vm26944_vm1, %v26943_v14  ;;  %v23103_v20 = vld [vmem:[#allocation2 + $0x68] sm:$0xff] }
0x2f74   : > { %v22415_v2 = vmul.f32 %v26832_v55, %v30638_v0  ;;  %v22404_v35 = vpop.xlane.xlu0 %22403  ;;  %26133 = vmatprep.subr.mxu1 %v26943_v14  ;;  %v26237_v0 = vpack.c.bf16 %v23103_v20, %v23102_v25 }
0x2f75   : > { %26841 = vrcp.f32 %v22404_v35  ;;  %26121 = vmatmul.mubr.msk.f32.vlgmr.msra.gmra.mrb[16].mxu0 %vm18325_vm8, %v22414_v53  ;;  %v22961_v13 = vpop.permute.xlu1 %22960 }
0x2f76   : > { %26126 = vmatmul.mubr.msk.f32.vlgmr.msra.gmra.mrb[18].mxu1 %vm18325_vm8, %v22415_v2  ;;  %26129 = vmatpush3.msk.msra.mxu0 %vm18329_vm7, %v22653_v30 }
0x2f77   : > { %v26834_v42 = vpop.eup %26833  ;;  %26134 = vmatpush3.msk.msra.mxu1 %vm18329_vm7, %v22730_v8  ;;  %26130 = vmatprep.mubr.msk.f32.mxu0 %vm26944_vm1, %v26943_v14 }
0x2f78   : > { %v26836_v41 = vpop.eup %26835  ;;  %v22416_v22 = vmul.f32 %v26834_v42, %v30646_v54  ;;  %26135 = vmatprep.mubr.msk.f32.mxu1 %vm26944_vm1, %v26943_v14  ;;  %26138 = vmatprep.subr.mxu0 %v26943_v14  ;;  %v22884_v51 = vpop.permute.xlu0 %22883 }
0x2f79   : > { %v22417_v29 = vmul.f32 %v26836_v41, %v30648_v34  ;;  %26143 = vmatprep.subr.mxu1 %v26943_v14  ;;  %v20296_v46 = vpop.permute.xlu1 %20295 }
0x2f7a   : > { %26131 = vmatmul.mubr.msk.f32.vlgmr.msra.gmra.mrb[18].mxu0 %vm18325_vm8, %v22416_v22  ;;  %v20318_v22 = vadd.f32 %v20296_v46, %v29880_v6 }
0x2f7b   : > { %v26838_v63 = vpop.eup %26837  ;;  %26136 = vmatmul.mubr.msk.f32.vlgmr.msra.gmra.mrb[20].mxu1 %vm18325_vm8, %v22417_v29  ;;  %26139 = vmatpush3.msk.msra.mxu0 %vm18329_vm7, %v22807_v12 }
0x2f7c   : > { %v26840_v59 = vpop.eup %26839  ;;  %v22418_v18 = vmul.f32 %v26838_v63, %v30654_v50  ;;  %26144 = vmatpush3.msk.msra.mxu1 %vm18329_vm7, %v22884_v51  ;;  %26140 = vmatprep.mubr.msk.f32.mxu0 %vm26944_vm1, %v26943_v14  ;;  %v20294_v23 = vpop.permute.xlu0 %20293 }
0x2f7d   : > { %v22419_v5 = vmul.f32 %v26840_v59, %v30656_v21  ;;  %26145 = vmatprep.mubr.msk.f32.mxu1 %vm26944_vm1, %v26943_v14  ;;  %26148 = vmatprep.subr.mxu0 %v26943_v14  ;;  %v20300_v60 = vpop.permute.xlu1 %20299  ;;  %v20317_v29 = vadd.f32 %v20294_v23, %v29872_v4 }
0x2f7e   : > { %26141 = vmatmul.mubr.msk.f32.vlgmr.msra.gmra.mrb[20].mxu0 %vm18325_vm8, %v22418_v18  ;;  %26238 = vmatprep.subr.bf16.mxu1 %v26237_v0  ;;  %v18941_v18 = vadd.f32 %v30157_v37, %v29872_v4  ;;  %v20320_v52 = vadd.f32 %v20300_v60, %v29888_v62 }
0x2f7f   : > { %v26842_v36 = vpop.eup %26841  ;;  %26146 = vmatmul.mubr.msk.f32.vlgmr.msra.gmra.mrb[22].mxu1 %vm18325_vm8, %v22419_v5  ;;  %26149 = vmatpush3.msk.msra.mxu0 %vm18329_vm7, %v22961_v13  ;;  %v18942_v5 = vadd.f32 %v30159_v11, %v29880_v6 }
0x2f80   : > { %v22420_v16 = vmul.f32 %v26842_v36, %v30662_v28  ;;  %26150 = vmatprep.mubr.msk.f32.mxu0 %vm26944_vm1, %v26943_v14  ;;  %26240 = vmatpush3.bf16.msra.mxu1 %v26237_v0  ;;  %v20298_v1 = vpop.permute.xlu0 %20297  ;;  %v23077_v25 = vsel %vm473_vm2, %v18941_v18, %v20317_v29  ;;  %v23243_v18 = vld [vmem:[%s30988_s6] sm:$0xff] }
0x2f81   : > { %26242 = vmatprep.subr.bf16.mxu1 %v26241_v48  ;;  %v21672_v47 = vpop.permute.xlu1 %21671  ;;  %v20319_v7 = vadd.f32 %v20298_v1, %v29874_v3 }
0x2f82   : > { %26151 = vmatmul.mubr.msk.f32.vlgmr.msra.gmra.mrb[22].mxu0 %vm18325_vm8, %v22420_v16  ;;  %v21694_v63 = vadd.f32 %v21672_v47, %v29880_v6  ;;  %v23078_v16 = vsel %vm473_vm2, %v18942_v5, %v20318_v22 }
0x2f84   : > { %26244 = vmatpush3.bf16.msra.mxu1 %v26241_v48  ;;  %v21670_v39 = vpop.permute.xlu0 %21669  ;;  %v23086_v48 = vsel %vm5911_vm3, %v23078_v16, %v21694_v63 }
0x2f85   : > { %v21676_v26 = vpop.permute.xlu1 %21675  ;;  %v21693_v59 = vadd.f32 %v21670_v39, %v29872_v4 }
0x2f86   : > { %v21696_v11 = vadd.f32 %v21676_v26, %v29888_v62 }
0x2f87   : > { %v23085_v37 = vsel %vm5911_vm3, %v23077_v25, %v21693_v59  ;;  %v24127_v25 = vld [vmem:[%s30987_s5 + $0x3] ss:$0 sm:$0xff] }
0x2f88   : > { %v21674_v33 = vpop.permute.xlu0 %21673 }
0x2f89   : > { %v20304_v19 = vpop.permute.xlu1 %20303 }
0x2f8c   : > { %v20302_v58 = vpop.permute.xlu0 %20301 }
0x2f8d   : > { %v20308_v53 = vpop.permute.xlu1 %20307 }
0x2f8e   : > { %v20324_v47 = vadd.f32 %v20308_v53, %v29908_v49 }
0x2f90   : > { %v20306_v55 = vpop.permute.xlu0 %20305 }
0x2f91   : > { %v21680_v35 = vpop.permute.xlu1 %21679 }
0x2f94   : > { %v21678_v2 = vpop.permute.xlu0 %21677 }
0x2f95   : > { %v21684_v41 = vpop.permute.xlu1 %21683 }
0x2f98   : > { %v21682_v42 = vpop.permute.xlu0 %21681 }
0x3045   : > { %v22494_v31 = vpop.f32.mrb[16].mxu1 }
0x3046   : > { %23045 = vrot.lane.b32.xlu0 %v22494_v31, %s31050_s10  ;;  %v26117_v54 = vpop.f32.mrb[17].mxu1 }
0x3048   : > { %v22571_v34 = vpop.f32.mrb[16].mxu0 }
0x3049   : > { %v22648_v24 = vpop.f32.mrb[18].mxu1  ;;  %v26122_v43 = vpop.f32.mrb[17].mxu0  ;;  %23047 = vrot.lane.b32.xlu1 %v22571_v34, %s31050_s10  ;;  %v18944_v34 = vadd.f32 %v30163_v15, %v29888_v62 }
0x304a   : > { %23049 = vrot.lane.b32.xlu0 %v22648_v24, %s31050_s10  ;;  %v26127_v14 = vpop.f32.mrb[19].mxu1 }
0x304b   : > { %v18946_v14 = vadd.f32 %v30167_v9, %v29900_v45  ;;  %v21698_v9 = vadd.f32 %v21680_v35, %v29900_v45 }
0x304d   : > { %v22725_v50 = vpop.f32.mrb[18].mxu0 }
0x304e   : > { %v22802_v21 = vpop.f32.mrb[20].mxu1  ;;  %23051 = vrot.lane.b32.xlu1 %v22725_v50, %s31050_s10  ;;  %v26132_v44 = vpop.f32.mrb[19].mxu0  ;;  %v20322_v50 = vadd.f32 %v20304_v19, %v29900_v45  ;;  %v21700_v19 = vadd.f32 %v21684_v41, %v29908_v49 }
0x304f   : > { %23053 = vrot.lane.b32.xlu0 %v22802_v21, %s31050_s10  ;;  %v26137_v56 = vpop.f32.mrb[21].mxu1  ;;  %v23080_v44 = vsel %vm473_vm2, %v18944_v34, %v20320_v52 }
0x3050   : > { %v23082_v46 = vsel %vm473_vm2, %v18946_v14, %v20322_v50 }
0x3051   : > { %v22879_v28 = vpop.f32.mrb[20].mxu0 }
0x3052   : > { %v22956_v32 = vpop.f32.mrb[22].mxu1  ;;  %23055 = vrot.lane.b32.xlu1 %v22879_v28, %s31050_s10  ;;  %v26142_v61 = vpop.f32.mrb[21].mxu0 }
0x3053   : > { %23057 = vrot.lane.b32.xlu0 %v22956_v32, %s31050_s10  ;;  %v26147_v30 = vpop.f32.mrb[23].mxu1  ;;  %v21697_v61 = vadd.f32 %v21678_v2, %v29892_v57  ;;  %v18948_v2 = vadd.f32 %v30171_v38, %v29908_v49 }
0x3054   : > { %v18945_v30 = vadd.f32 %v30165_v17, %v29892_v57 }
0x3055   : > { %v23033_v12 = vpop.f32.mrb[22].mxu0  ;;  %v23084_v29 = vsel %vm473_vm2, %v18948_v2, %v20324_v47 }
0x3056   : > { %23059 = vrot.lane.b32.xlu1 %v23033_v12, %s31050_s10  ;;  %v26152_v8 = vpop.f32.mrb[23].mxu0 }
0x30b8   : > { %v23046_v51 = vpop.permute.xlu0 %23045 }
0x30b9   : > { %v23069_v13 = vadd.f32 %v23046_v51, %v29872_v4  ;;  %v21695_v4 = vadd.f32 %v21674_v33, %v29874_v3  ;;  %v20323_v33 = vadd.f32 %v20306_v55, %v29894_v40 }
0x30bb   : > { %v23048_v36 = vpop.permute.xlu1 %23047  ;;  %v30767_v31 = vsel %vm5920_vm4, %v23085_v37, %v23069_v13  ;;  %v23245_v13 = vld [vmem:[%s30988_s6 + $0x10] sm:$0xff] }
0x30bc   : > { %v23050_v20 = vpop.permute.xlu0 %23049  ;;  %v23070_v0 = vadd.f32 %v23048_v36, %v29880_v6  ;;  %v18943_v6 = vadd.f32 %v30161_v10, %v29874_v3  ;;  %v20321_v10 = vadd.f32 %v20302_v58, %v29892_v57  ;;  %v23246_v36 = vld [vmem:[%s30988_s6 + $0x18] sm:$0xff] }
0x30bd   : > { %v23071_v24 = vadd.f32 %v23050_v20, %v29874_v3  ;;  %v23088_v3 = vsel %vm5911_vm3, %v23080_v44, %v21696_v11  ;;  %v26249_v16 = vpack.c.bf16 %v23246_v36, %v23245_v13 }
0x30be   : > { %v30770_v54 = vsel %vm5920_vm4, %v23086_v48, %v23070_v0  ;;  %v23079_v56 = vsel %vm473_vm2, %v18943_v6, %v20319_v7  ;;  %v23081_v39 = vsel %vm473_vm2, %v18945_v30, %v20321_v10 }
0x30bf   : > { %v23122_v43 = vcombine.low %v30767_v31, %v30770_v54  ;;  %v23087_v32 = vsel %vm5911_vm3, %v23079_v56, %v21695_v4  ;;  %v23089_v58 = vsel %vm5911_vm3, %v23081_v39, %v21697_v61 }
0x30c0   : > { %v23052_v21 = vpop.permute.xlu1 %23051  ;;  %v23095_v12 = vsel %vm5920_vm4, %v23087_v32, %v23071_v24 }
0x30c1   : > { %v23054_v28 = vpop.permute.xlu0 %23053  ;;  %v23072_v15 = vadd.f32 %v23052_v21, %v29888_v62  ;;  %26161 = vmatprep.mubr.msk.f32.mxu1 %vm340_vm0, %v23122_v43  ;;  %v18947_v62 = vadd.f32 %v30169_v27, %v29894_v40  ;;  %v21699_v27 = vadd.f32 %v21682_v42, %v29894_v40  ;;  %v23092_v42 = vsel %vm5911_vm3, %v23084_v29, %v21700_v19 }
0x30c2   : > { %v23073_v8 = vadd.f32 %v23054_v28, %v29892_v57  ;;  %v23090_v57 = vsel %vm5911_vm3, %v23082_v46, %v21698_v9 }
0x30c3   : > { %v23096_v23 = vsel %vm5920_vm4, %v23088_v3, %v23072_v15  ;;  %v23083_v51 = vsel %vm473_vm2, %v18947_v62, %v20323_v33  ;;  %v24132_v62 = vld [vmem:[%s30989_s7] ss:$0 sm:$0xff] }
0x30c4   : > { %v23123_v1 = vcombine.low %v23095_v12, %v23096_v23  ;;  %v23056_v60 = vpop.permute.xlu1 %23055  ;;  %v23097_v53 = vsel %vm5920_vm4, %v23089_v58, %v23073_v8  ;;  %v23091_v63 = vsel %vm5911_vm3, %v23083_v51, %v21699_v27 }
0x30c5   : > { %v23058_v17 = vpop.permute.xlu0 %23057  ;;  %v23074_v26 = vadd.f32 %v23056_v60, %v29900_v45 }
0x30c6   : > { %26162 = vmatmul.mubr.msk.f32.vlgmr.msra.gmra.mrb[24].mxu1 %vm340_vm0, %v23123_v1  ;;  %v23075_v55 = vadd.f32 %v23058_v17, %v29894_v40 }
0x30c7   : > { %v23098_v35 = vsel %vm5920_vm4, %v23090_v57, %v23074_v26 }
0x30c8   : > { %v23124_v45 = vcombine.low %v23097_v53, %v23098_v35  ;;  %v23060_v22 = vpop.permute.xlu1 %23059  ;;  %v23099_v38 = vsel %vm5920_vm4, %v23091_v63, %v23075_v55 }
0x30c9   : > { %v23076_v41 = vadd.f32 %v23060_v22, %v29908_v49  ;;  %v23244_v49 = vld [vmem:[%s30988_s6 + $0x8] sm:$0xff] }
0x30ca   : > { %26164 = vmatprep.mubr.msk.f32.mxu1 %vm340_vm0, %v23124_v45  ;;  %v26245_v5 = vpack.c.bf16 %v23244_v49, %v23243_v18 }
0x30cb   : > { %v23100_v40 = vsel %vm5920_vm4, %v23092_v42, %v23076_v41 }
0x30cc   : > { %v23125_v59 = vcombine.low %v23099_v38, %v23100_v40  ;;  %26246 = vmatprep.subr.bf16.mxu0 %v26245_v5 }
0x30cd   : > { %26248 = vmatpush3.bf16.msra.mxu0 %v26245_v5 }
0x30ce   : > { %26165 = vmatmul.mubr.msk.f32.gmra.mrb[26].mxu1 %vm340_vm0, %v23125_v59  ;;  %26250 = vmatprep.subr.bf16.mxu0 %v26249_v16 }
0x30d1   : > { %26252 = vmatpush3.bf16.msra.mxu0 %v26249_v16 }
0x3199   : > { %v26163_v20 = vpop.f32.mrb[24].mxu1 }
0x319a   : > { %v23206_v0 = vadd.f32 %v26163_v20, %v24127_v25  ;;  %v23200_v52 = vpop.f32.mrb[25].mxu1 }
0x319b   : > { %v23201_v7 = vadd.f32 %v24127_v25, %v23200_v52 }
0x319c   : > { %v23220_v48 = vmax.f32 %v23206_v0, 0.0 }
0x319d   : > { %v23219_v37 = vmax.f32 %v23201_v7, 0.0 }
0x319e   : > { %v23228_v11 = vcombine.high %v23220_v48, %v23220_v48  ;;  %v23237_v14 = vadd.f32 %v23220_v48, %v23095_v12  ;;  %v23367_v12 = vlaneseq }
0x319f   : > { %v23227_v4 = vcombine.high %v23219_v37, %v23219_v37  ;;  %v23235_v34 = vadd.f32 %v23219_v37, %v30767_v31 }
0x31a0   : > { %v23238_v6 = vadd.f32 %v23228_v11, %v23096_v23  ;;  %v23368_v23 = vshrl.u32 %v23367_v12, 7 }
0x31a1   : > { %v23236_v24 = vadd.f32 %v23227_v4, %v30770_v54  ;;  %v26166_v43 = vpop.f32.mrb[26].mxu1 }
0x31a2   : > { %v23216_v50 = vadd.f32 %v26166_v43, %v24127_v25  ;;  %v23210_v21 = vpop.f32.mrb[27].mxu1  ;;  %v23263_v10 = vcombine.low %v23237_v14, %v23238_v6  ;;  %v30846_v46 = vsub.s32 0, %v23368_v23  ;;  %v30848_v60 = vsub.s32 1, %v23368_v23 }
0x31a3   : > { %v23262_v44 = vcombine.low %v23235_v34, %v23236_v24  ;;  %v23211_v56 = vadd.f32 %v24127_v25, %v23210_v21  ;;  %v30850_v39 = vsub.s32 2, %v23368_v23  ;;  %v30854_v33 = vsub.s32 3, %v23368_v23 }
0x31a4   : > { %v23222_v28 = vmax.f32 %v23216_v50, 0.0 }
0x31a5   : > { %v23221_v15 = vmax.f32 %v23211_v56, 0.0  ;;  %26175 = vmatprep.mubr.msk.f32.mxu0 %vm340_vm0, %v23262_v44 }
0x31a6   : > { %v23230_v3 = vcombine.high %v23222_v28, %v23222_v28  ;;  %26176 = vmatmul.mubr.msk.f32.vlgmr.msra.gmra.mrb[24].mxu0 %vm340_vm0, %v23263_v10  ;;  %v23241_v30 = vadd.f32 %v23222_v28, %v23099_v38 }
0x31a7   : > { %v23229_v32 = vcombine.high %v23221_v15, %v23221_v15  ;;  %v23239_v61 = vadd.f32 %v23221_v15, %v23097_v53 }
0x31a8   : > { %v23242_v9 = vadd.f32 %v23230_v3, %v23100_v40 }
0x31a9   : > { %v23240_v31 = vadd.f32 %v23229_v32, %v23098_v35 }
0x31aa   : > { %v23265_v8 = vcombine.low %v23241_v30, %v23242_v9 }
0x31ab   : > { %v23264_v54 = vcombine.low %v23239_v61, %v23240_v31 }
0x31ad   : > { %26178 = vmatprep.mubr.msk.f32.mxu0 %vm340_vm0, %v23264_v54 }
0x31ae   : > { %26179 = vmatmul.mubr.msk.f32.gmra.mrb[26].mxu0 %vm340_vm0, %v23265_v8 }
0x3279   : > { %v26177_v1 = vpop.f32.mrb[24].mxu0 }
0x327a   : > { %v30852_v47 = vadd.f32 %v26177_v1, %v24132_v62  ;;  %v23340_v17 = vpop.f32.mrb[25].mxu0 }
0x327b   : > { %v23341_v26 = vadd.f32 %v24132_v62, %v23340_v17 }
0x327c   : > { %v30858_v57 = vcombine.high %v30852_v47, %v30852_v47  ;;  %v23378_v58 = vrot.slane %v30852_v47, %v30846_v46  ;;  %v23425_v19 = vrot.slane %v30852_v47, %v30848_v60  ;;  %v23467_v27 = vrot.slane %v30852_v47, %v30850_v39 }
0x327d   : > { %v23363_v2 = vcombine.high %v23341_v26, %v23341_v26  ;;  %v23370_v53 = vrot.slane %v23341_v26, %v30846_v46  ;;  %v23509_v55 = vrot.slane %v30852_v47, %v30854_v33  ;;  %v23417_v35 = vrot.slane %v23341_v26, %v30848_v60 }
0x327e   : > { %v23459_v45 = vrot.slane %v23341_v26, %v30850_v39  ;;  %v23501_v22 = vrot.slane %v23341_v26, %v30854_v33  ;;  %v23471_v63 = vrot.slane %v30858_v57, %v30850_v39  ;;  %v23429_v38 = vrot.slane %v30858_v57, %v30848_v60 }
0x327f   : > { %v23374_v29 = vrot.slane %v23363_v2, %v30846_v46  ;;  %v23421_v51 = vrot.slane %v23363_v2, %v30848_v60  ;;  %v23463_v41 = vrot.slane %v23363_v2, %v30850_v39  ;;  %v23505_v42 = vrot.slane %v23363_v2, %v30854_v33 }
0x3280   : > { %v23513_v40 = vrot.slane %v30858_v57, %v30854_v33  ;;  %v23382_v59 = vrot.slane %v30858_v57, %v30846_v46 }
0x3281   : > { %v26180_v18 = vpop.f32.mrb[26].mxu0  ;;  %v23488_v49 = vsel %vm23399_vm9, %v23463_v41, %v23459_v45  ;;  %v23446_v5 = vsel %vm23399_vm9, %v23421_v51, %v23417_v35  ;;  %v23530_v13 = vsel %vm23399_vm9, %v23505_v42, %v23501_v22  ;;  %v23400_v36 = vsel %vm23399_vm9, %v23374_v29, %v23370_v53 }
0x3282   : > { %v23356_v16 = vadd.f32 %v26180_v18, %v24132_v62  ;;  %v23350_v25 = vpop.f32.mrb[27].mxu0  ;;  %v23489_v20 = vsel %vm23401_vm10, %v23467_v27, %v23488_v49  ;;  %v23447_v0 = vsel %vm23401_vm10, %v23425_v19, %v23446_v5  ;;  %v23531_v52 = vsel %vm23401_vm10, %v23509_v55, %v23530_v13 }
0x3283   : > { %v23351_v7 = vadd.f32 %v24132_v62, %v23350_v25  ;;  %v23490_v48 = vsel %vm23403_vm11, %v23471_v63, %v23489_v20  ;;  %v23448_v37 = vsel %vm23403_vm11, %v23429_v38, %v23447_v0  ;;  %v23532_v11 = vsel %vm23403_vm11, %v23513_v40, %v23531_v52 }
0x3284   : > { %v23366_v4 = vcombine.high %v23356_v16, %v23356_v16  ;;  %v23483_v6 = vrot.slane %v23356_v16, %v30850_v39  ;;  %v23441_v34 = vrot.slane %v23356_v16, %v30848_v60  ;;  %v23525_v24 = vrot.slane %v23356_v16, %v30854_v33 }
0x3285   : > { %v23365_v43 = vcombine.high %v23351_v7, %v23351_v7  ;;  %v23386_v14 = vrot.slane %v23351_v7, %v30846_v46  ;;  %v23433_v50 = vrot.slane %v23351_v7, %v30848_v60  ;;  %v23475_v21 = vrot.slane %v23351_v7, %v30850_v39 }
0x3286   : > { %v23517_v44 = vrot.slane %v23351_v7, %v30854_v33  ;;  %v23487_v56 = vrot.slane %v23366_v4, %v30850_v39  ;;  %v23445_v10 = vrot.slane %v23366_v4, %v30848_v60  ;;  %v23529_v28 = vrot.slane %v23366_v4, %v30854_v33 }
0x3287   : > { %v23479_v15 = vrot.slane %v23365_v43, %v30850_v39  ;;  %v23491_v3 = vsel %vm23405_vm12, %v23475_v21, %v23490_v48  ;;  %v23437_v32 = vrot.slane %v23365_v43, %v30848_v60  ;;  %v23449_v9 = vsel %vm23405_vm12, %v23433_v50, %v23448_v37 }
0x3288   : > { %v23521_v61 = vrot.slane %v23365_v43, %v30854_v33  ;;  %v23533_v31 = vsel %vm23405_vm12, %v23517_v44, %v23532_v11  ;;  %v23394_v30 = vrot.slane %v23356_v16, %v30846_v46  ;;  %v23398_v54 = vrot.slane %v23366_v4, %v30846_v46 }
0x3289   : > { %v23492_v8 = vsel %vm23407_vm13, %v23479_v15, %v23491_v3  ;;  %v23450_v12 = vsel %vm23407_vm13, %v23437_v32, %v23449_v9  ;;  %v23402_v23 = vsel %vm23401_vm10, %v23378_v58, %v23400_v36  ;;  %v23390_v62 = vrot.slane %v23365_v43, %v30846_v46 }
0x328a   : > { %v23493_v1 = vsel %vm23409_vm14, %v23483_v6, %v23492_v8  ;;  %v23451_v60 = vsel %vm23409_vm14, %v23441_v34, %v23450_v12  ;;  %v23534_v39 = vsel %vm23407_vm13, %v23521_v61, %v23533_v31  ;;  %v23404_v47 = vsel %vm23403_vm11, %v23382_v59, %v23402_v23 }
0x328b   : > { %v23494_v33 = vsel %vm23411_vm15, %v23487_v56, %v23493_v1  ;;  %v23452_v17 = vsel %vm23411_vm15, %v23445_v10, %v23451_v60  ;;  %v23535_v26 = vsel %vm23409_vm14, %v23525_v24, %v23534_v39  ;;  %v23406_v57 = vsel %vm23405_vm12, %v23386_v14, %v23404_v47 }
0x328c   : > { %23495 = vrot.lane.b32.xlu1 %v23494_v33, %s31049_s12  ;;  %23453 = vrot.lane.b32.xlu0 %v23452_v17, %s31048_s17  ;;  %v23536_v46 = vsel %vm23411_vm15, %v23529_v28, %v23535_v26  ;;  %v23408_v58 = vsel %vm23407_vm13, %v23390_v62, %v23406_v57  ;;  %s24138_s12 = sshll.u32 %s27026_s9, 7  ;;  %s23558_s17 = sshll.u32 %s314_s11, 4  ;;  %s30940_s17 = int_to_ptr.vmem [resolvable:$true] %s23558_s17 }
0x328d   : > { %v23410_v19 = vsel %vm23409_vm14, %v23394_v30, %v23408_v58  ;;  %s30938_s13 = scalar_lea.hbm %s30990_s8, %s24138_s12  ;;  %s23545_s9 = scalar_lea.sflag [#allocation4], %s312_s25 }
0x328e   : > { %v23412_v27 = vsel %vm23411_vm15, %v23398_v54, %v23410_v19  ;;  %p26879_p2 = scmp.lt.s32.totalorder %s30940_s17, %s26877_s21 }
0x3290   : > { %23537 = vrot.lane.b32.xlu0 %v23536_v46, %s31050_s10  ;;  %s26872_s10 = scalar_lea.vmem %s30940_s17, 128 }
0x3291   : > { %p26873_p6 = scmp.ne.s32.totalorder %s30940_s17, %s26872_s10  ;;  %p26880_p3 = scmp.lt.s32.totalorder %s26878_s22, %s26872_s10 }
0x3293   : > { %p26874_p10 = pnand %p26873_p6, %p31057_p9  ;;  %p26881_p4 = por %p26880_p3, %p26879_p2 }
0x3295   : > { %p26875_p12 = pneg %p26874_p10 }
0x3297   : > { %p26882_p7 = pnand %p26881_p4, %p26875_p12 }
0x32fe   : > { %v23454_v2 = vpop.permute.xlu0 %23453  ;;  %v23496_v53 = vpop.permute.xlu1 %23495 }
0x32ff   : > { %v23540_v55 = vsel %vm473_vm2, %v23412_v27, %v23454_v2 }
0x3300   : > { %v23541_v45 = vsel %vm5911_vm3, %v23540_v55, %v23496_v53 }
0x3302   : > { %v23538_v35 = vpop.permute.xlu0 %23537 }
0x3303   : > { %v23542_v22 = vsel %vm5920_vm4, %v23541_v45, %v23538_v35 }
0x3304   : > { %23543 = vst.msk [vmem:[%s314_s11] sm:$0xff] %vm340_vm0, %v23542_v22 }
0x3305   : > { %26885 = shalt.err (!%p26882_p7)
}
0x3306   : > { %s26886_s23 = scalar_lea.hbm %s30938_s13, 128  ;;  %s26890_s0 = scalar_lea.hbm %s30990_s8, 256 }
0x3307   : > { %p26887_p8 = scmp.ne.s32.totalorder %s30938_s13, %s26886_s23  ;;  %p26891_p1 = scmp.lt.u32.totalorder %s30938_s13, %s30990_s8 }
0x3308   : > { %p26892_p0 = scmp.lt.u32.totalorder %s26890_s0, %s26886_s23  ;;  %p26894_p6 = scmp.lt.u32.totalorder %s26886_s23, %s30938_s13 }
0x3309   : > { %p26888_p11 = pnand %p26887_p8, %p31057_p9 }
0x330a   : > { %p26893_p5 = por %p26892_p0, %p26891_p1 }
0x330b   : > { %p26889_p13 = pneg %p26888_p11 }
0x330c   : > { %p26895_p10 = por %p26894_p6, %p26893_p5 }
0x330e   : > { %p26896_p12 = pnand %p26895_p10, %p26889_p13 }
0x3310   : > { %26899 = shalt.err (!%p26896_p12)
}
0x3311   : > { %26257 = dma.vmem_to_hbm [thread:$0]  (%p31057_p9), %s30940_s17, 128, %s30938_s13, %s23545_s9  }
0x3312 PF: > { %s31058_s29 = sld [smem:[#allocation11_spill]]  ;;  %p26269_p2 = scmp.ge.s32.totalorder %s26938_s30, 2 }
0x3313   : > { %s23570_s14 = sand.u32 1, %s26926_s27  }
0x3314   : > { %s23571_s25 = scalar_lea.sflag [#allocation4], %s23570_s14 }
0x3318   : > { %p31059_p3 = scmp.ne.s32.totalorder %s31058_s29, 0 }
0x331a   : > { %p26264_p4 = pnand %p26269_p2, %p31059_p3 }
0x331c   : > { %26921 = dma.done.wait (!%p26264_p4), %s23571_s25, 128  }
0x331d   : > { %26923 = vsyncadd (!%p26264_p4), %s23571_s25, 4294967168  ;;  %s31060_s30 = sld [smem:[#allocation9_spill]]  ;;  %s31061_s1 = sld [smem:[#allocation8_spill]] }
0x331e   : > { %s31062_s29 = sld [smem:[#allocation10_spill]]  ;;  %s31063_s27 = smov %s26930_s28 }
0x3323   : > { %p19_p7 = scmp.ge.s32.totalorder %s31060_s30, 4   ;;  %s31064_s28 = smov %s31061_s1 }
0x3325   :  { %21 = sbr.rel (!%p19_p7) target bundleno = 8 (0x8), region = 104 }
0x332c   :  { %23576 = vsyncpa [#allocation3], 1 }
0x332d   :  { %23578 = vsyncpa [#allocation3 + $0x1], 1 }
0x332e   :  { %23579 = vsyncpa [#allocation4], 1 }
0x332f   :  { %23581 = vsyncpa [#allocation4 + $0x1], 1 }

</bundles_post_ra>
